<compile_context>
chip_gen: v7x
topology: tpu7x:2x2x1
jax: 0.10.0
libtpu: 0.0.40
codegen_flags: <defaults>
</compile_context>

<pallas_src>
import numpy as np
import jax
import jax.numpy as jnp
from jax.experimental import pallas as pl
from jax.experimental.pallas import tpu as pltpu

# Model hyper-parameters implied by ConvModule_7's forward pass.
CIN, COUT, K = 3, 32, 7
NUM_CLASSES = 3
H, W = 100, 100                     # avg_pool2d(out, 94) => conv output 94x94 => input 100x100
OH, OW = H - K + 1, W - K + 1       # 94, 94
M = OH * OW                         # 8836 spatial positions
BN_EPS = 1e-5

RPAD = 32                           # (ci, kw) rows: 21 -> 32 (two bf16 sublane tiles)
KPAD = K * RPAD                     # 224 contraction rows after the in-kernel kh expansion
WCOL = 128                          # ow lane width (OW=94 padded to one lane tile)
XS_COLS = H * WCOL                  # 12800 columns of the kw-im2col slab
P_COLS = OH * WCOL                  # 12032 columns of the matmul / conv output
W_PAD_IN = WCOL + K - 1             # 134: image width padded so every kw shift stays in bounds


def conv_bn_relu_pool_fc_kernel(xs_ref, w_ref, shift_ref, fcw_ref, fcb_ref,
                                o_ref, p_ref):
    # In-kernel kh expansion: p[kh*32 + (ci*7+kw), oh*128+ow] = xs[ci*7+kw, (oh+kh)*128+ow].
    # All source/destination offsets are multiples of (32 rows, 128 lanes) -> aligned copies.
    for kh in range(K):
        p_ref[kh * RPAD:(kh + 1) * RPAD, :] = xs_ref[0, :, kh * WCOL: kh * WCOL + P_COLS]

    # Conv2d as a single im2col matmul (BN scale pre-folded into the weights):
    # (COUT, 224) bf16 @ (224, 12032) bf16 -> (COUT, 12032) f32 on the MXU, f32 accumulation.
    conv = jnp.dot(w_ref[...], p_ref[...], preferred_element_type=jnp.float32)

    # BN shift (conv bias folded in) + ReLU.
    y = jnp.maximum(conv + shift_ref[...], 0.0)                        # (COUT, P_COLS)

    # Mask the ow >= 94 padding lanes (they hold shifted image values, not conv outputs).
    col = jax.lax.broadcasted_iota(jnp.int32, (1, P_COLS), 1)
    y = jnp.where((col & (WCOL - 1)) < OW, y, 0.0)

    # Global average pool over the 94x94 map (== avg_pool2d(.,94) + squeeze), then Linear(32 -> 3).
    pooled = jnp.sum(y, axis=1, keepdims=True) * (1.0 / M)             # (COUT, 1)
    logits = jnp.dot(fcw_ref[...], pooled,
                     preferred_element_type=jnp.float32,
                     precision=jax.lax.Precision.HIGHEST) + fcb_ref[...]   # (NUM_CLASSES, 1)
    o_ref[0] = logits


def _kw_im2col(x):
    # x: (N, CIN, H, W) f32 -> (N, RPAD, H*128) bf16 with
    # xs[n, ci*K + kw, h*128 + ow] = x[n, ci, h, ow + kw]  (zero where ow + kw >= W).
    n = x.shape[0]
    xb = x.astype(jnp.bfloat16)
    xp = jnp.pad(xb, ((0, 0), (0, 0), (0, 0), (0, W_PAD_IN - W)))      # (N, CIN, H, 134)
    cols = [xp[:, :, :, kw:kw + WCOL] for kw in range(K)]              # K x (N, CIN, H, 128)
    xs = jnp.stack(cols, axis=2)                                       # (N, CIN, K, H, 128)
    xs = xs.reshape(n, CIN * K, H * WCOL)                              # (N, 21, 12800)
    return jnp.pad(xs, ((0, 0), (0, RPAD - CIN * K), (0, 0)))          # (N, 32, 12800)


def _fold_params(params):
    w, b = params["conv_w"], params["conv_b"]
    inv_std = params["bn_gamma"] / jnp.sqrt(params["bn_var"] + BN_EPS)             # (COUT,)
    # Fold BN scale into the conv weights; reorder to [co, kh*RPAD + (ci*K + kw)].
    ws = w * inv_std[:, None, None, None]                                          # (COUT,CIN,K,K)
    w2 = jnp.transpose(ws, (0, 2, 1, 3)).reshape(COUT, K, CIN * K)                 # (COUT,K,21)
    w2 = jnp.pad(w2, ((0, 0), (0, 0), (0, RPAD - CIN * K)))                        # (COUT,K,32)
    w2 = w2.reshape(COUT, KPAD).astype(jnp.bfloat16)                               # (COUT,224)
    # Fold conv bias + BN mean/beta into a per-channel shift.
    shift = ((b - params["bn_mean"]) * inv_std + params["bn_beta"]).reshape(COUT, 1)
    shift = shift.astype(jnp.float32)
    fcw = params["fc_w"].astype(jnp.float32)                                       # (3, COUT)
    fcb = params["fc_b"].reshape(NUM_CLASSES, 1).astype(jnp.float32)               # (3, 1)
    return w2, shift, fcw, fcb


@jax.jit
def conv_module_7_forward(x, params):
    n = x.shape[0]
    xs = _kw_im2col(x)                                                 # (N, 32, 12800) bf16
    w2, shift, fcw, fcb = _fold_params(params)

    out = pl.pallas_call(
        conv_bn_relu_pool_fc_kernel,
        out_shape=jax.ShapeDtypeStruct((n, NUM_CLASSES, 1), jnp.float32),
        grid_spec=pltpu.PrefetchScalarGridSpec(
            num_scalar_prefetch=0,
            grid=(n,),                                                  # one image per grid step
            in_specs=[
                pl.BlockSpec((1, RPAD, XS_COLS), lambda i: (i, 0, 0)),      # streamed per image
                pl.BlockSpec((COUT, KPAD), lambda i: (0, 0)),               # resident
                pl.BlockSpec((COUT, 1), lambda i: (0, 0)),                  # resident
                pl.BlockSpec((NUM_CLASSES, COUT), lambda i: (0, 0)),        # resident
                pl.BlockSpec((NUM_CLASSES, 1), lambda i: (0, 0)),           # resident
            ],
            out_specs=pl.BlockSpec((1, NUM_CLASSES, 1), lambda i: (i, 0, 0)),
            scratch_shapes=[pltpu.VMEM((KPAD, P_COLS), jnp.bfloat16)],      # kh-expanded patches
        ),
        compiler_params=pltpu.CompilerParams(
            dimension_semantics=("parallel",),
            vmem_limit_bytes=32 * 1024 * 1024,
        ),
    )(xs, w2, shift, fcw, fcb)

    # Matches torch .squeeze() for batch > 1: (N, 32, 1, 1) -> (N, 32) -> Linear -> (N, 3).
    return out.reshape(n, NUM_CLASSES)


def init_params(key):
    ks = jax.random.split(key, 8)
    conv_w = jax.random.normal(ks[0], (COUT, CIN, K, K), jnp.float32) / np.sqrt(CIN * K * K)
    conv_b = 0.1 * jax.random.normal(ks[1], (COUT,), jnp.float32)
    bn_gamma = 1.0 + 0.1 * jax.random.normal(ks[2], (COUT,), jnp.float32)
    bn_beta = 0.1 * jax.random.normal(ks[3], (COUT,), jnp.float32)
    bn_mean = 0.1 * jax.random.normal(ks[4], (COUT,), jnp.float32)
    bn_var = 0.5 + 0.5 * jnp.abs(jax.random.normal(ks[5], (COUT,), jnp.float32))
    fc_w = jax.random.normal(ks[6], (NUM_CLASSES, COUT), jnp.float32) / np.sqrt(COUT)
    fc_b = 0.1 * jax.random.normal(ks[7], (NUM_CLASSES,), jnp.float32)
    return dict(conv_w=conv_w, conv_b=conv_b, bn_gamma=bn_gamma, bn_beta=bn_beta,
                bn_mean=bn_mean, bn_var=bn_var, fc_w=fc_w, fc_b=fc_b)


def reference_forward(x, params):
    # Pure-JAX reference mirroring the PyTorch forward (BN in inference mode), full f32.
    conv = jax.lax.conv_general_dilated(
        x, params["conv_w"], window_strides=(1, 1), padding="VALID",
        dimension_numbers=("NCHW", "OIHW", "NCHW"),
        precision=jax.lax.Precision.HIGHEST)
    conv = conv + params["conv_b"][None, :, None, None]
    inv_std = params["bn_gamma"] / jnp.sqrt(params["bn_var"] + BN_EPS)
    y = (conv - params["bn_mean"][None, :, None, None]) * inv_std[None, :, None, None] \
        + params["bn_beta"][None, :, None, None]
    y = jnp.maximum(y, 0.0)
    pooled = jnp.mean(y, axis=(2, 3))                  # avg_pool2d(., 94) + squeeze -> (N, 32)
    return pooled @ params["fc_w"].T + params["fc_b"]  # (N, 3)


if __name__ == "__main__":
    key = jax.random.PRNGKey(0)
    kx, kp = jax.random.split(key)
    params = init_params(kp)
    x = jax.random.normal(kx, (2, CIN, H, W), jnp.float32)   # batch=2, NCHW like PyTorch

    out = conv_module_7_forward(x, params)
    out = jax.block_until_ready(out)

    ref = reference_forward(x, params)
    # bf16 MXU inputs with f32 accumulation (errors average out over the 94x94 pool); 2e-3 holds.
    np.testing.assert_allclose(np.asarray(out), np.asarray(ref), rtol=2e-3, atol=2e-3)
    print("KERNEL_OK")
</pallas_src>

<mosaic_0001>
module attributes {stable_mosaic.version = 11 : i64} {
  func.func @conv_bn_relu_pool_fc_kernel(%arg0: i32, %arg1: memref<1x32x12800xbf16, #tpu.memory_space<vmem>>, %arg2: memref<32x224xbf16, #tpu.memory_space<vmem>>, %arg3: memref<32x1xf32, #tpu.memory_space<vmem>>, %arg4: memref<3x32xf32, #tpu.memory_space<vmem>>, %arg5: memref<3x1xf32, #tpu.memory_space<vmem>>, %arg6: memref<1x3x1xf32, #tpu.memory_space<vmem>>, %arg7: memref<224x12032xbf16, #tpu.memory_space<vmem>>) attributes {dimension_semantics = [#tpu.dimension_semantics<parallel>], iteration_bounds = array<i64: 2>, scalar_prefetch = 0 : i64, scratch_operands = 1 : i64, tpu.core_type = #tpu.core_type<tc>, window_params = [{transform_indices = @transform_0, window_bounds = array<i64: 1, 32, 12800>}, {pipeline_mode = #tpu.pipeline_mode<synchronous>, transform_indices = @transform_1, window_bounds = array<i64: 32, 224>}, {pipeline_mode = #tpu.pipeline_mode<synchronous>, transform_indices = @transform_2, window_bounds = array<i64: 32, 1>}, {pipeline_mode = #tpu.pipeline_mode<synchronous>, transform_indices = @transform_3, window_bounds = array<i64: 3, 32>}, {pipeline_mode = #tpu.pipeline_mode<synchronous>, transform_indices = @transform_4, window_bounds = array<i64: 3, 1>}, {transform_indices = @transform_5, window_bounds = array<i64: 1, 3, 1>}]} {
    %c0 = arith.constant 0 : index
    %c0_0 = arith.constant 0 : index
    %c0_1 = arith.constant 0 : index
    %0 = vector.load %arg1[%c0, %c0_0, %c0_1] : memref<1x32x12800xbf16, #tpu.memory_space<vmem>>, vector<1x32x12032xbf16>
    %1 = vector.shape_cast %0 : vector<1x32x12032xbf16> to vector<32x12032xbf16>
    %c0_2 = arith.constant 0 : index
    %c0_3 = arith.constant 0 : index
    %2 = vector.load %arg7[%c0_2, %c0_3] : memref<224x12032xbf16, #tpu.memory_space<vmem>>, vector<32x12032xbf16>
    tpu.vector_store %arg7[%c0_2, %c0_3], %1 {strides = array<i32>} : memref<224x12032xbf16, #tpu.memory_space<vmem>>, vector<32x12032xbf16>,
    %c0_4 = arith.constant 0 : index
    %c0_5 = arith.constant 0 : index
    %c128 = arith.constant 128 : index
    %3 = vector.load %arg1[%c0_4, %c0_5, %c128] : memref<1x32x12800xbf16, #tpu.memory_space<vmem>>, vector<1x32x12032xbf16>
    %4 = vector.shape_cast %3 : vector<1x32x12032xbf16> to vector<32x12032xbf16>
    %c32 = arith.constant 32 : index
    %c0_6 = arith.constant 0 : index
    %5 = vector.load %arg7[%c32, %c0_6] : memref<224x12032xbf16, #tpu.memory_space<vmem>>, vector<32x12032xbf16>
    tpu.vector_store %arg7[%c32, %c0_6], %4 {strides = array<i32>} : memref<224x12032xbf16, #tpu.memory_space<vmem>>, vector<32x12032xbf16>,
    %c0_7 = arith.constant 0 : index
    %c0_8 = arith.constant 0 : index
    %c256 = arith.constant 256 : index
    %6 = vector.load %arg1[%c0_7, %c0_8, %c256] : memref<1x32x12800xbf16, #tpu.memory_space<vmem>>, vector<1x32x12032xbf16>
    %7 = vector.shape_cast %6 : vector<1x32x12032xbf16> to vector<32x12032xbf16>
    %c64 = arith.constant 64 : index
    %c0_9 = arith.constant 0 : index
    %8 = vector.load %arg7[%c64, %c0_9] : memref<224x12032xbf16, #tpu.memory_space<vmem>>, vector<32x12032xbf16>
    tpu.vector_store %arg7[%c64, %c0_9], %7 {strides = array<i32>} : memref<224x12032xbf16, #tpu.memory_space<vmem>>, vector<32x12032xbf16>,
    %c0_10 = arith.constant 0 : index
    %c0_11 = arith.constant 0 : index
    %c384 = arith.constant 384 : index
    %9 = vector.load %arg1[%c0_10, %c0_11, %c384] : memref<1x32x12800xbf16, #tpu.memory_space<vmem>>, vector<1x32x12032xbf16>
    %10 = vector.shape_cast %9 : vector<1x32x12032xbf16> to vector<32x12032xbf16>
    %c96 = arith.constant 96 : index
    %c0_12 = arith.constant 0 : index
    %11 = vector.load %arg7[%c96, %c0_12] : memref<224x12032xbf16, #tpu.memory_space<vmem>>, vector<32x12032xbf16>
    tpu.vector_store %arg7[%c96, %c0_12], %10 {strides = array<i32>} : memref<224x12032xbf16, #tpu.memory_space<vmem>>, vector<32x12032xbf16>,
    %c0_13 = arith.constant 0 : index
    %c0_14 = arith.constant 0 : index
    %c512 = arith.constant 512 : index
    %12 = vector.load %arg1[%c0_13, %c0_14, %c512] : memref<1x32x12800xbf16, #tpu.memory_space<vmem>>, vector<1x32x12032xbf16>
    %13 = vector.shape_cast %12 : vector<1x32x12032xbf16> to vector<32x12032xbf16>
    %c128_15 = arith.constant 128 : index
    %c0_16 = arith.constant 0 : index
    %14 = vector.load %arg7[%c128_15, %c0_16] : memref<224x12032xbf16, #tpu.memory_space<vmem>>, vector<32x12032xbf16>
    tpu.vector_store %arg7[%c128_15, %c0_16], %13 {strides = array<i32>} : memref<224x12032xbf16, #tpu.memory_space<vmem>>, vector<32x12032xbf16>,
    %c0_17 = arith.constant 0 : index
    %c0_18 = arith.constant 0 : index
    %c640 = arith.constant 640 : index
    %15 = vector.load %arg1[%c0_17, %c0_18, %c640] : memref<1x32x12800xbf16, #tpu.memory_space<vmem>>, vector<1x32x12032xbf16>
    %16 = vector.shape_cast %15 : vector<1x32x12032xbf16> to vector<32x12032xbf16>
    %c160 = arith.constant 160 : index
    %c0_19 = arith.constant 0 : index
    %17 = vector.load %arg7[%c160, %c0_19] : memref<224x12032xbf16, #tpu.memory_space<vmem>>, vector<32x12032xbf16>
    tpu.vector_store %arg7[%c160, %c0_19], %16 {strides = array<i32>} : memref<224x12032xbf16, #tpu.memory_space<vmem>>, vector<32x12032xbf16>,
    %c0_20 = arith.constant 0 : index
    %c0_21 = arith.constant 0 : index
    %c768 = arith.constant 768 : index
    %18 = vector.load %arg1[%c0_20, %c0_21, %c768] : memref<1x32x12800xbf16, #tpu.memory_space<vmem>>, vector<1x32x12032xbf16>
    %19 = vector.shape_cast %18 : vector<1x32x12032xbf16> to vector<32x12032xbf16>
    %c192 = arith.constant 192 : index
    %c0_22 = arith.constant 0 : index
    %20 = vector.load %arg7[%c192, %c0_22] : memref<224x12032xbf16, #tpu.memory_space<vmem>>, vector<32x12032xbf16>
    tpu.vector_store %arg7[%c192, %c0_22], %19 {strides = array<i32>} : memref<224x12032xbf16, #tpu.memory_space<vmem>>, vector<32x12032xbf16>,
    %c0_23 = arith.constant 0 : index
    %c0_24 = arith.constant 0 : index
    %21 = vector.load %arg2[%c0_23, %c0_24] : memref<32x224xbf16, #tpu.memory_space<vmem>>, vector<32x224xbf16>
    %c0_25 = arith.constant 0 : index
    %c0_26 = arith.constant 0 : index
    %22 = vector.load %arg7[%c0_25, %c0_26] : memref<224x12032xbf16, #tpu.memory_space<vmem>>, vector<224x12032xbf16>
    %cst = arith.constant dense<0.000000e+00> : vector<32x12032xf32>
    %23 = tpu.matmul %21, %22, %cst {dimension_numbers = #tpu.dot_dimension_numbers<[1], [0], [0], [1], [0, 0, 1, 1], [], []>} : vector<32x224xbf16>, vector<224x12032xbf16>, vector<32x12032xf32> -> vector<32x12032xf32>
    %c0_27 = arith.constant 0 : index
    %c0_28 = arith.constant 0 : index
    %24 = vector.load %arg3[%c0_27, %c0_28] : memref<32x1xf32, #tpu.memory_space<vmem>>, vector<32x1xf32>
    %25 = vector.broadcast %24 : vector<32x1xf32> to vector<32x12032xf32>
    %26 = arith.addf %23, %25 : vector<32x12032xf32>
    %cst_29 = arith.constant 0.000000e+00 : f32
    %27 = vector.broadcast %cst_29 : f32 to vector<32x12032xf32>
    %28 = arith.maximumf %26, %27 : vector<32x12032xf32>
    %29 = tpu.iota {dimensions = array<i32: 1>} : vector<1x12032xi32>
    %c127_i32 = arith.constant 127 : i32
    %30 = vector.broadcast %c127_i32 : i32 to vector<1x12032xi32>
    %31 = arith.andi %29, %30 : vector<1x12032xi32>
    %c94_i32 = arith.constant 94 : i32
    %32 = vector.broadcast %c94_i32 : i32 to vector<1x12032xi32>
    %33 = arith.cmpi slt, %31, %32 : vector<1x12032xi32>
    %cst_30 = arith.constant 0.000000e+00 : f32
    %34 = vector.shape_cast %33 : vector<1x12032xi1> to vector<1x12032xi1>
    %35 = vector.broadcast %34 : vector<1x12032xi1> to vector<32x12032xi1>
    %36 = vector.broadcast %cst_30 : f32 to vector<32x12032xf32>
    %37 = arith.select %35, %28, %36 : vector<32x12032xi1>, vector<32x12032xf32>
    %cst_31 = arith.constant dense<0.000000e+00> : vector<32xf32>
    %38 = vector.multi_reduction <add>, %37, %cst_31 [1] : vector<32x12032xf32> to vector<32xf32>
    %39 = vector.shape_cast %38 : vector<32xf32> to vector<32x1xf32>
    %cst_32 = arith.constant 1.13173381E-4 : f32
    %40 = vector.broadcast %cst_32 : f32 to vector<32x1xf32>
    %41 = arith.mulf %39, %40 : vector<32x1xf32>
    %c0_33 = arith.constant 0 : index
    %c0_34 = arith.constant 0 : index
    %42 = vector.load %arg4[%c0_33, %c0_34] : memref<3x32xf32, #tpu.memory_space<vmem>>, vector<3x32xf32>
    %cst_35 = arith.constant dense<0.000000e+00> : vector<3x1xf32>
    %43 = tpu.matmul %42, %41, %cst_35 {dimension_numbers = #tpu.dot_dimension_numbers<[1], [0], [0], [1], [0, 0, 1, 1], [], []>, precision = #tpu.contract_precision<fp32>} : vector<3x32xf32>, vector<32x1xf32>, vector<3x1xf32> -> vector<3x1xf32>
    %c0_36 = arith.constant 0 : index
    %c0_37 = arith.constant 0 : index
    %44 = vector.load %arg5[%c0_36, %c0_37] : memref<3x1xf32, #tpu.memory_space<vmem>>, vector<3x1xf32>
    %45 = arith.addf %43, %44 : vector<3x1xf32>
    %c0_38 = arith.constant 0 : index
    %c0_39 = arith.constant 0 : index
    %c0_40 = arith.constant 0 : index
    %46 = vector.load %arg6[%c0_38, %c0_39, %c0_40] : memref<1x3x1xf32, #tpu.memory_space<vmem>>, vector<1x3x1xf32>
    %47 = vector.shape_cast %46 : vector<1x3x1xf32> to vector<3x1xf32>
    %48 = vector.shape_cast %45 : vector<3x1xf32> to vector<1x3x1xf32>
    tpu.vector_store %arg6[%c0_38, %c0_39, %c0_40], %48 {strides = array<i32>} : memref<1x3x1xf32, #tpu.memory_space<vmem>>, vector<1x3x1xf32>,
    return
  }
  func.func @transform_0(%arg0: i32) -> (i32, i32, i32) {
    %c0_i32 = arith.constant 0 : i32
    %c0_i32_0 = arith.constant 0 : i32
    %c0_i32_1 = arith.constant 0 : i32
    return %arg0, %c0_i32, %c0_i32_0 : i32, i32, i32
  }
  func.func @transform_1(%arg0: i32) -> (i32, i32) {
    %c0_i32 = arith.constant 0 : i32
    %c0_i32_0 = arith.constant 0 : i32
    %c0_i32_1 = arith.constant 0 : i32
    return %c0_i32, %c0_i32_0 : i32, i32
  }
  func.func @transform_2(%arg0: i32) -> (i32, i32) {
    %c0_i32 = arith.constant 0 : i32
    %c0_i32_0 = arith.constant 0 : i32
    %c0_i32_1 = arith.constant 0 : i32
    return %c0_i32, %c0_i32_0 : i32, i32
  }
  func.func @transform_3(%arg0: i32) -> (i32, i32) {
    %c0_i32 = arith.constant 0 : i32
    %c0_i32_0 = arith.constant 0 : i32
    %c0_i32_1 = arith.constant 0 : i32
    return %c0_i32, %c0_i32_0 : i32, i32
  }
  func.func @transform_4(%arg0: i32) -> (i32, i32) {
    %c0_i32 = arith.constant 0 : i32
    %c0_i32_0 = arith.constant 0 : i32
    %c0_i32_1 = arith.constant 0 : i32
    return %c0_i32, %c0_i32_0 : i32, i32
  }
  func.func @transform_5(%arg0: i32) -> (i32, i32, i32) {
    %c0_i32 = arith.constant 0 : i32
    %c0_i32_0 = arith.constant 0 : i32
    %c0_i32_1 = arith.constant 0 : i32
    return %arg0, %c0_i32, %c0_i32_0 : i32, i32, i32
  }
}

</mosaic_0001>

<bundles_post_ra>
// kernel: conv_module_7_forward.1
= control target key start
LH: loop header
LB: loop body
LE: loop exit
PB: predicated region body
PF: predicated region fallthrough
CT: control target
= control target key end

     0   :  { %s17700_s18 = smov 0   ;;  %s22363_s0 = inlined_call_operand.vmem [shape: bf16[2,32,12800], index: 0, kind: input, shape index: {}]   ;;  %s22364_s1 = inlined_call_operand.vmem [shape: bf16[32,224], index: 1, kind: input, shape index: {}]   ;;  %s22365_s2 = inlined_call_operand.vmem [shape: f32[32,1], index: 2, kind: input, shape index: {}]   ;;  %s22366_s3 = inlined_call_operand.vmem [shape: f32[3,32], index: 3, kind: input, shape index: {}]   ;;  %s22367_s4 = inlined_call_operand.vmem [shape: f32[3,1], index: 4, kind: input, shape index: {}]   ;;  %s22368_s5 = inlined_call_operand.vmem [shape: f32[2,3,1], index: 5, kind: output, shape index: {}]  }
   0x1 LB: > { %s15449_s19 = sadd.s32 4294967295, %s17664_s18   ;;  %p15453_p0 = scmp.ge.s32.totalorder %s17664_s18, 1  ;;  %s17664_s18 = sphi %s17700_s18, %s15_s18  }
   0x2   : > { %p187_p1 = scmp.lt.s32.totalorder %s17664_s18, 3 }
   0x4   : > { %p188_p2 = pnand %p15453_p0, %p187_p1 }
   0x5   : > { %p214_p3 = scmp.lt.s32.totalorder (!%p188_p2), %s15449_s19, 1  ;;  %v17711_v0 = vld [vmem:[%s22364_s1 + $0x4] ss:$8 sps:$4 sm:$0xff] (!%p188_p2)   ;;  %vm10798_vm0 = vcmask (!%p188_p2), 785408   ;;  %v17666_v15 = vmov (!%p188_p2), 0   ;;  %v10758_v42 = vld [vmem:[%s22365_s2 + $0x10] sm:$0xff] (!%p188_p2) }
   0x6   : > { %191 = sbr.rel (%p188_p2) target bundleno = 2001 (0x7d1), region = 40  ;;  %16776 = vmatprep.mubr.msk.bf16.mxu0 (!%p188_p2), %vm10798_vm0, %v17711_v0  ;;  %16778 = vmatprep.mubr.msk.bf16.mxu1 (!%p188_p2), %vm10798_vm0, %v17711_v0  ;;  %v10756_v30 = vld [vmem:[%s22365_s2] sm:$0xff] (!%p188_p2)  ;;  %v10757_v32 = vld [vmem:[%s22365_s2 + $0x8] sm:$0xff] (!%p188_p2)  ;;  %v17847_v41 = vld [vmem:[%s22364_s1 + $0x14] ss:$8 sps:$4 sm:$0xff] (!%p188_p2)  }
   0x7   : > { %17028 = vset.pattern.permute.xlu0 (!%p188_p2), %v17666_v15  ;;  %17029 = vset.pattern.permute.xlu1 (!%p188_p2), %v17666_v15  ;;  %v17840_v40 = vld [vmem:[%s22364_s1] ss:$8 sps:$4 sm:$0xff] (!%p188_p2)   ;;  %v17863_v43 = vld [vmem:[%s22364_s1 + $0x10] ss:$8 sps:$4 sm:$0xff] (!%p188_p2)  }
   0x8   : > { %10762 = vperm.xlu0 (!%p188_p2), %17028, %v10756_v30   ;;  %10772 = vperm.xlu1 (!%p188_p2), %17029, %v10758_v42   ;;  %v10759_v44 = vld [vmem:[%s22365_s2 + $0x18] sm:$0xff] (!%p188_p2)  ;;  %v18106_v30 = vld [vmem:[%s22364_s1] ss:$8 sps:$4 sm:$0xff] (!%p188_p2)  }
   0xc   : > { %10767 = vperm.xlu0 (!%p188_p2), %17028, %v10757_v32   ;;  %10777 = vperm.xlu1 (!%p188_p2), %17029, %v10759_v44   ;;  %v18127_v32 = vld [vmem:[%s22364_s1 + $0x10] ss:$8 sps:$4 sm:$0xff] (!%p188_p2)  }
   0xd   : > { %s22556_s19 = smov (!%p214_p3, %s15449_s19), 1 }
   0xe   : > { %s17015_s22 = smul.u32 1600, %s22556_s19  ;;  %s15455_s6 = sshll.u32 %s22556_s19, 2 }
   0xf   : > { %s222_s11 = scalar_lea.vmem %s22368_s5, %s15455_s6 }
  0x10   : > { %s17723_s25 = scalar_lea.vmem %s22363_s0, %s17015_s22 }
  0x11   : > { %v17030_v1 = vld [vmem:[%s17723_s25 + $0x4] ss:$400 sps:$4 sm:$0xff]   ;;  %v17032_v2 = vld [vmem:[%s17723_s25 + $0xc] ss:$400 sps:$4 sm:$0xff]   ;;  %v17034_v3 = vld [vmem:[%s17723_s25] ss:$400 sps:$4 sm:$0xff]  }
  0x12   : > { %10805 = vmatprep.subr.bf16.mxu0 %v17030_v1  ;;  %v17035_v4 = vld [vmem:[%s17723_s25 + $0x8] ss:$400 sps:$4 sm:$0xff]   ;;  %10858 = vmatprep.subr.bf16.mxu1 %v17032_v2  ;;  %v17036_v5 = vld [vmem:[%s17723_s25 + $0x324] ss:$400 sps:$4 sm:$0xff]   ;;  %v17038_v6 = vld [vmem:[%s17723_s25 + $0x32c] ss:$400 sps:$4 sm:$0xff]  }
  0x13   : > { %10806 = vmatpush1.bf16.msra.mxu0 %v17034_v3  ;;  %10859 = vmatpush1.bf16.msra.mxu1 %v17035_v4  ;;  %v17040_v7 = vld [vmem:[%s17723_s25 + $0x320] ss:$400 sps:$4 sm:$0xff]   ;;  %v17041_v8 = vld [vmem:[%s17723_s25 + $0x328] ss:$400 sps:$4 sm:$0xff]   ;;  %v17046_v11 = vld [vmem:[%s17723_s25 + $0x4] ss:$400 sps:$4 sm:$0xff]  }
  0x14   : > { %10807 = vmatprep.subr.bf16.mxu0 %v17036_v5  ;;  %10860 = vmatprep.subr.bf16.mxu1 %v17038_v6  ;;  %v17042_v9 = vld [vmem:[%s17723_s25 + $0x8] ss:$400 sps:$4 sm:$0xff]   ;;  %v17044_v10 = vld [vmem:[%s17723_s25 + $0x10] ss:$400 sps:$4 sm:$0xff]   ;;  %v17047_v12 = vld [vmem:[%s17723_s25 + $0xc] ss:$400 sps:$4 sm:$0xff]  }
  0x15   : > { %v17048_v13 = vld [vmem:[%s17723_s25 + $0x328] ss:$400 sps:$4 sm:$0xff]   ;;  %v17050_v14 = vld [vmem:[%s17723_s25 + $0x330] ss:$400 sps:$4 sm:$0xff]   ;;  %v17052_v16 = vld [vmem:[%s17723_s25 + $0x324] ss:$400 sps:$4 sm:$0xff]  }
  0x16   : > { %v17053_v17 = vld [vmem:[%s17723_s25 + $0x32c] ss:$400 sps:$4 sm:$0xff]   ;;  %v17742_v18 = vld [vmem:[%s17723_s25 + $0x14] ss:$400 sps:$4 sm:$0xff]   ;;  %v17745_v19 = vld [vmem:[%s17723_s25 + $0x10] ss:$400 sps:$4 sm:$0xff]  }
  0x17   : > { %10808 = vmatpush1.bf16.msra.mxu0 %v17040_v7  ;;  %10861 = vmatpush1.bf16.msra.mxu1 %v17041_v8  ;;  %v17749_v20 = vld [vmem:[%s17723_s25 + $0x334] ss:$400 sps:$4 sm:$0xff]   ;;  %v17753_v21 = vld [vmem:[%s17723_s25 + $0x330] ss:$400 sps:$4 sm:$0xff]   ;;  %v17757_v22 = vld [vmem:[%s17723_s25 + $0x18] ss:$400 sps:$4 sm:$0xff]  }
  0x18   : > { %10809 = vmatprep.subr.bf16.mxu0 %v17042_v9  ;;  %10862 = vmatprep.subr.bf16.mxu1 %v17044_v10  ;;  %v17761_v23 = vld [vmem:[%s17723_s25 + $0x14] ss:$400 sps:$4 sm:$0xff]   ;;  %v17765_v24 = vld [vmem:[%s17723_s25 + $0x338] ss:$400 sps:$4 sm:$0xff]   ;;  %v17773_v26 = vld [vmem:[%s17723_s25 + $0x1c] ss:$400 sps:$4 sm:$0xff]  }
  0x19   : > { %v17769_v25 = vld [vmem:[%s17723_s25 + $0x334] ss:$400 sps:$4 sm:$0xff]   ;;  %v17777_v27 = vld [vmem:[%s17723_s25 + $0x18] ss:$400 sps:$4 sm:$0xff]   ;;  %v17782_v28 = vld [vmem:[%s17723_s25 + $0x33c] ss:$400 sps:$4 sm:$0xff]  }
  0x1a   : > { %v17785_v29 = vld [vmem:[%s17723_s25 + $0x338] ss:$400 sps:$4 sm:$0xff]   ;;  %v17795_v31 = vld [vmem:[%s17723_s25 + $0x20] ss:$400 sps:$4 sm:$0xff]   ;;  %v17803_v33 = vld [vmem:[%s17723_s25 + $0x1c] ss:$400 sps:$4 sm:$0xff]  }
  0x1b   : > { %10810 = vmatpush1.bf16.msra.mxu0 %v17046_v11  ;;  %10863 = vmatpush1.bf16.msra.mxu1 %v17047_v12  ;;  %v17808_v34 = vld [vmem:[%s17723_s25 + $0x340] ss:$400 sps:$4 sm:$0xff]   ;;  %v17813_v35 = vld [vmem:[%s17723_s25 + $0x33c] ss:$400 sps:$4 sm:$0xff]   ;;  %v17818_v36 = vld [vmem:[%s17723_s25 + $0x24] ss:$400 sps:$4 sm:$0xff]  }
  0x1c   : > { %10811 = vmatprep.subr.bf16.mxu0 %v17048_v13  ;;  %10864 = vmatprep.subr.bf16.mxu1 %v17050_v14  ;;  %v17821_v37 = vld [vmem:[%s17723_s25 + $0x20] ss:$400 sps:$4 sm:$0xff]   ;;  %v17824_v38 = vld [vmem:[%s17723_s25 + $0x344] ss:$400 sps:$4 sm:$0xff]   ;;  %v17089_v45 = vld [vmem:[%s17723_s25 + $0x28] ss:$400 sps:$4 sm:$0xff]  }
  0x1d   : > { %v17831_v39 = vld [vmem:[%s17723_s25 + $0x340] ss:$400 sps:$4 sm:$0xff]   ;;  %v17896_v46 = vld [vmem:[%s17723_s25 + $0x24] ss:$400 sps:$4 sm:$0xff]   ;;  %v17092_v47 = vld [vmem:[%s17723_s25 + $0x348] ss:$400 sps:$4 sm:$0xff]  }
  0x1e   : > { %v17903_v48 = vld [vmem:[%s17723_s25 + $0x344] ss:$400 sps:$4 sm:$0xff]   ;;  %v17095_v49 = vld [vmem:[%s17723_s25 + $0x2c] ss:$400 sps:$4 sm:$0xff]   ;;  %v17093_v50 = vld [vmem:[%s17723_s25 + $0x28] ss:$400 sps:$4 sm:$0xff]  }
  0x1f   : > { %10812 = vmatpush1.bf16.msra.mxu0 %v17052_v16  ;;  %10865 = vmatpush1.bf16.msra.mxu1 %v17053_v17  ;;  %v17098_v51 = vld [vmem:[%s17723_s25 + $0x34c] ss:$400 sps:$4 sm:$0xff]   ;;  %v17096_v52 = vld [vmem:[%s17723_s25 + $0x348] ss:$400 sps:$4 sm:$0xff]   ;;  %v17101_v53 = vld [vmem:[%s17723_s25 + $0x30] ss:$400 sps:$4 sm:$0xff]  }
  0x20   : > { %10813 = vmatprep.subr.bf16.mxu0 %v17032_v2  ;;  %10866 = vmatprep.subr.bf16.mxu1 %v17742_v18  ;;  %v17099_v54 = vld [vmem:[%s17723_s25 + $0x2c] ss:$400 sps:$4 sm:$0xff]   ;;  %v17920_v55 = vld [vmem:[%s17723_s25 + $0x350] ss:$400 sps:$4 sm:$0xff]   ;;  %v17925_v57 = vld [vmem:[%s17723_s25 + $0x34] ss:$400 sps:$4 sm:$0xff]  }
  0x21   : > { %v17102_v56 = vld [vmem:[%s17723_s25 + $0x34c] ss:$400 sps:$4 sm:$0xff]   ;;  %v17930_v58 = vld [vmem:[%s17723_s25 + $0x30] ss:$400 sps:$4 sm:$0xff]   ;;  %v17933_v59 = vld [vmem:[%s17723_s25 + $0x354] ss:$400 sps:$4 sm:$0xff]  }
  0x22   : > { %v17938_v60 = vld [vmem:[%s17723_s25 + $0x350] ss:$400 sps:$4 sm:$0xff]   ;;  %v17116_v61 = vld [vmem:[%s17723_s25 + $0x38] ss:$400 sps:$4 sm:$0xff]   ;;  %v17967_v62 = vld [vmem:[%s17723_s25 + $0x34] ss:$400 sps:$4 sm:$0xff]  }
  0x23   : > { %10814 = vmatpush1.bf16.msra.mxu0 %v17035_v4  ;;  %10867 = vmatpush1.bf16.msra.mxu1 %v17745_v19  ;;  %v17119_v63 = vld [vmem:[%s17723_s25 + $0x358] ss:$400 sps:$4 sm:$0xff]   ;;  %v17122_v1 = vld [vmem:[%s17723_s25 + $0x3c] ss:$400 sps:$4 sm:$0xff]   ;;  %v17128_v5 = vld [vmem:[%s17723_s25 + $0x40] ss:$400 sps:$4 sm:$0xff]  }
  0x24   : > { %10815 = vmatprep.subr.bf16.mxu0 %v17038_v6  ;;  %10868 = vmatprep.subr.bf16.mxu1 %v17749_v20  ;;  %v17978_v2 = vld [vmem:[%s17723_s25 + $0x38] ss:$400 sps:$4 sm:$0xff]   ;;  %v17125_v3 = vld [vmem:[%s17723_s25 + $0x35c] ss:$400 sps:$4 sm:$0xff]   ;;  %v17990_v7 = vld [vmem:[%s17723_s25 + $0x360] ss:$400 sps:$4 sm:$0xff]  }
  0x25   : > { %v17123_v4 = vld [vmem:[%s17723_s25 + $0x358] ss:$400 sps:$4 sm:$0xff]   ;;  %v17126_v6 = vld [vmem:[%s17723_s25 + $0x3c] ss:$400 sps:$4 sm:$0xff]   ;;  %v17995_v9 = vld [vmem:[%s17723_s25 + $0x44] ss:$400 sps:$4 sm:$0xff]  }
  0x26   : > { %v18003_v11 = vld [vmem:[%s17723_s25 + $0x364] ss:$400 sps:$4 sm:$0xff]   ;;  %v18052_v16 = vld [vmem:[%s17723_s25 + $0x368] ss:$400 sps:$4 sm:$0xff]  }
  0x27   : > { %10816 = vmatpush1.bf16.msra.mxu0 %v17041_v8  ;;  %10869 = vmatpush1.bf16.msra.mxu1 %v17753_v21  ;;  %v17129_v8 = vld [vmem:[%s17723_s25 + $0x35c] ss:$400 sps:$4 sm:$0xff]   ;;  %v18048_v15 = vld [vmem:[%s17723_s25 + $0x44] ss:$400 sps:$4 sm:$0xff]  }
  0x28   : > { %10817 = vmatprep.subr.bf16.mxu0 %v17044_v10  ;;  %10870 = vmatprep.subr.bf16.mxu1 %v17757_v22  ;;  %v18000_v10 = vld [vmem:[%s17723_s25 + $0x40] ss:$400 sps:$4 sm:$0xff]   ;;  %v18032_v13 = vld [vmem:[%s22364_s1 + $0x4] ss:$8 sps:$4 sm:$0xff]  }
  0x2b   : > { %10818 = vmatpush1.bf16.msra.mxu0 %v17047_v12  ;;  %10871 = vmatpush1.bf16.msra.mxu1 %v17761_v23  ;;  %v18008_v12 = vld [vmem:[%s17723_s25 + $0x360] ss:$400 sps:$4 sm:$0xff]  }
  0x2c   : > { %10819 = vmatprep.subr.bf16.mxu0 %v17050_v14  ;;  %10872 = vmatprep.subr.bf16.mxu1 %v17765_v24  ;;  %v18044_v14 = vld [vmem:[%s17723_s25 + $0x48] ss:$400 sps:$4 sm:$0xff]  }
  0x2f   : > { %10820 = vmatpush1.bf16.msra.mxu0 %v17053_v17  ;;  %10873 = vmatpush1.bf16.msra.mxu1 %v17769_v25  ;;  %v18056_v17 = vld [vmem:[%s17723_s25 + $0x364] ss:$400 sps:$4 sm:$0xff]  }
  0x30   : > { %10821 = vmatprep.subr.bf16.mxu0 %v17742_v18  ;;  %10874 = vmatprep.subr.bf16.mxu1 %v17773_v26 }
  0x33   : > { %10822 = vmatpush1.bf16.msra.mxu0 %v17745_v19  ;;  %10875 = vmatpush1.bf16.msra.mxu1 %v17777_v27 }
  0x34   : > { %10823 = vmatprep.subr.bf16.mxu0 %v17749_v20  ;;  %10876 = vmatprep.subr.bf16.mxu1 %v17782_v28 }
  0x37   : > { %10824 = vmatpush1.bf16.msra.mxu0 %v17753_v21  ;;  %10877 = vmatpush1.bf16.msra.mxu1 %v17785_v29 }
  0x38   : > { %10825 = vmatprep.subr.bf16.mxu0 %v17757_v22  ;;  %10878 = vmatprep.subr.bf16.mxu1 %v17795_v31 }
  0x3b   : > { %10826 = vmatpush1.bf16.msra.mxu0 %v17761_v23  ;;  %10879 = vmatpush1.bf16.msra.mxu1 %v17803_v33 }
  0x3c   : > { %10827 = vmatprep.subr.bf16.mxu0 %v17765_v24  ;;  %10880 = vmatprep.subr.bf16.mxu1 %v17808_v34 }
  0x3f   : > { %10828 = vmatpush1.bf16.msra.mxu0 %v17769_v25  ;;  %10881 = vmatpush1.bf16.msra.mxu1 %v17813_v35 }
  0x40   : > { %10829 = vmatprep.subr.bf16.mxu0 %v17773_v26  ;;  %10882 = vmatprep.subr.bf16.mxu1 %v17818_v36 }
  0x43   : > { %10830 = vmatpush1.bf16.msra.mxu0 %v17777_v27  ;;  %10883 = vmatpush1.bf16.msra.mxu1 %v17821_v37 }
  0x44   : > { %10831 = vmatprep.subr.bf16.mxu0 %v17782_v28  ;;  %10884 = vmatprep.subr.bf16.mxu1 %v17824_v38 }
  0x47   : > { %10832 = vmatpush1.bf16.msra.mxu0 %v17785_v29  ;;  %10885 = vmatpush1.bf16.msra.mxu1 %v17831_v39 }
  0x48   : > { %10911 = vmatprep.subr.bf16.mxu0 %v17742_v18  ;;  %10964 = vmatprep.subr.bf16.mxu1 %v17773_v26  ;;  %v18061_v18 = vld [vmem:[%s17723_s25 + $0x4c] ss:$400 sps:$4 sm:$0xff]  }
  0x4a   : > { %10838 = vmatmul.mubr.bf16.vlgmr.msra.gmra.mrb[0].mxu0 %v17840_v40  ;;  %10891 = vmatmul.mubr.bf16.vlgmr.msra.gmra.mrb[0].mxu1 %v17840_v40 }
  0x4b   : > { %10912 = vmatpush1.bf16.msra.mxu0 %v17745_v19  ;;  %10965 = vmatpush1.bf16.msra.mxu1 %v17777_v27  ;;  %v18065_v19 = vld [vmem:[%s17723_s25 + $0x48] ss:$400 sps:$4 sm:$0xff]  }
  0x4c   : > { %10913 = vmatprep.subr.bf16.mxu0 %v17749_v20  ;;  %10966 = vmatprep.subr.bf16.mxu1 %v17782_v28  ;;  %v17149_v20 = vld [vmem:[%s17723_s25 + $0x36c] ss:$400 sps:$4 sm:$0xff]  }
  0x4d   : > { %16777 = vmatprep.mubr.msk.bf16.mxu0 %vm10798_vm0, %v17847_v41  ;;  %16779 = vmatprep.mubr.msk.bf16.mxu1 %vm10798_vm0, %v17847_v41 }
  0x4f   : > { %10914 = vmatpush1.bf16.msra.mxu0 %v17753_v21  ;;  %10967 = vmatpush1.bf16.msra.mxu1 %v17785_v29  ;;  %v17147_v21 = vld [vmem:[%s17723_s25 + $0x368] ss:$400 sps:$4 sm:$0xff]  }
  0x50   : > { %10915 = vmatprep.subr.bf16.mxu0 %v17757_v22  ;;  %10968 = vmatprep.subr.bf16.mxu1 %v17795_v31  ;;  %v17152_v22 = vld [vmem:[%s17723_s25 + $0x50] ss:$400 sps:$4 sm:$0xff]  }
  0x52   : > { %10848 = vmatmul.mubr.bf16.gmra.mrb[4].mxu0 %v17863_v43  ;;  %10901 = vmatmul.mubr.bf16.gmra.mrb[4].mxu1 %v17863_v43 }
  0x53   : > { %10916 = vmatpush1.bf16.msra.mxu0 %v17761_v23  ;;  %10969 = vmatpush1.bf16.msra.mxu1 %v17803_v33  ;;  %v17150_v23 = vld [vmem:[%s17723_s25 + $0x4c] ss:$400 sps:$4 sm:$0xff]  }
  0x54   : > { %10917 = vmatprep.subr.bf16.mxu0 %v17765_v24  ;;  %10970 = vmatprep.subr.bf16.mxu1 %v17808_v34  ;;  %v17155_v24 = vld [vmem:[%s17723_s25 + $0x370] ss:$400 sps:$4 sm:$0xff]  }
  0x55   : > { %16780 = vmatprep.mubr.msk.bf16.mxu0 %vm10798_vm0, %v17711_v0  ;;  %16782 = vmatprep.mubr.msk.bf16.mxu1 %vm10798_vm0, %v17711_v0 }
  0x57   : > { %10918 = vmatpush1.bf16.msra.mxu0 %v17769_v25  ;;  %10971 = vmatpush1.bf16.msra.mxu1 %v17813_v35  ;;  %v17153_v25 = vld [vmem:[%s17723_s25 + $0x36c] ss:$400 sps:$4 sm:$0xff]  }
  0x58   : > { %10919 = vmatprep.subr.bf16.mxu0 %v17773_v26  ;;  %10972 = vmatprep.subr.bf16.mxu1 %v17818_v36  ;;  %v18083_v26 = vld [vmem:[%s17723_s25 + $0x54] ss:$400 sps:$4 sm:$0xff]  }
  0x5b   : > { %10920 = vmatpush1.bf16.msra.mxu0 %v17777_v27  ;;  %10973 = vmatpush1.bf16.msra.mxu1 %v17821_v37  ;;  %v18087_v27 = vld [vmem:[%s17723_s25 + $0x50] ss:$400 sps:$4 sm:$0xff]  }
  0x5c   : > { %10921 = vmatprep.subr.bf16.mxu0 %v17782_v28  ;;  %10974 = vmatprep.subr.bf16.mxu1 %v17824_v38  ;;  %v18092_v28 = vld [vmem:[%s17723_s25 + $0x374] ss:$400 sps:$4 sm:$0xff]  }
  0x5f   : > { %10922 = vmatpush1.bf16.msra.mxu0 %v17785_v29  ;;  %10975 = vmatpush1.bf16.msra.mxu1 %v17831_v39  ;;  %v18097_v29 = vld [vmem:[%s17723_s25 + $0x370] ss:$400 sps:$4 sm:$0xff]  }
  0x60   : > { %10923 = vmatprep.subr.bf16.mxu0 %v17795_v31  ;;  %10976 = vmatprep.subr.bf16.mxu1 %v17089_v45  ;;  %v18116_v31 = vld [vmem:[%s22364_s1 + $0x14] ss:$8 sps:$4 sm:$0xff]  }
  0x63   : > { %10924 = vmatpush1.bf16.msra.mxu0 %v17803_v33  ;;  %10977 = vmatpush1.bf16.msra.mxu1 %v17896_v46  ;;  %v18144_v33 = vld [vmem:[%s17723_s25 + $0x58] ss:$400 sps:$4 sm:$0xff]  }
  0x64   : > { %10925 = vmatprep.subr.bf16.mxu0 %v17808_v34  ;;  %10978 = vmatprep.subr.bf16.mxu1 %v17092_v47  ;;  %v18148_v34 = vld [vmem:[%s17723_s25 + $0x54] ss:$400 sps:$4 sm:$0xff]  }
  0x67   : > { %10926 = vmatpush1.bf16.msra.mxu0 %v17813_v35  ;;  %10979 = vmatpush1.bf16.msra.mxu1 %v17903_v48  ;;  %v18152_v35 = vld [vmem:[%s17723_s25 + $0x378] ss:$400 sps:$4 sm:$0xff]  }
  0x68   : > { %10927 = vmatprep.subr.bf16.mxu0 %v17818_v36  ;;  %10980 = vmatprep.subr.bf16.mxu1 %v17095_v49 }
  0x6b   : > { %10928 = vmatpush1.bf16.msra.mxu0 %v17821_v37  ;;  %10981 = vmatpush1.bf16.msra.mxu1 %v17093_v50 }
  0x6c   : > { %10929 = vmatprep.subr.bf16.mxu0 %v17824_v38  ;;  %10982 = vmatprep.subr.bf16.mxu1 %v17098_v51 }
  0x6f   : > { %10930 = vmatpush1.bf16.msra.mxu0 %v17831_v39  ;;  %10983 = vmatpush1.bf16.msra.mxu1 %v17096_v52 }
  0x70   : > { %10931 = vmatprep.subr.bf16.mxu0 %v17089_v45  ;;  %10984 = vmatprep.subr.bf16.mxu1 %v17101_v53 }
  0x73   : > { %10932 = vmatpush1.bf16.msra.mxu0 %v17896_v46  ;;  %10985 = vmatpush1.bf16.msra.mxu1 %v17099_v54 }
  0x74   : > { %10933 = vmatprep.subr.bf16.mxu0 %v17092_v47  ;;  %10986 = vmatprep.subr.bf16.mxu1 %v17920_v55 }
  0x77   : > { %10934 = vmatpush1.bf16.msra.mxu0 %v17903_v48  ;;  %10987 = vmatpush1.bf16.msra.mxu1 %v17102_v56 }
  0x78   : > { %10935 = vmatprep.subr.bf16.mxu0 %v17095_v49  ;;  %10988 = vmatprep.subr.bf16.mxu1 %v17925_v57 }
  0x7b   : > { %10936 = vmatpush1.bf16.msra.mxu0 %v17093_v50  ;;  %10989 = vmatpush1.bf16.msra.mxu1 %v17930_v58 }
  0x7c   : > { %10937 = vmatprep.subr.bf16.mxu0 %v17098_v51  ;;  %10990 = vmatprep.subr.bf16.mxu1 %v17933_v59 }
  0x7f   : > { %10938 = vmatpush1.bf16.msra.mxu0 %v17096_v52  ;;  %10991 = vmatpush1.bf16.msra.mxu1 %v17938_v60 }
  0x80   : > { %11017 = vmatprep.subr.bf16.mxu0 %v17818_v36  ;;  %11070 = vmatprep.subr.bf16.mxu1 %v17095_v49  ;;  %v18156_v36 = vld [vmem:[%s17723_s25 + $0x374] ss:$400 sps:$4 sm:$0xff]  }
  0x82   : > { %10944 = vmatmul.mubr.bf16.vlgmr.msra.gmra.mrb[8].mxu0 %v17840_v40  ;;  %10997 = vmatmul.mubr.bf16.vlgmr.msra.gmra.mrb[8].mxu1 %v17840_v40 }
  0x83   : > { %11018 = vmatpush1.bf16.msra.mxu0 %v17821_v37  ;;  %11071 = vmatpush1.bf16.msra.mxu1 %v17093_v50  ;;  %v18160_v37 = vld [vmem:[%s17723_s25 + $0x5c] ss:$400 sps:$4 sm:$0xff]  }
  0x84   : > { %11019 = vmatprep.subr.bf16.mxu0 %v17824_v38  ;;  %11072 = vmatprep.subr.bf16.mxu1 %v17098_v51  ;;  %v18164_v38 = vld [vmem:[%s17723_s25 + $0x58] ss:$400 sps:$4 sm:$0xff]  }
  0x85   : > { %16781 = vmatprep.mubr.msk.bf16.mxu0 %vm10798_vm0, %v17847_v41  ;;  %16783 = vmatprep.mubr.msk.bf16.mxu1 %vm10798_vm0, %v17847_v41 }
  0x87   : > { %11020 = vmatpush1.bf16.msra.mxu0 %v17831_v39  ;;  %11073 = vmatpush1.bf16.msra.mxu1 %v17096_v52  ;;  %v13672_v39 = vlaneseq  ;;  %v18183_v44 = vpop.permute.xlu0 %10762 }
  0x88   : > { %11021 = vmatprep.subr.bf16.mxu0 %v17089_v45  ;;  %11074 = vmatprep.subr.bf16.mxu1 %v17101_v53  ;;  %v18188_v45 = vld [vmem:[%s17723_s25 + $0x5c] ss:$400 sps:$4 sm:$0xff]  }
  0x89   : > { %v18176_v42 = vand.u32 127, %v13672_v39  ;;  %v18252_v39 = vld [vmem:[%s17723_s25 + $0x380] ss:$400 sps:$4 sm:$0xff]  }
  0x8a   : > { %10954 = vmatmul.mubr.bf16.gmra.mrb[12].mxu0 %v17863_v43  ;;  %11007 = vmatmul.mubr.bf16.gmra.mrb[12].mxu1 %v17863_v43 }
  0x8b   : > { %11022 = vmatpush1.bf16.msra.mxu0 %v17896_v46  ;;  %11075 = vmatpush1.bf16.msra.mxu1 %v17099_v54  ;;  %v13674_v46 = vadd.s32 128, %v18176_v42  ;;  %vm13861_vm1 = vcmp.lt.s32.totalorder %v18176_v42, 94 }
  0x8c   : > { %11023 = vmatprep.subr.bf16.mxu0 %v17092_v47  ;;  %11076 = vmatprep.subr.bf16.mxu1 %v17920_v55  ;;  %v13675_v47 = vadd.s32 256, %v18176_v42 }
  0x8d   : > { %16784 = vmatprep.mubr.msk.bf16.mxu0 %vm10798_vm0, %v17711_v0  ;;  %16786 = vmatprep.mubr.msk.bf16.mxu1 %vm10798_vm0, %v17711_v0  ;;  %v17972_v0 = vld [vmem:[%s17723_s25 + $0x354] ss:$400 sps:$4 sm:$0xff]  }
  0x8f   : > { %11024 = vmatpush1.bf16.msra.mxu0 %v17903_v48  ;;  %11077 = vmatpush1.bf16.msra.mxu1 %v17102_v56  ;;  %v18195_v48 = vld [vmem:[%s17723_s25 + $0x380] ss:$400 sps:$4 sm:$0xff]  }
  0x90   : > { %11025 = vmatprep.subr.bf16.mxu0 %v17095_v49  ;;  %11078 = vmatprep.subr.bf16.mxu1 %v17925_v57  ;;  %v13676_v49 = vadd.s32 384, %v18176_v42 }
  0x93   : > { %11026 = vmatpush1.bf16.msra.mxu0 %v17093_v50  ;;  %11079 = vmatpush1.bf16.msra.mxu1 %v17930_v58  ;;  %v13768_v50 = vand.u32 127, %v13674_v46 }
  0x94   : > { %11027 = vmatprep.subr.bf16.mxu0 %v17098_v51  ;;  %11080 = vmatprep.subr.bf16.mxu1 %v17933_v59  ;;  %v18201_v51 = vld [vmem:[%s17723_s25 + $0x37c] ss:$400 sps:$4 sm:$0xff]  }
  0x95   : > { %vm18216_vm2 = vcmp.lt.s32.totalorder %v13768_v50, 94 }
  0x97   : > { %11028 = vmatpush1.bf16.msra.mxu0 %v17096_v52  ;;  %11081 = vmatpush1.bf16.msra.mxu1 %v17938_v60  ;;  %v13769_v52 = vand.u32 127, %v13675_v47 }
  0x98   : > { %11029 = vmatprep.subr.bf16.mxu0 %v17101_v53  ;;  %11082 = vmatprep.subr.bf16.mxu1 %v17116_v61  ;;  %v18205_v53 = vpop.permute.xlu0 %10767 }
  0x99   : > { %vm18222_vm3 = vcmp.lt.s32.totalorder %v13769_v52, 94 }
  0x9b   : > { %11030 = vmatpush1.bf16.msra.mxu0 %v17099_v54  ;;  %11083 = vmatpush1.bf16.msra.mxu1 %v17967_v62  ;;  %v18208_v54 = vld [vmem:[%s17723_s25 + $0x64] ss:$400 sps:$4 sm:$0xff]  }
  0x9c   : > { %11031 = vmatprep.subr.bf16.mxu0 %v17920_v55  ;;  %11084 = vmatprep.subr.bf16.mxu1 %v17119_v63  ;;  %v18210_v55 = vpop.permute.xlu1 %10772 }
  0x9f   : > { %11032 = vmatpush1.bf16.msra.mxu0 %v17102_v56  ;;  %11085 = vmatpush1.bf16.msra.mxu1 %v17972_v0 }
  0xa0   : > { %11033 = vmatprep.subr.bf16.mxu0 %v17925_v57  ;;  %11086 = vmatprep.subr.bf16.mxu1 %v17122_v1 }
  0xa3   : > { %11034 = vmatpush1.bf16.msra.mxu0 %v17930_v58  ;;  %11087 = vmatpush1.bf16.msra.mxu1 %v17978_v2 }
  0xa4   : > { %11035 = vmatprep.subr.bf16.mxu0 %v17933_v59  ;;  %11088 = vmatprep.subr.bf16.mxu1 %v17125_v3 }
  0xa7   : > { %11036 = vmatpush1.bf16.msra.mxu0 %v17938_v60  ;;  %11089 = vmatpush1.bf16.msra.mxu1 %v17123_v4 }
  0xa8   : > { %11037 = vmatprep.subr.bf16.mxu0 %v17116_v61  ;;  %11090 = vmatprep.subr.bf16.mxu1 %v17128_v5 }
  0xab   : > { %11038 = vmatpush1.bf16.msra.mxu0 %v17967_v62  ;;  %11091 = vmatpush1.bf16.msra.mxu1 %v17126_v6 }
  0xac   : > { %11039 = vmatprep.subr.bf16.mxu0 %v17119_v63  ;;  %11092 = vmatprep.subr.bf16.mxu1 %v17990_v7 }
  0xaf   : > { %11040 = vmatpush1.bf16.msra.mxu0 %v17972_v0  ;;  %11093 = vmatpush1.bf16.msra.mxu1 %v17129_v8 }
  0xb0   : > { %11041 = vmatprep.subr.bf16.mxu0 %v17122_v1  ;;  %11094 = vmatprep.subr.bf16.mxu1 %v17995_v9 }
  0xb3   : > { %11042 = vmatpush1.bf16.msra.mxu0 %v17978_v2  ;;  %11095 = vmatpush1.bf16.msra.mxu1 %v18000_v10 }
  0xb4   : > { %11043 = vmatprep.subr.bf16.mxu0 %v17125_v3  ;;  %11096 = vmatprep.subr.bf16.mxu1 %v18003_v11 }
  0xb7   : > { %11044 = vmatpush1.bf16.msra.mxu0 %v17123_v4  ;;  %11097 = vmatpush1.bf16.msra.mxu1 %v18008_v12 }
  0xb8   : > { %11123 = vmatprep.subr.bf16.mxu0 %v17925_v57  ;;  %11176 = vmatprep.subr.bf16.mxu1 %v17122_v1 }
  0xba   : > { %11050 = vmatmul.mubr.bf16.vlgmr.msra.gmra.mrb[16].mxu0 %v17840_v40  ;;  %11103 = vmatmul.mubr.bf16.vlgmr.msra.gmra.mrb[16].mxu1 %v17840_v40  ;;  %v18169_v40 = vld [vmem:[%s17723_s25 + $0x37c] ss:$400 sps:$4 sm:$0xff]  }
  0xbb   : > { %11124 = vmatpush1.bf16.msra.mxu0 %v17930_v58  ;;  %11177 = vmatpush1.bf16.msra.mxu1 %v17978_v2 }
  0xbc   : > { %11125 = vmatprep.subr.bf16.mxu0 %v17933_v59  ;;  %11178 = vmatprep.subr.bf16.mxu1 %v17125_v3 }
  0xbd   : > { %16785 = vmatprep.mubr.msk.bf16.mxu0 %vm10798_vm0, %v17847_v41  ;;  %16787 = vmatprep.mubr.msk.bf16.mxu1 %vm10798_vm0, %v17847_v41  ;;  %v18174_v41 = vld [vmem:[%s17723_s25 + $0x378] ss:$400 sps:$4 sm:$0xff]  }
  0xbf   : > { %11126 = vmatpush1.bf16.msra.mxu0 %v17938_v60  ;;  %11179 = vmatpush1.bf16.msra.mxu1 %v17123_v4 }
  0xc0   : > { %11127 = vmatprep.subr.bf16.mxu0 %v17116_v61  ;;  %11180 = vmatprep.subr.bf16.mxu1 %v17128_v5 }
  0xc2   : > { %11060 = vmatmul.mubr.bf16.gmra.mrb[20].mxu0 %v17863_v43  ;;  %11113 = vmatmul.mubr.bf16.gmra.mrb[20].mxu1 %v17863_v43  ;;  %v18181_v43 = vld [vmem:[%s17723_s25 + $0x60] ss:$400 sps:$4 sm:$0xff]  }
  0xc3   : > { %11128 = vmatpush1.bf16.msra.mxu0 %v17967_v62  ;;  %11181 = vmatpush1.bf16.msra.mxu1 %v17126_v6  ;;  %v13770_v62 = vand.u32 127, %v13676_v49  ;;  %v18258_v49 = vpop.permute.xlu1 %10777 }
  0xc4   : > { %11129 = vmatprep.subr.bf16.mxu0 %v17119_v63  ;;  %11182 = vmatprep.subr.bf16.mxu1 %v17990_v7 }
  0xc5   : > { %16788 = vmatprep.mubr.msk.bf16.mxu0 %vm10798_vm0, %v18032_v13  ;;  %16790 = vmatprep.mubr.msk.bf16.mxu1 %vm10798_vm0, %v18032_v13  ;;  %vm18241_vm4 = vcmp.lt.s32.totalorder %v13770_v62, 94 }
  0xc7   : > { %11130 = vmatpush1.bf16.msra.mxu0 %v17972_v0  ;;  %11183 = vmatpush1.bf16.msra.mxu1 %v17129_v8 }
  0xc8   : > { %11131 = vmatprep.subr.bf16.mxu0 %v17122_v1  ;;  %11184 = vmatprep.subr.bf16.mxu1 %v17995_v9 }
  0xcb   : > { %11132 = vmatpush1.bf16.msra.mxu0 %v17978_v2  ;;  %11185 = vmatpush1.bf16.msra.mxu1 %v18000_v10 }
  0xcc   : > { %11133 = vmatprep.subr.bf16.mxu0 %v17125_v3  ;;  %11186 = vmatprep.subr.bf16.mxu1 %v18003_v11 }
  0xcf   : > { %11134 = vmatpush1.bf16.msra.mxu0 %v17123_v4  ;;  %11187 = vmatpush1.bf16.msra.mxu1 %v18008_v12 }
  0xd0   : > { %11135 = vmatprep.subr.bf16.mxu0 %v17128_v5  ;;  %11188 = vmatprep.subr.bf16.mxu1 %v18044_v14  ;;  %v18228_v5 = vld [vmem:[%s17723_s25 + $0x60] ss:$400 sps:$4 sm:$0xff]  }
  0xd3   : > { %11136 = vmatpush1.bf16.msra.mxu0 %v17126_v6  ;;  %11189 = vmatpush1.bf16.msra.mxu1 %v18048_v15 }
  0xd4   : > { %11137 = vmatprep.subr.bf16.mxu0 %v17990_v7  ;;  %11190 = vmatprep.subr.bf16.mxu1 %v18052_v16 }
  0xd7   : > { %11138 = vmatpush1.bf16.msra.mxu0 %v17129_v8  ;;  %11191 = vmatpush1.bf16.msra.mxu1 %v18056_v17 }
  0xd8   : > { %11139 = vmatprep.subr.bf16.mxu0 %v17995_v9  ;;  %11192 = vmatprep.subr.bf16.mxu1 %v18061_v18 }
  0xdb   : > { %11140 = vmatpush1.bf16.msra.mxu0 %v18000_v10  ;;  %11193 = vmatpush1.bf16.msra.mxu1 %v18065_v19 }
  0xdc   : > { %11141 = vmatprep.subr.bf16.mxu0 %v18003_v11  ;;  %11194 = vmatprep.subr.bf16.mxu1 %v17149_v20 }
  0xdf   : > { %11142 = vmatpush1.bf16.msra.mxu0 %v18008_v12  ;;  %11195 = vmatpush1.bf16.msra.mxu1 %v17147_v21 }
  0xe0   : > { %11143 = vmatprep.subr.bf16.mxu0 %v18044_v14  ;;  %11196 = vmatprep.subr.bf16.mxu1 %v17152_v22 }
  0xe3   : > { %11144 = vmatpush1.bf16.msra.mxu0 %v18048_v15  ;;  %11197 = vmatpush1.bf16.msra.mxu1 %v17150_v23 }
  0xe4   : > { %11145 = vmatprep.subr.bf16.mxu0 %v18052_v16  ;;  %11198 = vmatprep.subr.bf16.mxu1 %v17155_v24 }
  0xe7   : > { %11146 = vmatpush1.bf16.msra.mxu0 %v18056_v17  ;;  %11199 = vmatpush1.bf16.msra.mxu1 %v17153_v25 }
  0xe8   : > { %11147 = vmatprep.subr.bf16.mxu0 %v18061_v18  ;;  %11200 = vmatprep.subr.bf16.mxu1 %v18083_v26 }
  0xeb   : > { %11148 = vmatpush1.bf16.msra.mxu0 %v18065_v19  ;;  %11201 = vmatpush1.bf16.msra.mxu1 %v18087_v27 }
  0xec   : > { %11149 = vmatprep.subr.bf16.mxu0 %v17149_v20  ;;  %11202 = vmatprep.subr.bf16.mxu1 %v18092_v28 }
  0xef   : > { %11150 = vmatpush1.bf16.msra.mxu0 %v17147_v21  ;;  %11203 = vmatpush1.bf16.msra.mxu1 %v18097_v29 }
  0xf0   : > { %11229 = vmatprep.subr.bf16.mxu0 %v17995_v9  ;;  %11282 = vmatprep.subr.bf16.mxu1 %v18061_v18 }
  0xf2   : > { %11156 = vmatmul.mubr.bf16.vlgmr.msra.gmra.mrb[24].mxu0 %v18106_v30  ;;  %11209 = vmatmul.mubr.bf16.vlgmr.msra.gmra.mrb[24].mxu1 %v18106_v30 }
  0xf3   : > { %11230 = vmatpush1.bf16.msra.mxu0 %v18000_v10  ;;  %11283 = vmatpush1.bf16.msra.mxu1 %v18065_v19 }
  0xf4   : > { %11231 = vmatprep.subr.bf16.mxu0 %v18003_v11  ;;  %11284 = vmatprep.subr.bf16.mxu1 %v17149_v20 }
  0xf5   : > { %16789 = vmatprep.mubr.msk.bf16.mxu0 %vm10798_vm0, %v18116_v31  ;;  %16791 = vmatprep.mubr.msk.bf16.mxu1 %vm10798_vm0, %v18116_v31 }
  0xf7   : > { %11232 = vmatpush1.bf16.msra.mxu0 %v18008_v12  ;;  %11285 = vmatpush1.bf16.msra.mxu1 %v17147_v21  ;;  %v18235_v12 = vld [vmem:[%s17723_s25 + $0x384] ss:$400 sps:$4 sm:$0xff]  }
  0xf8   : > { %11233 = vmatprep.subr.bf16.mxu0 %v18044_v14  ;;  %11286 = vmatprep.subr.bf16.mxu1 %v17152_v22 }
  0xfa   : > { %11166 = vmatmul.mubr.bf16.gmra.mrb[28].mxu0 %v18127_v32  ;;  %11219 = vmatmul.mubr.bf16.gmra.mrb[28].mxu1 %v18127_v32 }
  0xfb   : > { %11234 = vmatpush1.bf16.msra.mxu0 %v18048_v15  ;;  %11287 = vmatpush1.bf16.msra.mxu1 %v17150_v23 }
  0xfc   : > { %11235 = vmatprep.subr.bf16.mxu0 %v18052_v16  ;;  %11288 = vmatprep.subr.bf16.mxu1 %v17155_v24 }
  0xfd   : > { %16792 = vmatprep.mubr.msk.bf16.mxu0 %vm10798_vm0, %v18032_v13  ;;  %16794 = vmatprep.mubr.msk.bf16.mxu1 %vm10798_vm0, %v18032_v13 }
  0xff   : > { %11236 = vmatpush1.bf16.msra.mxu0 %v18056_v17  ;;  %11289 = vmatpush1.bf16.msra.mxu1 %v17153_v25 }
 0x100   : > { %11237 = vmatprep.subr.bf16.mxu0 %v18061_v18  ;;  %11290 = vmatprep.subr.bf16.mxu1 %v18083_v26 }
 0x103   : > { %11238 = vmatpush1.bf16.msra.mxu0 %v18065_v19  ;;  %11291 = vmatpush1.bf16.msra.mxu1 %v18087_v27 }
 0x104   : > { %11239 = vmatprep.subr.bf16.mxu0 %v17149_v20  ;;  %11292 = vmatprep.subr.bf16.mxu1 %v18092_v28  ;;  %v13679_v20 = vadd.s32 768, %v18176_v42 }
 0x107   : > { %11240 = vmatpush1.bf16.msra.mxu0 %v17147_v21  ;;  %11293 = vmatpush1.bf16.msra.mxu1 %v18097_v29 }
 0x108   : > { %11241 = vmatprep.subr.bf16.mxu0 %v17152_v22  ;;  %11294 = vmatprep.subr.bf16.mxu1 %v18144_v33 }
 0x10b   : > { %11242 = vmatpush1.bf16.msra.mxu0 %v17150_v23  ;;  %11295 = vmatpush1.bf16.msra.mxu1 %v18148_v34 }
 0x10c   : > { %11243 = vmatprep.subr.bf16.mxu0 %v17155_v24  ;;  %11296 = vmatprep.subr.bf16.mxu1 %v18152_v35 }
 0x10f   : > { %11244 = vmatpush1.bf16.msra.mxu0 %v17153_v25  ;;  %11297 = vmatpush1.bf16.msra.mxu1 %v18156_v36 }
 0x110   : > { %11245 = vmatprep.subr.bf16.mxu0 %v18083_v26  ;;  %11298 = vmatprep.subr.bf16.mxu1 %v18160_v37 }
 0x113   : > { %11246 = vmatpush1.bf16.msra.mxu0 %v18087_v27  ;;  %11299 = vmatpush1.bf16.msra.mxu1 %v18164_v38 }
 0x114   : > { %11247 = vmatprep.subr.bf16.mxu0 %v18092_v28  ;;  %11300 = vmatprep.subr.bf16.mxu1 %v18169_v40 }
 0x117   : > { %11248 = vmatpush1.bf16.msra.mxu0 %v18097_v29  ;;  %11301 = vmatpush1.bf16.msra.mxu1 %v18174_v41 }
 0x118   : > { %11249 = vmatprep.subr.bf16.mxu0 %v18144_v33  ;;  %11302 = vmatprep.subr.bf16.mxu1 %v18181_v43 }
 0x11b   : > { %11250 = vmatpush1.bf16.msra.mxu0 %v18148_v34  ;;  %11303 = vmatpush1.bf16.msra.mxu1 %v18188_v45 }
 0x11c   : > { %11251 = vmatprep.subr.bf16.mxu0 %v18152_v35  ;;  %11304 = vmatprep.subr.bf16.mxu1 %v18195_v48 }
 0x11d   : > { %v10839_v56 = vpop.f32.mrb[0].mxu0  ;;  %v10892_v57 = vpop.f32.mrb[0].mxu1 }
 0x11e   : > { %v10840_v58 = vadd.f32 %v10839_v56, %v18183_v44  ;;  %v10841_v59 = vpop.f32.mrb[1].mxu0  ;;  %v10893_v60 = vadd.f32 %v10892_v57, %v18183_v44  ;;  %v10894_v61 = vpop.f32.mrb[1].mxu1 }
 0x11f   : > { %v10842_v63 = vadd.f32 %v10841_v59, %v18183_v44  ;;  %v10843_v1 = vpop.f32.mrb[2].mxu0  ;;  %11252 = vmatpush1.bf16.msra.mxu0 %v18156_v36  ;;  %11305 = vmatpush1.bf16.msra.mxu1 %v18201_v51  ;;  %v10895_v3 = vadd.f32 %v10894_v61, %v18183_v44  ;;  %v10896_v4 = vpop.f32.mrb[2].mxu1 }
 0x120   : > { %v13296_v6 = vmax.f32 %v10840_v58, 0.0  ;;  %v10844_v7 = vadd.f32 %v10843_v1, %v18205_v53  ;;  %v10845_v8 = vpop.f32.mrb[3].mxu0  ;;  %v13298_v9 = vmax.f32 %v10893_v60, 0.0  ;;  %v10897_v10 = vadd.f32 %v10896_v4, %v18205_v53  ;;  %11253 = vmatprep.subr.bf16.mxu0 %v18160_v37  ;;  %11306 = vmatprep.subr.bf16.mxu1 %v18208_v54  ;;  %v10898_v11 = vpop.f32.mrb[3].mxu1 }
 0x121   : > { %v13297_v14 = vmax.f32 %v10842_v63, 0.0  ;;  %v10846_v15 = vadd.f32 %v10845_v8, %v18205_v53  ;;  %v13299_v16 = vmax.f32 %v10895_v3, 0.0  ;;  %v10899_v17 = vadd.f32 %v10898_v11, %v18205_v53 }
 0x122   : > { %v14143_v18 = vsel %vm13861_vm1, %v13296_v6, 0.0  ;;  %v13390_v19 = vmax.f32 %v10844_v7, 0.0  ;;  %v13392_v21 = vmax.f32 %v10897_v10, 0.0  ;;  %v14145_v24 = vsel %vm18222_vm3, %v13298_v9, 0.0 }
 0x123   : > { %v14144_v22 = vsel %vm18216_vm2, %v13297_v14, 0.0  ;;  %v13391_v23 = vmax.f32 %v10846_v15, 0.0  ;;  %11254 = vmatpush1.bf16.msra.mxu0 %v18164_v38  ;;  %11307 = vmatpush1.bf16.msra.mxu1 %v18228_v5  ;;  %v13393_v25 = vmax.f32 %v10899_v17, 0.0  ;;  %v14146_v52 = vsel %vm18241_vm4, %v13299_v16, 0.0 }
 0x124   : > { %v14519_v46 = vadd.f32 %v14144_v22, %v14143_v18  ;;  %v14237_v47 = vsel %vm13861_vm1, %v13390_v19, 0.0  ;;  %11255 = vmatprep.subr.bf16.mxu0 %v18169_v40  ;;  %11308 = vmatprep.subr.bf16.mxu1 %v18235_v12  ;;  %v14239_v56 = vsel %vm18222_vm3, %v13392_v21, 0.0 }
 0x125   : > { %v14238_v50 = vsel %vm18216_vm2, %v13391_v23, 0.0  ;;  %v10849_v57 = vpop.f32.mrb[4].mxu0  ;;  %v10902_v58 = vpop.f32.mrb[4].mxu1  ;;  %v14240_v3 = vsel %vm18241_vm4, %v13393_v25, 0.0 }
 0x126   : > { %v14614_v59 = vadd.f32 %v14238_v50, %v14237_v47  ;;  %v14520_v60 = vadd.f32 %v14519_v46, %v14145_v24  ;;  %v10850_v61 = vadd.f32 %v10849_v57, %v18210_v55  ;;  %v10851_v62 = vpop.f32.mrb[5].mxu0  ;;  %v10903_v63 = vadd.f32 %v10902_v58, %v18210_v55  ;;  %v10904_v1 = vpop.f32.mrb[5].mxu1 }
 0x127   : > { %11256 = vmatpush1.bf16.msra.mxu0 %v18174_v41  ;;  %11309 = vmatpush1.bf16.msra.mxu1 %v18252_v39  ;;  %v10852_v4 = vadd.f32 %v10851_v62, %v18210_v55  ;;  %v10853_v6 = vpop.f32.mrb[6].mxu0  ;;  %v10905_v7 = vadd.f32 %v10904_v1, %v18210_v55  ;;  %v10906_v8 = vpop.f32.mrb[6].mxu1 }
 0x128   : > { %v18274_v9 = vadd.f32 %v14520_v60, %v14146_v52  ;;  %v14615_v10 = vadd.f32 %v14614_v59, %v14239_v56  ;;  %11335 = vmatprep.subr.bf16.mxu0 %v18083_v26  ;;  %11388 = vmatprep.subr.bf16.mxu1 %v18160_v37  ;;  %v13484_v11 = vmax.f32 %v10850_v61, 0.0  ;;  %v10854_v14 = vadd.f32 %v10853_v6, %v18258_v49  ;;  %v10855_v15 = vpop.f32.mrb[7].mxu0  ;;  %v10908_v16 = vpop.f32.mrb[7].mxu1 }
 0x129   : > { %v13485_v17 = vmax.f32 %v10852_v4, 0.0  ;;  %v10856_v18 = vadd.f32 %v10855_v15, %v18258_v49  ;;  %v13486_v19 = vmax.f32 %v10903_v63, 0.0  ;;  %v13487_v21 = vmax.f32 %v10905_v7, 0.0  ;;  %v18395_v4 = vld [vmem:[%s17723_s25 + $0x38c] ss:$400 sps:$4 sm:$0xff]  }
 0x12a   : > { %v18280_v22 = vadd.f32 %v14615_v10, %v14240_v3  ;;  %11262 = vmatmul.mubr.bf16.vlgmr.msra.gmra.mrb[32].mxu0 %v18106_v30  ;;  %11315 = vmatmul.mubr.bf16.vlgmr.msra.gmra.mrb[32].mxu1 %v18106_v30  ;;  %v14331_v26 = vsel %vm13861_vm1, %v13484_v11, 0.0  ;;  %v13578_v23 = vmax.f32 %v10854_v14, 0.0  ;;  %v10907_v24 = vadd.f32 %v10906_v8, %v18258_v49  ;;  %v18401_v7 = vld [vmem:[%s17723_s25 + $0x74] ss:$400 sps:$4 sm:$0xff]  }
 0x12b   : > { %11336 = vmatpush1.bf16.msra.mxu0 %v18087_v27  ;;  %11389 = vmatpush1.bf16.msra.mxu1 %v18164_v38  ;;  %v14332_v25 = vsel %vm18216_vm2, %v13485_v17, 0.0  ;;  %v13579_v46 = vmax.f32 %v10856_v18, 0.0  ;;  %v14333_v47 = vsel %vm18222_vm3, %v13486_v19, 0.0  ;;  %v10909_v27 = vadd.f32 %v10908_v16, %v18258_v49 }
 0x12c   : > { %11337 = vmatprep.subr.bf16.mxu0 %v18092_v28  ;;  %11390 = vmatprep.subr.bf16.mxu1 %v18169_v40  ;;  %v14709_v50 = vadd.f32 %v14332_v25, %v14331_v26  ;;  %v14425_v52 = vsel %vm13861_vm1, %v13578_v23, 0.0  ;;  %v13580_v56 = vmax.f32 %v10907_v24, 0.0  ;;  %v14334_v28 = vsel %vm18241_vm4, %v13487_v21, 0.0  ;;  %v18418_v25 = vld [vmem:[%s17723_s25 + $0x70] ss:$400 sps:$4 sm:$0xff]  }
 0x12d   : > { %16793 = vmatprep.mubr.msk.bf16.mxu0 %vm10798_vm0, %v18116_v31  ;;  %16795 = vmatprep.mubr.msk.bf16.mxu1 %vm10798_vm0, %v18116_v31  ;;  %v14426_v57 = vsel %vm18216_vm2, %v13579_v46, 0.0  ;;  %v13581_v61 = vmax.f32 %v10909_v27, 0.0  ;;  %v13680_v6 = vadd.s32 896, %v18176_v42  ;;  %v13773_v11 = vand.u32 127, %v13679_v20 }
 0x12e   : > { %v14804_v58 = vadd.f32 %v14426_v57, %v14425_v52  ;;  %v14710_v59 = vadd.f32 %v14709_v50, %v14333_v47  ;;  %v14427_v60 = vsel %vm18222_vm3, %v13580_v56, 0.0 }
 0x12f   : > { %11338 = vmatpush1.bf16.msra.mxu0 %v18097_v29  ;;  %11391 = vmatpush1.bf16.msra.mxu1 %v18174_v41  ;;  %v14428_v63 = vsel %vm18241_vm4, %v13581_v61, 0.0  ;;  %v18337_v29 = vld [vmem:[%s17723_s25 + $0x68] ss:$400 sps:$4 sm:$0xff]   ;;  %v13774_v24 = vand.u32 127, %v13680_v6  ;;  %vm18428_vm7 = vcmp.lt.s32.totalorder %v13773_v11, 94 }
 0x130   : > { %11339 = vmatprep.subr.bf16.mxu0 %v18144_v33  ;;  %11392 = vmatprep.subr.bf16.mxu1 %v18181_v43  ;;  %v18312_v62 = vadd.f32 %v14710_v59, %v14334_v28  ;;  %v14805_v0 = vadd.f32 %v14804_v58, %v14427_v60  ;;  %v18342_v33 = vld [vmem:[%s17723_s25 + $0x64] ss:$400 sps:$4 sm:$0xff]  }
 0x131   : > { %v18425_v28 = vld [vmem:[%s17723_s25 + $0x394] ss:$400 sps:$4 sm:$0xff]   ;;  %vm18438_vm8 = vcmp.lt.s32.totalorder %v13774_v24, 94 }
 0x132   : > { %11272 = vmatmul.mubr.bf16.gmra.mrb[36].mxu0 %v18127_v32  ;;  %11325 = vmatmul.mubr.bf16.gmra.mrb[36].mxu1 %v18127_v32  ;;  %v18318_v2 = vadd.f32 %v14805_v0, %v14428_v63 }
 0x133   : > { %11340 = vmatpush1.bf16.msra.mxu0 %v18148_v34  ;;  %11393 = vmatpush1.bf16.msra.mxu1 %v18188_v45  ;;  %v18347_v34 = vld [vmem:[%s17723_s25 + $0x388] ss:$400 sps:$4 sm:$0xff]  }
 0x134   : > { %11341 = vmatprep.subr.bf16.mxu0 %v18152_v35  ;;  %11394 = vmatprep.subr.bf16.mxu1 %v18195_v48  ;;  %v18352_v35 = vld [vmem:[%s17723_s25 + $0x384] ss:$400 sps:$4 sm:$0xff]  }
 0x135   : > { %16796 = vmatprep.mubr.msk.bf16.mxu0 %vm10798_vm0, %v18032_v13  ;;  %16798 = vmatprep.mubr.msk.bf16.mxu1 %vm10798_vm0, %v18032_v13 }
 0x137   : > { %11342 = vmatpush1.bf16.msra.mxu0 %v18156_v36  ;;  %11395 = vmatpush1.bf16.msra.mxu1 %v18201_v51  ;;  %v18357_v36 = vld [vmem:[%s17723_s25 + $0x6c] ss:$400 sps:$4 sm:$0xff]  }
 0x138   : > { %11343 = vmatprep.subr.bf16.mxu0 %v18160_v37  ;;  %11396 = vmatprep.subr.bf16.mxu1 %v18208_v54  ;;  %v18362_v37 = vld [vmem:[%s17723_s25 + $0x68] ss:$400 sps:$4 sm:$0xff]  }
 0x13b   : > { %11344 = vmatpush1.bf16.msra.mxu0 %v18164_v38  ;;  %11397 = vmatpush1.bf16.msra.mxu1 %v18228_v5  ;;  %v18367_v38 = vld [vmem:[%s17723_s25 + $0x38c] ss:$400 sps:$4 sm:$0xff]  }
 0x13c   : > { %11345 = vmatprep.subr.bf16.mxu0 %v18169_v40  ;;  %11398 = vmatprep.subr.bf16.mxu1 %v18235_v12  ;;  %v18372_v40 = vld [vmem:[%s17723_s25 + $0x388] ss:$400 sps:$4 sm:$0xff]  }
 0x13f   : > { %11346 = vmatpush1.bf16.msra.mxu0 %v18174_v41  ;;  %11399 = vmatpush1.bf16.msra.mxu1 %v18252_v39  ;;  %v18377_v41 = vld [vmem:[%s17723_s25 + $0x70] ss:$400 sps:$4 sm:$0xff]  }
 0x140   : > { %11347 = vmatprep.subr.bf16.mxu0 %v18181_v43  ;;  %11400 = vmatprep.subr.bf16.mxu1 %v18337_v29  ;;  %v13677_v43 = vadd.s32 512, %v18176_v42 }
 0x142   : > { %v13771_v1 = vand.u32 127, %v13677_v43 }
 0x143   : > { %11348 = vmatpush1.bf16.msra.mxu0 %v18188_v45  ;;  %11401 = vmatpush1.bf16.msra.mxu1 %v18342_v33  ;;  %v18383_v45 = vld [vmem:[%s17723_s25 + $0x6c] ss:$400 sps:$4 sm:$0xff]  }
 0x144   : > { %11349 = vmatprep.subr.bf16.mxu0 %v18195_v48  ;;  %11402 = vmatprep.subr.bf16.mxu1 %v18347_v34  ;;  %v13678_v48 = vadd.s32 640, %v18176_v42  ;;  %vm18404_vm5 = vcmp.lt.s32.totalorder %v13771_v1, 94 }
 0x146   : > { %v13772_v3 = vand.u32 127, %v13678_v48 }
 0x147   : > { %11350 = vmatpush1.bf16.msra.mxu0 %v18201_v51  ;;  %11403 = vmatpush1.bf16.msra.mxu1 %v18352_v35  ;;  %v18389_v51 = vld [vmem:[%s17723_s25 + $0x390] ss:$400 sps:$4 sm:$0xff]  }
 0x148   : > { %11351 = vmatprep.subr.bf16.mxu0 %v18208_v54  ;;  %11404 = vmatprep.subr.bf16.mxu1 %v18357_v36  ;;  %vm18410_vm6 = vcmp.lt.s32.totalorder %v13772_v3, 94 }
 0x14b   : > { %11352 = vmatpush1.bf16.msra.mxu0 %v18228_v5  ;;  %11405 = vmatpush1.bf16.msra.mxu1 %v18362_v37 }
 0x14c   : > { %11353 = vmatprep.subr.bf16.mxu0 %v18235_v12  ;;  %11406 = vmatprep.subr.bf16.mxu1 %v18367_v38 }
 0x14f   : > { %11354 = vmatpush1.bf16.msra.mxu0 %v18252_v39  ;;  %11407 = vmatpush1.bf16.msra.mxu1 %v18372_v40 }
 0x150   : > { %11355 = vmatprep.subr.bf16.mxu0 %v18337_v29  ;;  %11408 = vmatprep.subr.bf16.mxu1 %v18377_v41 }
 0x153   : > { %11356 = vmatpush1.bf16.msra.mxu0 %v18342_v33  ;;  %11409 = vmatpush1.bf16.msra.mxu1 %v18383_v45 }
 0x154   : > { %11357 = vmatprep.subr.bf16.mxu0 %v18347_v34  ;;  %11410 = vmatprep.subr.bf16.mxu1 %v18389_v51 }
 0x155   : > { %v10945_v8 = vpop.f32.mrb[8].mxu0  ;;  %v10998_v10 = vpop.f32.mrb[8].mxu1 }
 0x156   : > { %v10946_v14 = vadd.f32 %v10945_v8, %v18183_v44  ;;  %v10947_v16 = vpop.f32.mrb[9].mxu0  ;;  %v10999_v17 = vadd.f32 %v10998_v10, %v18183_v44  ;;  %v11000_v18 = vpop.f32.mrb[9].mxu1  ;;  %v18445_v8 = vld [vmem:[%s17723_s25 + $0x390] ss:$400 sps:$4 sm:$0xff]  }
 0x157   : > { %v10948_v19 = vadd.f32 %v10947_v16, %v18183_v44  ;;  %v10949_v26 = vpop.f32.mrb[10].mxu0  ;;  %11358 = vmatpush1.bf16.msra.mxu0 %v18352_v35  ;;  %11411 = vmatpush1.bf16.msra.mxu1 %v18395_v4  ;;  %v11001_v23 = vadd.f32 %v11000_v18, %v18183_v44  ;;  %v11002_v46 = vpop.f32.mrb[10].mxu1 }
 0x158   : > { %v13300_v47 = vmax.f32 %v10946_v14, 0.0  ;;  %v10950_v50 = vadd.f32 %v10949_v26, %v18205_v53  ;;  %v10951_v52 = vpop.f32.mrb[11].mxu0  ;;  %v13302_v56 = vmax.f32 %v10999_v17, 0.0  ;;  %11359 = vmatprep.subr.bf16.mxu0 %v18357_v36  ;;  %11412 = vmatprep.subr.bf16.mxu1 %v18401_v7  ;;  %v11003_v27 = vadd.f32 %v11002_v46, %v18205_v53  ;;  %v11004_v57 = vpop.f32.mrb[11].mxu1 }
 0x159   : > { %v13301_v58 = vmax.f32 %v10948_v19, 0.0  ;;  %v10952_v59 = vadd.f32 %v10951_v52, %v18205_v53  ;;  %v11005_v61 = vadd.f32 %v11004_v57, %v18205_v53  ;;  %v13303_v43 = vmax.f32 %v11001_v23, 0.0 }
 0x15a   : > { %v14147_v0 = vsel %vm18404_vm5, %v13300_v47, 0.0  ;;  %v13394_v63 = vmax.f32 %v10950_v50, 0.0  ;;  %v13396_v48 = vmax.f32 %v11003_v27, 0.0 }
 0x15b   : > { %v14522_v20 = vadd.f32 %v18274_v9, %v14147_v0  ;;  %v14148_v1 = vsel %vm18410_vm6, %v13301_v58, 0.0  ;;  %v13395_v3 = vmax.f32 %v10952_v59, 0.0  ;;  %11360 = vmatpush1.bf16.msra.mxu0 %v18362_v37  ;;  %11413 = vmatpush1.bf16.msra.mxu1 %v18418_v25  ;;  %v14149_v9 = vsel %vm18428_vm7, %v13302_v56, 0.0 }
 0x15c   : > { %v14241_v10 = vsel %vm18404_vm5, %v13394_v63, 0.0  ;;  %v13397_v11 = vmax.f32 %v11005_v61, 0.0  ;;  %11361 = vmatprep.subr.bf16.mxu0 %v18367_v38  ;;  %11414 = vmatprep.subr.bf16.mxu1 %v18425_v28  ;;  %v14150_v26 = vsel %vm18438_vm8, %v13303_v43, 0.0  ;;  %v14243_v23 = vsel %vm18428_vm7, %v13396_v48, 0.0 }
 0x15d   : > { %v14523_v14 = vadd.f32 %v14522_v20, %v14148_v1  ;;  %v14617_v16 = vadd.f32 %v18280_v22, %v14241_v10  ;;  %v14242_v17 = vsel %vm18410_vm6, %v13395_v3, 0.0  ;;  %v10955_v18 = vpop.f32.mrb[12].mxu0  ;;  %v11008_v19 = vpop.f32.mrb[12].mxu1 }
 0x15e   : > { %v10956_v24 = vadd.f32 %v10955_v18, %v18210_v55  ;;  %v10957_v46 = vpop.f32.mrb[13].mxu0  ;;  %v11009_v47 = vadd.f32 %v11008_v19, %v18210_v55  ;;  %v11010_v50 = vpop.f32.mrb[13].mxu1  ;;  %v14244_v22 = vsel %vm18438_vm8, %v13397_v11, 0.0 }
 0x15f   : > { %v14618_v52 = vadd.f32 %v14617_v16, %v14242_v17  ;;  %v14524_v56 = vadd.f32 %v14523_v14, %v14149_v9  ;;  %v10958_v27 = vadd.f32 %v10957_v46, %v18210_v55  ;;  %v10959_v57 = vpop.f32.mrb[14].mxu0  ;;  %11362 = vmatpush1.bf16.msra.mxu0 %v18372_v40  ;;  %11415 = vmatpush1.bf16.msra.mxu1 %v18445_v8  ;;  %v11012_v58 = vpop.f32.mrb[14].mxu1 }
 0x160   : > { %v13488_v59 = vmax.f32 %v10956_v24, 0.0  ;;  %v10960_v61 = vadd.f32 %v10959_v57, %v18258_v49  ;;  %v10961_v0 = vpop.f32.mrb[15].mxu0  ;;  %v13490_v63 = vmax.f32 %v11009_v47, 0.0  ;;  %v11011_v43 = vadd.f32 %v11010_v50, %v18210_v55  ;;  %11441 = vmatprep.subr.bf16.mxu0 %v18208_v54  ;;  %11494 = vmatprep.subr.bf16.mxu1 %v18357_v36  ;;  %v11014_v48 = vpop.f32.mrb[15].mxu1 }
 0x161   : > { %v18471_v20 = vadd.f32 %v14524_v56, %v14150_v26  ;;  %v14619_v1 = vadd.f32 %v14618_v52, %v14243_v23  ;;  %v13489_v3 = vmax.f32 %v10958_v27, 0.0  ;;  %v10962_v10 = vadd.f32 %v10961_v0, %v18258_v49  ;;  %v18591_v27 = vld [vmem:[%s17723_s25 + $0x39c] ss:$400 sps:$4 sm:$0xff]  }
 0x162   : > { %v14335_v9 = vsel %vm18404_vm5, %v13488_v59, 0.0  ;;  %v13582_v11 = vmax.f32 %v10960_v61, 0.0  ;;  %v13491_v14 = vmax.f32 %v11011_v43, 0.0  ;;  %11368 = vmatmul.mubr.bf16.vlgmr.msra.gmra.mrb[40].mxu0 %v18106_v30  ;;  %11421 = vmatmul.mubr.bf16.vlgmr.msra.gmra.mrb[40].mxu1 %v18106_v30  ;;  %v14337_v26 = vsel %vm18428_vm7, %v13490_v63, 0.0 }
 0x163   : > { %v14712_v54 = vadd.f32 %v18312_v62, %v14335_v9  ;;  %v18479_v16 = vadd.f32 %v14619_v1, %v14244_v22  ;;  %v14336_v17 = vsel %vm18410_vm6, %v13489_v3, 0.0  ;;  %v13583_v18 = vmax.f32 %v10962_v10, 0.0  ;;  %11442 = vmatpush1.bf16.msra.mxu0 %v18228_v5  ;;  %11495 = vmatpush1.bf16.msra.mxu1 %v18362_v37 }
 0x164   : > { %v14429_v19 = vsel %vm18404_vm5, %v13582_v11, 0.0  ;;  %v11013_v23 = vadd.f32 %v11012_v58, %v18258_v49  ;;  %v11015_v62 = vadd.f32 %v11014_v48, %v18258_v49  ;;  %11443 = vmatprep.subr.bf16.mxu0 %v18235_v12  ;;  %11496 = vmatprep.subr.bf16.mxu1 %v18367_v38  ;;  %v14338_v15 = vsel %vm18438_vm8, %v13491_v14, 0.0  ;;  %v18597_v58 = vld [vmem:[%s17723_s25 + $0x84] ss:$400 sps:$4 sm:$0xff]  }
 0x165   : > { %v14713_v24 = vadd.f32 %v14712_v54, %v14336_v17  ;;  %v14807_v46 = vadd.f32 %v18318_v2, %v14429_v19  ;;  %v14430_v5 = vsel %vm18410_vm6, %v13583_v18, 0.0  ;;  %16797 = vmatprep.mubr.msk.bf16.mxu0 %vm10798_vm0, %v18116_v31  ;;  %16799 = vmatprep.mubr.msk.bf16.mxu1 %vm10798_vm0, %v18116_v31  ;;  %v13684_v57 = vadd.s32 1408, %v18176_v42  ;;  %v18614_v17 = vld [vmem:[%s17723_s25 + $0x80] ss:$400 sps:$4 sm:$0xff]  }
 0x166   : > { %v13584_v47 = vmax.f32 %v11013_v23, 0.0  ;;  %v13585_v50 = vmax.f32 %v11015_v62, 0.0 }
 0x167   : > { %v14808_v12 = vadd.f32 %v14807_v46, %v14430_v5  ;;  %v14714_v52 = vadd.f32 %v14713_v24, %v14337_v26  ;;  %11444 = vmatpush1.bf16.msra.mxu0 %v18252_v39  ;;  %11497 = vmatpush1.bf16.msra.mxu1 %v18372_v40  ;;  %v13778_v54 = vand.u32 127, %v13684_v57  ;;  %v18621_v5 = vld [vmem:[%s17723_s25 + $0x3a4] ss:$400 sps:$4 sm:$0xff]  }
 0x168   : > { %v14431_v2 = vsel %vm18428_vm7, %v13584_v47, 0.0  ;;  %v14432_v21 = vsel %vm18438_vm8, %v13585_v50, 0.0  ;;  %11445 = vmatprep.subr.bf16.mxu0 %v18337_v29  ;;  %11498 = vmatprep.subr.bf16.mxu1 %v18377_v41  ;;  %v18543_v29 = vld [vmem:[%s17723_s25 + $0x398] ss:$400 sps:$4 sm:$0xff]   ;;  %v13686_v50 = vadd.s32 1664, %v18176_v42 }
 0x169   : > { %v18510_v56 = vadd.f32 %v14714_v52, %v14338_v15  ;;  %v14809_v22 = vadd.f32 %v14808_v12, %v14431_v2  ;;  %vm18634_vm12 = vcmp.lt.s32.totalorder %v13778_v54, 94 }
 0x16a   : > { %11378 = vmatmul.mubr.bf16.gmra.mrb[44].mxu0 %v18127_v32  ;;  %11431 = vmatmul.mubr.bf16.gmra.mrb[44].mxu1 %v18127_v32  ;;  %v18538_v32 = vld [vmem:[%s17723_s25 + $0x74] ss:$400 sps:$4 sm:$0xff]  }
 0x16b   : > { %v18514_v39 = vadd.f32 %v14809_v22, %v14432_v21  ;;  %11446 = vmatpush1.bf16.msra.mxu0 %v18342_v33  ;;  %11499 = vmatpush1.bf16.msra.mxu1 %v18383_v45  ;;  %v18548_v33 = vld [vmem:[%s17723_s25 + $0x394] ss:$400 sps:$4 sm:$0xff]  }
 0x16c   : > { %11447 = vmatprep.subr.bf16.mxu0 %v18347_v34  ;;  %11500 = vmatprep.subr.bf16.mxu1 %v18389_v51  ;;  %v18553_v34 = vld [vmem:[%s17723_s25 + $0x7c] ss:$400 sps:$4 sm:$0xff]  }
 0x16d   : > { %16800 = vmatprep.mubr.msk.bf16.mxu0 %vm10798_vm0, %v18032_v13  ;;  %16802 = vmatprep.mubr.msk.bf16.mxu1 %vm10798_vm0, %v18032_v13  ;;  %v18533_v13 = vld [vmem:[%s17723_s25 + $0x78] ss:$400 sps:$4 sm:$0xff]  }
 0x16f   : > { %11448 = vmatpush1.bf16.msra.mxu0 %v18352_v35  ;;  %11501 = vmatpush1.bf16.msra.mxu1 %v18395_v4  ;;  %v18558_v35 = vld [vmem:[%s17723_s25 + $0x78] ss:$400 sps:$4 sm:$0xff]  }
 0x170   : > { %11449 = vmatprep.subr.bf16.mxu0 %v18357_v36  ;;  %11502 = vmatprep.subr.bf16.mxu1 %v18401_v7  ;;  %v18563_v36 = vld [vmem:[%s17723_s25 + $0x39c] ss:$400 sps:$4 sm:$0xff]  }
 0x173   : > { %11450 = vmatpush1.bf16.msra.mxu0 %v18362_v37  ;;  %11503 = vmatpush1.bf16.msra.mxu1 %v18418_v25  ;;  %v18568_v37 = vld [vmem:[%s17723_s25 + $0x398] ss:$400 sps:$4 sm:$0xff]  }
 0x174   : > { %11451 = vmatprep.subr.bf16.mxu0 %v18367_v38  ;;  %11504 = vmatprep.subr.bf16.mxu1 %v18425_v28  ;;  %v18573_v38 = vld [vmem:[%s17723_s25 + $0x80] ss:$400 sps:$4 sm:$0xff]  }
 0x177   : > { %11452 = vmatpush1.bf16.msra.mxu0 %v18372_v40  ;;  %11505 = vmatpush1.bf16.msra.mxu1 %v18445_v8  ;;  %v13681_v40 = vadd.s32 1024, %v18176_v42 }
 0x178   : > { %11453 = vmatprep.subr.bf16.mxu0 %v18377_v41  ;;  %11506 = vmatprep.subr.bf16.mxu1 %v18533_v13  ;;  %v18579_v41 = vld [vmem:[%s17723_s25 + $0x7c] ss:$400 sps:$4 sm:$0xff]  }
 0x179   : > { %v13775_v60 = vand.u32 127, %v13681_v40 }
 0x17b   : > { %11454 = vmatpush1.bf16.msra.mxu0 %v18383_v45  ;;  %11507 = vmatpush1.bf16.msra.mxu1 %v18538_v32  ;;  %v13682_v45 = vadd.s32 1152, %v18176_v42  ;;  %vm18600_vm9 = vcmp.lt.s32.totalorder %v13775_v60, 94  ;;  %v18791_v60 = vld [vmem:[%s17723_s25 + $0x3b0] ss:$400 sps:$4 sm:$0xff]  }
 0x17c   : > { %11455 = vmatprep.subr.bf16.mxu0 %v18389_v51  ;;  %11508 = vmatprep.subr.bf16.mxu1 %v18543_v29  ;;  %v18585_v51 = vld [vmem:[%s17723_s25 + $0x3a0] ss:$400 sps:$4 sm:$0xff]  }
 0x17d   : > { %v13776_v6 = vand.u32 127, %v13682_v45 }
 0x17f   : > { %11456 = vmatpush1.bf16.msra.mxu0 %v18395_v4  ;;  %11509 = vmatpush1.bf16.msra.mxu1 %v18548_v33  ;;  %v13683_v4 = vadd.s32 1280, %v18176_v42  ;;  %vm18606_vm10 = vcmp.lt.s32.totalorder %v13776_v6, 94  ;;  %v18641_v6 = vld [vmem:[%s17723_s25 + $0x3a0] ss:$400 sps:$4 sm:$0xff]  }
 0x180   : > { %11457 = vmatprep.subr.bf16.mxu0 %v18401_v7  ;;  %11510 = vmatprep.subr.bf16.mxu1 %v18553_v34 }
 0x181   : > { %v13777_v0 = vand.u32 127, %v13683_v4 }
 0x183   : > { %11458 = vmatpush1.bf16.msra.mxu0 %v18418_v25  ;;  %11511 = vmatpush1.bf16.msra.mxu1 %v18558_v35  ;;  %vm18624_vm11 = vcmp.lt.s32.totalorder %v13777_v0, 94 }
 0x184   : > { %11459 = vmatprep.subr.bf16.mxu0 %v18425_v28  ;;  %11512 = vmatprep.subr.bf16.mxu1 %v18563_v36 }
 0x187   : > { %11460 = vmatpush1.bf16.msra.mxu0 %v18445_v8  ;;  %11513 = vmatpush1.bf16.msra.mxu1 %v18568_v37 }
 0x188   : > { %11461 = vmatprep.subr.bf16.mxu0 %v18533_v13  ;;  %11514 = vmatprep.subr.bf16.mxu1 %v18573_v38 }
 0x18b   : > { %11462 = vmatpush1.bf16.msra.mxu0 %v18538_v32  ;;  %11515 = vmatpush1.bf16.msra.mxu1 %v18579_v41 }
 0x18c   : > { %11463 = vmatprep.subr.bf16.mxu0 %v18543_v29  ;;  %11516 = vmatprep.subr.bf16.mxu1 %v18585_v51 }
 0x18d   : > { %v11051_v59 = vpop.f32.mrb[16].mxu0  ;;  %v11104_v61 = vpop.f32.mrb[16].mxu1 }
 0x18e   : > { %v11052_v63 = vadd.f32 %v11051_v59, %v18183_v44  ;;  %v11053_v48 = vpop.f32.mrb[17].mxu0  ;;  %v11105_v1 = vadd.f32 %v11104_v61, %v18183_v44  ;;  %v11106_v3 = vpop.f32.mrb[17].mxu1 }
 0x18f   : > { %v11054_v10 = vadd.f32 %v11053_v48, %v18183_v44  ;;  %v11055_v11 = vpop.f32.mrb[18].mxu0  ;;  %11464 = vmatpush1.bf16.msra.mxu0 %v18548_v33  ;;  %11517 = vmatpush1.bf16.msra.mxu1 %v18591_v27  ;;  %v11107_v14 = vadd.f32 %v11106_v3, %v18183_v44  ;;  %v11108_v18 = vpop.f32.mrb[18].mxu1 }
 0x190   : > { %v13304_v19 = vmax.f32 %v11052_v63, 0.0  ;;  %v11056_v26 = vadd.f32 %v11055_v11, %v18205_v53  ;;  %v11057_v23 = vpop.f32.mrb[19].mxu0  ;;  %v13306_v62 = vmax.f32 %v11105_v1, 0.0  ;;  %11465 = vmatprep.subr.bf16.mxu0 %v18553_v34  ;;  %11518 = vmatprep.subr.bf16.mxu1 %v18597_v58  ;;  %v11109_v24 = vadd.f32 %v11108_v18, %v18205_v53  ;;  %v11110_v46 = vpop.f32.mrb[19].mxu1 }
 0x191   : > { %v13305_v15 = vmax.f32 %v11054_v10, 0.0  ;;  %v11058_v47 = vadd.f32 %v11057_v23, %v18205_v53  ;;  %v11111_v12 = vadd.f32 %v11110_v46, %v18205_v53  ;;  %v13307_v21 = vmax.f32 %v11107_v14, 0.0 }
 0x192   : > { %v14151_v52 = vsel %vm18600_vm9, %v13304_v19, 0.0  ;;  %v13398_v2 = vmax.f32 %v11056_v26, 0.0  ;;  %v13400_v22 = vmax.f32 %v11109_v24, 0.0 }
 0x193   : > { %v14526_v40 = vadd.f32 %v18471_v20, %v14151_v52  ;;  %v14152_v45 = vsel %vm18606_vm10, %v13305_v15, 0.0  ;;  %v13399_v4 = vmax.f32 %v11058_v47, 0.0  ;;  %11466 = vmatpush1.bf16.msra.mxu0 %v18558_v35  ;;  %11519 = vmatpush1.bf16.msra.mxu1 %v18614_v17  ;;  %v14153_v20 = vsel %vm18624_vm11, %v13306_v62, 0.0 }
 0x194   : > { %v14245_v57 = vsel %vm18600_vm9, %v13398_v2, 0.0  ;;  %v13401_v59 = vmax.f32 %v11111_v12, 0.0  ;;  %11467 = vmatprep.subr.bf16.mxu0 %v18563_v36  ;;  %11520 = vmatprep.subr.bf16.mxu1 %v18621_v5  ;;  %v14154_v3 = vsel %vm18634_vm12, %v13307_v21, 0.0  ;;  %v14247_v10 = vsel %vm18624_vm11, %v13400_v22, 0.0 }
 0x195   : > { %v14527_v61 = vadd.f32 %v14526_v40, %v14152_v45  ;;  %v14621_v0 = vadd.f32 %v18479_v16, %v14245_v57  ;;  %v14246_v63 = vsel %vm18606_vm10, %v13399_v4, 0.0  ;;  %v11061_v48 = vpop.f32.mrb[20].mxu0  ;;  %v11114_v1 = vpop.f32.mrb[20].mxu1 }
 0x196   : > { %v11062_v11 = vadd.f32 %v11061_v48, %v18210_v55  ;;  %v11063_v14 = vpop.f32.mrb[21].mxu0  ;;  %v11115_v54 = vadd.f32 %v11114_v1, %v18210_v55  ;;  %v11116_v18 = vpop.f32.mrb[21].mxu1  ;;  %v14248_v16 = vsel %vm18634_vm12, %v13401_v59, 0.0 }
 0x197   : > { %v14622_v19 = vadd.f32 %v14621_v0, %v14246_v63  ;;  %v14528_v26 = vadd.f32 %v14527_v61, %v14153_v20  ;;  %v11064_v23 = vadd.f32 %v11063_v14, %v18210_v55  ;;  %v11065_v62 = vpop.f32.mrb[22].mxu0  ;;  %11468 = vmatpush1.bf16.msra.mxu0 %v18568_v37  ;;  %11521 = vmatpush1.bf16.msra.mxu1 %v18641_v6  ;;  %v11118_v24 = vpop.f32.mrb[22].mxu1 }
 0x198   : > { %v13492_v46 = vmax.f32 %v11062_v11, 0.0  ;;  %v11066_v15 = vadd.f32 %v11065_v62, %v18258_v49  ;;  %v11067_v47 = vpop.f32.mrb[23].mxu0  ;;  %v13494_v12 = vmax.f32 %v11115_v54, 0.0  ;;  %v11117_v52 = vadd.f32 %v11116_v18, %v18210_v55  ;;  %11547 = vmatprep.subr.bf16.mxu0 %v18401_v7  ;;  %11600 = vmatprep.subr.bf16.mxu1 %v18553_v34  ;;  %v11120_v2 = vpop.f32.mrb[23].mxu1  ;;  %v18711_v18 = vld [vmem:[%s22364_s1 + $0x10] ss:$8 sps:$4 sm:$0xff]  }
 0x199   : > { %v18667_v21 = vadd.f32 %v14528_v26, %v14154_v3  ;;  %v14623_v22 = vadd.f32 %v14622_v19, %v14247_v10  ;;  %v13493_v40 = vmax.f32 %v11064_v23, 0.0  ;;  %v11068_v45 = vadd.f32 %v11067_v47, %v18258_v49  ;;  %v18797_v23 = vld [vmem:[%s17723_s25 + $0x3ac] ss:$400 sps:$4 sm:$0xff]  }
 0x19a   : > { %v14339_v4 = vsel %vm18600_vm9, %v13492_v46, 0.0  ;;  %v13586_v57 = vmax.f32 %v11066_v15, 0.0  ;;  %v13495_v20 = vmax.f32 %v11117_v52, 0.0  ;;  %11474 = vmatmul.mubr.bf16.vlgmr.msra.gmra.mrb[48].mxu0 %v18106_v30  ;;  %11527 = vmatmul.mubr.bf16.vlgmr.msra.gmra.mrb[48].mxu1 %v18106_v30  ;;  %v14341_v48 = vsel %vm18624_vm11, %v13494_v12, 0.0  ;;  %v18906_v52 = vld [vmem:[%s22364_s1 + $0x14] ss:$8 sps:$4 sm:$0xff]  }
 0x19b   : > { %v14716_v7 = vadd.f32 %v18510_v56, %v14339_v4  ;;  %v18675_v59 = vadd.f32 %v14623_v22, %v14248_v16  ;;  %v14340_v61 = vsel %vm18606_vm10, %v13493_v40, 0.0  ;;  %v13587_v0 = vmax.f32 %v11068_v45, 0.0  ;;  %11548 = vmatpush1.bf16.msra.mxu0 %v18418_v25  ;;  %11601 = vmatpush1.bf16.msra.mxu1 %v18558_v35 }
 0x19c   : > { %v14433_v63 = vsel %vm18600_vm9, %v13586_v57, 0.0  ;;  %v11119_v30 = vadd.f32 %v11118_v24, %v18258_v49  ;;  %v11121_v56 = vadd.f32 %v11120_v2, %v18258_v49  ;;  %11549 = vmatprep.subr.bf16.mxu0 %v18425_v28  ;;  %11602 = vmatprep.subr.bf16.mxu1 %v18563_v36  ;;  %v14342_v43 = vsel %vm18634_vm12, %v13495_v20, 0.0  ;;  %v18803_v24 = vld [vmem:[%s17723_s25 + $0x94] ss:$400 sps:$4 sm:$0xff]  }
 0x19d   : > { %v14717_v1 = vadd.f32 %v14716_v7, %v14340_v61  ;;  %v14811_v3 = vadd.f32 %v18514_v39, %v14433_v63  ;;  %v14434_v25 = vsel %vm18606_vm10, %v13587_v0, 0.0  ;;  %16801 = vmatprep.mubr.msk.bf16.mxu0 %vm10798_vm0, %v18116_v31  ;;  %16803 = vmatprep.mubr.msk.bf16.mxu1 %vm10798_vm0, %v18116_v31  ;;  %v13687_v19 = vadd.s32 1792, %v18176_v42  ;;  %v18820_v61 = vld [vmem:[%s17723_s25 + $0x90] ss:$400 sps:$4 sm:$0xff]  }
 0x19e   : > { %v13588_v10 = vmax.f32 %v11119_v30, 0.0  ;;  %v13589_v11 = vmax.f32 %v11121_v56, 0.0  ;;  %v13780_v16 = vand.u32 127, %v13686_v50  ;;  %v13688_v62 = vadd.s32 1920, %v18176_v42 }
 0x19f   : > { %v14812_v28 = vadd.f32 %v14811_v3, %v14434_v25  ;;  %v14718_v14 = vadd.f32 %v14717_v1, %v14341_v48  ;;  %11550 = vmatpush1.bf16.msra.mxu0 %v18445_v8  ;;  %11603 = vmatpush1.bf16.msra.mxu1 %v18568_v37  ;;  %v13781_v47 = vand.u32 127, %v13687_v19  ;;  %v18827_v25 = vld [vmem:[%s17723_s25 + $0x3b4] ss:$400 sps:$4 sm:$0xff]  }
 0x1a0   : > { %v14435_v39 = vsel %vm18624_vm11, %v13588_v10, 0.0  ;;  %v14436_v9 = vsel %vm18634_vm12, %v13589_v11, 0.0  ;;  %11551 = vmatprep.subr.bf16.mxu0 %v18533_v13  ;;  %11604 = vmatprep.subr.bf16.mxu1 %v18573_v38  ;;  %v18724_v13 = vld [vmem:[%s22364_s1 + $0x4] ss:$8 sps:$4 sm:$0xff]   ;;  %vm18812_vm14 = vcmp.lt.s32.totalorder %v13780_v16, 94  ;;  %v13782_v7 = vand.u32 127, %v13688_v62 }
 0x1a1   : > { %v18706_v31 = vadd.f32 %v14718_v14, %v14342_v43  ;;  %v14813_v54 = vadd.f32 %v14812_v28, %v14435_v39  ;;  %vm18830_vm15 = vcmp.lt.s32.totalorder %v13781_v47, 94  ;;  %v18847_v16 = vld [vmem:[%s17723_s25 + $0x3b0] ss:$400 sps:$4 sm:$0xff]  }
 0x1a2   : > { %11484 = vmatmul.mubr.bf16.gmra.mrb[52].mxu0 %v18711_v18  ;;  %11537 = vmatmul.mubr.bf16.gmra.mrb[52].mxu1 %v18711_v18  ;;  %vm18840_vm1 = vcmp.lt.s32.totalorder %v13782_v7, 94  ;;  %v18997_v11 = vld [vmem:[%s17723_s25 + $0x3c0] ss:$400 sps:$4 sm:$0xff]  }
 0x1a3   : > { %v18715_v8 = vadd.f32 %v14813_v54, %v14436_v9  ;;  %11552 = vmatpush1.bf16.msra.mxu0 %v18538_v32  ;;  %11605 = vmatpush1.bf16.msra.mxu1 %v18579_v41  ;;  %v18739_v32 = vld [vmem:[%s17723_s25 + $0x88] ss:$400 sps:$4 sm:$0xff]  }
 0x1a4   : > { %11553 = vmatprep.subr.bf16.mxu0 %v18543_v29  ;;  %11606 = vmatprep.subr.bf16.mxu1 %v18585_v51  ;;  %v18744_v29 = vld [vmem:[%s17723_s25 + $0x84] ss:$400 sps:$4 sm:$0xff]  }
 0x1a5   : > { %16804 = vmatprep.mubr.msk.bf16.mxu0 %vm10798_vm0, %v18724_v13  ;;  %16806 = vmatprep.mubr.msk.bf16.mxu1 %vm10798_vm0, %v18724_v13 }
 0x1a7   : > { %11554 = vmatpush1.bf16.msra.mxu0 %v18548_v33  ;;  %11607 = vmatpush1.bf16.msra.mxu1 %v18591_v27  ;;  %v18749_v33 = vld [vmem:[%s17723_s25 + $0x3a8] ss:$400 sps:$4 sm:$0xff]  }
 0x1a8   : > { %11555 = vmatprep.subr.bf16.mxu0 %v18553_v34  ;;  %11608 = vmatprep.subr.bf16.mxu1 %v18597_v58  ;;  %v18754_v34 = vld [vmem:[%s17723_s25 + $0x3a4] ss:$400 sps:$4 sm:$0xff]  }
 0x1ab   : > { %11556 = vmatpush1.bf16.msra.mxu0 %v18558_v35  ;;  %11609 = vmatpush1.bf16.msra.mxu1 %v18614_v17  ;;  %v18759_v35 = vld [vmem:[%s17723_s25 + $0x8c] ss:$400 sps:$4 sm:$0xff]  }
 0x1ac   : > { %11557 = vmatprep.subr.bf16.mxu0 %v18563_v36  ;;  %11610 = vmatprep.subr.bf16.mxu1 %v18621_v5  ;;  %v18764_v36 = vld [vmem:[%s17723_s25 + $0x88] ss:$400 sps:$4 sm:$0xff]  }
 0x1af   : > { %11558 = vmatpush1.bf16.msra.mxu0 %v18568_v37  ;;  %11611 = vmatpush1.bf16.msra.mxu1 %v18641_v6  ;;  %v18769_v37 = vld [vmem:[%s17723_s25 + $0x3ac] ss:$400 sps:$4 sm:$0xff]  }
 0x1b0   : > { %11559 = vmatprep.subr.bf16.mxu0 %v18573_v38  ;;  %11612 = vmatprep.subr.bf16.mxu1 %v18739_v32  ;;  %v18774_v38 = vld [vmem:[%s17723_s25 + $0x3a8] ss:$400 sps:$4 sm:$0xff]  }
 0x1b3   : > { %11560 = vmatpush1.bf16.msra.mxu0 %v18579_v41  ;;  %11613 = vmatpush1.bf16.msra.mxu1 %v18744_v29  ;;  %v18779_v41 = vld [vmem:[%s17723_s25 + $0x90] ss:$400 sps:$4 sm:$0xff]  }
 0x1b4   : > { %11561 = vmatprep.subr.bf16.mxu0 %v18585_v51  ;;  %11614 = vmatprep.subr.bf16.mxu1 %v18749_v33  ;;  %v13685_v51 = vadd.s32 1536, %v18176_v42 }
 0x1b6   : > { %v13779_v26 = vand.u32 127, %v13685_v51 }
 0x1b7   : > { %11562 = vmatpush1.bf16.msra.mxu0 %v18591_v27  ;;  %11615 = vmatpush1.bf16.msra.mxu1 %v18754_v34  ;;  %v18785_v27 = vld [vmem:[%s17723_s25 + $0x8c] ss:$400 sps:$4 sm:$0xff]  }
 0x1b8   : > { %11563 = vmatprep.subr.bf16.mxu0 %v18597_v58  ;;  %11616 = vmatprep.subr.bf16.mxu1 %v18759_v35  ;;  %vm18806_vm13 = vcmp.lt.s32.totalorder %v13779_v26, 94  ;;  %v13691_v26 = vadd.s32 2304, %v18176_v42 }
 0x1bb   : > { %11564 = vmatpush1.bf16.msra.mxu0 %v18614_v17  ;;  %11617 = vmatpush1.bf16.msra.mxu1 %v18764_v36 }
 0x1bc   : > { %11565 = vmatprep.subr.bf16.mxu0 %v18621_v5  ;;  %11618 = vmatprep.subr.bf16.mxu1 %v18769_v37 }
 0x1bf   : > { %11566 = vmatpush1.bf16.msra.mxu0 %v18641_v6  ;;  %11619 = vmatpush1.bf16.msra.mxu1 %v18774_v38 }
 0x1c0   : > { %11567 = vmatprep.subr.bf16.mxu0 %v18739_v32  ;;  %11620 = vmatprep.subr.bf16.mxu1 %v18779_v41 }
 0x1c3   : > { %11568 = vmatpush1.bf16.msra.mxu0 %v18744_v29  ;;  %11621 = vmatpush1.bf16.msra.mxu1 %v18785_v27 }
 0x1c4   : > { %11569 = vmatprep.subr.bf16.mxu0 %v18749_v33  ;;  %11622 = vmatprep.subr.bf16.mxu1 %v18791_v60 }
 0x1c5   : > { %v11157_v46 = vpop.f32.mrb[24].mxu0  ;;  %v11210_v15 = vpop.f32.mrb[24].mxu1 }
 0x1c6   : > { %v11158_v12 = vadd.f32 %v11157_v46, %v18183_v44  ;;  %v11159_v2 = vpop.f32.mrb[25].mxu0  ;;  %v11211_v22 = vadd.f32 %v11210_v15, %v18183_v44  ;;  %v11212_v40 = vpop.f32.mrb[25].mxu1 }
 0x1c7   : > { %v11160_v45 = vadd.f32 %v11159_v2, %v18183_v44  ;;  %v11161_v57 = vpop.f32.mrb[26].mxu0  ;;  %11570 = vmatpush1.bf16.msra.mxu0 %v18754_v34  ;;  %11623 = vmatpush1.bf16.msra.mxu1 %v18797_v23  ;;  %v11213_v20 = vadd.f32 %v11212_v40, %v18183_v44  ;;  %v11214_v0 = vpop.f32.mrb[26].mxu1 }
 0x1c8   : > { %v13308_v63 = vmax.f32 %v11158_v12, 0.0  ;;  %v11162_v48 = vadd.f32 %v11161_v57, %v18205_v53  ;;  %v11163_v30 = vpop.f32.mrb[27].mxu0  ;;  %v13310_v56 = vmax.f32 %v11211_v22, 0.0  ;;  %11571 = vmatprep.subr.bf16.mxu0 %v18759_v35  ;;  %11624 = vmatprep.subr.bf16.mxu1 %v18803_v24  ;;  %v11215_v1 = vadd.f32 %v11214_v0, %v18205_v53  ;;  %v11216_v3 = vpop.f32.mrb[27].mxu1 }
 0x1c9   : > { %v13309_v43 = vmax.f32 %v11160_v45, 0.0  ;;  %v11164_v10 = vadd.f32 %v11163_v30, %v18205_v53  ;;  %v11217_v28 = vadd.f32 %v11216_v3, %v18205_v53  ;;  %v13311_v9 = vmax.f32 %v11213_v20, 0.0 }
 0x1ca   : > { %v14155_v14 = vsel %vm18806_vm13, %v13308_v63, 0.0  ;;  %v13402_v39 = vmax.f32 %v11162_v48, 0.0  ;;  %v13404_v54 = vmax.f32 %v11215_v1, 0.0 }
 0x1cb   : > { %v14530_v51 = vadd.f32 %v18667_v21, %v14155_v14  ;;  %v14156_v50 = vsel %vm18812_vm14, %v13309_v43, 0.0  ;;  %v13403_v19 = vmax.f32 %v11164_v10, 0.0  ;;  %11572 = vmatpush1.bf16.msra.mxu0 %v18764_v36  ;;  %11625 = vmatpush1.bf16.msra.mxu1 %v18820_v61  ;;  %v14157_v21 = vsel %vm18830_vm15, %v13310_v56, 0.0 }
 0x1cc   : > { %v14249_v62 = vsel %vm18806_vm13, %v13402_v39, 0.0  ;;  %v13405_v46 = vmax.f32 %v11217_v28, 0.0  ;;  %11573 = vmatprep.subr.bf16.mxu0 %v18769_v37  ;;  %11626 = vmatprep.subr.bf16.mxu1 %v18827_v25  ;;  %v14158_v40 = vsel %vm18840_vm1, %v13311_v9, 0.0  ;;  %v14251_v45 = vsel %vm18830_vm15, %v13404_v54, 0.0 }
 0x1cd   : > { %v14531_v15 = vadd.f32 %v14530_v51, %v14156_v50  ;;  %v14625_v47 = vadd.f32 %v18675_v59, %v14249_v62  ;;  %v14250_v12 = vsel %vm18812_vm14, %v13403_v19, 0.0  ;;  %v11167_v2 = vpop.f32.mrb[28].mxu0  ;;  %v11220_v22 = vpop.f32.mrb[28].mxu1 }
 0x1ce   : > { %v11168_v57 = vadd.f32 %v11167_v2, %v18210_v55  ;;  %v11169_v20 = vpop.f32.mrb[29].mxu0  ;;  %v11221_v7 = vadd.f32 %v11220_v22, %v18210_v55  ;;  %v11222_v0 = vpop.f32.mrb[29].mxu1  ;;  %v14252_v59 = vsel %vm18840_vm1, %v13405_v46, 0.0  ;;  %v18881_v46 = vld [vmem:[%s22364_s1] ss:$8 sps:$4 sm:$0xff]  }
 0x1cf   : > { %v14626_v63 = vadd.f32 %v14625_v47, %v14250_v12  ;;  %v14532_v48 = vadd.f32 %v14531_v15, %v14157_v21  ;;  %v11170_v30 = vadd.f32 %v11169_v20, %v18210_v55  ;;  %v11171_v56 = vpop.f32.mrb[30].mxu0  ;;  %11574 = vmatpush1.bf16.msra.mxu0 %v18774_v38  ;;  %11627 = vmatpush1.bf16.msra.mxu1 %v18847_v16  ;;  %v11224_v1 = vpop.f32.mrb[30].mxu1 }
 0x1d0   : > { %v13496_v3 = vmax.f32 %v11168_v57, 0.0  ;;  %v11172_v43 = vadd.f32 %v11171_v56, %v18258_v49  ;;  %v11173_v10 = vpop.f32.mrb[31].mxu0  ;;  %v13498_v28 = vmax.f32 %v11221_v7, 0.0  ;;  %v11223_v14 = vadd.f32 %v11222_v0, %v18210_v55  ;;  %11653 = vmatprep.subr.bf16.mxu0 %v18597_v58  ;;  %11706 = vmatprep.subr.bf16.mxu1 %v18759_v35  ;;  %v11226_v39 = vpop.f32.mrb[31].mxu1 }
 0x1d1   : > { %v18873_v9 = vadd.f32 %v14532_v48, %v14158_v40  ;;  %v14627_v54 = vadd.f32 %v14626_v63, %v14251_v45  ;;  %v13497_v51 = vmax.f32 %v11170_v30, 0.0  ;;  %v11174_v50 = vadd.f32 %v11173_v10, %v18258_v49 }
 0x1d2   : > { %v14343_v19 = vsel %vm18806_vm13, %v13496_v3, 0.0  ;;  %v13590_v62 = vmax.f32 %v11172_v43, 0.0  ;;  %v13499_v21 = vmax.f32 %v11223_v14, 0.0  ;;  %11580 = vmatmul.mubr.bf16.vlgmr.msra.gmra.mrb[56].mxu0 %v18881_v46  ;;  %11633 = vmatmul.mubr.bf16.vlgmr.msra.gmra.mrb[56].mxu1 %v18881_v46  ;;  %v14345_v22 = vsel %vm18830_vm15, %v13498_v28, 0.0  ;;  %v19009_v43 = vld [vmem:[%s17723_s25 + $0xa4] ss:$400 sps:$4 sm:$0xff]  }
 0x1d3   : > { %v14720_v58 = vadd.f32 %v18706_v31, %v14343_v19  ;;  %v18886_v15 = vadd.f32 %v14627_v54, %v14252_v59  ;;  %v14344_v47 = vsel %vm18812_vm14, %v13497_v51, 0.0  ;;  %v13591_v12 = vmax.f32 %v11174_v50, 0.0  ;;  %11654 = vmatpush1.bf16.msra.mxu0 %v18614_v17  ;;  %11707 = vmatpush1.bf16.msra.mxu1 %v18764_v36 }
 0x1d4   : > { %v14437_v2 = vsel %vm18806_vm13, %v13590_v62, 0.0  ;;  %v11225_v40 = vadd.f32 %v11224_v1, %v18258_v49  ;;  %v11227_v31 = vadd.f32 %v11226_v39, %v18258_v49  ;;  %11655 = vmatprep.subr.bf16.mxu0 %v18621_v5  ;;  %11708 = vmatprep.subr.bf16.mxu1 %v18769_v37  ;;  %v14346_v5 = vsel %vm18840_vm1, %v13499_v21, 0.0  ;;  %v19003_v1 = vld [vmem:[%s17723_s25 + $0x3bc] ss:$400 sps:$4 sm:$0xff]  }
 0x1d5   : > { %v14721_v45 = vadd.f32 %v14720_v58, %v14344_v47  ;;  %v14815_v57 = vadd.f32 %v18715_v8, %v14437_v2  ;;  %v14438_v17 = vsel %vm18812_vm14, %v13591_v12, 0.0  ;;  %16805 = vmatprep.mubr.msk.bf16.mxu0 %vm10798_vm0, %v18906_v52  ;;  %16807 = vmatprep.mubr.msk.bf16.mxu1 %vm10798_vm0, %v18906_v52  ;;  %v13692_v3 = vadd.s32 2432, %v18176_v42  ;;  %v19026_v2 = vld [vmem:[%s17723_s25 + $0xa0] ss:$400 sps:$4 sm:$0xff]  }
 0x1d6   : > { %v13592_v20 = vmax.f32 %v11225_v40, 0.0  ;;  %v13593_v7 = vmax.f32 %v11227_v31, 0.0  ;;  %v13785_v14 = vand.u32 127, %v13691_v26 }
 0x1d7   : > { %v14816_v8 = vadd.f32 %v14815_v57, %v14438_v17  ;;  %v14722_v0 = vadd.f32 %v14721_v45, %v14345_v22  ;;  %11656 = vmatpush1.bf16.msra.mxu0 %v18641_v6  ;;  %11709 = vmatpush1.bf16.msra.mxu1 %v18774_v38  ;;  %v13786_v12 = vand.u32 127, %v13692_v3 }
 0x1d8   : > { %v14439_v4 = vsel %vm18830_vm15, %v13592_v20, 0.0  ;;  %v14440_v63 = vsel %vm18840_vm1, %v13593_v7, 0.0  ;;  %11657 = vmatprep.subr.bf16.mxu0 %v18739_v32  ;;  %11710 = vmatprep.subr.bf16.mxu1 %v18779_v41  ;;  %v18945_v32 = vld [vmem:[%s17723_s25 + $0x98] ss:$400 sps:$4 sm:$0xff]   ;;  %v19033_v20 = vld [vmem:[%s17723_s25 + $0x3c4] ss:$400 sps:$4 sm:$0xff]  }
 0x1d9   : > { %v18922_v48 = vadd.f32 %v14722_v0, %v14346_v5  ;;  %v14817_v59 = vadd.f32 %v14816_v8, %v14439_v4  ;;  %vm19036_vm4 = vcmp.lt.s32.totalorder %v13785_v14, 94  ;;  %vm19046_vm5 = vcmp.lt.s32.totalorder %v13786_v12, 94 }
 0x1da   : > { %11590 = vmatmul.mubr.bf16.gmra.mrb[60].mxu0 %v18711_v18  ;;  %11643 = vmatmul.mubr.bf16.gmra.mrb[60].mxu1 %v18711_v18 }
 0x1db   : > { %v18926_v6 = vadd.f32 %v14817_v59, %v14440_v63  ;;  %11658 = vmatpush1.bf16.msra.mxu0 %v18744_v29  ;;  %11711 = vmatpush1.bf16.msra.mxu1 %v18785_v27  ;;  %v18950_v29 = vld [vmem:[%s17723_s25 + $0x94] ss:$400 sps:$4 sm:$0xff]  }
 0x1dc   : > { %11659 = vmatprep.subr.bf16.mxu0 %v18749_v33  ;;  %11712 = vmatprep.subr.bf16.mxu1 %v18791_v60  ;;  %v18955_v33 = vld [vmem:[%s17723_s25 + $0x3b8] ss:$400 sps:$4 sm:$0xff]  }
 0x1dd   : > { %16808 = vmatprep.mubr.msk.bf16.mxu0 %vm10798_vm0, %v18724_v13  ;;  %16810 = vmatprep.mubr.msk.bf16.mxu1 %vm10798_vm0, %v18724_v13 }
 0x1df   : > { %11660 = vmatpush1.bf16.msra.mxu0 %v18754_v34  ;;  %11713 = vmatpush1.bf16.msra.mxu1 %v18797_v23  ;;  %v18960_v34 = vld [vmem:[%s17723_s25 + $0x3b4] ss:$400 sps:$4 sm:$0xff]  }
 0x1e0   : > { %11661 = vmatprep.subr.bf16.mxu0 %v18759_v35  ;;  %11714 = vmatprep.subr.bf16.mxu1 %v18803_v24  ;;  %v18965_v35 = vld [vmem:[%s17723_s25 + $0x9c] ss:$400 sps:$4 sm:$0xff]  }
 0x1e3   : > { %11662 = vmatpush1.bf16.msra.mxu0 %v18764_v36  ;;  %11715 = vmatpush1.bf16.msra.mxu1 %v18820_v61  ;;  %v18970_v36 = vld [vmem:[%s17723_s25 + $0x98] ss:$400 sps:$4 sm:$0xff]  }
 0x1e4   : > { %11663 = vmatprep.subr.bf16.mxu0 %v18769_v37  ;;  %11716 = vmatprep.subr.bf16.mxu1 %v18827_v25  ;;  %v18975_v37 = vld [vmem:[%s17723_s25 + $0x3bc] ss:$400 sps:$4 sm:$0xff]  }
 0x1e7   : > { %11664 = vmatpush1.bf16.msra.mxu0 %v18774_v38  ;;  %11717 = vmatpush1.bf16.msra.mxu1 %v18847_v16  ;;  %v18980_v38 = vld [vmem:[%s17723_s25 + $0x3b8] ss:$400 sps:$4 sm:$0xff]  }
 0x1e8   : > { %11665 = vmatprep.subr.bf16.mxu0 %v18779_v41  ;;  %11718 = vmatprep.subr.bf16.mxu1 %v18945_v32  ;;  %v18985_v41 = vld [vmem:[%s17723_s25 + $0xa0] ss:$400 sps:$4 sm:$0xff]  }
 0x1eb   : > { %11666 = vmatpush1.bf16.msra.mxu0 %v18785_v27  ;;  %11719 = vmatpush1.bf16.msra.mxu1 %v18950_v29  ;;  %v13689_v27 = vadd.s32 2048, %v18176_v42 }
 0x1ec   : > { %11667 = vmatprep.subr.bf16.mxu0 %v18791_v60  ;;  %11720 = vmatprep.subr.bf16.mxu1 %v18955_v33  ;;  %v18991_v60 = vld [vmem:[%s17723_s25 + $0x9c] ss:$400 sps:$4 sm:$0xff]  }
 0x1ed   : > { %v13783_v30 = vand.u32 127, %v13689_v27 }
 0x1ef   : > { %11668 = vmatpush1.bf16.msra.mxu0 %v18797_v23  ;;  %11721 = vmatpush1.bf16.msra.mxu1 %v18960_v34  ;;  %v13690_v23 = vadd.s32 2176, %v18176_v42  ;;  %vm19012_vm2 = vcmp.lt.s32.totalorder %v13783_v30, 94 }
 0x1f0   : > { %11669 = vmatprep.subr.bf16.mxu0 %v18803_v24  ;;  %11722 = vmatprep.subr.bf16.mxu1 %v18965_v35 }
 0x1f1   : > { %v13784_v56 = vand.u32 127, %v13690_v23 }
 0x1f3   : > { %11670 = vmatpush1.bf16.msra.mxu0 %v18820_v61  ;;  %11723 = vmatpush1.bf16.msra.mxu1 %v18970_v36  ;;  %vm19018_vm3 = vcmp.lt.s32.totalorder %v13784_v56, 94 }
 0x1f4   : > { %11671 = vmatprep.subr.bf16.mxu0 %v18827_v25  ;;  %11724 = vmatprep.subr.bf16.mxu1 %v18975_v37 }
 0x1f7   : > { %11672 = vmatpush1.bf16.msra.mxu0 %v18847_v16  ;;  %11725 = vmatpush1.bf16.msra.mxu1 %v18980_v38 }
 0x1f8   : > { %11673 = vmatprep.subr.bf16.mxu0 %v18945_v32  ;;  %11726 = vmatprep.subr.bf16.mxu1 %v18985_v41 }
 0x1fb   : > { %11674 = vmatpush1.bf16.msra.mxu0 %v18950_v29  ;;  %11727 = vmatpush1.bf16.msra.mxu1 %v18991_v60 }
 0x1fc   : > { %11675 = vmatprep.subr.bf16.mxu0 %v18955_v33  ;;  %11728 = vmatprep.subr.bf16.mxu1 %v18997_v11 }
 0x1fd   : > { %v11263_v10 = vpop.f32.mrb[32].mxu0  ;;  %v11316_v28 = vpop.f32.mrb[32].mxu1 }
 0x1fe   : > { %v11264_v39 = vadd.f32 %v11263_v10, %v18183_v44  ;;  %v11265_v51 = vpop.f32.mrb[33].mxu0  ;;  %v11317_v50 = vadd.f32 %v11316_v28, %v18183_v44  ;;  %v11318_v19 = vpop.f32.mrb[33].mxu1  ;;  %v19053_v10 = vld [vmem:[%s17723_s25 + $0x3c0] ss:$400 sps:$4 sm:$0xff]  }
 0x1ff   : > { %v11266_v62 = vadd.f32 %v11265_v51, %v18183_v44  ;;  %v11267_v58 = vpop.f32.mrb[34].mxu0  ;;  %11676 = vmatpush1.bf16.msra.mxu0 %v18960_v34  ;;  %11729 = vmatpush1.bf16.msra.mxu1 %v19003_v1  ;;  %v11319_v47 = vadd.f32 %v11318_v19, %v18183_v44  ;;  %v11320_v22 = vpop.f32.mrb[34].mxu1 }
 0x200   : > { %v13312_v40 = vmax.f32 %v11264_v39, 0.0  ;;  %v11268_v31 = vadd.f32 %v11267_v58, %v18205_v53  ;;  %v11269_v45 = vpop.f32.mrb[35].mxu0  ;;  %v13314_v57 = vmax.f32 %v11317_v50, 0.0  ;;  %11677 = vmatprep.subr.bf16.mxu0 %v18965_v35  ;;  %11730 = vmatprep.subr.bf16.mxu1 %v19009_v43  ;;  %v11321_v17 = vadd.f32 %v11320_v22, %v18205_v53  ;;  %v11322_v5 = vpop.f32.mrb[35].mxu1 }
 0x201   : > { %v13313_v7 = vmax.f32 %v11266_v62, 0.0  ;;  %v11270_v8 = vadd.f32 %v11269_v45, %v18205_v53  ;;  %v11323_v4 = vadd.f32 %v11322_v5, %v18205_v53  ;;  %v13315_v27 = vmax.f32 %v11319_v47, 0.0 }
 0x202   : > { %v14159_v63 = vsel %vm19012_vm2, %v13312_v40, 0.0  ;;  %v13406_v59 = vmax.f32 %v11268_v31, 0.0  ;;  %v13408_v23 = vmax.f32 %v11321_v17, 0.0 }
 0x203   : > { %v14534_v26 = vadd.f32 %v18873_v9, %v14159_v63  ;;  %v14160_v30 = vsel %vm19018_vm3, %v13313_v7, 0.0  ;;  %v13407_v56 = vmax.f32 %v11270_v8, 0.0  ;;  %11678 = vmatpush1.bf16.msra.mxu0 %v18970_v36  ;;  %11731 = vmatpush1.bf16.msra.mxu1 %v19026_v2  ;;  %v14161_v9 = vsel %vm19036_vm4, %v13314_v57, 0.0 }
 0x204   : > { %v14253_v28 = vsel %vm19012_vm2, %v13406_v59, 0.0  ;;  %v13409_v14 = vmax.f32 %v11323_v4, 0.0  ;;  %11679 = vmatprep.subr.bf16.mxu0 %v18975_v37  ;;  %11732 = vmatprep.subr.bf16.mxu1 %v19033_v20  ;;  %v14162_v58 = vsel %vm19046_vm5, %v13315_v27, 0.0  ;;  %v14255_v47 = vsel %vm19036_vm4, %v13408_v23, 0.0 }
 0x205   : > { %v14535_v39 = vadd.f32 %v14534_v26, %v14160_v30  ;;  %v14629_v51 = vadd.f32 %v18886_v15, %v14253_v28  ;;  %v14254_v50 = vsel %vm19018_vm3, %v13407_v56, 0.0  ;;  %v11273_v19 = vpop.f32.mrb[36].mxu0  ;;  %v11326_v62 = vpop.f32.mrb[36].mxu1 }
 0x206   : > { %v11274_v12 = vadd.f32 %v11273_v19, %v18210_v55  ;;  %v11275_v22 = vpop.f32.mrb[37].mxu0  ;;  %v11327_v40 = vadd.f32 %v11326_v62, %v18210_v55  ;;  %v11328_v31 = vpop.f32.mrb[37].mxu1  ;;  %v14256_v15 = vsel %vm19046_vm5, %v13409_v14, 0.0 }
 0x207   : > { %v14630_v45 = vadd.f32 %v14629_v51, %v14254_v50  ;;  %v14536_v57 = vadd.f32 %v14535_v39, %v14161_v9  ;;  %v11276_v17 = vadd.f32 %v11275_v22, %v18210_v55  ;;  %v11277_v5 = vpop.f32.mrb[38].mxu0  ;;  %11680 = vmatpush1.bf16.msra.mxu0 %v18980_v38  ;;  %11733 = vmatpush1.bf16.msra.mxu1 %v19053_v10  ;;  %v11330_v7 = vpop.f32.mrb[38].mxu1 }
 0x208   : > { %v13500_v8 = vmax.f32 %v11274_v12, 0.0  ;;  %v11278_v4 = vadd.f32 %v11277_v5, %v18258_v49  ;;  %v11279_v63 = vpop.f32.mrb[39].mxu0  ;;  %v13502_v59 = vmax.f32 %v11327_v40, 0.0  ;;  %v11329_v27 = vadd.f32 %v11328_v31, %v18210_v55  ;;  %11759 = vmatprep.subr.bf16.mxu0 %v18803_v24  ;;  %11812 = vmatprep.subr.bf16.mxu1 %v18965_v35  ;;  %v11332_v23 = vpop.f32.mrb[39].mxu1 }
 0x209   : > { %v19079_v26 = vadd.f32 %v14536_v57, %v14162_v58  ;;  %v14631_v30 = vadd.f32 %v14630_v45, %v14255_v47  ;;  %v13501_v56 = vmax.f32 %v11276_v17, 0.0  ;;  %v11280_v28 = vadd.f32 %v11279_v63, %v18258_v49  ;;  %v19199_v17 = vld [vmem:[%s17723_s25 + $0x3cc] ss:$400 sps:$4 sm:$0xff]  }
 0x20a   : > { %v14347_v9 = vsel %vm19012_vm2, %v13500_v8, 0.0  ;;  %v13594_v14 = vmax.f32 %v11278_v4, 0.0  ;;  %v13503_v39 = vmax.f32 %v11329_v27, 0.0  ;;  %11686 = vmatmul.mubr.bf16.vlgmr.msra.gmra.mrb[64].mxu0 %v18881_v46  ;;  %11739 = vmatmul.mubr.bf16.vlgmr.msra.gmra.mrb[64].mxu1 %v18881_v46  ;;  %v14349_v58 = vsel %vm19036_vm4, %v13502_v59, 0.0 }
 0x20b   : > { %v14724_v24 = vadd.f32 %v18922_v48, %v14347_v9  ;;  %v19087_v51 = vadd.f32 %v14631_v30, %v14256_v15  ;;  %v14348_v50 = vsel %vm19018_vm3, %v13501_v56, 0.0  ;;  %v13595_v19 = vmax.f32 %v11280_v28, 0.0  ;;  %11760 = vmatpush1.bf16.msra.mxu0 %v18820_v61  ;;  %11813 = vmatpush1.bf16.msra.mxu1 %v18970_v36 }
 0x20c   : > { %v14441_v62 = vsel %vm19012_vm2, %v13594_v14, 0.0  ;;  %v11331_v47 = vadd.f32 %v11330_v7, %v18258_v49  ;;  %v11333_v48 = vadd.f32 %v11332_v23, %v18258_v49  ;;  %11761 = vmatprep.subr.bf16.mxu0 %v18827_v25  ;;  %11814 = vmatprep.subr.bf16.mxu1 %v18975_v37  ;;  %v14350_v54 = vsel %vm19046_vm5, %v13503_v39, 0.0  ;;  %v19205_v7 = vld [vmem:[%s17723_s25 + $0xb4] ss:$400 sps:$4 sm:$0xff]  }
 0x20d   : > { %v14725_v12 = vadd.f32 %v14724_v24, %v14348_v50  ;;  %v14819_v22 = vadd.f32 %v18926_v6, %v14441_v62  ;;  %v14442_v61 = vsel %vm19018_vm3, %v13595_v19, 0.0  ;;  %16809 = vmatprep.mubr.msk.bf16.mxu0 %vm10798_vm0, %v18906_v52  ;;  %16811 = vmatprep.mubr.msk.bf16.mxu1 %vm10798_vm0, %v18906_v52  ;;  %v13696_v5 = vadd.s32 2944, %v18176_v42  ;;  %v19222_v50 = vld [vmem:[%s17723_s25 + $0xb0] ss:$400 sps:$4 sm:$0xff]  }
 0x20e   : > { %v13596_v40 = vmax.f32 %v11331_v47, 0.0  ;;  %v13597_v31 = vmax.f32 %v11333_v48, 0.0 }
 0x20f   : > { %v14820_v25 = vadd.f32 %v14819_v22, %v14442_v61  ;;  %v14726_v45 = vadd.f32 %v14725_v12, %v14349_v58  ;;  %11762 = vmatpush1.bf16.msra.mxu0 %v18847_v16  ;;  %11815 = vmatpush1.bf16.msra.mxu1 %v18980_v38  ;;  %v13790_v24 = vand.u32 127, %v13696_v5  ;;  %v19229_v61 = vld [vmem:[%s17723_s25 + $0x3d4] ss:$400 sps:$4 sm:$0xff]  }
 0x210   : > { %v14443_v6 = vsel %vm19036_vm4, %v13596_v40, 0.0  ;;  %v14444_v21 = vsel %vm19046_vm5, %v13597_v31, 0.0  ;;  %11763 = vmatprep.subr.bf16.mxu0 %v18945_v32  ;;  %11816 = vmatprep.subr.bf16.mxu1 %v18985_v41  ;;  %v19151_v32 = vld [vmem:[%s17723_s25 + $0x3c8] ss:$400 sps:$4 sm:$0xff]   ;;  %v13698_v31 = vadd.s32 3200, %v18176_v42 }
 0x211   : > { %v19118_v57 = vadd.f32 %v14726_v45, %v14350_v54  ;;  %v14821_v15 = vadd.f32 %v14820_v25, %v14443_v6  ;;  %vm19242_vm9 = vcmp.lt.s32.totalorder %v13790_v24, 94 }
 0x212   : > { %11696 = vmatmul.mubr.bf16.gmra.mrb[68].mxu0 %v18711_v18  ;;  %11749 = vmatmul.mubr.bf16.gmra.mrb[68].mxu1 %v18711_v18  ;;  %v19141_v18 = vld [vmem:[%s17723_s25 + $0xa8] ss:$400 sps:$4 sm:$0xff]  }
 0x213   : > { %v19122_v16 = vadd.f32 %v14821_v15, %v14444_v21  ;;  %11764 = vmatpush1.bf16.msra.mxu0 %v18950_v29  ;;  %11817 = vmatpush1.bf16.msra.mxu1 %v18991_v60  ;;  %v19156_v29 = vld [vmem:[%s17723_s25 + $0x3c4] ss:$400 sps:$4 sm:$0xff]  }
 0x214   : > { %11765 = vmatprep.subr.bf16.mxu0 %v18955_v33  ;;  %11818 = vmatprep.subr.bf16.mxu1 %v18997_v11  ;;  %v19161_v33 = vld [vmem:[%s17723_s25 + $0xac] ss:$400 sps:$4 sm:$0xff]  }
 0x215   : > { %16812 = vmatprep.mubr.msk.bf16.mxu0 %vm10798_vm0, %v18724_v13  ;;  %16814 = vmatprep.mubr.msk.bf16.mxu1 %vm10798_vm0, %v18724_v13  ;;  %v19146_v13 = vld [vmem:[%s17723_s25 + $0xa4] ss:$400 sps:$4 sm:$0xff]  }
 0x217   : > { %11766 = vmatpush1.bf16.msra.mxu0 %v18960_v34  ;;  %11819 = vmatpush1.bf16.msra.mxu1 %v19003_v1  ;;  %v19166_v34 = vld [vmem:[%s17723_s25 + $0xa8] ss:$400 sps:$4 sm:$0xff]  }
 0x218   : > { %11767 = vmatprep.subr.bf16.mxu0 %v18965_v35  ;;  %11820 = vmatprep.subr.bf16.mxu1 %v19009_v43  ;;  %v19171_v35 = vld [vmem:[%s17723_s25 + $0x3cc] ss:$400 sps:$4 sm:$0xff]  }
 0x21b   : > { %11768 = vmatpush1.bf16.msra.mxu0 %v18970_v36  ;;  %11821 = vmatpush1.bf16.msra.mxu1 %v19026_v2  ;;  %v19176_v36 = vld [vmem:[%s17723_s25 + $0x3c8] ss:$400 sps:$4 sm:$0xff]  }
 0x21c   : > { %11769 = vmatprep.subr.bf16.mxu0 %v18975_v37  ;;  %11822 = vmatprep.subr.bf16.mxu1 %v19033_v20  ;;  %v19181_v37 = vld [vmem:[%s17723_s25 + $0xb0] ss:$400 sps:$4 sm:$0xff]  }
 0x21f   : > { %11770 = vmatpush1.bf16.msra.mxu0 %v18980_v38  ;;  %11823 = vmatpush1.bf16.msra.mxu1 %v19053_v10  ;;  %v13693_v38 = vadd.s32 2560, %v18176_v42 }
 0x220   : > { %11771 = vmatprep.subr.bf16.mxu0 %v18985_v41  ;;  %11824 = vmatprep.subr.bf16.mxu1 %v19141_v18  ;;  %v19187_v41 = vld [vmem:[%s17723_s25 + $0xac] ss:$400 sps:$4 sm:$0xff]  }
 0x221   : > { %v13787_v0 = vand.u32 127, %v13693_v38 }
 0x223   : > { %11772 = vmatpush1.bf16.msra.mxu0 %v18991_v60  ;;  %11825 = vmatpush1.bf16.msra.mxu1 %v19146_v13  ;;  %v13694_v60 = vadd.s32 2688, %v18176_v42  ;;  %vm19208_vm6 = vcmp.lt.s32.totalorder %v13787_v0, 94  ;;  %v19399_v0 = vld [vmem:[%s17723_s25 + $0x3e0] ss:$400 sps:$4 sm:$0xff]  }
 0x224   : > { %11773 = vmatprep.subr.bf16.mxu0 %v18997_v11  ;;  %11826 = vmatprep.subr.bf16.mxu1 %v19151_v32  ;;  %v19193_v11 = vld [vmem:[%s17723_s25 + $0x3d0] ss:$400 sps:$4 sm:$0xff]  }
 0x225   : > { %v13788_v3 = vand.u32 127, %v13694_v60 }
 0x227   : > { %11774 = vmatpush1.bf16.msra.mxu0 %v19003_v1  ;;  %11827 = vmatpush1.bf16.msra.mxu1 %v19156_v29  ;;  %v13695_v1 = vadd.s32 2816, %v18176_v42  ;;  %vm19214_vm7 = vcmp.lt.s32.totalorder %v13788_v3, 94  ;;  %v19249_v3 = vld [vmem:[%s17723_s25 + $0x3d0] ss:$400 sps:$4 sm:$0xff]  }
 0x228   : > { %11775 = vmatprep.subr.bf16.mxu0 %v19009_v43  ;;  %11828 = vmatprep.subr.bf16.mxu1 %v19161_v33 }
 0x229   : > { %v13789_v63 = vand.u32 127, %v13695_v1 }
 0x22b   : > { %11776 = vmatpush1.bf16.msra.mxu0 %v19026_v2  ;;  %11829 = vmatpush1.bf16.msra.mxu1 %v19166_v34  ;;  %vm19232_vm8 = vcmp.lt.s32.totalorder %v13789_v63, 94 }
 0x22c   : > { %11777 = vmatprep.subr.bf16.mxu0 %v19033_v20  ;;  %11830 = vmatprep.subr.bf16.mxu1 %v19171_v35 }
 0x22f   : > { %11778 = vmatpush1.bf16.msra.mxu0 %v19053_v10  ;;  %11831 = vmatpush1.bf16.msra.mxu1 %v19176_v36 }
 0x230   : > { %11779 = vmatprep.subr.bf16.mxu0 %v19141_v18  ;;  %11832 = vmatprep.subr.bf16.mxu1 %v19181_v37 }
 0x233   : > { %11780 = vmatpush1.bf16.msra.mxu0 %v19146_v13  ;;  %11833 = vmatpush1.bf16.msra.mxu1 %v19187_v41 }
 0x234   : > { %11781 = vmatprep.subr.bf16.mxu0 %v19151_v32  ;;  %11834 = vmatprep.subr.bf16.mxu1 %v19193_v11 }
 0x235   : > { %v11369_v8 = vpop.f32.mrb[40].mxu0  ;;  %v11422_v4 = vpop.f32.mrb[40].mxu1 }
 0x236   : > { %v11370_v59 = vadd.f32 %v11369_v8, %v18183_v44  ;;  %v11371_v23 = vpop.f32.mrb[41].mxu0  ;;  %v11423_v30 = vadd.f32 %v11422_v4, %v18183_v44  ;;  %v11424_v56 = vpop.f32.mrb[41].mxu1 }
 0x237   : > { %v11372_v28 = vadd.f32 %v11371_v23, %v18183_v44  ;;  %v11373_v14 = vpop.f32.mrb[42].mxu0  ;;  %11782 = vmatpush1.bf16.msra.mxu0 %v19156_v29  ;;  %11835 = vmatpush1.bf16.msra.mxu1 %v19199_v17  ;;  %v11425_v39 = vadd.f32 %v11424_v56, %v18183_v44  ;;  %v11426_v19 = vpop.f32.mrb[42].mxu1 }
 0x238   : > { %v13316_v62 = vmax.f32 %v11370_v59, 0.0  ;;  %v11374_v58 = vadd.f32 %v11373_v14, %v18205_v53  ;;  %v11375_v47 = vpop.f32.mrb[43].mxu0  ;;  %v13318_v48 = vmax.f32 %v11423_v30, 0.0  ;;  %11783 = vmatprep.subr.bf16.mxu0 %v19161_v33  ;;  %11836 = vmatprep.subr.bf16.mxu1 %v19205_v7  ;;  %v11427_v12 = vadd.f32 %v11426_v19, %v18205_v53  ;;  %v11428_v22 = vpop.f32.mrb[43].mxu1 }
 0x239   : > { %v13317_v54 = vmax.f32 %v11372_v28, 0.0  ;;  %v11376_v40 = vadd.f32 %v11375_v47, %v18205_v53  ;;  %v11429_v25 = vadd.f32 %v11428_v22, %v18205_v53  ;;  %v13319_v21 = vmax.f32 %v11425_v39, 0.0 }
 0x23a   : > { %v14163_v45 = vsel %vm19208_vm6, %v13316_v62, 0.0  ;;  %v13410_v6 = vmax.f32 %v11374_v58, 0.0  ;;  %v13412_v15 = vmax.f32 %v11427_v12, 0.0 }
 0x23b   : > { %v14538_v38 = vadd.f32 %v19079_v26, %v14163_v45  ;;  %v14164_v60 = vsel %vm19214_vm7, %v13317_v54, 0.0  ;;  %v13411_v1 = vmax.f32 %v11376_v40, 0.0  ;;  %11784 = vmatpush1.bf16.msra.mxu0 %v19166_v34  ;;  %11837 = vmatpush1.bf16.msra.mxu1 %v19222_v50  ;;  %v14165_v26 = vsel %vm19232_vm8, %v13318_v48, 0.0 }
 0x23c   : > { %v14257_v5 = vsel %vm19208_vm6, %v13410_v6, 0.0  ;;  %v13413_v8 = vmax.f32 %v11429_v25, 0.0  ;;  %11785 = vmatprep.subr.bf16.mxu0 %v19171_v35  ;;  %11838 = vmatprep.subr.bf16.mxu1 %v19229_v61  ;;  %v14166_v56 = vsel %vm19242_vm9, %v13319_v21, 0.0  ;;  %v14259_v28 = vsel %vm19232_vm8, %v13412_v15, 0.0 }
 0x23d   : > { %v14539_v4 = vadd.f32 %v14538_v38, %v14164_v60  ;;  %v14633_v63 = vadd.f32 %v19087_v51, %v14257_v5  ;;  %v14258_v59 = vsel %vm19214_vm7, %v13411_v1, 0.0  ;;  %v11379_v23 = vpop.f32.mrb[44].mxu0  ;;  %v11432_v30 = vpop.f32.mrb[44].mxu1 }
 0x23e   : > { %v11380_v14 = vadd.f32 %v11379_v23, %v18210_v55  ;;  %v11381_v39 = vpop.f32.mrb[45].mxu0  ;;  %v11433_v24 = vadd.f32 %v11432_v30, %v18210_v55  ;;  %v11434_v19 = vpop.f32.mrb[45].mxu1  ;;  %v14260_v51 = vsel %vm19242_vm9, %v13413_v8, 0.0 }
 0x23f   : > { %v14634_v62 = vadd.f32 %v14633_v63, %v14258_v59  ;;  %v14540_v58 = vadd.f32 %v14539_v4, %v14165_v26  ;;  %v11382_v47 = vadd.f32 %v11381_v39, %v18210_v55  ;;  %v11383_v48 = vpop.f32.mrb[46].mxu0  ;;  %11786 = vmatpush1.bf16.msra.mxu0 %v19176_v36  ;;  %11839 = vmatpush1.bf16.msra.mxu1 %v19249_v3  ;;  %v11436_v12 = vpop.f32.mrb[46].mxu1 }
 0x240   : > { %v13504_v22 = vmax.f32 %v11380_v14, 0.0  ;;  %v11384_v54 = vadd.f32 %v11383_v48, %v18258_v49  ;;  %v11385_v40 = vpop.f32.mrb[47].mxu0  ;;  %v13506_v25 = vmax.f32 %v11433_v24, 0.0  ;;  %v11435_v45 = vadd.f32 %v11434_v19, %v18210_v55  ;;  %11865 = vmatprep.subr.bf16.mxu0 %v19009_v43  ;;  %11918 = vmatprep.subr.bf16.mxu1 %v19161_v33  ;;  %v11438_v6 = vpop.f32.mrb[47].mxu1  ;;  %v19319_v19 = vld [vmem:[%s22364_s1 + $0x10] ss:$8 sps:$4 sm:$0xff]  }
 0x241   : > { %v19275_v21 = vadd.f32 %v14540_v58, %v14166_v56  ;;  %v14635_v15 = vadd.f32 %v14634_v62, %v14259_v28  ;;  %v13505_v38 = vmax.f32 %v11382_v47, 0.0  ;;  %v11386_v60 = vadd.f32 %v11385_v40, %v18258_v49  ;;  %v19405_v47 = vld [vmem:[%s17723_s25 + $0x3dc] ss:$400 sps:$4 sm:$0xff]  }
 0x242   : > { %v14351_v1 = vsel %vm19208_vm6, %v13504_v22, 0.0  ;;  %v13598_v5 = vmax.f32 %v11384_v54, 0.0  ;;  %v13507_v26 = vmax.f32 %v11435_v45, 0.0  ;;  %11792 = vmatmul.mubr.bf16.vlgmr.msra.gmra.mrb[72].mxu0 %v18881_v46  ;;  %11845 = vmatmul.mubr.bf16.vlgmr.msra.gmra.mrb[72].mxu1 %v18881_v46  ;;  %v14353_v23 = vsel %vm19232_vm8, %v13506_v25, 0.0  ;;  %v19514_v45 = vld [vmem:[%s22364_s1 + $0x14] ss:$8 sps:$4 sm:$0xff]  }
 0x243   : > { %v14728_v43 = vadd.f32 %v19118_v57, %v14351_v1  ;;  %v19283_v8 = vadd.f32 %v14635_v15, %v14260_v51  ;;  %v14352_v4 = vsel %vm19214_vm7, %v13505_v38, 0.0  ;;  %v13599_v63 = vmax.f32 %v11386_v60, 0.0  ;;  %11866 = vmatpush1.bf16.msra.mxu0 %v19026_v2  ;;  %11919 = vmatpush1.bf16.msra.mxu1 %v19166_v34 }
 0x244   : > { %v14445_v59 = vsel %vm19208_vm6, %v13598_v5, 0.0  ;;  %v11437_v46 = vadd.f32 %v11436_v12, %v18258_v49  ;;  %v11439_v57 = vadd.f32 %v11438_v6, %v18258_v49  ;;  %11867 = vmatprep.subr.bf16.mxu0 %v19033_v20  ;;  %11920 = vmatprep.subr.bf16.mxu1 %v19171_v35  ;;  %v14354_v27 = vsel %vm19242_vm9, %v13507_v26, 0.0  ;;  %v19411_v12 = vld [vmem:[%s17723_s25 + $0xc4] ss:$400 sps:$4 sm:$0xff]  }
 0x245   : > { %v14729_v30 = vadd.f32 %v14728_v43, %v14352_v4  ;;  %v14823_v56 = vadd.f32 %v19122_v16, %v14445_v59  ;;  %v14446_v2 = vsel %vm19214_vm7, %v13599_v63, 0.0  ;;  %16813 = vmatprep.mubr.msk.bf16.mxu0 %vm10798_vm0, %v18906_v52  ;;  %16815 = vmatprep.mubr.msk.bf16.mxu1 %vm10798_vm0, %v18906_v52  ;;  %v13699_v62 = vadd.s32 3328, %v18176_v42  ;;  %v19428_v4 = vld [vmem:[%s17723_s25 + $0xc0] ss:$400 sps:$4 sm:$0xff]  }
 0x246   : > { %v13600_v28 = vmax.f32 %v11437_v46, 0.0  ;;  %v13601_v14 = vmax.f32 %v11439_v57, 0.0  ;;  %v13792_v51 = vand.u32 127, %v13698_v31  ;;  %v13700_v48 = vadd.s32 3456, %v18176_v42 }
 0x247   : > { %v14824_v20 = vadd.f32 %v14823_v56, %v14446_v2  ;;  %v14730_v39 = vadd.f32 %v14729_v30, %v14353_v23  ;;  %11868 = vmatpush1.bf16.msra.mxu0 %v19053_v10  ;;  %11921 = vmatpush1.bf16.msra.mxu1 %v19176_v36  ;;  %v13793_v40 = vand.u32 127, %v13699_v62  ;;  %v19435_v2 = vld [vmem:[%s17723_s25 + $0x3e4] ss:$400 sps:$4 sm:$0xff]  }
 0x248   : > { %v14447_v16 = vsel %vm19232_vm8, %v13600_v28, 0.0  ;;  %v14448_v9 = vsel %vm19242_vm9, %v13601_v14, 0.0  ;;  %11869 = vmatprep.subr.bf16.mxu0 %v19141_v18  ;;  %11922 = vmatprep.subr.bf16.mxu1 %v19181_v37  ;;  %v19332_v18 = vld [vmem:[%s22364_s1 + $0x4] ss:$8 sps:$4 sm:$0xff]   ;;  %vm19420_vm11 = vcmp.lt.s32.totalorder %v13792_v51, 94  ;;  %v13794_v43 = vand.u32 127, %v13700_v48 }
 0x249   : > { %v19314_v52 = vadd.f32 %v14730_v39, %v14354_v27  ;;  %v14825_v24 = vadd.f32 %v14824_v20, %v14447_v16  ;;  %vm19438_vm12 = vcmp.lt.s32.totalorder %v13793_v40, 94  ;;  %v19455_v51 = vld [vmem:[%s17723_s25 + $0x3e0] ss:$400 sps:$4 sm:$0xff]  }
 0x24a   : > { %11802 = vmatmul.mubr.bf16.gmra.mrb[76].mxu0 %v19319_v19  ;;  %11855 = vmatmul.mubr.bf16.gmra.mrb[76].mxu1 %v19319_v19  ;;  %vm19448_vm13 = vcmp.lt.s32.totalorder %v13794_v43, 94  ;;  %v19605_v14 = vld [vmem:[%s17723_s25 + $0x3f0] ss:$400 sps:$4 sm:$0xff]  }
 0x24b   : > { %v19323_v10 = vadd.f32 %v14825_v24, %v14448_v9  ;;  %11870 = vmatpush1.bf16.msra.mxu0 %v19146_v13  ;;  %11923 = vmatpush1.bf16.msra.mxu1 %v19187_v41  ;;  %v19347_v13 = vld [vmem:[%s17723_s25 + $0xb8] ss:$400 sps:$4 sm:$0xff]  }
 0x24c   : > { %11871 = vmatprep.subr.bf16.mxu0 %v19151_v32  ;;  %11924 = vmatprep.subr.bf16.mxu1 %v19193_v11  ;;  %v19352_v32 = vld [vmem:[%s17723_s25 + $0xb4] ss:$400 sps:$4 sm:$0xff]  }
 0x24d   : > { %16816 = vmatprep.mubr.msk.bf16.mxu0 %vm10798_vm0, %v19332_v18  ;;  %16818 = vmatprep.mubr.msk.bf16.mxu1 %vm10798_vm0, %v19332_v18 }
 0x24f   : > { %11872 = vmatpush1.bf16.msra.mxu0 %v19156_v29  ;;  %11925 = vmatpush1.bf16.msra.mxu1 %v19199_v17  ;;  %v19357_v29 = vld [vmem:[%s17723_s25 + $0x3d8] ss:$400 sps:$4 sm:$0xff]  }
 0x250   : > { %11873 = vmatprep.subr.bf16.mxu0 %v19161_v33  ;;  %11926 = vmatprep.subr.bf16.mxu1 %v19205_v7  ;;  %v19362_v33 = vld [vmem:[%s17723_s25 + $0x3d4] ss:$400 sps:$4 sm:$0xff]  }
 0x253   : > { %11874 = vmatpush1.bf16.msra.mxu0 %v19166_v34  ;;  %11927 = vmatpush1.bf16.msra.mxu1 %v19222_v50  ;;  %v19367_v34 = vld [vmem:[%s17723_s25 + $0xbc] ss:$400 sps:$4 sm:$0xff]  }
 0x254   : > { %11875 = vmatprep.subr.bf16.mxu0 %v19171_v35  ;;  %11928 = vmatprep.subr.bf16.mxu1 %v19229_v61  ;;  %v19372_v35 = vld [vmem:[%s17723_s25 + $0xb8] ss:$400 sps:$4 sm:$0xff]  }
 0x257   : > { %11876 = vmatpush1.bf16.msra.mxu0 %v19176_v36  ;;  %11929 = vmatpush1.bf16.msra.mxu1 %v19249_v3  ;;  %v19377_v36 = vld [vmem:[%s17723_s25 + $0x3dc] ss:$400 sps:$4 sm:$0xff]  }
 0x258   : > { %11877 = vmatprep.subr.bf16.mxu0 %v19181_v37  ;;  %11930 = vmatprep.subr.bf16.mxu1 %v19347_v13  ;;  %v19382_v37 = vld [vmem:[%s17723_s25 + $0x3d8] ss:$400 sps:$4 sm:$0xff]  }
 0x25b   : > { %11878 = vmatpush1.bf16.msra.mxu0 %v19187_v41  ;;  %11931 = vmatpush1.bf16.msra.mxu1 %v19352_v32  ;;  %v19387_v41 = vld [vmem:[%s17723_s25 + $0xc0] ss:$400 sps:$4 sm:$0xff]  }
 0x25c   : > { %11879 = vmatprep.subr.bf16.mxu0 %v19193_v11  ;;  %11932 = vmatprep.subr.bf16.mxu1 %v19357_v29  ;;  %v13697_v11 = vadd.s32 3072, %v18176_v42 }
 0x25e   : > { %v13791_v58 = vand.u32 127, %v13697_v11 }
 0x25f   : > { %11880 = vmatpush1.bf16.msra.mxu0 %v19199_v17  ;;  %11933 = vmatpush1.bf16.msra.mxu1 %v19362_v33  ;;  %v19393_v17 = vld [vmem:[%s17723_s25 + $0xbc] ss:$400 sps:$4 sm:$0xff]  }
 0x260   : > { %11881 = vmatprep.subr.bf16.mxu0 %v19205_v7  ;;  %11934 = vmatprep.subr.bf16.mxu1 %v19367_v34  ;;  %vm19414_vm10 = vcmp.lt.s32.totalorder %v13791_v58, 94  ;;  %v13703_v58 = vadd.s32 3840, %v18176_v42 }
 0x263   : > { %11882 = vmatpush1.bf16.msra.mxu0 %v19222_v50  ;;  %11935 = vmatpush1.bf16.msra.mxu1 %v19372_v35 }
 0x264   : > { %11883 = vmatprep.subr.bf16.mxu0 %v19229_v61  ;;  %11936 = vmatprep.subr.bf16.mxu1 %v19377_v36 }
 0x267   : > { %11884 = vmatpush1.bf16.msra.mxu0 %v19249_v3  ;;  %11937 = vmatpush1.bf16.msra.mxu1 %v19382_v37 }
 0x268   : > { %11885 = vmatprep.subr.bf16.mxu0 %v19347_v13  ;;  %11938 = vmatprep.subr.bf16.mxu1 %v19387_v41 }
 0x26b   : > { %11886 = vmatpush1.bf16.msra.mxu0 %v19352_v32  ;;  %11939 = vmatpush1.bf16.msra.mxu1 %v19393_v17 }
 0x26c   : > { %11887 = vmatprep.subr.bf16.mxu0 %v19357_v29  ;;  %11940 = vmatprep.subr.bf16.mxu1 %v19399_v0 }
 0x26d   : > { %v11475_v22 = vpop.f32.mrb[48].mxu0  ;;  %v11528_v54 = vpop.f32.mrb[48].mxu1 }
 0x26e   : > { %v11476_v25 = vadd.f32 %v11475_v22, %v18183_v44  ;;  %v11477_v6 = vpop.f32.mrb[49].mxu0  ;;  %v11529_v15 = vadd.f32 %v11528_v54, %v18183_v44  ;;  %v11530_v38 = vpop.f32.mrb[49].mxu1 }
 0x26f   : > { %v11478_v60 = vadd.f32 %v11477_v6, %v18183_v44  ;;  %v11479_v5 = vpop.f32.mrb[50].mxu0  ;;  %11888 = vmatpush1.bf16.msra.mxu0 %v19362_v33  ;;  %11941 = vmatpush1.bf16.msra.mxu1 %v19405_v47  ;;  %v11531_v26 = vadd.f32 %v11530_v38, %v18183_v44  ;;  %v11532_v63 = vpop.f32.mrb[50].mxu1 }
 0x270   : > { %v13320_v59 = vmax.f32 %v11476_v25, 0.0  ;;  %v11480_v23 = vadd.f32 %v11479_v5, %v18205_v53  ;;  %v11481_v46 = vpop.f32.mrb[51].mxu0  ;;  %v13322_v57 = vmax.f32 %v11529_v15, 0.0  ;;  %11889 = vmatprep.subr.bf16.mxu0 %v19367_v34  ;;  %11942 = vmatprep.subr.bf16.mxu1 %v19411_v12  ;;  %v11533_v30 = vadd.f32 %v11532_v63, %v18205_v53  ;;  %v11534_v56 = vpop.f32.mrb[51].mxu1 }
 0x271   : > { %v13321_v27 = vmax.f32 %v11478_v60, 0.0  ;;  %v11482_v28 = vadd.f32 %v11481_v46, %v18205_v53  ;;  %v11535_v20 = vadd.f32 %v11534_v56, %v18205_v53  ;;  %v13323_v9 = vmax.f32 %v11531_v26, 0.0 }
 0x272   : > { %v14167_v39 = vsel %vm19414_vm10, %v13320_v59, 0.0  ;;  %v13414_v16 = vmax.f32 %v11480_v23, 0.0  ;;  %v13416_v24 = vmax.f32 %v11533_v30, 0.0 }
 0x273   : > { %v14542_v11 = vadd.f32 %v19275_v21, %v14167_v39  ;;  %v14168_v31 = vsel %vm19420_vm11, %v13321_v27, 0.0  ;;  %v13415_v62 = vmax.f32 %v11482_v28, 0.0  ;;  %11890 = vmatpush1.bf16.msra.mxu0 %v19372_v35  ;;  %11943 = vmatpush1.bf16.msra.mxu1 %v19428_v4  ;;  %v14169_v21 = vsel %vm19438_vm12, %v13322_v57, 0.0 }
 0x274   : > { %v14261_v48 = vsel %vm19414_vm10, %v13414_v16, 0.0  ;;  %v13417_v22 = vmax.f32 %v11535_v20, 0.0  ;;  %11891 = vmatprep.subr.bf16.mxu0 %v19377_v36  ;;  %11944 = vmatprep.subr.bf16.mxu1 %v19435_v2  ;;  %v14170_v38 = vsel %vm19448_vm13, %v13323_v9, 0.0  ;;  %v14263_v60 = vsel %vm19438_vm12, %v13416_v24, 0.0 }
 0x275   : > { %v14543_v54 = vadd.f32 %v14542_v11, %v14168_v31  ;;  %v14637_v40 = vadd.f32 %v19283_v8, %v14261_v48  ;;  %v14262_v25 = vsel %vm19420_vm11, %v13415_v62, 0.0  ;;  %v11485_v6 = vpop.f32.mrb[52].mxu0  ;;  %v11538_v15 = vpop.f32.mrb[52].mxu1 }
 0x276   : > { %v11486_v5 = vadd.f32 %v11485_v6, %v18210_v55  ;;  %v11487_v26 = vpop.f32.mrb[53].mxu0  ;;  %v11539_v43 = vadd.f32 %v11538_v15, %v18210_v55  ;;  %v11540_v63 = vpop.f32.mrb[53].mxu1  ;;  %v14264_v8 = vsel %vm19448_vm13, %v13417_v22, 0.0  ;;  %v19489_v22 = vld [vmem:[%s22364_s1] ss:$8 sps:$4 sm:$0xff]  }
 0x277   : > { %v14638_v59 = vadd.f32 %v14637_v40, %v14262_v25  ;;  %v14544_v23 = vadd.f32 %v14543_v54, %v14169_v21  ;;  %v11488_v46 = vadd.f32 %v11487_v26, %v18210_v55  ;;  %v11489_v57 = vpop.f32.mrb[54].mxu0  ;;  %11892 = vmatpush1.bf16.msra.mxu0 %v19382_v37  ;;  %11945 = vmatpush1.bf16.msra.mxu1 %v19455_v51  ;;  %v11542_v30 = vpop.f32.mrb[54].mxu1 }
 0x278   : > { %v13508_v56 = vmax.f32 %v11486_v5, 0.0  ;;  %v11490_v27 = vadd.f32 %v11489_v57, %v18258_v49  ;;  %v11491_v28 = vpop.f32.mrb[55].mxu0  ;;  %v13510_v20 = vmax.f32 %v11539_v43, 0.0  ;;  %v11541_v39 = vadd.f32 %v11540_v63, %v18210_v55  ;;  %11971 = vmatprep.subr.bf16.mxu0 %v19205_v7  ;;  %12024 = vmatprep.subr.bf16.mxu1 %v19367_v34  ;;  %v11544_v16 = vpop.f32.mrb[55].mxu1 }
 0x279   : > { %v19481_v9 = vadd.f32 %v14544_v23, %v14170_v38  ;;  %v14639_v24 = vadd.f32 %v14638_v59, %v14263_v60  ;;  %v13509_v11 = vmax.f32 %v11488_v46, 0.0  ;;  %v11492_v31 = vadd.f32 %v11491_v28, %v18258_v49 }
 0x27a   : > { %v14355_v62 = vsel %vm19414_vm10, %v13508_v56, 0.0  ;;  %v13602_v48 = vmax.f32 %v11490_v27, 0.0  ;;  %v13511_v21 = vmax.f32 %v11541_v39, 0.0  ;;  %11898 = vmatmul.mubr.bf16.vlgmr.msra.gmra.mrb[80].mxu0 %v19489_v22  ;;  %11951 = vmatmul.mubr.bf16.vlgmr.msra.gmra.mrb[80].mxu1 %v19489_v22  ;;  %v14357_v15 = vsel %vm19438_vm12, %v13510_v20, 0.0  ;;  %v19617_v27 = vld [vmem:[%s17723_s25 + $0xd4] ss:$400 sps:$4 sm:$0xff]  }
 0x27b   : > { %v14732_v7 = vadd.f32 %v19314_v52, %v14355_v62  ;;  %v19494_v54 = vadd.f32 %v14639_v24, %v14264_v8  ;;  %v14356_v40 = vsel %vm19420_vm11, %v13509_v11, 0.0  ;;  %v13603_v25 = vmax.f32 %v11492_v31, 0.0  ;;  %11972 = vmatpush1.bf16.msra.mxu0 %v19222_v50  ;;  %12025 = vmatpush1.bf16.msra.mxu1 %v19372_v35 }
 0x27c   : > { %v14449_v6 = vsel %vm19414_vm10, %v13602_v48, 0.0  ;;  %v11543_v38 = vadd.f32 %v11542_v30, %v18258_v49  ;;  %v11545_v52 = vadd.f32 %v11544_v16, %v18258_v49  ;;  %11973 = vmatprep.subr.bf16.mxu0 %v19229_v61  ;;  %12026 = vmatprep.subr.bf16.mxu1 %v19377_v36  ;;  %v14358_v61 = vsel %vm19448_vm13, %v13511_v21, 0.0  ;;  %v19611_v30 = vld [vmem:[%s17723_s25 + $0x3ec] ss:$400 sps:$4 sm:$0xff]  }
 0x27d   : > { %v14733_v60 = vadd.f32 %v14732_v7, %v14356_v40  ;;  %v14827_v5 = vadd.f32 %v19323_v10, %v14449_v6  ;;  %v14450_v50 = vsel %vm19420_vm11, %v13603_v25, 0.0  ;;  %16817 = vmatprep.mubr.msk.bf16.mxu0 %vm10798_vm0, %v19514_v45  ;;  %16819 = vmatprep.mubr.msk.bf16.mxu1 %vm10798_vm0, %v19514_v45  ;;  %v13704_v56 = vadd.s32 3968, %v18176_v42  ;;  %v19634_v6 = vld [vmem:[%s17723_s25 + $0xd0] ss:$400 sps:$4 sm:$0xff]  }
 0x27e   : > { %v13604_v26 = vmax.f32 %v11543_v38, 0.0  ;;  %v13605_v43 = vmax.f32 %v11545_v52, 0.0  ;;  %v13797_v39 = vand.u32 127, %v13703_v58 }
 0x27f   : > { %v14828_v10 = vadd.f32 %v14827_v5, %v14450_v50  ;;  %v14734_v63 = vadd.f32 %v14733_v60, %v14357_v15  ;;  %11974 = vmatpush1.bf16.msra.mxu0 %v19249_v3  ;;  %12027 = vmatpush1.bf16.msra.mxu1 %v19382_v37  ;;  %v13798_v25 = vand.u32 127, %v13704_v56 }
 0x280   : > { %v14451_v1 = vsel %vm19438_vm12, %v13604_v26, 0.0  ;;  %v14452_v59 = vsel %vm19448_vm13, %v13605_v43, 0.0  ;;  %11975 = vmatprep.subr.bf16.mxu0 %v19347_v13  ;;  %12028 = vmatprep.subr.bf16.mxu1 %v19387_v41  ;;  %v19553_v13 = vld [vmem:[%s17723_s25 + $0xc8] ss:$400 sps:$4 sm:$0xff]   ;;  %v19641_v26 = vld [vmem:[%s17723_s25 + $0x3f4] ss:$400 sps:$4 sm:$0xff]  }
 0x281   : > { %v19530_v23 = vadd.f32 %v14734_v63, %v14358_v61  ;;  %v14829_v8 = vadd.f32 %v14828_v10, %v14451_v1  ;;  %vm19644_vm1 = vcmp.lt.s32.totalorder %v13797_v39, 94  ;;  %vm19654_vm2 = vcmp.lt.s32.totalorder %v13798_v25, 94 }
 0x282   : > { %11908 = vmatmul.mubr.bf16.gmra.mrb[84].mxu0 %v19319_v19  ;;  %11961 = vmatmul.mubr.bf16.gmra.mrb[84].mxu1 %v19319_v19 }
 0x283   : > { %v19534_v3 = vadd.f32 %v14829_v8, %v14452_v59  ;;  %11976 = vmatpush1.bf16.msra.mxu0 %v19352_v32  ;;  %12029 = vmatpush1.bf16.msra.mxu1 %v19393_v17  ;;  %v19558_v32 = vld [vmem:[%s17723_s25 + $0xc4] ss:$400 sps:$4 sm:$0xff]  }
 0x284   : > { %11977 = vmatprep.subr.bf16.mxu0 %v19357_v29  ;;  %12030 = vmatprep.subr.bf16.mxu1 %v19399_v0  ;;  %v19563_v29 = vld [vmem:[%s17723_s25 + $0x3e8] ss:$400 sps:$4 sm:$0xff]  }
 0x285   : > { %16820 = vmatprep.mubr.msk.bf16.mxu0 %vm10798_vm0, %v19332_v18  ;;  %16822 = vmatprep.mubr.msk.bf16.mxu1 %vm10798_vm0, %v19332_v18 }
 0x287   : > { %11978 = vmatpush1.bf16.msra.mxu0 %v19362_v33  ;;  %12031 = vmatpush1.bf16.msra.mxu1 %v19405_v47  ;;  %v19568_v33 = vld [vmem:[%s17723_s25 + $0x3e4] ss:$400 sps:$4 sm:$0xff]  }
 0x288   : > { %11979 = vmatprep.subr.bf16.mxu0 %v19367_v34  ;;  %12032 = vmatprep.subr.bf16.mxu1 %v19411_v12  ;;  %v19573_v34 = vld [vmem:[%s17723_s25 + $0xcc] ss:$400 sps:$4 sm:$0xff]  }
 0x28b   : > { %11980 = vmatpush1.bf16.msra.mxu0 %v19372_v35  ;;  %12033 = vmatpush1.bf16.msra.mxu1 %v19428_v4  ;;  %v19578_v35 = vld [vmem:[%s17723_s25 + $0xc8] ss:$400 sps:$4 sm:$0xff]  }
 0x28c   : > { %11981 = vmatprep.subr.bf16.mxu0 %v19377_v36  ;;  %12034 = vmatprep.subr.bf16.mxu1 %v19435_v2  ;;  %v19583_v36 = vld [vmem:[%s17723_s25 + $0x3ec] ss:$400 sps:$4 sm:$0xff]  }
 0x28f   : > { %11982 = vmatpush1.bf16.msra.mxu0 %v19382_v37  ;;  %12035 = vmatpush1.bf16.msra.mxu1 %v19455_v51  ;;  %v19588_v37 = vld [vmem:[%s17723_s25 + $0x3e8] ss:$400 sps:$4 sm:$0xff]  }
 0x290   : > { %11983 = vmatprep.subr.bf16.mxu0 %v19387_v41  ;;  %12036 = vmatprep.subr.bf16.mxu1 %v19553_v13  ;;  %v19593_v41 = vld [vmem:[%s17723_s25 + $0xd0] ss:$400 sps:$4 sm:$0xff]  }
 0x293   : > { %11984 = vmatpush1.bf16.msra.mxu0 %v19393_v17  ;;  %12037 = vmatpush1.bf16.msra.mxu1 %v19558_v32  ;;  %v13701_v17 = vadd.s32 3584, %v18176_v42 }
 0x294   : > { %11985 = vmatprep.subr.bf16.mxu0 %v19399_v0  ;;  %12038 = vmatprep.subr.bf16.mxu1 %v19563_v29  ;;  %v19599_v0 = vld [vmem:[%s17723_s25 + $0xcc] ss:$400 sps:$4 sm:$0xff]  }
 0x295   : > { %v13795_v46 = vand.u32 127, %v13701_v17 }
 0x297   : > { %11986 = vmatpush1.bf16.msra.mxu0 %v19405_v47  ;;  %12039 = vmatpush1.bf16.msra.mxu1 %v19568_v33  ;;  %v13702_v47 = vadd.s32 3712, %v18176_v42  ;;  %vm19620_vm14 = vcmp.lt.s32.totalorder %v13795_v46, 94 }
 0x298   : > { %11987 = vmatprep.subr.bf16.mxu0 %v19411_v12  ;;  %12040 = vmatprep.subr.bf16.mxu1 %v19573_v34 }
 0x299   : > { %v13796_v57 = vand.u32 127, %v13702_v47 }
 0x29b   : > { %11988 = vmatpush1.bf16.msra.mxu0 %v19428_v4  ;;  %12041 = vmatpush1.bf16.msra.mxu1 %v19578_v35  ;;  %vm19626_vm15 = vcmp.lt.s32.totalorder %v13796_v57, 94 }
 0x29c   : > { %11989 = vmatprep.subr.bf16.mxu0 %v19435_v2  ;;  %12042 = vmatprep.subr.bf16.mxu1 %v19583_v36 }
 0x29f   : > { %11990 = vmatpush1.bf16.msra.mxu0 %v19455_v51  ;;  %12043 = vmatpush1.bf16.msra.mxu1 %v19588_v37 }
 0x2a0   : > { %11991 = vmatprep.subr.bf16.mxu0 %v19553_v13  ;;  %12044 = vmatprep.subr.bf16.mxu1 %v19593_v41 }
 0x2a3   : > { %11992 = vmatpush1.bf16.msra.mxu0 %v19558_v32  ;;  %12045 = vmatpush1.bf16.msra.mxu1 %v19599_v0 }
 0x2a4   : > { %11993 = vmatprep.subr.bf16.mxu0 %v19563_v29  ;;  %12046 = vmatprep.subr.bf16.mxu1 %v19605_v14 }
 0x2a5   : > { %v11581_v28 = vpop.f32.mrb[56].mxu0  ;;  %v11634_v20 = vpop.f32.mrb[56].mxu1 }
 0x2a6   : > { %v11582_v16 = vadd.f32 %v11581_v28, %v18183_v44  ;;  %v11583_v11 = vpop.f32.mrb[57].mxu0  ;;  %v11635_v31 = vadd.f32 %v11634_v20, %v18183_v44  ;;  %v11636_v62 = vpop.f32.mrb[57].mxu1  ;;  %v19661_v28 = vld [vmem:[%s17723_s25 + $0x3f0] ss:$400 sps:$4 sm:$0xff]  }
 0x2a7   : > { %v11584_v48 = vadd.f32 %v11583_v11, %v18183_v44  ;;  %v11585_v7 = vpop.f32.mrb[58].mxu0  ;;  %11994 = vmatpush1.bf16.msra.mxu0 %v19568_v33  ;;  %12047 = vmatpush1.bf16.msra.mxu1 %v19611_v30  ;;  %v11637_v40 = vadd.f32 %v11636_v62, %v18183_v44  ;;  %v11638_v15 = vpop.f32.mrb[58].mxu1 }
 0x2a8   : > { %v13324_v38 = vmax.f32 %v11582_v16, 0.0  ;;  %v11586_v52 = vadd.f32 %v11585_v7, %v18205_v53  ;;  %v11587_v60 = vpop.f32.mrb[59].mxu0  ;;  %v13326_v5 = vmax.f32 %v11635_v31, 0.0  ;;  %11995 = vmatprep.subr.bf16.mxu0 %v19573_v34  ;;  %12048 = vmatprep.subr.bf16.mxu1 %v19617_v27  ;;  %v11639_v50 = vadd.f32 %v11638_v15, %v18205_v53  ;;  %v11640_v61 = vpop.f32.mrb[59].mxu1 }
 0x2a9   : > { %v13325_v43 = vmax.f32 %v11584_v48, 0.0  ;;  %v11588_v10 = vadd.f32 %v11587_v60, %v18205_v53  ;;  %v11641_v1 = vadd.f32 %v11640_v61, %v18205_v53  ;;  %v13327_v17 = vmax.f32 %v11637_v40, 0.0 }
 0x2aa   : > { %v14171_v59 = vsel %vm19620_vm14, %v13324_v38, 0.0  ;;  %v13418_v8 = vmax.f32 %v11586_v52, 0.0  ;;  %v13420_v47 = vmax.f32 %v11639_v50, 0.0 }
 0x2ab   : > { %v14546_v58 = vadd.f32 %v19481_v9, %v14171_v59  ;;  %v14172_v46 = vsel %vm19626_vm15, %v13325_v43, 0.0  ;;  %v13419_v57 = vmax.f32 %v11588_v10, 0.0  ;;  %11996 = vmatpush1.bf16.msra.mxu0 %v19578_v35  ;;  %12049 = vmatpush1.bf16.msra.mxu1 %v19634_v6  ;;  %v14173_v9 = vsel %vm19644_vm1, %v13326_v5, 0.0 }
 0x2ac   : > { %v14265_v20 = vsel %vm19620_vm14, %v13418_v8, 0.0  ;;  %v13421_v39 = vmax.f32 %v11641_v1, 0.0  ;;  %11997 = vmatprep.subr.bf16.mxu0 %v19583_v36  ;;  %12050 = vmatprep.subr.bf16.mxu1 %v19641_v26  ;;  %v14174_v7 = vsel %vm19654_vm2, %v13327_v17, 0.0  ;;  %v14267_v40 = vsel %vm19644_vm1, %v13420_v47, 0.0 }
 0x2ad   : > { %v14547_v16 = vadd.f32 %v14546_v58, %v14172_v46  ;;  %v14641_v11 = vadd.f32 %v19494_v54, %v14265_v20  ;;  %v14266_v31 = vsel %vm19626_vm15, %v13419_v57, 0.0  ;;  %v11591_v62 = vpop.f32.mrb[60].mxu0  ;;  %v11644_v48 = vpop.f32.mrb[60].mxu1 }
 0x2ae   : > { %v11592_v25 = vadd.f32 %v11591_v62, %v18210_v55  ;;  %v11593_v15 = vpop.f32.mrb[61].mxu0  ;;  %v11645_v38 = vadd.f32 %v11644_v48, %v18210_v55  ;;  %v11646_v52 = vpop.f32.mrb[61].mxu1  ;;  %v14268_v54 = vsel %vm19654_vm2, %v13421_v39, 0.0 }
 0x2af   : > { %v14642_v60 = vadd.f32 %v14641_v11, %v14266_v31  ;;  %v14548_v5 = vadd.f32 %v14547_v16, %v14173_v9  ;;  %v11594_v50 = vadd.f32 %v11593_v15, %v18210_v55  ;;  %v11595_v61 = vpop.f32.mrb[62].mxu0  ;;  %11998 = vmatpush1.bf16.msra.mxu0 %v19588_v37  ;;  %12051 = vmatpush1.bf16.msra.mxu1 %v19661_v28  ;;  %v11648_v43 = vpop.f32.mrb[62].mxu1 }
 0x2b0   : > { %v13512_v10 = vmax.f32 %v11592_v25, 0.0  ;;  %v11596_v1 = vadd.f32 %v11595_v61, %v18258_v49  ;;  %v11597_v59 = vpop.f32.mrb[63].mxu0  ;;  %v13514_v8 = vmax.f32 %v11645_v38, 0.0  ;;  %v11647_v17 = vadd.f32 %v11646_v52, %v18210_v55  ;;  %12077 = vmatprep.subr.bf16.mxu0 %v19411_v12  ;;  %12130 = vmatprep.subr.bf16.mxu1 %v19573_v34  ;;  %v11650_v47 = vpop.f32.mrb[63].mxu1 }
 0x2b1   : > { %v19687_v58 = vadd.f32 %v14548_v5, %v14174_v7  ;;  %v14643_v46 = vadd.f32 %v14642_v60, %v14267_v40  ;;  %v13513_v57 = vmax.f32 %v11594_v50, 0.0  ;;  %v11598_v20 = vadd.f32 %v11597_v59, %v18258_v49  ;;  %v19807_v50 = vld [vmem:[%s17723_s25 + $0x3fc] ss:$400 sps:$4 sm:$0xff]  }
 0x2b2   : > { %v14359_v9 = vsel %vm19620_vm14, %v13512_v10, 0.0  ;;  %v13606_v39 = vmax.f32 %v11596_v1, 0.0  ;;  %v13515_v16 = vmax.f32 %v11647_v17, 0.0  ;;  %12004 = vmatmul.mubr.bf16.vlgmr.msra.gmra.mrb[88].mxu0 %v19489_v22  ;;  %12057 = vmatmul.mubr.bf16.vlgmr.msra.gmra.mrb[88].mxu1 %v19489_v22  ;;  %v14361_v7 = vsel %vm19644_vm1, %v13514_v8, 0.0 }
 0x2b3   : > { %v14736_v12 = vadd.f32 %v19530_v23, %v14359_v9  ;;  %v19695_v11 = vadd.f32 %v14643_v46, %v14268_v54  ;;  %v14360_v31 = vsel %vm19626_vm15, %v13513_v57, 0.0  ;;  %v13607_v62 = vmax.f32 %v11598_v20, 0.0  ;;  %12078 = vmatpush1.bf16.msra.mxu0 %v19428_v4  ;;  %12131 = vmatpush1.bf16.msra.mxu1 %v19578_v35 }
 0x2b4   : > { %v14453_v48 = vsel %vm19620_vm14, %v13606_v39, 0.0  ;;  %v11649_v40 = vadd.f32 %v11648_v43, %v18258_v49  ;;  %v11651_v23 = vadd.f32 %v11650_v47, %v18258_v49  ;;  %12079 = vmatprep.subr.bf16.mxu0 %v19435_v2  ;;  %12132 = vmatprep.subr.bf16.mxu1 %v19583_v36  ;;  %v14362_v24 = vsel %vm19654_vm2, %v13515_v16, 0.0  ;;  %v19813_v43 = vld [vmem:[%s17723_s25 + $0xe4] ss:$400 sps:$4 sm:$0xff]  }
 0x2b5   : > { %v14737_v25 = vadd.f32 %v14736_v12, %v14360_v31  ;;  %v14831_v15 = vadd.f32 %v19534_v3, %v14453_v48  ;;  %v14454_v4 = vsel %vm19626_vm15, %v13607_v62, 0.0  ;;  %16821 = vmatprep.mubr.msk.bf16.mxu0 %vm10798_vm0, %v19514_v45  ;;  %16823 = vmatprep.mubr.msk.bf16.mxu1 %vm10798_vm0, %v19514_v45  ;;  %v13708_v61 = vadd.s32 4480, %v18176_v42  ;;  %v19830_v31 = vld [vmem:[%s17723_s25 + $0xe0] ss:$400 sps:$4 sm:$0xff]  }
 0x2b6   : > { %v13608_v38 = vmax.f32 %v11649_v40, 0.0  ;;  %v13609_v52 = vmax.f32 %v11651_v23, 0.0 }
 0x2b7   : > { %v14832_v2 = vadd.f32 %v14831_v15, %v14454_v4  ;;  %v14738_v60 = vadd.f32 %v14737_v25, %v14361_v7  ;;  %12080 = vmatpush1.bf16.msra.mxu0 %v19455_v51  ;;  %12133 = vmatpush1.bf16.msra.mxu1 %v19588_v37  ;;  %v13802_v12 = vand.u32 127, %v13708_v61  ;;  %v19837_v4 = vld [vmem:[%s17723_s25 + $0x404] ss:$400 sps:$4 sm:$0xff]  }
 0x2b8   : > { %v14455_v3 = vsel %vm19644_vm1, %v13608_v38, 0.0  ;;  %v14456_v21 = vsel %vm19654_vm2, %v13609_v52, 0.0  ;;  %12081 = vmatprep.subr.bf16.mxu0 %v19553_v13  ;;  %12134 = vmatprep.subr.bf16.mxu1 %v19593_v41  ;;  %v19759_v13 = vld [vmem:[%s17723_s25 + $0x3f8] ss:$400 sps:$4 sm:$0xff]   ;;  %v13710_v52 = vadd.s32 4736, %v18176_v42 }
 0x2b9   : > { %v19726_v5 = vadd.f32 %v14738_v60, %v14362_v24  ;;  %v14833_v54 = vadd.f32 %v14832_v2, %v14455_v3  ;;  %vm19850_vm6 = vcmp.lt.s32.totalorder %v13802_v12, 94 }
 0x2ba   : > { %12014 = vmatmul.mubr.bf16.gmra.mrb[92].mxu0 %v19319_v19  ;;  %12067 = vmatmul.mubr.bf16.gmra.mrb[92].mxu1 %v19319_v19  ;;  %v19749_v19 = vld [vmem:[%s17723_s25 + $0xd8] ss:$400 sps:$4 sm:$0xff]  }
 0x2bb   : > { %v19730_v51 = vadd.f32 %v14833_v54, %v14456_v21  ;;  %12082 = vmatpush1.bf16.msra.mxu0 %v19558_v32  ;;  %12135 = vmatpush1.bf16.msra.mxu1 %v19599_v0  ;;  %v19764_v32 = vld [vmem:[%s17723_s25 + $0x3f4] ss:$400 sps:$4 sm:$0xff]  }
 0x2bc   : > { %12083 = vmatprep.subr.bf16.mxu0 %v19563_v29  ;;  %12136 = vmatprep.subr.bf16.mxu1 %v19605_v14  ;;  %v19769_v29 = vld [vmem:[%s17723_s25 + $0xdc] ss:$400 sps:$4 sm:$0xff]  }
 0x2bd   : > { %16824 = vmatprep.mubr.msk.bf16.mxu0 %vm10798_vm0, %v19332_v18  ;;  %16826 = vmatprep.mubr.msk.bf16.mxu1 %vm10798_vm0, %v19332_v18  ;;  %v19754_v18 = vld [vmem:[%s17723_s25 + $0xd4] ss:$400 sps:$4 sm:$0xff]  }
 0x2bf   : > { %12084 = vmatpush1.bf16.msra.mxu0 %v19568_v33  ;;  %12137 = vmatpush1.bf16.msra.mxu1 %v19611_v30  ;;  %v19774_v33 = vld [vmem:[%s17723_s25 + $0xd8] ss:$400 sps:$4 sm:$0xff]  }
 0x2c0   : > { %12085 = vmatprep.subr.bf16.mxu0 %v19573_v34  ;;  %12138 = vmatprep.subr.bf16.mxu1 %v19617_v27  ;;  %v19779_v34 = vld [vmem:[%s17723_s25 + $0x3fc] ss:$400 sps:$4 sm:$0xff]  }
 0x2c3   : > { %12086 = vmatpush1.bf16.msra.mxu0 %v19578_v35  ;;  %12139 = vmatpush1.bf16.msra.mxu1 %v19634_v6  ;;  %v19784_v35 = vld [vmem:[%s17723_s25 + $0x3f8] ss:$400 sps:$4 sm:$0xff]  }
 0x2c4   : > { %12087 = vmatprep.subr.bf16.mxu0 %v19583_v36  ;;  %12140 = vmatprep.subr.bf16.mxu1 %v19641_v26  ;;  %v19789_v36 = vld [vmem:[%s17723_s25 + $0xe0] ss:$400 sps:$4 sm:$0xff]  }
 0x2c7   : > { %12088 = vmatpush1.bf16.msra.mxu0 %v19588_v37  ;;  %12141 = vmatpush1.bf16.msra.mxu1 %v19661_v28  ;;  %v13705_v37 = vadd.s32 4096, %v18176_v42 }
 0x2c8   : > { %12089 = vmatprep.subr.bf16.mxu0 %v19593_v41  ;;  %12142 = vmatprep.subr.bf16.mxu1 %v19749_v19  ;;  %v19795_v41 = vld [vmem:[%s17723_s25 + $0xdc] ss:$400 sps:$4 sm:$0xff]  }
 0x2c9   : > { %v13799_v63 = vand.u32 127, %v13705_v37 }
 0x2cb   : > { %12090 = vmatpush1.bf16.msra.mxu0 %v19599_v0  ;;  %12143 = vmatpush1.bf16.msra.mxu1 %v19754_v18  ;;  %v13706_v0 = vadd.s32 4224, %v18176_v42  ;;  %vm19816_vm3 = vcmp.lt.s32.totalorder %v13799_v63, 94  ;;  %v20007_v63 = vld [vmem:[%s17723_s25 + $0x410] ss:$400 sps:$4 sm:$0xff]  }
 0x2cc   : > { %12091 = vmatprep.subr.bf16.mxu0 %v19605_v14  ;;  %12144 = vmatprep.subr.bf16.mxu1 %v19759_v13  ;;  %v19801_v14 = vld [vmem:[%s17723_s25 + $0x400] ss:$400 sps:$4 sm:$0xff]  }
 0x2cd   : > { %v13800_v56 = vand.u32 127, %v13706_v0 }
 0x2cf   : > { %12092 = vmatpush1.bf16.msra.mxu0 %v19611_v30  ;;  %12145 = vmatpush1.bf16.msra.mxu1 %v19764_v32  ;;  %v13707_v30 = vadd.s32 4352, %v18176_v42  ;;  %vm19822_vm4 = vcmp.lt.s32.totalorder %v13800_v56, 94  ;;  %v19857_v56 = vld [vmem:[%s17723_s25 + $0x400] ss:$400 sps:$4 sm:$0xff]  }
 0x2d0   : > { %12093 = vmatprep.subr.bf16.mxu0 %v19617_v27  ;;  %12146 = vmatprep.subr.bf16.mxu1 %v19769_v29 }
 0x2d1   : > { %v13801_v59 = vand.u32 127, %v13707_v30 }
 0x2d3   : > { %12094 = vmatpush1.bf16.msra.mxu0 %v19634_v6  ;;  %12147 = vmatpush1.bf16.msra.mxu1 %v19774_v33  ;;  %vm19840_vm5 = vcmp.lt.s32.totalorder %v13801_v59, 94 }
 0x2d4   : > { %12095 = vmatprep.subr.bf16.mxu0 %v19641_v26  ;;  %12148 = vmatprep.subr.bf16.mxu1 %v19779_v34 }
 0x2d7   : > { %12096 = vmatpush1.bf16.msra.mxu0 %v19661_v28  ;;  %12149 = vmatpush1.bf16.msra.mxu1 %v19784_v35 }
 0x2d8   : > { %12097 = vmatprep.subr.bf16.mxu0 %v19749_v19  ;;  %12150 = vmatprep.subr.bf16.mxu1 %v19789_v36 }
 0x2db   : > { %12098 = vmatpush1.bf16.msra.mxu0 %v19754_v18  ;;  %12151 = vmatpush1.bf16.msra.mxu1 %v19795_v41 }
 0x2dc   : > { %12099 = vmatprep.subr.bf16.mxu0 %v19759_v13  ;;  %12152 = vmatprep.subr.bf16.mxu1 %v19801_v14 }
 0x2dd   : > { %v11687_v10 = vpop.f32.mrb[64].mxu0  ;;  %v11740_v1 = vpop.f32.mrb[64].mxu1 }
 0x2de   : > { %v11688_v8 = vadd.f32 %v11687_v10, %v18183_v44  ;;  %v11689_v47 = vpop.f32.mrb[65].mxu0  ;;  %v11741_v46 = vadd.f32 %v11740_v1, %v18183_v44  ;;  %v11742_v57 = vpop.f32.mrb[65].mxu1 }
 0x2df   : > { %v11690_v20 = vadd.f32 %v11689_v47, %v18183_v44  ;;  %v11691_v39 = vpop.f32.mrb[66].mxu0  ;;  %12100 = vmatpush1.bf16.msra.mxu0 %v19764_v32  ;;  %12153 = vmatpush1.bf16.msra.mxu1 %v19807_v50  ;;  %v11743_v16 = vadd.f32 %v11742_v57, %v18183_v44  ;;  %v11744_v62 = vpop.f32.mrb[66].mxu1 }
 0x2e0   : > { %v13328_v48 = vmax.f32 %v11688_v8, 0.0  ;;  %v11692_v7 = vadd.f32 %v11691_v39, %v18205_v53  ;;  %v11693_v40 = vpop.f32.mrb[67].mxu0  ;;  %v13330_v23 = vmax.f32 %v11741_v46, 0.0  ;;  %12101 = vmatprep.subr.bf16.mxu0 %v19769_v29  ;;  %12154 = vmatprep.subr.bf16.mxu1 %v19813_v43  ;;  %v11745_v25 = vadd.f32 %v11744_v62, %v18205_v53  ;;  %v11746_v15 = vpop.f32.mrb[67].mxu1 }
 0x2e1   : > { %v13329_v24 = vmax.f32 %v11690_v20, 0.0  ;;  %v11694_v38 = vadd.f32 %v11693_v40, %v18205_v53  ;;  %v11747_v2 = vadd.f32 %v11746_v15, %v18205_v53  ;;  %v13331_v21 = vmax.f32 %v11743_v16, 0.0 }
 0x2e2   : > { %v14175_v60 = vsel %vm19816_vm3, %v13328_v48, 0.0  ;;  %v13422_v3 = vmax.f32 %v11692_v7, 0.0  ;;  %v13424_v54 = vmax.f32 %v11745_v25, 0.0 }
 0x2e3   : > { %v14550_v37 = vadd.f32 %v19687_v58, %v14175_v60  ;;  %v14176_v0 = vsel %vm19822_vm4, %v13329_v24, 0.0  ;;  %v13423_v30 = vmax.f32 %v11694_v38, 0.0  ;;  %12102 = vmatpush1.bf16.msra.mxu0 %v19774_v33  ;;  %12155 = vmatpush1.bf16.msra.mxu1 %v19830_v31  ;;  %v14177_v58 = vsel %vm19840_vm5, %v13330_v23, 0.0 }
 0x2e4   : > { %v14269_v61 = vsel %vm19816_vm3, %v13422_v3, 0.0  ;;  %v13425_v10 = vmax.f32 %v11747_v2, 0.0  ;;  %12103 = vmatprep.subr.bf16.mxu0 %v19779_v34  ;;  %12156 = vmatprep.subr.bf16.mxu1 %v19837_v4  ;;  %v14178_v57 = vsel %vm19850_vm6, %v13331_v21, 0.0  ;;  %v14271_v20 = vsel %vm19840_vm5, %v13424_v54, 0.0 }
 0x2e5   : > { %v14551_v1 = vadd.f32 %v14550_v37, %v14176_v0  ;;  %v14645_v59 = vadd.f32 %v19695_v11, %v14269_v61  ;;  %v14270_v8 = vsel %vm19822_vm4, %v13423_v30, 0.0  ;;  %v11697_v47 = vpop.f32.mrb[68].mxu0  ;;  %v11750_v46 = vpop.f32.mrb[68].mxu1 }
 0x2e6   : > { %v11698_v39 = vadd.f32 %v11697_v47, %v18210_v55  ;;  %v11699_v16 = vpop.f32.mrb[69].mxu0  ;;  %v11751_v12 = vadd.f32 %v11750_v46, %v18210_v55  ;;  %v11752_v62 = vpop.f32.mrb[69].mxu1  ;;  %v14272_v11 = vsel %vm19850_vm6, %v13425_v10, 0.0 }
 0x2e7   : > { %v14646_v48 = vadd.f32 %v14645_v59, %v14270_v8  ;;  %v14552_v7 = vadd.f32 %v14551_v1, %v14177_v58  ;;  %v11700_v40 = vadd.f32 %v11699_v16, %v18210_v55  ;;  %v11701_v23 = vpop.f32.mrb[70].mxu0  ;;  %12104 = vmatpush1.bf16.msra.mxu0 %v19784_v35  ;;  %12157 = vmatpush1.bf16.msra.mxu1 %v19857_v56  ;;  %v11754_v25 = vpop.f32.mrb[70].mxu1 }
 0x2e8   : > { %v13516_v15 = vmax.f32 %v11698_v39, 0.0  ;;  %v11702_v24 = vadd.f32 %v11701_v23, %v18258_v49  ;;  %v11703_v38 = vpop.f32.mrb[71].mxu0  ;;  %v13518_v2 = vmax.f32 %v11751_v12, 0.0  ;;  %v11753_v60 = vadd.f32 %v11752_v62, %v18210_v55  ;;  %12183 = vmatprep.subr.bf16.mxu0 %v19617_v27  ;;  %12236 = vmatprep.subr.bf16.mxu1 %v19769_v29  ;;  %v11756_v3 = vpop.f32.mrb[71].mxu1  ;;  %v19927_v62 = vld [vmem:[%s22364_s1 + $0x10] ss:$8 sps:$4 sm:$0xff]  }
 0x2e9   : > { %v19883_v21 = vadd.f32 %v14552_v7, %v14178_v57  ;;  %v14647_v54 = vadd.f32 %v14646_v48, %v14271_v20  ;;  %v13517_v37 = vmax.f32 %v11700_v40, 0.0  ;;  %v11704_v0 = vadd.f32 %v11703_v38, %v18258_v49  ;;  %v20013_v40 = vld [vmem:[%s17723_s25 + $0x40c] ss:$400 sps:$4 sm:$0xff]  }
 0x2ea   : > { %v14363_v30 = vsel %vm19816_vm3, %v13516_v15, 0.0  ;;  %v13610_v61 = vmax.f32 %v11702_v24, 0.0  ;;  %v13519_v58 = vmax.f32 %v11753_v60, 0.0  ;;  %12110 = vmatmul.mubr.bf16.vlgmr.msra.gmra.mrb[96].mxu0 %v19489_v22  ;;  %12163 = vmatmul.mubr.bf16.vlgmr.msra.gmra.mrb[96].mxu1 %v19489_v22  ;;  %v14365_v47 = vsel %vm19840_vm5, %v13518_v2, 0.0  ;;  %v20122_v60 = vld [vmem:[%s22364_s1 + $0x14] ss:$8 sps:$4 sm:$0xff]  }
 0x2eb   : > { %v14740_v27 = vadd.f32 %v19726_v5, %v14363_v30  ;;  %v19891_v10 = vadd.f32 %v14647_v54, %v14272_v11  ;;  %v14364_v1 = vsel %vm19822_vm4, %v13517_v37, 0.0  ;;  %v13611_v59 = vmax.f32 %v11704_v0, 0.0  ;;  %12184 = vmatpush1.bf16.msra.mxu0 %v19634_v6  ;;  %12237 = vmatpush1.bf16.msra.mxu1 %v19774_v33 }
 0x2ec   : > { %v14457_v8 = vsel %vm19816_vm3, %v13610_v61, 0.0  ;;  %v11755_v22 = vadd.f32 %v11754_v25, %v18258_v49  ;;  %v11757_v5 = vadd.f32 %v11756_v3, %v18258_v49  ;;  %12185 = vmatprep.subr.bf16.mxu0 %v19641_v26  ;;  %12238 = vmatprep.subr.bf16.mxu1 %v19779_v34  ;;  %v14366_v17 = vsel %vm19850_vm6, %v13519_v58, 0.0  ;;  %v20019_v25 = vld [vmem:[%s17723_s25 + $0xf4] ss:$400 sps:$4 sm:$0xff]  }
 0x2ed   : > { %v14741_v46 = vadd.f32 %v14740_v27, %v14364_v1  ;;  %v14835_v57 = vadd.f32 %v19730_v51, %v14457_v8  ;;  %v14458_v6 = vsel %vm19822_vm4, %v13611_v59, 0.0  ;;  %16825 = vmatprep.mubr.msk.bf16.mxu0 %vm10798_vm0, %v19514_v45  ;;  %16827 = vmatprep.mubr.msk.bf16.mxu1 %vm10798_vm0, %v19514_v45  ;;  %v13711_v48 = vadd.s32 4864, %v18176_v42  ;;  %v20036_v1 = vld [vmem:[%s17723_s25 + $0xf0] ss:$400 sps:$4 sm:$0xff]  }
 0x2ee   : > { %v13612_v20 = vmax.f32 %v11755_v22, 0.0  ;;  %v13613_v39 = vmax.f32 %v11757_v5, 0.0  ;;  %v13804_v11 = vand.u32 127, %v13710_v52  ;;  %v13712_v23 = vadd.s32 4992, %v18176_v42 }
 0x2ef   : > { %v14836_v26 = vadd.f32 %v14835_v57, %v14458_v6  ;;  %v14742_v16 = vadd.f32 %v14741_v46, %v14365_v47  ;;  %12186 = vmatpush1.bf16.msra.mxu0 %v19661_v28  ;;  %12239 = vmatpush1.bf16.msra.mxu1 %v19784_v35  ;;  %v13805_v38 = vand.u32 127, %v13711_v48  ;;  %v20043_v6 = vld [vmem:[%s17723_s25 + $0x414] ss:$400 sps:$4 sm:$0xff]  }
 0x2f0   : > { %v14459_v51 = vsel %vm19840_vm5, %v13612_v20, 0.0  ;;  %v14460_v9 = vsel %vm19850_vm6, %v13613_v39, 0.0  ;;  %12187 = vmatprep.subr.bf16.mxu0 %v19749_v19  ;;  %12240 = vmatprep.subr.bf16.mxu1 %v19789_v36  ;;  %v19940_v19 = vld [vmem:[%s22364_s1 + $0x4] ss:$8 sps:$4 sm:$0xff]   ;;  %vm20028_vm8 = vcmp.lt.s32.totalorder %v13804_v11, 94  ;;  %v13806_v27 = vand.u32 127, %v13712_v23 }
 0x2f1   : > { %v19922_v45 = vadd.f32 %v14742_v16, %v14366_v17  ;;  %v14837_v12 = vadd.f32 %v14836_v26, %v14459_v51  ;;  %vm20046_vm9 = vcmp.lt.s32.totalorder %v13805_v38, 94  ;;  %v20063_v11 = vld [vmem:[%s17723_s25 + $0x410] ss:$400 sps:$4 sm:$0xff]  }
 0x2f2   : > { %12120 = vmatmul.mubr.bf16.gmra.mrb[100].mxu0 %v19927_v62  ;;  %12173 = vmatmul.mubr.bf16.gmra.mrb[100].mxu1 %v19927_v62  ;;  %vm20056_vm10 = vcmp.lt.s32.totalorder %v13806_v27, 94  ;;  %v20213_v39 = vld [vmem:[%s17723_s25 + $0x420] ss:$400 sps:$4 sm:$0xff]  }
 0x2f3   : > { %v19931_v28 = vadd.f32 %v14837_v12, %v14460_v9  ;;  %12188 = vmatpush1.bf16.msra.mxu0 %v19754_v18  ;;  %12241 = vmatpush1.bf16.msra.mxu1 %v19795_v41  ;;  %v19955_v18 = vld [vmem:[%s17723_s25 + $0xe8] ss:$400 sps:$4 sm:$0xff]  }
 0x2f4   : > { %12189 = vmatprep.subr.bf16.mxu0 %v19759_v13  ;;  %12242 = vmatprep.subr.bf16.mxu1 %v19801_v14  ;;  %v19960_v13 = vld [vmem:[%s17723_s25 + $0xe4] ss:$400 sps:$4 sm:$0xff]  }
 0x2f5   : > { %16828 = vmatprep.mubr.msk.bf16.mxu0 %vm10798_vm0, %v19940_v19  ;;  %16830 = vmatprep.mubr.msk.bf16.mxu1 %vm10798_vm0, %v19940_v19 }
 0x2f7   : > { %12190 = vmatpush1.bf16.msra.mxu0 %v19764_v32  ;;  %12243 = vmatpush1.bf16.msra.mxu1 %v19807_v50  ;;  %v19965_v32 = vld [vmem:[%s17723_s25 + $0x408] ss:$400 sps:$4 sm:$0xff]  }
 0x2f8   : > { %12191 = vmatprep.subr.bf16.mxu0 %v19769_v29  ;;  %12244 = vmatprep.subr.bf16.mxu1 %v19813_v43  ;;  %v19970_v29 = vld [vmem:[%s17723_s25 + $0x404] ss:$400 sps:$4 sm:$0xff]  }
 0x2fb   : > { %12192 = vmatpush1.bf16.msra.mxu0 %v19774_v33  ;;  %12245 = vmatpush1.bf16.msra.mxu1 %v19830_v31  ;;  %v19975_v33 = vld [vmem:[%s17723_s25 + $0xec] ss:$400 sps:$4 sm:$0xff]  }
 0x2fc   : > { %12193 = vmatprep.subr.bf16.mxu0 %v19779_v34  ;;  %12246 = vmatprep.subr.bf16.mxu1 %v19837_v4  ;;  %v19980_v34 = vld [vmem:[%s17723_s25 + $0xe8] ss:$400 sps:$4 sm:$0xff]  }
 0x2ff   : > { %12194 = vmatpush1.bf16.msra.mxu0 %v19784_v35  ;;  %12247 = vmatpush1.bf16.msra.mxu1 %v19857_v56  ;;  %v19985_v35 = vld [vmem:[%s17723_s25 + $0x40c] ss:$400 sps:$4 sm:$0xff]  }
 0x300   : > { %12195 = vmatprep.subr.bf16.mxu0 %v19789_v36  ;;  %12248 = vmatprep.subr.bf16.mxu1 %v19955_v18  ;;  %v19990_v36 = vld [vmem:[%s17723_s25 + $0x408] ss:$400 sps:$4 sm:$0xff]  }
 0x303   : > { %12196 = vmatpush1.bf16.msra.mxu0 %v19795_v41  ;;  %12249 = vmatpush1.bf16.msra.mxu1 %v19960_v13  ;;  %v19995_v41 = vld [vmem:[%s17723_s25 + $0xf0] ss:$400 sps:$4 sm:$0xff]  }
 0x304   : > { %12197 = vmatprep.subr.bf16.mxu0 %v19801_v14  ;;  %12250 = vmatprep.subr.bf16.mxu1 %v19965_v32  ;;  %v13709_v14 = vadd.s32 4608, %v18176_v42 }
 0x306   : > { %v13803_v7 = vand.u32 127, %v13709_v14 }
 0x307   : > { %12198 = vmatpush1.bf16.msra.mxu0 %v19807_v50  ;;  %12251 = vmatpush1.bf16.msra.mxu1 %v19970_v29  ;;  %v20001_v50 = vld [vmem:[%s17723_s25 + $0xec] ss:$400 sps:$4 sm:$0xff]  }
 0x308   : > { %12199 = vmatprep.subr.bf16.mxu0 %v19813_v43  ;;  %12252 = vmatprep.subr.bf16.mxu1 %v19975_v33  ;;  %vm20022_vm7 = vcmp.lt.s32.totalorder %v13803_v7, 94  ;;  %v13715_v7 = vadd.s32 5376, %v18176_v42 }
 0x30b   : > { %12200 = vmatpush1.bf16.msra.mxu0 %v19830_v31  ;;  %12253 = vmatpush1.bf16.msra.mxu1 %v19980_v34 }
 0x30c   : > { %12201 = vmatprep.subr.bf16.mxu0 %v19837_v4  ;;  %12254 = vmatprep.subr.bf16.mxu1 %v19985_v35 }
 0x30f   : > { %12202 = vmatpush1.bf16.msra.mxu0 %v19857_v56  ;;  %12255 = vmatpush1.bf16.msra.mxu1 %v19990_v36 }
 0x310   : > { %12203 = vmatprep.subr.bf16.mxu0 %v19955_v18  ;;  %12256 = vmatprep.subr.bf16.mxu1 %v19995_v41 }
 0x313   : > { %12204 = vmatpush1.bf16.msra.mxu0 %v19960_v13  ;;  %12257 = vmatpush1.bf16.msra.mxu1 %v20001_v50 }
 0x314   : > { %12205 = vmatprep.subr.bf16.mxu0 %v19965_v32  ;;  %12258 = vmatprep.subr.bf16.mxu1 %v20007_v63 }
 0x315   : > { %v11793_v15 = vpop.f32.mrb[72].mxu0  ;;  %v11846_v24 = vpop.f32.mrb[72].mxu1 }
 0x316   : > { %v11794_v2 = vadd.f32 %v11793_v15, %v18183_v44  ;;  %v11795_v3 = vpop.f32.mrb[73].mxu0  ;;  %v11847_v54 = vadd.f32 %v11846_v24, %v18183_v44  ;;  %v11848_v37 = vpop.f32.mrb[73].mxu1 }
 0x317   : > { %v11796_v0 = vadd.f32 %v11795_v3, %v18183_v44  ;;  %v11797_v61 = vpop.f32.mrb[74].mxu0  ;;  %12206 = vmatpush1.bf16.msra.mxu0 %v19970_v29  ;;  %12259 = vmatpush1.bf16.msra.mxu1 %v20013_v40  ;;  %v11849_v58 = vadd.f32 %v11848_v37, %v18183_v44  ;;  %v11850_v59 = vpop.f32.mrb[74].mxu1 }
 0x318   : > { %v13332_v8 = vmax.f32 %v11794_v2, 0.0  ;;  %v11798_v47 = vadd.f32 %v11797_v61, %v18205_v53  ;;  %v11799_v22 = vpop.f32.mrb[75].mxu0  ;;  %v13334_v5 = vmax.f32 %v11847_v54, 0.0  ;;  %12207 = vmatprep.subr.bf16.mxu0 %v19975_v33  ;;  %12260 = vmatprep.subr.bf16.mxu1 %v20019_v25  ;;  %v11851_v46 = vadd.f32 %v11850_v59, %v18205_v53  ;;  %v11852_v57 = vpop.f32.mrb[75].mxu1 }
 0x319   : > { %v13333_v17 = vmax.f32 %v11796_v0, 0.0  ;;  %v11800_v20 = vadd.f32 %v11799_v22, %v18205_v53  ;;  %v11853_v26 = vadd.f32 %v11852_v57, %v18205_v53  ;;  %v13335_v9 = vmax.f32 %v11849_v58, 0.0 }
 0x31a   : > { %v14179_v16 = vsel %vm20022_vm7, %v13332_v8, 0.0  ;;  %v13426_v51 = vmax.f32 %v11798_v47, 0.0  ;;  %v13428_v12 = vmax.f32 %v11851_v46, 0.0 }
 0x31b   : > { %v14554_v14 = vadd.f32 %v19883_v21, %v14179_v16  ;;  %v14180_v52 = vsel %vm20028_vm8, %v13333_v17, 0.0  ;;  %v13427_v48 = vmax.f32 %v11800_v20, 0.0  ;;  %12208 = vmatpush1.bf16.msra.mxu0 %v19980_v34  ;;  %12261 = vmatpush1.bf16.msra.mxu1 %v20036_v1  ;;  %v14181_v21 = vsel %vm20046_vm9, %v13334_v5, 0.0 }
 0x31c   : > { %v14273_v23 = vsel %vm20022_vm7, %v13426_v51, 0.0  ;;  %v13429_v15 = vmax.f32 %v11853_v26, 0.0  ;;  %12209 = vmatprep.subr.bf16.mxu0 %v19985_v35  ;;  %12262 = vmatprep.subr.bf16.mxu1 %v20043_v6  ;;  %v14182_v37 = vsel %vm20056_vm10, %v13335_v9, 0.0  ;;  %v14275_v0 = vsel %vm20046_vm9, %v13428_v12, 0.0 }
 0x31d   : > { %v14555_v24 = vadd.f32 %v14554_v14, %v14180_v52  ;;  %v14649_v38 = vadd.f32 %v19891_v10, %v14273_v23  ;;  %v14274_v2 = vsel %vm20028_vm8, %v13427_v48, 0.0  ;;  %v11803_v3 = vpop.f32.mrb[76].mxu0  ;;  %v11856_v54 = vpop.f32.mrb[76].mxu1 }
 0x31e   : > { %v11804_v61 = vadd.f32 %v11803_v3, %v18210_v55  ;;  %v11805_v58 = vpop.f32.mrb[77].mxu0  ;;  %v11857_v27 = vadd.f32 %v11856_v54, %v18210_v55  ;;  %v11858_v59 = vpop.f32.mrb[77].mxu1  ;;  %v14276_v10 = vsel %vm20056_vm10, %v13429_v15, 0.0  ;;  %v20097_v15 = vld [vmem:[%s22364_s1] ss:$8 sps:$4 sm:$0xff]  }
 0x31f   : > { %v14650_v8 = vadd.f32 %v14649_v38, %v14274_v2  ;;  %v14556_v47 = vadd.f32 %v14555_v24, %v14181_v21  ;;  %v11806_v22 = vadd.f32 %v11805_v58, %v18210_v55  ;;  %v11807_v5 = vpop.f32.mrb[78].mxu0  ;;  %12210 = vmatpush1.bf16.msra.mxu0 %v19990_v36  ;;  %12263 = vmatpush1.bf16.msra.mxu1 %v20063_v11  ;;  %v11860_v46 = vpop.f32.mrb[78].mxu1 }
 0x320   : > { %v13520_v57 = vmax.f32 %v11804_v61, 0.0  ;;  %v11808_v17 = vadd.f32 %v11807_v5, %v18258_v49  ;;  %v11809_v20 = vpop.f32.mrb[79].mxu0  ;;  %v13522_v26 = vmax.f32 %v11857_v27, 0.0  ;;  %v11859_v16 = vadd.f32 %v11858_v59, %v18210_v55  ;;  %12289 = vmatprep.subr.bf16.mxu0 %v19813_v43  ;;  %12342 = vmatprep.subr.bf16.mxu1 %v19975_v33  ;;  %v11862_v51 = vpop.f32.mrb[79].mxu1 }
 0x321   : > { %v20089_v9 = vadd.f32 %v14556_v47, %v14182_v37  ;;  %v14651_v12 = vadd.f32 %v14650_v8, %v14275_v0  ;;  %v13521_v14 = vmax.f32 %v11806_v22, 0.0  ;;  %v11810_v52 = vadd.f32 %v11809_v20, %v18258_v49 }
 0x322   : > { %v14367_v48 = vsel %vm20022_vm7, %v13520_v57, 0.0  ;;  %v13614_v23 = vmax.f32 %v11808_v17, 0.0  ;;  %v13523_v21 = vmax.f32 %v11859_v16, 0.0  ;;  %12216 = vmatmul.mubr.bf16.vlgmr.msra.gmra.mrb[104].mxu0 %v20097_v15  ;;  %12269 = vmatmul.mubr.bf16.vlgmr.msra.gmra.mrb[104].mxu1 %v20097_v15  ;;  %v14369_v54 = vsel %vm20046_vm9, %v13522_v26, 0.0  ;;  %v20225_v17 = vld [vmem:[%s17723_s25 + $0x104] ss:$400 sps:$4 sm:$0xff]  }
 0x323   : > { %v14744_v43 = vadd.f32 %v19922_v45, %v14367_v48  ;;  %v20102_v24 = vadd.f32 %v14651_v12, %v14276_v10  ;;  %v14368_v38 = vsel %vm20028_vm8, %v13521_v14, 0.0  ;;  %v13615_v2 = vmax.f32 %v11810_v52, 0.0  ;;  %12290 = vmatpush1.bf16.msra.mxu0 %v19830_v31  ;;  %12343 = vmatpush1.bf16.msra.mxu1 %v19980_v34 }
 0x324   : > { %v14461_v3 = vsel %vm20022_vm7, %v13614_v23, 0.0  ;;  %v11861_v37 = vadd.f32 %v11860_v46, %v18258_v49  ;;  %v11863_v45 = vadd.f32 %v11862_v51, %v18258_v49  ;;  %12291 = vmatprep.subr.bf16.mxu0 %v19837_v4  ;;  %12344 = vmatprep.subr.bf16.mxu1 %v19985_v35  ;;  %v14370_v4 = vsel %vm20056_vm10, %v13523_v21, 0.0  ;;  %v20219_v46 = vld [vmem:[%s17723_s25 + $0x41c] ss:$400 sps:$4 sm:$0xff]  }
 0x325   : > { %v14745_v0 = vadd.f32 %v14744_v43, %v14368_v38  ;;  %v14839_v61 = vadd.f32 %v19931_v28, %v14461_v3  ;;  %v14462_v31 = vsel %vm20028_vm8, %v13615_v2, 0.0  ;;  %16829 = vmatprep.mubr.msk.bf16.mxu0 %vm10798_vm0, %v20122_v60  ;;  %16831 = vmatprep.mubr.msk.bf16.mxu1 %vm10798_vm0, %v20122_v60  ;;  %v13716_v57 = vadd.s32 5504, %v18176_v42  ;;  %v20242_v3 = vld [vmem:[%s17723_s25 + $0x100] ss:$400 sps:$4 sm:$0xff]  }
 0x326   : > { %v13616_v58 = vmax.f32 %v11861_v37, 0.0  ;;  %v13617_v27 = vmax.f32 %v11863_v45, 0.0  ;;  %v13809_v16 = vand.u32 127, %v13715_v7 }
 0x327   : > { %v14840_v28 = vadd.f32 %v14839_v61, %v14462_v31  ;;  %v14746_v59 = vadd.f32 %v14745_v0, %v14369_v54  ;;  %12292 = vmatpush1.bf16.msra.mxu0 %v19857_v56  ;;  %12345 = vmatpush1.bf16.msra.mxu1 %v19990_v36  ;;  %v13810_v2 = vand.u32 127, %v13716_v57 }
 0x328   : > { %v14463_v30 = vsel %vm20046_vm9, %v13616_v58, 0.0  ;;  %v14464_v8 = vsel %vm20056_vm10, %v13617_v27, 0.0  ;;  %12293 = vmatprep.subr.bf16.mxu0 %v19955_v18  ;;  %12346 = vmatprep.subr.bf16.mxu1 %v19995_v41  ;;  %v20161_v18 = vld [vmem:[%s17723_s25 + $0xf8] ss:$400 sps:$4 sm:$0xff]   ;;  %v20249_v58 = vld [vmem:[%s17723_s25 + $0x424] ss:$400 sps:$4 sm:$0xff]  }
 0x329   : > { %v20138_v47 = vadd.f32 %v14746_v59, %v14370_v4  ;;  %v14841_v10 = vadd.f32 %v14840_v28, %v14463_v30  ;;  %vm20252_vm13 = vcmp.lt.s32.totalorder %v13809_v16, 94  ;;  %vm20262_vm14 = vcmp.lt.s32.totalorder %v13810_v2, 94 }
 0x32a   : > { %12226 = vmatmul.mubr.bf16.gmra.mrb[108].mxu0 %v19927_v62  ;;  %12279 = vmatmul.mubr.bf16.gmra.mrb[108].mxu1 %v19927_v62 }
 0x32b   : > { %v20142_v56 = vadd.f32 %v14841_v10, %v14464_v8  ;;  %12294 = vmatpush1.bf16.msra.mxu0 %v19960_v13  ;;  %12347 = vmatpush1.bf16.msra.mxu1 %v20001_v50  ;;  %v20166_v13 = vld [vmem:[%s17723_s25 + $0xf4] ss:$400 sps:$4 sm:$0xff]  }
 0x32c   : > { %12295 = vmatprep.subr.bf16.mxu0 %v19965_v32  ;;  %12348 = vmatprep.subr.bf16.mxu1 %v20007_v63  ;;  %v20171_v32 = vld [vmem:[%s17723_s25 + $0x418] ss:$400 sps:$4 sm:$0xff]  }
 0x32d   : > { %16832 = vmatprep.mubr.msk.bf16.mxu0 %vm10798_vm0, %v19940_v19  ;;  %16834 = vmatprep.mubr.msk.bf16.mxu1 %vm10798_vm0, %v19940_v19 }
 0x32f   : > { %12296 = vmatpush1.bf16.msra.mxu0 %v19970_v29  ;;  %12349 = vmatpush1.bf16.msra.mxu1 %v20013_v40  ;;  %v20176_v29 = vld [vmem:[%s17723_s25 + $0x414] ss:$400 sps:$4 sm:$0xff]  }
 0x330   : > { %12297 = vmatprep.subr.bf16.mxu0 %v19975_v33  ;;  %12350 = vmatprep.subr.bf16.mxu1 %v20019_v25  ;;  %v20181_v33 = vld [vmem:[%s17723_s25 + $0xfc] ss:$400 sps:$4 sm:$0xff]  }
 0x333   : > { %12298 = vmatpush1.bf16.msra.mxu0 %v19980_v34  ;;  %12351 = vmatpush1.bf16.msra.mxu1 %v20036_v1  ;;  %v20186_v34 = vld [vmem:[%s17723_s25 + $0xf8] ss:$400 sps:$4 sm:$0xff]  }
 0x334   : > { %12299 = vmatprep.subr.bf16.mxu0 %v19985_v35  ;;  %12352 = vmatprep.subr.bf16.mxu1 %v20043_v6  ;;  %v20191_v35 = vld [vmem:[%s17723_s25 + $0x41c] ss:$400 sps:$4 sm:$0xff]  }
 0x337   : > { %12300 = vmatpush1.bf16.msra.mxu0 %v19990_v36  ;;  %12353 = vmatpush1.bf16.msra.mxu1 %v20063_v11  ;;  %v20196_v36 = vld [vmem:[%s17723_s25 + $0x418] ss:$400 sps:$4 sm:$0xff]  }
 0x338   : > { %12301 = vmatprep.subr.bf16.mxu0 %v19995_v41  ;;  %12354 = vmatprep.subr.bf16.mxu1 %v20161_v18  ;;  %v20201_v41 = vld [vmem:[%s17723_s25 + $0x100] ss:$400 sps:$4 sm:$0xff]  }
 0x33b   : > { %12302 = vmatpush1.bf16.msra.mxu0 %v20001_v50  ;;  %12355 = vmatpush1.bf16.msra.mxu1 %v20166_v13  ;;  %v13713_v50 = vadd.s32 5120, %v18176_v42 }
 0x33c   : > { %12303 = vmatprep.subr.bf16.mxu0 %v20007_v63  ;;  %12356 = vmatprep.subr.bf16.mxu1 %v20171_v32  ;;  %v20207_v63 = vld [vmem:[%s17723_s25 + $0xfc] ss:$400 sps:$4 sm:$0xff]  }
 0x33d   : > { %v13807_v22 = vand.u32 127, %v13713_v50 }
 0x33f   : > { %12304 = vmatpush1.bf16.msra.mxu0 %v20013_v40  ;;  %12357 = vmatpush1.bf16.msra.mxu1 %v20176_v29  ;;  %v13714_v40 = vadd.s32 5248, %v18176_v42  ;;  %vm20228_vm11 = vcmp.lt.s32.totalorder %v13807_v22, 94 }
 0x340   : > { %12305 = vmatprep.subr.bf16.mxu0 %v20019_v25  ;;  %12358 = vmatprep.subr.bf16.mxu1 %v20181_v33 }
 0x341   : > { %v13808_v5 = vand.u32 127, %v13714_v40 }
 0x343   : > { %12306 = vmatpush1.bf16.msra.mxu0 %v20036_v1  ;;  %12359 = vmatpush1.bf16.msra.mxu1 %v20186_v34  ;;  %vm20234_vm12 = vcmp.lt.s32.totalorder %v13808_v5, 94 }
 0x344   : > { %12307 = vmatprep.subr.bf16.mxu0 %v20043_v6  ;;  %12360 = vmatprep.subr.bf16.mxu1 %v20191_v35 }
 0x347   : > { %12308 = vmatpush1.bf16.msra.mxu0 %v20063_v11  ;;  %12361 = vmatpush1.bf16.msra.mxu1 %v20196_v36 }
 0x348   : > { %12309 = vmatprep.subr.bf16.mxu0 %v20161_v18  ;;  %12362 = vmatprep.subr.bf16.mxu1 %v20201_v41 }
 0x34b   : > { %12310 = vmatpush1.bf16.msra.mxu0 %v20166_v13  ;;  %12363 = vmatpush1.bf16.msra.mxu1 %v20207_v63 }
 0x34c   : > { %12311 = vmatprep.subr.bf16.mxu0 %v20171_v32  ;;  %12364 = vmatprep.subr.bf16.mxu1 %v20213_v39 }
 0x34d   : > { %v11899_v20 = vpop.f32.mrb[80].mxu0  ;;  %v11952_v26 = vpop.f32.mrb[80].mxu1 }
 0x34e   : > { %v11900_v51 = vadd.f32 %v11899_v20, %v18183_v44  ;;  %v11901_v14 = vpop.f32.mrb[81].mxu0  ;;  %v11953_v52 = vadd.f32 %v11952_v26, %v18183_v44  ;;  %v11954_v48 = vpop.f32.mrb[81].mxu1  ;;  %v20269_v20 = vld [vmem:[%s17723_s25 + $0x420] ss:$400 sps:$4 sm:$0xff]  }
 0x34f   : > { %v11902_v23 = vadd.f32 %v11901_v14, %v18183_v44  ;;  %v11903_v43 = vpop.f32.mrb[82].mxu0  ;;  %12312 = vmatpush1.bf16.msra.mxu0 %v20176_v29  ;;  %12365 = vmatpush1.bf16.msra.mxu1 %v20219_v46  ;;  %v11955_v38 = vadd.f32 %v11954_v48, %v18183_v44  ;;  %v11956_v54 = vpop.f32.mrb[82].mxu1 }
 0x350   : > { %v13336_v37 = vmax.f32 %v11900_v51, 0.0  ;;  %v11904_v45 = vadd.f32 %v11903_v43, %v18205_v53  ;;  %v11905_v0 = vpop.f32.mrb[83].mxu0  ;;  %v13338_v61 = vmax.f32 %v11953_v52, 0.0  ;;  %12313 = vmatprep.subr.bf16.mxu0 %v20181_v33  ;;  %12366 = vmatprep.subr.bf16.mxu1 %v20225_v17  ;;  %v11957_v31 = vadd.f32 %v11956_v54, %v18205_v53  ;;  %v11958_v4 = vpop.f32.mrb[83].mxu1 }
 0x351   : > { %v13337_v27 = vmax.f32 %v11902_v23, 0.0  ;;  %v11906_v28 = vadd.f32 %v11905_v0, %v18205_v53  ;;  %v11959_v30 = vadd.f32 %v11958_v4, %v18205_v53  ;;  %v13339_v50 = vmax.f32 %v11955_v38, 0.0 }
 0x352   : > { %v14183_v8 = vsel %vm20228_vm11, %v13336_v37, 0.0  ;;  %v13430_v10 = vmax.f32 %v11904_v45, 0.0  ;;  %v13432_v40 = vmax.f32 %v11957_v31, 0.0 }
 0x353   : > { %v14558_v7 = vadd.f32 %v20089_v9, %v14183_v8  ;;  %v14184_v22 = vsel %vm20234_vm12, %v13337_v27, 0.0  ;;  %v13431_v5 = vmax.f32 %v11906_v28, 0.0  ;;  %12314 = vmatpush1.bf16.msra.mxu0 %v20186_v34  ;;  %12367 = vmatpush1.bf16.msra.mxu1 %v20242_v3  ;;  %v14185_v9 = vsel %vm20252_vm13, %v13338_v61, 0.0 }
 0x354   : > { %v14277_v26 = vsel %vm20228_vm11, %v13430_v10, 0.0  ;;  %v13433_v16 = vmax.f32 %v11959_v30, 0.0  ;;  %12315 = vmatprep.subr.bf16.mxu0 %v20191_v35  ;;  %12368 = vmatprep.subr.bf16.mxu1 %v20249_v58  ;;  %v14186_v43 = vsel %vm20262_vm14, %v13339_v50, 0.0  ;;  %v14279_v38 = vsel %vm20252_vm13, %v13432_v40, 0.0 }
 0x355   : > { %v14559_v51 = vadd.f32 %v14558_v7, %v14184_v22  ;;  %v14653_v14 = vadd.f32 %v20102_v24, %v14277_v26  ;;  %v14278_v52 = vsel %vm20234_vm12, %v13431_v5, 0.0  ;;  %v11909_v48 = vpop.f32.mrb[84].mxu0  ;;  %v11962_v23 = vpop.f32.mrb[84].mxu1 }
 0x356   : > { %v11910_v2 = vadd.f32 %v11909_v48, %v18210_v55  ;;  %v11911_v54 = vpop.f32.mrb[85].mxu0  ;;  %v11963_v37 = vadd.f32 %v11962_v23, %v18210_v55  ;;  %v11964_v45 = vpop.f32.mrb[85].mxu1  ;;  %v14280_v24 = vsel %vm20262_vm14, %v13433_v16, 0.0 }
 0x357   : > { %v14654_v0 = vadd.f32 %v14653_v14, %v14278_v52  ;;  %v14560_v61 = vadd.f32 %v14559_v51, %v14185_v9  ;;  %v11912_v31 = vadd.f32 %v11911_v54, %v18210_v55  ;;  %v11913_v4 = vpop.f32.mrb[86].mxu0  ;;  %12316 = vmatpush1.bf16.msra.mxu0 %v20196_v36  ;;  %12369 = vmatpush1.bf16.msra.mxu1 %v20269_v20  ;;  %v11966_v27 = vpop.f32.mrb[86].mxu1 }
 0x358   : > { %v13524_v28 = vmax.f32 %v11910_v2, 0.0  ;;  %v11914_v30 = vadd.f32 %v11913_v4, %v18258_v49  ;;  %v11915_v8 = vpop.f32.mrb[87].mxu0  ;;  %v13526_v10 = vmax.f32 %v11963_v37, 0.0  ;;  %v11965_v50 = vadd.f32 %v11964_v45, %v18210_v55  ;;  %12395 = vmatprep.subr.bf16.mxu0 %v20019_v25  ;;  %12448 = vmatprep.subr.bf16.mxu1 %v20181_v33  ;;  %v11968_v40 = vpop.f32.mrb[87].mxu1 }
 0x359   : > { %v20295_v7 = vadd.f32 %v14560_v61, %v14186_v43  ;;  %v14655_v22 = vadd.f32 %v14654_v0, %v14279_v38  ;;  %v13525_v5 = vmax.f32 %v11912_v31, 0.0  ;;  %v11916_v26 = vadd.f32 %v11915_v8, %v18258_v49  ;;  %v20415_v31 = vld [vmem:[%s17723_s25 + $0x42c] ss:$400 sps:$4 sm:$0xff]  }
 0x35a   : > { %v14371_v9 = vsel %vm20228_vm11, %v13524_v28, 0.0  ;;  %v13618_v16 = vmax.f32 %v11914_v30, 0.0  ;;  %v13527_v51 = vmax.f32 %v11965_v50, 0.0  ;;  %12322 = vmatmul.mubr.bf16.vlgmr.msra.gmra.mrb[112].mxu0 %v20097_v15  ;;  %12375 = vmatmul.mubr.bf16.vlgmr.msra.gmra.mrb[112].mxu1 %v20097_v15  ;;  %v14373_v43 = vsel %vm20252_vm13, %v13526_v10, 0.0 }
 0x35b   : > { %v14748_v25 = vadd.f32 %v20138_v47, %v14371_v9  ;;  %v20303_v14 = vadd.f32 %v14655_v22, %v14280_v24  ;;  %v14372_v52 = vsel %vm20234_vm12, %v13525_v5, 0.0  ;;  %v13619_v48 = vmax.f32 %v11916_v26, 0.0  ;;  %12396 = vmatpush1.bf16.msra.mxu0 %v20036_v1  ;;  %12449 = vmatpush1.bf16.msra.mxu1 %v20186_v34 }
 0x35c   : > { %v14465_v23 = vsel %vm20228_vm11, %v13618_v16, 0.0  ;;  %v11967_v38 = vadd.f32 %v11966_v27, %v18258_v49  ;;  %v11969_v47 = vadd.f32 %v11968_v40, %v18258_v49  ;;  %12397 = vmatprep.subr.bf16.mxu0 %v20043_v6  ;;  %12450 = vmatprep.subr.bf16.mxu1 %v20191_v35  ;;  %v14374_v12 = vsel %vm20262_vm14, %v13527_v51, 0.0  ;;  %v20421_v27 = vld [vmem:[%s17723_s25 + $0x114] ss:$400 sps:$4 sm:$0xff]  }
 0x35d   : > { %v14749_v2 = vadd.f32 %v14748_v25, %v14372_v52  ;;  %v14843_v54 = vadd.f32 %v20142_v56, %v14465_v23  ;;  %v14466_v1 = vsel %vm20234_vm12, %v13619_v48, 0.0  ;;  %16833 = vmatprep.mubr.msk.bf16.mxu0 %vm10798_vm0, %v20122_v60  ;;  %16835 = vmatprep.mubr.msk.bf16.mxu1 %vm10798_vm0, %v20122_v60  ;;  %v13720_v4 = vadd.s32 6016, %v18176_v42  ;;  %v20438_v52 = vld [vmem:[%s17723_s25 + $0x110] ss:$400 sps:$4 sm:$0xff]  }
 0x35e   : > { %v13620_v37 = vmax.f32 %v11967_v38, 0.0  ;;  %v13621_v45 = vmax.f32 %v11969_v47, 0.0 }
 0x35f   : > { %v14844_v6 = vadd.f32 %v14843_v54, %v14466_v1  ;;  %v14750_v0 = vadd.f32 %v14749_v2, %v14373_v43  ;;  %12398 = vmatpush1.bf16.msra.mxu0 %v20063_v11  ;;  %12451 = vmatpush1.bf16.msra.mxu1 %v20196_v36  ;;  %v13814_v25 = vand.u32 127, %v13720_v4  ;;  %v20445_v1 = vld [vmem:[%s17723_s25 + $0x434] ss:$400 sps:$4 sm:$0xff]  }
 0x360   : > { %v14467_v56 = vsel %vm20252_vm13, %v13620_v37, 0.0  ;;  %v14468_v21 = vsel %vm20262_vm14, %v13621_v45, 0.0  ;;  %12399 = vmatprep.subr.bf16.mxu0 %v20161_v18  ;;  %12452 = vmatprep.subr.bf16.mxu1 %v20201_v41  ;;  %v20367_v18 = vld [vmem:[%s17723_s25 + $0x428] ss:$400 sps:$4 sm:$0xff]   ;;  %v13722_v45 = vadd.s32 6272, %v18176_v42 }
 0x361   : > { %v20334_v61 = vadd.f32 %v14750_v0, %v14374_v12  ;;  %v14845_v24 = vadd.f32 %v14844_v6, %v14467_v56  ;;  %vm20458_vm3 = vcmp.lt.s32.totalorder %v13814_v25, 94 }
 0x362   : > { %12332 = vmatmul.mubr.bf16.gmra.mrb[116].mxu0 %v19927_v62  ;;  %12385 = vmatmul.mubr.bf16.gmra.mrb[116].mxu1 %v19927_v62  ;;  %v20357_v62 = vld [vmem:[%s17723_s25 + $0x108] ss:$400 sps:$4 sm:$0xff]  }
 0x363   : > { %v20338_v11 = vadd.f32 %v14845_v24, %v14468_v21  ;;  %12400 = vmatpush1.bf16.msra.mxu0 %v20166_v13  ;;  %12453 = vmatpush1.bf16.msra.mxu1 %v20207_v63  ;;  %v20372_v13 = vld [vmem:[%s17723_s25 + $0x424] ss:$400 sps:$4 sm:$0xff]  }
 0x364   : > { %12401 = vmatprep.subr.bf16.mxu0 %v20171_v32  ;;  %12454 = vmatprep.subr.bf16.mxu1 %v20213_v39  ;;  %v20377_v32 = vld [vmem:[%s17723_s25 + $0x10c] ss:$400 sps:$4 sm:$0xff]  }
 0x365   : > { %16836 = vmatprep.mubr.msk.bf16.mxu0 %vm10798_vm0, %v19940_v19  ;;  %16838 = vmatprep.mubr.msk.bf16.mxu1 %vm10798_vm0, %v19940_v19  ;;  %v20362_v19 = vld [vmem:[%s17723_s25 + $0x104] ss:$400 sps:$4 sm:$0xff]  }
 0x367   : > { %12402 = vmatpush1.bf16.msra.mxu0 %v20176_v29  ;;  %12455 = vmatpush1.bf16.msra.mxu1 %v20219_v46  ;;  %v20382_v29 = vld [vmem:[%s17723_s25 + $0x108] ss:$400 sps:$4 sm:$0xff]  }
 0x368   : > { %12403 = vmatprep.subr.bf16.mxu0 %v20181_v33  ;;  %12456 = vmatprep.subr.bf16.mxu1 %v20225_v17  ;;  %v20387_v33 = vld [vmem:[%s17723_s25 + $0x42c] ss:$400 sps:$4 sm:$0xff]  }
 0x36b   : > { %12404 = vmatpush1.bf16.msra.mxu0 %v20186_v34  ;;  %12457 = vmatpush1.bf16.msra.mxu1 %v20242_v3  ;;  %v20392_v34 = vld [vmem:[%s17723_s25 + $0x428] ss:$400 sps:$4 sm:$0xff]  }
 0x36c   : > { %12405 = vmatprep.subr.bf16.mxu0 %v20191_v35  ;;  %12458 = vmatprep.subr.bf16.mxu1 %v20249_v58  ;;  %v20397_v35 = vld [vmem:[%s17723_s25 + $0x110] ss:$400 sps:$4 sm:$0xff]  }
 0x36f   : > { %12406 = vmatpush1.bf16.msra.mxu0 %v20196_v36  ;;  %12459 = vmatpush1.bf16.msra.mxu1 %v20269_v20  ;;  %v13717_v36 = vadd.s32 5632, %v18176_v42 }
 0x370   : > { %12407 = vmatprep.subr.bf16.mxu0 %v20201_v41  ;;  %12460 = vmatprep.subr.bf16.mxu1 %v20357_v62  ;;  %v20403_v41 = vld [vmem:[%s17723_s25 + $0x10c] ss:$400 sps:$4 sm:$0xff]  }
 0x371   : > { %v13811_v59 = vand.u32 127, %v13717_v36 }
 0x373   : > { %12408 = vmatpush1.bf16.msra.mxu0 %v20207_v63  ;;  %12461 = vmatpush1.bf16.msra.mxu1 %v20362_v19  ;;  %v13718_v63 = vadd.s32 5760, %v18176_v42  ;;  %vm20424_vm15 = vcmp.lt.s32.totalorder %v13811_v59, 94  ;;  %v20615_v59 = vld [vmem:[%s17723_s25 + $0x440] ss:$400 sps:$4 sm:$0xff]  }
 0x374   : > { %12409 = vmatprep.subr.bf16.mxu0 %v20213_v39  ;;  %12462 = vmatprep.subr.bf16.mxu1 %v20367_v18  ;;  %v20409_v39 = vld [vmem:[%s17723_s25 + $0x430] ss:$400 sps:$4 sm:$0xff]  }
 0x375   : > { %v13812_v57 = vand.u32 127, %v13718_v63 }
 0x377   : > { %12410 = vmatpush1.bf16.msra.mxu0 %v20219_v46  ;;  %12463 = vmatpush1.bf16.msra.mxu1 %v20372_v13  ;;  %v13719_v46 = vadd.s32 5888, %v18176_v42  ;;  %vm20430_vm1 = vcmp.lt.s32.totalorder %v13812_v57, 94  ;;  %v20465_v57 = vld [vmem:[%s17723_s25 + $0x430] ss:$400 sps:$4 sm:$0xff]  }
 0x378   : > { %12411 = vmatprep.subr.bf16.mxu0 %v20225_v17  ;;  %12464 = vmatprep.subr.bf16.mxu1 %v20377_v32 }
 0x379   : > { %v13813_v8 = vand.u32 127, %v13719_v46 }
 0x37b   : > { %12412 = vmatpush1.bf16.msra.mxu0 %v20242_v3  ;;  %12465 = vmatpush1.bf16.msra.mxu1 %v20382_v29  ;;  %vm20448_vm2 = vcmp.lt.s32.totalorder %v13813_v8, 94 }
 0x37c   : > { %12413 = vmatprep.subr.bf16.mxu0 %v20249_v58  ;;  %12466 = vmatprep.subr.bf16.mxu1 %v20387_v33 }
 0x37f   : > { %12414 = vmatpush1.bf16.msra.mxu0 %v20269_v20  ;;  %12467 = vmatpush1.bf16.msra.mxu1 %v20392_v34 }
 0x380   : > { %12415 = vmatprep.subr.bf16.mxu0 %v20357_v62  ;;  %12468 = vmatprep.subr.bf16.mxu1 %v20397_v35 }
 0x383   : > { %12416 = vmatpush1.bf16.msra.mxu0 %v20362_v19  ;;  %12469 = vmatpush1.bf16.msra.mxu1 %v20403_v41 }
 0x384   : > { %12417 = vmatprep.subr.bf16.mxu0 %v20367_v18  ;;  %12470 = vmatprep.subr.bf16.mxu1 %v20409_v39 }
 0x385   : > { %v12005_v28 = vpop.f32.mrb[88].mxu0  ;;  %v12058_v30 = vpop.f32.mrb[88].mxu1 }
 0x386   : > { %v12006_v10 = vadd.f32 %v12005_v28, %v18183_v44  ;;  %v12007_v40 = vpop.f32.mrb[89].mxu0  ;;  %v12059_v22 = vadd.f32 %v12058_v30, %v18183_v44  ;;  %v12060_v5 = vpop.f32.mrb[89].mxu1 }
 0x387   : > { %v12008_v26 = vadd.f32 %v12007_v40, %v18183_v44  ;;  %v12009_v16 = vpop.f32.mrb[90].mxu0  ;;  %12418 = vmatpush1.bf16.msra.mxu0 %v20372_v13  ;;  %12471 = vmatpush1.bf16.msra.mxu1 %v20415_v31  ;;  %v12061_v51 = vadd.f32 %v12060_v5, %v18183_v44  ;;  %v12062_v48 = vpop.f32.mrb[90].mxu1 }
 0x388   : > { %v13340_v23 = vmax.f32 %v12006_v10, 0.0  ;;  %v12010_v43 = vadd.f32 %v12009_v16, %v18205_v53  ;;  %v12011_v38 = vpop.f32.mrb[91].mxu0  ;;  %v13342_v47 = vmax.f32 %v12059_v22, 0.0  ;;  %12419 = vmatprep.subr.bf16.mxu0 %v20377_v32  ;;  %12472 = vmatprep.subr.bf16.mxu1 %v20421_v27  ;;  %v12063_v2 = vadd.f32 %v12062_v48, %v18205_v53  ;;  %v12064_v54 = vpop.f32.mrb[91].mxu1 }
 0x389   : > { %v13341_v12 = vmax.f32 %v12008_v26, 0.0  ;;  %v12012_v37 = vadd.f32 %v12011_v38, %v18205_v53  ;;  %v12065_v6 = vadd.f32 %v12064_v54, %v18205_v53  ;;  %v13343_v21 = vmax.f32 %v12061_v51, 0.0 }
 0x38a   : > { %v14187_v0 = vsel %vm20424_vm15, %v13340_v23, 0.0  ;;  %v13434_v56 = vmax.f32 %v12010_v43, 0.0  ;;  %v13436_v24 = vmax.f32 %v12063_v2, 0.0 }
 0x38b   : > { %v14562_v36 = vadd.f32 %v20295_v7, %v14187_v0  ;;  %v14188_v63 = vsel %vm20430_vm1, %v13341_v12, 0.0  ;;  %v13435_v46 = vmax.f32 %v12012_v37, 0.0  ;;  %12420 = vmatpush1.bf16.msra.mxu0 %v20382_v29  ;;  %12473 = vmatpush1.bf16.msra.mxu1 %v20438_v52  ;;  %v14189_v7 = vsel %vm20448_vm2, %v13342_v47, 0.0 }
 0x38c   : > { %v14281_v4 = vsel %vm20424_vm15, %v13434_v56, 0.0  ;;  %v13437_v28 = vmax.f32 %v12065_v6, 0.0  ;;  %12421 = vmatprep.subr.bf16.mxu0 %v20387_v33  ;;  %12474 = vmatprep.subr.bf16.mxu1 %v20445_v1  ;;  %v14190_v5 = vsel %vm20458_vm3, %v13343_v21, 0.0  ;;  %v14283_v26 = vsel %vm20448_vm2, %v13436_v24, 0.0 }
 0x38d   : > { %v14563_v30 = vadd.f32 %v14562_v36, %v14188_v63  ;;  %v14657_v8 = vadd.f32 %v20303_v14, %v14281_v4  ;;  %v14282_v10 = vsel %vm20430_vm1, %v13435_v46, 0.0  ;;  %v12015_v40 = vpop.f32.mrb[92].mxu0  ;;  %v12068_v22 = vpop.f32.mrb[92].mxu1 }
 0x38e   : > { %v12016_v16 = vadd.f32 %v12015_v40, %v18210_v55  ;;  %v12017_v51 = vpop.f32.mrb[93].mxu0  ;;  %v12069_v25 = vadd.f32 %v12068_v22, %v18210_v55  ;;  %v12070_v48 = vpop.f32.mrb[93].mxu1  ;;  %v14284_v14 = vsel %vm20458_vm3, %v13437_v28, 0.0 }
 0x38f   : > { %v14658_v23 = vadd.f32 %v14657_v8, %v14282_v10  ;;  %v14564_v43 = vadd.f32 %v14563_v30, %v14189_v7  ;;  %v12018_v38 = vadd.f32 %v12017_v51, %v18210_v55  ;;  %v12019_v47 = vpop.f32.mrb[94].mxu0  ;;  %12422 = vmatpush1.bf16.msra.mxu0 %v20392_v34  ;;  %12475 = vmatpush1.bf16.msra.mxu1 %v20465_v57  ;;  %v12072_v2 = vpop.f32.mrb[94].mxu1 }
 0x390   : > { %v13528_v54 = vmax.f32 %v12016_v16, 0.0  ;;  %v12020_v12 = vadd.f32 %v12019_v47, %v18258_v49  ;;  %v12021_v37 = vpop.f32.mrb[95].mxu0  ;;  %v13530_v6 = vmax.f32 %v12069_v25, 0.0  ;;  %v12071_v0 = vadd.f32 %v12070_v48, %v18210_v55  ;;  %12501 = vmatprep.subr.bf16.mxu0 %v20225_v17  ;;  %12554 = vmatprep.subr.bf16.mxu1 %v20377_v32  ;;  %v12074_v56 = vpop.f32.mrb[95].mxu1  ;;  %v20535_v48 = vld [vmem:[%s22364_s1 + $0x10] ss:$8 sps:$4 sm:$0xff]  }
 0x391   : > { %v20491_v21 = vadd.f32 %v14564_v43, %v14190_v5  ;;  %v14659_v24 = vadd.f32 %v14658_v23, %v14283_v26  ;;  %v13529_v36 = vmax.f32 %v12018_v38, 0.0  ;;  %v12022_v63 = vadd.f32 %v12021_v37, %v18258_v49  ;;  %v20621_v38 = vld [vmem:[%s17723_s25 + $0x43c] ss:$400 sps:$4 sm:$0xff]  }
 0x392   : > { %v14375_v46 = vsel %vm20424_vm15, %v13528_v54, 0.0  ;;  %v13622_v4 = vmax.f32 %v12020_v12, 0.0  ;;  %v13531_v7 = vmax.f32 %v12071_v0, 0.0  ;;  %12428 = vmatmul.mubr.bf16.vlgmr.msra.gmra.mrb[120].mxu0 %v20097_v15  ;;  %12481 = vmatmul.mubr.bf16.vlgmr.msra.gmra.mrb[120].mxu1 %v20097_v15  ;;  %v14377_v40 = vsel %vm20448_vm2, %v13530_v6, 0.0  ;;  %v20730_v0 = vld [vmem:[%s22364_s1 + $0x14] ss:$8 sps:$4 sm:$0xff]  }
 0x393   : > { %v14752_v17 = vadd.f32 %v20334_v61, %v14375_v46  ;;  %v20499_v28 = vadd.f32 %v14659_v24, %v14284_v14  ;;  %v14376_v30 = vsel %vm20430_vm1, %v13529_v36, 0.0  ;;  %v13623_v8 = vmax.f32 %v12022_v63, 0.0  ;;  %12502 = vmatpush1.bf16.msra.mxu0 %v20242_v3  ;;  %12555 = vmatpush1.bf16.msra.mxu1 %v20382_v29 }
 0x394   : > { %v14469_v10 = vsel %vm20424_vm15, %v13622_v4, 0.0  ;;  %v12073_v15 = vadd.f32 %v12072_v2, %v18258_v49  ;;  %v12075_v61 = vadd.f32 %v12074_v56, %v18258_v49  ;;  %12503 = vmatprep.subr.bf16.mxu0 %v20249_v58  ;;  %12556 = vmatprep.subr.bf16.mxu1 %v20387_v33  ;;  %v14378_v50 = vsel %vm20458_vm3, %v13531_v7, 0.0  ;;  %v20627_v2 = vld [vmem:[%s17723_s25 + $0x124] ss:$400 sps:$4 sm:$0xff]  }
 0x395   : > { %v14753_v22 = vadd.f32 %v14752_v17, %v14376_v30  ;;  %v14847_v5 = vadd.f32 %v20338_v11, %v14469_v10  ;;  %v14470_v3 = vsel %vm20430_vm1, %v13623_v8, 0.0  ;;  %16837 = vmatprep.mubr.msk.bf16.mxu0 %vm10798_vm0, %v20122_v60  ;;  %16839 = vmatprep.mubr.msk.bf16.mxu1 %vm10798_vm0, %v20122_v60  ;;  %v13723_v23 = vadd.s32 6400, %v18176_v42  ;;  %v20644_v30 = vld [vmem:[%s17723_s25 + $0x120] ss:$400 sps:$4 sm:$0xff]  }
 0x396   : > { %v13624_v26 = vmax.f32 %v12073_v15, 0.0  ;;  %v13625_v16 = vmax.f32 %v12075_v61, 0.0  ;;  %v13816_v14 = vand.u32 127, %v13722_v45  ;;  %v13724_v47 = vadd.s32 6528, %v18176_v42 }
 0x397   : > { %v14848_v58 = vadd.f32 %v14847_v5, %v14470_v3  ;;  %v14754_v51 = vadd.f32 %v14753_v22, %v14377_v40  ;;  %12504 = vmatpush1.bf16.msra.mxu0 %v20269_v20  ;;  %12557 = vmatpush1.bf16.msra.mxu1 %v20392_v34  ;;  %v13817_v37 = vand.u32 127, %v13723_v23  ;;  %v20651_v3 = vld [vmem:[%s17723_s25 + $0x444] ss:$400 sps:$4 sm:$0xff]  }
 0x398   : > { %v14471_v11 = vsel %vm20448_vm2, %v13624_v26, 0.0  ;;  %v14472_v9 = vsel %vm20458_vm3, %v13625_v16, 0.0  ;;  %12505 = vmatprep.subr.bf16.mxu0 %v20357_v62  ;;  %12558 = vmatprep.subr.bf16.mxu1 %v20397_v35  ;;  %v20548_v62 = vld [vmem:[%s22364_s1 + $0x4] ss:$8 sps:$4 sm:$0xff]   ;;  %vm20636_vm5 = vcmp.lt.s32.totalorder %v13816_v14, 94  ;;  %v13818_v17 = vand.u32 127, %v13724_v47 }
 0x399   : > { %v20530_v60 = vadd.f32 %v14754_v51, %v14378_v50  ;;  %v14849_v25 = vadd.f32 %v14848_v58, %v14471_v11  ;;  %vm20654_vm6 = vcmp.lt.s32.totalorder %v13817_v37, 94  ;;  %v20671_v14 = vld [vmem:[%s17723_s25 + $0x440] ss:$400 sps:$4 sm:$0xff]  }
 0x39a   : > { %12438 = vmatmul.mubr.bf16.gmra.mrb[124].mxu0 %v20535_v48  ;;  %12491 = vmatmul.mubr.bf16.gmra.mrb[124].mxu1 %v20535_v48  ;;  %vm20664_vm7 = vcmp.lt.s32.totalorder %v13818_v17, 94  ;;  %v20821_v16 = vld [vmem:[%s17723_s25 + $0x450] ss:$400 sps:$4 sm:$0xff]  }
 0x39b   : > { %v20539_v20 = vadd.f32 %v14849_v25, %v14472_v9  ;;  %12506 = vmatpush1.bf16.msra.mxu0 %v20362_v19  ;;  %12559 = vmatpush1.bf16.msra.mxu1 %v20403_v41  ;;  %v20563_v19 = vld [vmem:[%s17723_s25 + $0x118] ss:$400 sps:$4 sm:$0xff]  }
 0x39c   : > { %12507 = vmatprep.subr.bf16.mxu0 %v20367_v18  ;;  %12560 = vmatprep.subr.bf16.mxu1 %v20409_v39  ;;  %v20568_v18 = vld [vmem:[%s17723_s25 + $0x114] ss:$400 sps:$4 sm:$0xff]  }
 0x39d   : > { %16840 = vmatprep.mubr.msk.bf16.mxu0 %vm10798_vm0, %v20548_v62  ;;  %16842 = vmatprep.mubr.msk.bf16.mxu1 %vm10798_vm0, %v20548_v62 }
 0x39f   : > { %12508 = vmatpush1.bf16.msra.mxu0 %v20372_v13  ;;  %12561 = vmatpush1.bf16.msra.mxu1 %v20415_v31  ;;  %v20573_v13 = vld [vmem:[%s17723_s25 + $0x438] ss:$400 sps:$4 sm:$0xff]  }
 0x3a0   : > { %12509 = vmatprep.subr.bf16.mxu0 %v20377_v32  ;;  %12562 = vmatprep.subr.bf16.mxu1 %v20421_v27  ;;  %v20578_v32 = vld [vmem:[%s17723_s25 + $0x434] ss:$400 sps:$4 sm:$0xff]  }
 0x3a3   : > { %12510 = vmatpush1.bf16.msra.mxu0 %v20382_v29  ;;  %12563 = vmatpush1.bf16.msra.mxu1 %v20438_v52  ;;  %v20583_v29 = vld [vmem:[%s17723_s25 + $0x11c] ss:$400 sps:$4 sm:$0xff]  }
 0x3a4   : > { %12511 = vmatprep.subr.bf16.mxu0 %v20387_v33  ;;  %12564 = vmatprep.subr.bf16.mxu1 %v20445_v1  ;;  %v20588_v33 = vld [vmem:[%s17723_s25 + $0x118] ss:$400 sps:$4 sm:$0xff]  }
 0x3a7   : > { %12512 = vmatpush1.bf16.msra.mxu0 %v20392_v34  ;;  %12565 = vmatpush1.bf16.msra.mxu1 %v20465_v57  ;;  %v20593_v34 = vld [vmem:[%s17723_s25 + $0x43c] ss:$400 sps:$4 sm:$0xff]  }
 0x3a8   : > { %12513 = vmatprep.subr.bf16.mxu0 %v20397_v35  ;;  %12566 = vmatprep.subr.bf16.mxu1 %v20563_v19  ;;  %v20598_v35 = vld [vmem:[%s17723_s25 + $0x438] ss:$400 sps:$4 sm:$0xff]  }
 0x3ab   : > { %12514 = vmatpush1.bf16.msra.mxu0 %v20403_v41  ;;  %12567 = vmatpush1.bf16.msra.mxu1 %v20568_v18  ;;  %v20603_v41 = vld [vmem:[%s17723_s25 + $0x120] ss:$400 sps:$4 sm:$0xff]  }
 0x3ac   : > { %12515 = vmatprep.subr.bf16.mxu0 %v20409_v39  ;;  %12568 = vmatprep.subr.bf16.mxu1 %v20573_v13  ;;  %v13721_v39 = vadd.s32 6144, %v18176_v42 }
 0x3ae   : > { %v13815_v43 = vand.u32 127, %v13721_v39 }
 0x3af   : > { %12516 = vmatpush1.bf16.msra.mxu0 %v20415_v31  ;;  %12569 = vmatpush1.bf16.msra.mxu1 %v20578_v32  ;;  %v20609_v31 = vld [vmem:[%s17723_s25 + $0x11c] ss:$400 sps:$4 sm:$0xff]  }
 0x3b0   : > { %12517 = vmatprep.subr.bf16.mxu0 %v20421_v27  ;;  %12570 = vmatprep.subr.bf16.mxu1 %v20583_v29  ;;  %vm20630_vm4 = vcmp.lt.s32.totalorder %v13815_v43, 94  ;;  %v13727_v43 = vadd.s32 6912, %v18176_v42 }
 0x3b3   : > { %12518 = vmatpush1.bf16.msra.mxu0 %v20438_v52  ;;  %12571 = vmatpush1.bf16.msra.mxu1 %v20588_v33 }
 0x3b4   : > { %12519 = vmatprep.subr.bf16.mxu0 %v20445_v1  ;;  %12572 = vmatprep.subr.bf16.mxu1 %v20593_v34 }
 0x3b7   : > { %12520 = vmatpush1.bf16.msra.mxu0 %v20465_v57  ;;  %12573 = vmatpush1.bf16.msra.mxu1 %v20598_v35 }
 0x3b8   : > { %12521 = vmatprep.subr.bf16.mxu0 %v20563_v19  ;;  %12574 = vmatprep.subr.bf16.mxu1 %v20603_v41 }
 0x3bb   : > { %12522 = vmatpush1.bf16.msra.mxu0 %v20568_v18  ;;  %12575 = vmatpush1.bf16.msra.mxu1 %v20609_v31 }
 0x3bc   : > { %12523 = vmatprep.subr.bf16.mxu0 %v20573_v13  ;;  %12576 = vmatprep.subr.bf16.mxu1 %v20615_v59 }
 0x3bd   : > { %v12111_v54 = vpop.f32.mrb[96].mxu0  ;;  %v12164_v12 = vpop.f32.mrb[96].mxu1 }
 0x3be   : > { %v12112_v6 = vadd.f32 %v12111_v54, %v18183_v44  ;;  %v12113_v56 = vpop.f32.mrb[97].mxu0  ;;  %v12165_v24 = vadd.f32 %v12164_v12, %v18183_v44  ;;  %v12166_v36 = vpop.f32.mrb[97].mxu1 }
 0x3bf   : > { %v12114_v63 = vadd.f32 %v12113_v56, %v18183_v44  ;;  %v12115_v4 = vpop.f32.mrb[98].mxu0  ;;  %12524 = vmatpush1.bf16.msra.mxu0 %v20578_v32  ;;  %12577 = vmatpush1.bf16.msra.mxu1 %v20621_v38  ;;  %v12167_v7 = vadd.f32 %v12166_v36, %v18183_v44  ;;  %v12168_v8 = vpop.f32.mrb[98].mxu1 }
 0x3c0   : > { %v13344_v10 = vmax.f32 %v12112_v6, 0.0  ;;  %v12116_v40 = vadd.f32 %v12115_v4, %v18205_v53  ;;  %v12117_v15 = vpop.f32.mrb[99].mxu0  ;;  %v13346_v61 = vmax.f32 %v12165_v24, 0.0  ;;  %12525 = vmatprep.subr.bf16.mxu0 %v20583_v29  ;;  %12578 = vmatprep.subr.bf16.mxu1 %v20627_v2  ;;  %v12169_v22 = vadd.f32 %v12168_v8, %v18205_v53  ;;  %v12170_v5 = vpop.f32.mrb[99].mxu1 }
 0x3c1   : > { %v13345_v50 = vmax.f32 %v12114_v63, 0.0  ;;  %v12118_v26 = vadd.f32 %v12117_v15, %v18205_v53  ;;  %v12171_v58 = vadd.f32 %v12170_v5, %v18205_v53  ;;  %v13347_v9 = vmax.f32 %v12167_v7, 0.0 }
 0x3c2   : > { %v14191_v51 = vsel %vm20630_vm4, %v13344_v10, 0.0  ;;  %v13438_v11 = vmax.f32 %v12116_v40, 0.0  ;;  %v13440_v25 = vmax.f32 %v12169_v22, 0.0 }
 0x3c3   : > { %v14566_v39 = vadd.f32 %v20491_v21, %v14191_v51  ;;  %v14192_v45 = vsel %vm20636_vm5, %v13345_v50, 0.0  ;;  %v13439_v23 = vmax.f32 %v12118_v26, 0.0  ;;  %12526 = vmatpush1.bf16.msra.mxu0 %v20588_v33  ;;  %12579 = vmatpush1.bf16.msra.mxu1 %v20644_v30  ;;  %v14193_v21 = vsel %vm20654_vm6, %v13346_v61, 0.0 }
 0x3c4   : > { %v14285_v47 = vsel %vm20630_vm4, %v13438_v11, 0.0  ;;  %v13441_v54 = vmax.f32 %v12171_v58, 0.0  ;;  %12527 = vmatprep.subr.bf16.mxu0 %v20593_v34  ;;  %12580 = vmatprep.subr.bf16.mxu1 %v20651_v3  ;;  %v14194_v36 = vsel %vm20664_vm7, %v13347_v9, 0.0  ;;  %v14287_v63 = vsel %vm20654_vm6, %v13440_v25, 0.0 }
 0x3c5   : > { %v14567_v12 = vadd.f32 %v14566_v39, %v14192_v45  ;;  %v14661_v37 = vadd.f32 %v20499_v28, %v14285_v47  ;;  %v14286_v6 = vsel %vm20636_vm5, %v13439_v23, 0.0  ;;  %v12121_v56 = vpop.f32.mrb[100].mxu0  ;;  %v12174_v24 = vpop.f32.mrb[100].mxu1 }
 0x3c6   : > { %v12122_v4 = vadd.f32 %v12121_v56, %v18210_v55  ;;  %v12123_v7 = vpop.f32.mrb[101].mxu0  ;;  %v12175_v17 = vadd.f32 %v12174_v24, %v18210_v55  ;;  %v12176_v8 = vpop.f32.mrb[101].mxu1  ;;  %v14288_v28 = vsel %vm20664_vm7, %v13441_v54, 0.0  ;;  %v20705_v54 = vld [vmem:[%s22364_s1] ss:$8 sps:$4 sm:$0xff]  }
 0x3c7   : > { %v14662_v10 = vadd.f32 %v14661_v37, %v14286_v6  ;;  %v14568_v40 = vadd.f32 %v14567_v12, %v14193_v21  ;;  %v12124_v15 = vadd.f32 %v12123_v7, %v18210_v55  ;;  %v12125_v61 = vpop.f32.mrb[102].mxu0  ;;  %12528 = vmatpush1.bf16.msra.mxu0 %v20598_v35  ;;  %12581 = vmatpush1.bf16.msra.mxu1 %v20671_v14  ;;  %v12178_v22 = vpop.f32.mrb[102].mxu1 }
 0x3c8   : > { %v13532_v5 = vmax.f32 %v12122_v4, 0.0  ;;  %v12126_v50 = vadd.f32 %v12125_v61, %v18258_v49  ;;  %v12127_v26 = vpop.f32.mrb[103].mxu0  ;;  %v13534_v58 = vmax.f32 %v12175_v17, 0.0  ;;  %v12177_v51 = vadd.f32 %v12176_v8, %v18210_v55  ;;  %12607 = vmatprep.subr.bf16.mxu0 %v20421_v27  ;;  %12660 = vmatprep.subr.bf16.mxu1 %v20583_v29  ;;  %v12180_v11 = vpop.f32.mrb[103].mxu1 }
 0x3c9   : > { %v20697_v9 = vadd.f32 %v14568_v40, %v14194_v36  ;;  %v14663_v25 = vadd.f32 %v14662_v10, %v14287_v63  ;;  %v13533_v39 = vmax.f32 %v12124_v15, 0.0  ;;  %v12128_v45 = vadd.f32 %v12127_v26, %v18258_v49 }
 0x3ca   : > { %v14379_v23 = vsel %vm20630_vm4, %v13532_v5, 0.0  ;;  %v13626_v47 = vmax.f32 %v12126_v50, 0.0  ;;  %v13535_v21 = vmax.f32 %v12177_v51, 0.0  ;;  %12534 = vmatmul.mubr.bf16.vlgmr.msra.gmra.mrb[128].mxu0 %v20705_v54  ;;  %12587 = vmatmul.mubr.bf16.vlgmr.msra.gmra.mrb[128].mxu1 %v20705_v54  ;;  %v14381_v24 = vsel %vm20654_vm6, %v13534_v58, 0.0  ;;  %v20833_v50 = vld [vmem:[%s17723_s25 + $0x134] ss:$400 sps:$4 sm:$0xff]  }
 0x3cb   : > { %v14756_v27 = vadd.f32 %v20530_v60, %v14379_v23  ;;  %v20710_v12 = vadd.f32 %v14663_v25, %v14288_v28  ;;  %v14380_v37 = vsel %vm20636_vm5, %v13533_v39, 0.0  ;;  %v13627_v6 = vmax.f32 %v12128_v45, 0.0  ;;  %12608 = vmatpush1.bf16.msra.mxu0 %v20438_v52  ;;  %12661 = vmatpush1.bf16.msra.mxu1 %v20588_v33 }
 0x3cc   : > { %v14473_v56 = vsel %vm20630_vm4, %v13626_v47, 0.0  ;;  %v12179_v36 = vadd.f32 %v12178_v22, %v18258_v49  ;;  %v12181_v60 = vadd.f32 %v12180_v11, %v18258_v49  ;;  %12609 = vmatprep.subr.bf16.mxu0 %v20445_v1  ;;  %12662 = vmatprep.subr.bf16.mxu1 %v20593_v34  ;;  %v14382_v1 = vsel %vm20664_vm7, %v13535_v21, 0.0  ;;  %v20827_v22 = vld [vmem:[%s17723_s25 + $0x44c] ss:$400 sps:$4 sm:$0xff]  }
 0x3cd   : > { %v14757_v63 = vadd.f32 %v14756_v27, %v14380_v37  ;;  %v14851_v4 = vadd.f32 %v20539_v20, %v14473_v56  ;;  %v14474_v52 = vsel %vm20636_vm5, %v13627_v6, 0.0  ;;  %16841 = vmatprep.mubr.msk.bf16.mxu0 %vm10798_vm0, %v20730_v0  ;;  %16843 = vmatprep.mubr.msk.bf16.mxu1 %vm10798_vm0, %v20730_v0  ;;  %v13728_v5 = vadd.s32 7040, %v18176_v42  ;;  %v20850_v56 = vld [vmem:[%s17723_s25 + $0x130] ss:$400 sps:$4 sm:$0xff]  }
 0x3ce   : > { %v13628_v7 = vmax.f32 %v12179_v36, 0.0  ;;  %v13629_v17 = vmax.f32 %v12181_v60, 0.0  ;;  %v13821_v51 = vand.u32 127, %v13727_v43 }
 0x3cf   : > { %v14852_v20 = vadd.f32 %v14851_v4, %v14474_v52  ;;  %v14758_v8 = vadd.f32 %v14757_v63, %v14381_v24  ;;  %12610 = vmatpush1.bf16.msra.mxu0 %v20465_v57  ;;  %12663 = vmatpush1.bf16.msra.mxu1 %v20598_v35  ;;  %v13822_v6 = vand.u32 127, %v13728_v5 }
 0x3d0   : > { %v14475_v46 = vsel %vm20654_vm6, %v13628_v7, 0.0  ;;  %v14476_v10 = vsel %vm20664_vm7, %v13629_v17, 0.0  ;;  %12611 = vmatprep.subr.bf16.mxu0 %v20563_v19  ;;  %12664 = vmatprep.subr.bf16.mxu1 %v20603_v41  ;;  %v20769_v19 = vld [vmem:[%s17723_s25 + $0x128] ss:$400 sps:$4 sm:$0xff]   ;;  %v20857_v7 = vld [vmem:[%s17723_s25 + $0x454] ss:$400 sps:$4 sm:$0xff]  }
 0x3d1   : > { %v20746_v40 = vadd.f32 %v14758_v8, %v14382_v1  ;;  %v14853_v28 = vadd.f32 %v14852_v20, %v14475_v46  ;;  %vm20860_vm10 = vcmp.lt.s32.totalorder %v13821_v51, 94  ;;  %vm20870_vm11 = vcmp.lt.s32.totalorder %v13822_v6, 94 }
 0x3d2   : > { %12544 = vmatmul.mubr.bf16.gmra.mrb[132].mxu0 %v20535_v48  ;;  %12597 = vmatmul.mubr.bf16.gmra.mrb[132].mxu1 %v20535_v48 }
 0x3d3   : > { %v20750_v57 = vadd.f32 %v14853_v28, %v14476_v10  ;;  %12612 = vmatpush1.bf16.msra.mxu0 %v20568_v18  ;;  %12665 = vmatpush1.bf16.msra.mxu1 %v20609_v31  ;;  %v20774_v18 = vld [vmem:[%s17723_s25 + $0x124] ss:$400 sps:$4 sm:$0xff]  }
 0x3d4   : > { %12613 = vmatprep.subr.bf16.mxu0 %v20573_v13  ;;  %12666 = vmatprep.subr.bf16.mxu1 %v20615_v59  ;;  %v20779_v13 = vld [vmem:[%s17723_s25 + $0x448] ss:$400 sps:$4 sm:$0xff]  }
 0x3d5   : > { %16844 = vmatprep.mubr.msk.bf16.mxu0 %vm10798_vm0, %v20548_v62  ;;  %16846 = vmatprep.mubr.msk.bf16.mxu1 %vm10798_vm0, %v20548_v62 }
 0x3d7   : > { %12614 = vmatpush1.bf16.msra.mxu0 %v20578_v32  ;;  %12667 = vmatpush1.bf16.msra.mxu1 %v20621_v38  ;;  %v20784_v32 = vld [vmem:[%s17723_s25 + $0x444] ss:$400 sps:$4 sm:$0xff]  }
 0x3d8   : > { %12615 = vmatprep.subr.bf16.mxu0 %v20583_v29  ;;  %12668 = vmatprep.subr.bf16.mxu1 %v20627_v2  ;;  %v20789_v29 = vld [vmem:[%s17723_s25 + $0x12c] ss:$400 sps:$4 sm:$0xff]  }
 0x3db   : > { %12616 = vmatpush1.bf16.msra.mxu0 %v20588_v33  ;;  %12669 = vmatpush1.bf16.msra.mxu1 %v20644_v30  ;;  %v20794_v33 = vld [vmem:[%s17723_s25 + $0x128] ss:$400 sps:$4 sm:$0xff]  }
 0x3dc   : > { %12617 = vmatprep.subr.bf16.mxu0 %v20593_v34  ;;  %12670 = vmatprep.subr.bf16.mxu1 %v20651_v3  ;;  %v20799_v34 = vld [vmem:[%s17723_s25 + $0x44c] ss:$400 sps:$4 sm:$0xff]  }
 0x3df   : > { %12618 = vmatpush1.bf16.msra.mxu0 %v20598_v35  ;;  %12671 = vmatpush1.bf16.msra.mxu1 %v20671_v14  ;;  %v20804_v35 = vld [vmem:[%s17723_s25 + $0x448] ss:$400 sps:$4 sm:$0xff]  }
 0x3e0   : > { %12619 = vmatprep.subr.bf16.mxu0 %v20603_v41  ;;  %12672 = vmatprep.subr.bf16.mxu1 %v20769_v19  ;;  %v20809_v41 = vld [vmem:[%s17723_s25 + $0x130] ss:$400 sps:$4 sm:$0xff]  }
 0x3e3   : > { %12620 = vmatpush1.bf16.msra.mxu0 %v20609_v31  ;;  %12673 = vmatpush1.bf16.msra.mxu1 %v20774_v18  ;;  %v13725_v31 = vadd.s32 6656, %v18176_v42 }
 0x3e4   : > { %12621 = vmatprep.subr.bf16.mxu0 %v20615_v59  ;;  %12674 = vmatprep.subr.bf16.mxu1 %v20779_v13  ;;  %v20815_v59 = vld [vmem:[%s17723_s25 + $0x12c] ss:$400 sps:$4 sm:$0xff]  }
 0x3e5   : > { %v13819_v15 = vand.u32 127, %v13725_v31 }
 0x3e7   : > { %12622 = vmatpush1.bf16.msra.mxu0 %v20621_v38  ;;  %12675 = vmatpush1.bf16.msra.mxu1 %v20784_v32  ;;  %v13726_v38 = vadd.s32 6784, %v18176_v42  ;;  %vm20836_vm8 = vcmp.lt.s32.totalorder %v13819_v15, 94 }
 0x3e8   : > { %12623 = vmatprep.subr.bf16.mxu0 %v20627_v2  ;;  %12676 = vmatprep.subr.bf16.mxu1 %v20789_v29 }
 0x3e9   : > { %v13820_v61 = vand.u32 127, %v13726_v38 }
 0x3eb   : > { %12624 = vmatpush1.bf16.msra.mxu0 %v20644_v30  ;;  %12677 = vmatpush1.bf16.msra.mxu1 %v20794_v33  ;;  %vm20842_vm9 = vcmp.lt.s32.totalorder %v13820_v61, 94 }
 0x3ec   : > { %12625 = vmatprep.subr.bf16.mxu0 %v20651_v3  ;;  %12678 = vmatprep.subr.bf16.mxu1 %v20799_v34 }
 0x3ef   : > { %12626 = vmatpush1.bf16.msra.mxu0 %v20671_v14  ;;  %12679 = vmatpush1.bf16.msra.mxu1 %v20804_v35 }
 0x3f0   : > { %12627 = vmatprep.subr.bf16.mxu0 %v20769_v19  ;;  %12680 = vmatprep.subr.bf16.mxu1 %v20809_v41 }
 0x3f3   : > { %12628 = vmatpush1.bf16.msra.mxu0 %v20774_v18  ;;  %12681 = vmatpush1.bf16.msra.mxu1 %v20815_v59 }
 0x3f4   : > { %12629 = vmatprep.subr.bf16.mxu0 %v20779_v13  ;;  %12682 = vmatprep.subr.bf16.mxu1 %v20821_v16 }
 0x3f5   : > { %v12217_v26 = vpop.f32.mrb[104].mxu0  ;;  %v12270_v58 = vpop.f32.mrb[104].mxu1 }
 0x3f6   : > { %v12218_v11 = vadd.f32 %v12217_v26, %v18183_v44  ;;  %v12219_v39 = vpop.f32.mrb[105].mxu0  ;;  %v12271_v45 = vadd.f32 %v12270_v58, %v18183_v44  ;;  %v12272_v23 = vpop.f32.mrb[105].mxu1  ;;  %v20877_v26 = vld [vmem:[%s17723_s25 + $0x450] ss:$400 sps:$4 sm:$0xff]  }
 0x3f7   : > { %v12220_v47 = vadd.f32 %v12219_v39, %v18183_v44  ;;  %v12221_v27 = vpop.f32.mrb[106].mxu0  ;;  %12630 = vmatpush1.bf16.msra.mxu0 %v20784_v32  ;;  %12683 = vmatpush1.bf16.msra.mxu1 %v20827_v22  ;;  %v12273_v37 = vadd.f32 %v12272_v23, %v18183_v44  ;;  %v12274_v24 = vpop.f32.mrb[106].mxu1 }
 0x3f8   : > { %v13348_v36 = vmax.f32 %v12218_v11, 0.0  ;;  %v12222_v60 = vadd.f32 %v12221_v27, %v18205_v53  ;;  %v12223_v63 = vpop.f32.mrb[107].mxu0  ;;  %v13350_v4 = vmax.f32 %v12271_v45, 0.0  ;;  %12631 = vmatprep.subr.bf16.mxu0 %v20789_v29  ;;  %12684 = vmatprep.subr.bf16.mxu1 %v20833_v50  ;;  %v12275_v52 = vadd.f32 %v12274_v24, %v18205_v53  ;;  %v12276_v1 = vpop.f32.mrb[107].mxu1 }
 0x3f9   : > { %v13349_v17 = vmax.f32 %v12220_v47, 0.0  ;;  %v12224_v20 = vadd.f32 %v12223_v63, %v18205_v53  ;;  %v12277_v46 = vadd.f32 %v12276_v1, %v18205_v53  ;;  %v13351_v31 = vmax.f32 %v12273_v37, 0.0 }
 0x3fa   : > { %v14195_v10 = vsel %vm20836_vm8, %v13348_v36, 0.0  ;;  %v13442_v28 = vmax.f32 %v12222_v60, 0.0  ;;  %v13444_v38 = vmax.f32 %v12275_v52, 0.0 }
 0x3fb   : > { %v14570_v43 = vadd.f32 %v20697_v9, %v14195_v10  ;;  %v14196_v15 = vsel %vm20842_vm9, %v13349_v17, 0.0  ;;  %v13443_v61 = vmax.f32 %v12224_v20, 0.0  ;;  %12632 = vmatpush1.bf16.msra.mxu0 %v20794_v33  ;;  %12685 = vmatpush1.bf16.msra.mxu1 %v20850_v56  ;;  %v14197_v9 = vsel %vm20860_vm10, %v13350_v4, 0.0 }
 0x3fc   : > { %v14289_v58 = vsel %vm20836_vm8, %v13442_v28, 0.0  ;;  %v13445_v51 = vmax.f32 %v12277_v46, 0.0  ;;  %12633 = vmatprep.subr.bf16.mxu0 %v20799_v34  ;;  %12686 = vmatprep.subr.bf16.mxu1 %v20857_v7  ;;  %v14198_v27 = vsel %vm20870_vm11, %v13351_v31, 0.0  ;;  %v14291_v37 = vsel %vm20860_vm10, %v13444_v38, 0.0 }
 0x3fd   : > { %v14571_v11 = vadd.f32 %v14570_v43, %v14196_v15  ;;  %v14665_v39 = vadd.f32 %v20710_v12, %v14289_v58  ;;  %v14290_v45 = vsel %vm20842_vm9, %v13443_v61, 0.0  ;;  %v12227_v23 = vpop.f32.mrb[108].mxu0  ;;  %v12280_v47 = vpop.f32.mrb[108].mxu1 }
 0x3fe   : > { %v12228_v6 = vadd.f32 %v12227_v23, %v18210_v55  ;;  %v12229_v24 = vpop.f32.mrb[109].mxu0  ;;  %v12281_v36 = vadd.f32 %v12280_v47, %v18210_v55  ;;  %v12282_v60 = vpop.f32.mrb[109].mxu1  ;;  %v14292_v12 = vsel %vm20870_vm11, %v13445_v51, 0.0 }
 0x3ff   : > { %v14666_v63 = vadd.f32 %v14665_v39, %v14290_v45  ;;  %v14572_v4 = vadd.f32 %v14571_v11, %v14197_v9  ;;  %v12230_v52 = vadd.f32 %v12229_v24, %v18210_v55  ;;  %v12231_v1 = vpop.f32.mrb[110].mxu0  ;;  %12634 = vmatpush1.bf16.msra.mxu0 %v20804_v35  ;;  %12687 = vmatpush1.bf16.msra.mxu1 %v20877_v26  ;;  %v12284_v17 = vpop.f32.mrb[110].mxu1 }
 0x400   : > { %v13536_v20 = vmax.f32 %v12228_v6, 0.0  ;;  %v12232_v46 = vadd.f32 %v12231_v1, %v18258_v49  ;;  %v12233_v10 = vpop.f32.mrb[111].mxu0  ;;  %v13538_v28 = vmax.f32 %v12281_v36, 0.0  ;;  %v12283_v31 = vadd.f32 %v12282_v60, %v18210_v55  ;;  %12713 = vmatprep.subr.bf16.mxu0 %v20627_v2  ;;  %12766 = vmatprep.subr.bf16.mxu1 %v20789_v29  ;;  %v12286_v38 = vpop.f32.mrb[111].mxu1 }
 0x401   : > { %v20903_v43 = vadd.f32 %v14572_v4, %v14198_v27  ;;  %v14667_v15 = vadd.f32 %v14666_v63, %v14291_v37  ;;  %v13537_v61 = vmax.f32 %v12230_v52, 0.0  ;;  %v12234_v58 = vadd.f32 %v12233_v10, %v18258_v49  ;;  %v21023_v52 = vld [vmem:[%s17723_s25 + $0x45c] ss:$400 sps:$4 sm:$0xff]  }
 0x402   : > { %v14383_v9 = vsel %vm20836_vm8, %v13536_v20, 0.0  ;;  %v13630_v51 = vmax.f32 %v12232_v46, 0.0  ;;  %v13539_v11 = vmax.f32 %v12283_v31, 0.0  ;;  %12640 = vmatmul.mubr.bf16.vlgmr.msra.gmra.mrb[136].mxu0 %v20705_v54  ;;  %12693 = vmatmul.mubr.bf16.vlgmr.msra.gmra.mrb[136].mxu1 %v20705_v54  ;;  %v14385_v27 = vsel %vm20860_vm10, %v13538_v28, 0.0 }
 0x403   : > { %v14760_v2 = vadd.f32 %v20746_v40, %v14383_v9  ;;  %v20911_v39 = vadd.f32 %v14667_v15, %v14292_v12  ;;  %v14384_v45 = vsel %vm20842_vm9, %v13537_v61, 0.0  ;;  %v13631_v23 = vmax.f32 %v12234_v58, 0.0  ;;  %12714 = vmatpush1.bf16.msra.mxu0 %v20644_v30  ;;  %12767 = vmatpush1.bf16.msra.mxu1 %v20794_v33 }
 0x404   : > { %v14477_v47 = vsel %vm20836_vm8, %v13630_v51, 0.0  ;;  %v12285_v37 = vadd.f32 %v12284_v17, %v18258_v49  ;;  %v12287_v40 = vadd.f32 %v12286_v38, %v18258_v49  ;;  %12715 = vmatprep.subr.bf16.mxu0 %v20651_v3  ;;  %12768 = vmatprep.subr.bf16.mxu1 %v20799_v34  ;;  %v14386_v25 = vsel %vm20870_vm11, %v13539_v11, 0.0  ;;  %v21029_v17 = vld [vmem:[%s17723_s25 + $0x144] ss:$400 sps:$4 sm:$0xff]  }
 0x405   : > { %v14761_v6 = vadd.f32 %v14760_v2, %v14384_v45  ;;  %v14855_v24 = vadd.f32 %v20750_v57, %v14477_v47  ;;  %v14478_v30 = vsel %vm20842_vm9, %v13631_v23, 0.0  ;;  %16845 = vmatprep.mubr.msk.bf16.mxu0 %vm10798_vm0, %v20730_v0  ;;  %16847 = vmatprep.mubr.msk.bf16.mxu1 %vm10798_vm0, %v20730_v0  ;;  %v13732_v1 = vadd.s32 7552, %v18176_v42  ;;  %v21046_v45 = vld [vmem:[%s17723_s25 + $0x140] ss:$400 sps:$4 sm:$0xff]  }
 0x406   : > { %v13632_v36 = vmax.f32 %v12285_v37, 0.0  ;;  %v13633_v60 = vmax.f32 %v12287_v40, 0.0 }
 0x407   : > { %v14856_v3 = vadd.f32 %v14855_v24, %v14478_v30  ;;  %v14762_v63 = vadd.f32 %v14761_v6, %v14385_v27  ;;  %12716 = vmatpush1.bf16.msra.mxu0 %v20671_v14  ;;  %12769 = vmatpush1.bf16.msra.mxu1 %v20804_v35  ;;  %v13826_v2 = vand.u32 127, %v13732_v1  ;;  %v21053_v30 = vld [vmem:[%s17723_s25 + $0x464] ss:$400 sps:$4 sm:$0xff]  }
 0x408   : > { %v14479_v57 = vsel %vm20860_vm10, %v13632_v36, 0.0  ;;  %v14480_v21 = vsel %vm20870_vm11, %v13633_v60, 0.0  ;;  %12717 = vmatprep.subr.bf16.mxu0 %v20769_v19  ;;  %12770 = vmatprep.subr.bf16.mxu1 %v20809_v41  ;;  %v20975_v19 = vld [vmem:[%s17723_s25 + $0x458] ss:$400 sps:$4 sm:$0xff]   ;;  %v13734_v60 = vadd.s32 7808, %v18176_v42 }
 0x409   : > { %v20942_v4 = vadd.f32 %v14762_v63, %v14386_v25  ;;  %v14857_v12 = vadd.f32 %v14856_v3, %v14479_v57  ;;  %vm21066_vm15 = vcmp.lt.s32.totalorder %v13826_v2, 94 }
 0x40a   : > { %12650 = vmatmul.mubr.bf16.gmra.mrb[140].mxu0 %v20535_v48  ;;  %12703 = vmatmul.mubr.bf16.gmra.mrb[140].mxu1 %v20535_v48  ;;  %v20965_v48 = vld [vmem:[%s17723_s25 + $0x138] ss:$400 sps:$4 sm:$0xff]  }
 0x40b   : > { %v20946_v14 = vadd.f32 %v14857_v12, %v14480_v21  ;;  %12718 = vmatpush1.bf16.msra.mxu0 %v20774_v18  ;;  %12771 = vmatpush1.bf16.msra.mxu1 %v20815_v59  ;;  %v20980_v18 = vld [vmem:[%s17723_s25 + $0x454] ss:$400 sps:$4 sm:$0xff]  }
 0x40c   : > { %12719 = vmatprep.subr.bf16.mxu0 %v20779_v13  ;;  %12772 = vmatprep.subr.bf16.mxu1 %v20821_v16  ;;  %v20985_v13 = vld [vmem:[%s17723_s25 + $0x13c] ss:$400 sps:$4 sm:$0xff]  }
 0x40d   : > { %16848 = vmatprep.mubr.msk.bf16.mxu0 %vm10798_vm0, %v20548_v62  ;;  %16850 = vmatprep.mubr.msk.bf16.mxu1 %vm10798_vm0, %v20548_v62  ;;  %v20970_v62 = vld [vmem:[%s17723_s25 + $0x134] ss:$400 sps:$4 sm:$0xff]  }
 0x40f   : > { %12720 = vmatpush1.bf16.msra.mxu0 %v20784_v32  ;;  %12773 = vmatpush1.bf16.msra.mxu1 %v20827_v22  ;;  %v20990_v32 = vld [vmem:[%s17723_s25 + $0x138] ss:$400 sps:$4 sm:$0xff]  }
 0x410   : > { %12721 = vmatprep.subr.bf16.mxu0 %v20789_v29  ;;  %12774 = vmatprep.subr.bf16.mxu1 %v20833_v50  ;;  %v20995_v29 = vld [vmem:[%s17723_s25 + $0x45c] ss:$400 sps:$4 sm:$0xff]  }
 0x413   : > { %12722 = vmatpush1.bf16.msra.mxu0 %v20794_v33  ;;  %12775 = vmatpush1.bf16.msra.mxu1 %v20850_v56  ;;  %v21000_v33 = vld [vmem:[%s17723_s25 + $0x458] ss:$400 sps:$4 sm:$0xff]  }
 0x414   : > { %12723 = vmatprep.subr.bf16.mxu0 %v20799_v34  ;;  %12776 = vmatprep.subr.bf16.mxu1 %v20857_v7  ;;  %v21005_v34 = vld [vmem:[%s17723_s25 + $0x140] ss:$400 sps:$4 sm:$0xff]  }
 0x417   : > { %12724 = vmatpush1.bf16.msra.mxu0 %v20804_v35  ;;  %12777 = vmatpush1.bf16.msra.mxu1 %v20877_v26  ;;  %v13729_v35 = vadd.s32 7168, %v18176_v42 }
 0x418   : > { %12725 = vmatprep.subr.bf16.mxu0 %v20809_v41  ;;  %12778 = vmatprep.subr.bf16.mxu1 %v20965_v48  ;;  %v21011_v41 = vld [vmem:[%s17723_s25 + $0x13c] ss:$400 sps:$4 sm:$0xff]  }
 0x419   : > { %v13823_v8 = vand.u32 127, %v13729_v35 }
 0x41b   : > { %12726 = vmatpush1.bf16.msra.mxu0 %v20815_v59  ;;  %12779 = vmatpush1.bf16.msra.mxu1 %v20970_v62  ;;  %v13730_v59 = vadd.s32 7296, %v18176_v42  ;;  %vm21032_vm12 = vcmp.lt.s32.totalorder %v13823_v8, 94  ;;  %v21223_v8 = vld [vmem:[%s17723_s25 + $0x470] ss:$400 sps:$4 sm:$0xff]  }
 0x41c   : > { %12727 = vmatprep.subr.bf16.mxu0 %v20821_v16  ;;  %12780 = vmatprep.subr.bf16.mxu1 %v20975_v19  ;;  %v21017_v16 = vld [vmem:[%s17723_s25 + $0x460] ss:$400 sps:$4 sm:$0xff]  }
 0x41d   : > { %v13824_v5 = vand.u32 127, %v13730_v59 }
 0x41f   : > { %12728 = vmatpush1.bf16.msra.mxu0 %v20827_v22  ;;  %12781 = vmatpush1.bf16.msra.mxu1 %v20980_v18  ;;  %v13731_v22 = vadd.s32 7424, %v18176_v42  ;;  %vm21038_vm13 = vcmp.lt.s32.totalorder %v13824_v5, 94  ;;  %v21073_v5 = vld [vmem:[%s17723_s25 + $0x460] ss:$400 sps:$4 sm:$0xff]  }
 0x420   : > { %12729 = vmatprep.subr.bf16.mxu0 %v20833_v50  ;;  %12782 = vmatprep.subr.bf16.mxu1 %v20985_v13 }
 0x421   : > { %v13825_v10 = vand.u32 127, %v13731_v22 }
 0x423   : > { %12730 = vmatpush1.bf16.msra.mxu0 %v20850_v56  ;;  %12783 = vmatpush1.bf16.msra.mxu1 %v20990_v32  ;;  %vm21056_vm14 = vcmp.lt.s32.totalorder %v13825_v10, 94 }
 0x424   : > { %12731 = vmatprep.subr.bf16.mxu0 %v20857_v7  ;;  %12784 = vmatprep.subr.bf16.mxu1 %v20995_v29 }
 0x427   : > { %12732 = vmatpush1.bf16.msra.mxu0 %v20877_v26  ;;  %12785 = vmatpush1.bf16.msra.mxu1 %v21000_v33 }
 0x428   : > { %12733 = vmatprep.subr.bf16.mxu0 %v20965_v48  ;;  %12786 = vmatprep.subr.bf16.mxu1 %v21005_v34 }
 0x42b   : > { %12734 = vmatpush1.bf16.msra.mxu0 %v20970_v62  ;;  %12787 = vmatpush1.bf16.msra.mxu1 %v21011_v41 }
 0x42c   : > { %12735 = vmatprep.subr.bf16.mxu0 %v20975_v19  ;;  %12788 = vmatprep.subr.bf16.mxu1 %v21017_v16 }
 0x42d   : > { %v12323_v20 = vpop.f32.mrb[112].mxu0  ;;  %v12376_v46 = vpop.f32.mrb[112].mxu1 }
 0x42e   : > { %v12324_v28 = vadd.f32 %v12323_v20, %v18183_v44  ;;  %v12325_v38 = vpop.f32.mrb[113].mxu0  ;;  %v12377_v15 = vadd.f32 %v12376_v46, %v18183_v44  ;;  %v12378_v61 = vpop.f32.mrb[113].mxu1 }
 0x42f   : > { %v12326_v58 = vadd.f32 %v12325_v38, %v18183_v44  ;;  %v12327_v51 = vpop.f32.mrb[114].mxu0  ;;  %12736 = vmatpush1.bf16.msra.mxu0 %v20980_v18  ;;  %12789 = vmatpush1.bf16.msra.mxu1 %v21023_v52  ;;  %v12379_v11 = vadd.f32 %v12378_v61, %v18183_v44  ;;  %v12380_v23 = vpop.f32.mrb[114].mxu1 }
 0x430   : > { %v13352_v47 = vmax.f32 %v12324_v28, 0.0  ;;  %v12328_v27 = vadd.f32 %v12327_v51, %v18205_v53  ;;  %v12329_v37 = vpop.f32.mrb[115].mxu0  ;;  %v13354_v40 = vmax.f32 %v12377_v15, 0.0  ;;  %12737 = vmatprep.subr.bf16.mxu0 %v20985_v13  ;;  %12790 = vmatprep.subr.bf16.mxu1 %v21029_v17  ;;  %v12381_v6 = vadd.f32 %v12380_v23, %v18205_v53  ;;  %v12382_v24 = vpop.f32.mrb[115].mxu1 }
 0x431   : > { %v13353_v25 = vmax.f32 %v12326_v58, 0.0  ;;  %v12330_v36 = vadd.f32 %v12329_v37, %v18205_v53  ;;  %v12383_v3 = vadd.f32 %v12382_v24, %v18205_v53  ;;  %v13355_v21 = vmax.f32 %v12379_v11, 0.0 }
 0x432   : > { %v14199_v63 = vsel %vm21032_vm12, %v13352_v47, 0.0  ;;  %v13446_v57 = vmax.f32 %v12328_v27, 0.0  ;;  %v13448_v12 = vmax.f32 %v12381_v6, 0.0 }
 0x433   : > { %v14574_v35 = vadd.f32 %v20903_v43, %v14199_v63  ;;  %v14200_v59 = vsel %vm21038_vm13, %v13353_v25, 0.0  ;;  %v13447_v22 = vmax.f32 %v12330_v36, 0.0  ;;  %12738 = vmatpush1.bf16.msra.mxu0 %v20990_v32  ;;  %12791 = vmatpush1.bf16.msra.mxu1 %v21046_v45  ;;  %v14201_v43 = vsel %vm21056_vm14, %v13354_v40, 0.0 }
 0x434   : > { %v14293_v1 = vsel %vm21032_vm12, %v13446_v57, 0.0  ;;  %v13449_v20 = vmax.f32 %v12383_v3, 0.0  ;;  %12739 = vmatprep.subr.bf16.mxu0 %v20995_v29  ;;  %12792 = vmatprep.subr.bf16.mxu1 %v21053_v30  ;;  %v14202_v61 = vsel %vm21066_vm15, %v13355_v21, 0.0  ;;  %v14295_v58 = vsel %vm21056_vm14, %v13448_v12, 0.0 }
 0x435   : > { %v14575_v46 = vadd.f32 %v14574_v35, %v14200_v59  ;;  %v14669_v10 = vadd.f32 %v20911_v39, %v14293_v1  ;;  %v14294_v28 = vsel %vm21038_vm13, %v13447_v22, 0.0  ;;  %v12333_v38 = vpop.f32.mrb[116].mxu0  ;;  %v12386_v15 = vpop.f32.mrb[116].mxu1 }
 0x436   : > { %v12334_v51 = vadd.f32 %v12333_v38, %v18210_v55  ;;  %v12335_v11 = vpop.f32.mrb[117].mxu0  ;;  %v12387_v2 = vadd.f32 %v12386_v15, %v18210_v55  ;;  %v12388_v23 = vpop.f32.mrb[117].mxu1  ;;  %v14296_v39 = vsel %vm21066_vm15, %v13449_v20, 0.0 }
 0x437   : > { %v14670_v47 = vadd.f32 %v14669_v10, %v14294_v28  ;;  %v14576_v27 = vadd.f32 %v14575_v46, %v14201_v43  ;;  %v12336_v37 = vadd.f32 %v12335_v11, %v18210_v55  ;;  %v12337_v40 = vpop.f32.mrb[118].mxu0  ;;  %12740 = vmatpush1.bf16.msra.mxu0 %v21000_v33  ;;  %12793 = vmatpush1.bf16.msra.mxu1 %v21073_v5  ;;  %v12390_v6 = vpop.f32.mrb[118].mxu1 }
 0x438   : > { %v13540_v24 = vmax.f32 %v12334_v51, 0.0  ;;  %v12338_v25 = vadd.f32 %v12337_v40, %v18258_v49  ;;  %v12339_v36 = vpop.f32.mrb[119].mxu0  ;;  %v13542_v3 = vmax.f32 %v12387_v2, 0.0  ;;  %v12389_v63 = vadd.f32 %v12388_v23, %v18210_v55  ;;  %12819 = vmatprep.subr.bf16.mxu0 %v20833_v50  ;;  %12872 = vmatprep.subr.bf16.mxu1 %v20985_v13  ;;  %v12392_v57 = vpop.f32.mrb[119].mxu1  ;;  %v21143_v23 = vld [vmem:[%s22364_s1 + $0x10] ss:$8 sps:$4 sm:$0xff]  }
 0x439   : > { %v21099_v21 = vadd.f32 %v14576_v27, %v14202_v61  ;;  %v14671_v12 = vadd.f32 %v14670_v47, %v14295_v58  ;;  %v13541_v35 = vmax.f32 %v12336_v37, 0.0  ;;  %v12340_v59 = vadd.f32 %v12339_v36, %v18258_v49  ;;  %v21229_v37 = vld [vmem:[%s17723_s25 + $0x46c] ss:$400 sps:$4 sm:$0xff]  }
 0x43a   : > { %v14387_v22 = vsel %vm21032_vm12, %v13540_v24, 0.0  ;;  %v13634_v1 = vmax.f32 %v12338_v25, 0.0  ;;  %v13543_v43 = vmax.f32 %v12389_v63, 0.0  ;;  %12746 = vmatmul.mubr.bf16.vlgmr.msra.gmra.mrb[144].mxu0 %v20705_v54  ;;  %12799 = vmatmul.mubr.bf16.vlgmr.msra.gmra.mrb[144].mxu1 %v20705_v54  ;;  %v14389_v38 = vsel %vm21056_vm14, %v13542_v3, 0.0  ;;  %v21338_v63 = vld [vmem:[%s22364_s1 + $0x14] ss:$8 sps:$4 sm:$0xff]  }
 0x43b   : > { %v14764_v50 = vadd.f32 %v20942_v4, %v14387_v22  ;;  %v21107_v20 = vadd.f32 %v14671_v12, %v14296_v39  ;;  %v14388_v46 = vsel %vm21038_vm13, %v13541_v35, 0.0  ;;  %v13635_v10 = vmax.f32 %v12340_v59, 0.0  ;;  %12820 = vmatpush1.bf16.msra.mxu0 %v20850_v56  ;;  %12873 = vmatpush1.bf16.msra.mxu1 %v20990_v32 }
 0x43c   : > { %v14481_v28 = vsel %vm21032_vm12, %v13634_v1, 0.0  ;;  %v12391_v54 = vadd.f32 %v12390_v6, %v18258_v49  ;;  %v12393_v4 = vadd.f32 %v12392_v57, %v18258_v49  ;;  %12821 = vmatprep.subr.bf16.mxu0 %v20857_v7  ;;  %12874 = vmatprep.subr.bf16.mxu1 %v20995_v29  ;;  %v14390_v31 = vsel %vm21066_vm15, %v13543_v43, 0.0  ;;  %v21235_v6 = vld [vmem:[%s17723_s25 + $0x154] ss:$400 sps:$4 sm:$0xff]  }
 0x43d   : > { %v14765_v15 = vadd.f32 %v14764_v50, %v14388_v46  ;;  %v14859_v61 = vadd.f32 %v20946_v14, %v14481_v28  ;;  %v14482_v56 = vsel %vm21038_vm13, %v13635_v10, 0.0  ;;  %16849 = vmatprep.mubr.msk.bf16.mxu0 %vm10798_vm0, %v20730_v0  ;;  %16851 = vmatprep.mubr.msk.bf16.mxu1 %vm10798_vm0, %v20730_v0  ;;  %v13735_v47 = vadd.s32 7936, %v18176_v42  ;;  %v21252_v46 = vld [vmem:[%s17723_s25 + $0x150] ss:$400 sps:$4 sm:$0xff]  }
 0x43e   : > { %v13636_v58 = vmax.f32 %v12391_v54, 0.0  ;;  %v13637_v51 = vmax.f32 %v12393_v4, 0.0  ;;  %v13828_v39 = vand.u32 127, %v13734_v60  ;;  %v13736_v40 = vadd.s32 8064, %v18176_v42 }
 0x43f   : > { %v14860_v7 = vadd.f32 %v14859_v61, %v14482_v56  ;;  %v14766_v11 = vadd.f32 %v14765_v15, %v14389_v38  ;;  %12822 = vmatpush1.bf16.msra.mxu0 %v20877_v26  ;;  %12875 = vmatpush1.bf16.msra.mxu1 %v21000_v33  ;;  %v13829_v36 = vand.u32 127, %v13735_v47  ;;  %v21259_v56 = vld [vmem:[%s17723_s25 + $0x474] ss:$400 sps:$4 sm:$0xff]  }
 0x440   : > { %v14483_v14 = vsel %vm21056_vm14, %v13636_v58, 0.0  ;;  %v14484_v9 = vsel %vm21066_vm15, %v13637_v51, 0.0  ;;  %12823 = vmatprep.subr.bf16.mxu0 %v20965_v48  ;;  %12876 = vmatprep.subr.bf16.mxu1 %v21005_v34  ;;  %v21156_v48 = vld [vmem:[%s22364_s1 + $0x4] ss:$8 sps:$4 sm:$0xff]   ;;  %vm21244_vm2 = vcmp.lt.s32.totalorder %v13828_v39, 94  ;;  %v13830_v50 = vand.u32 127, %v13736_v40 }
 0x441   : > { %v21138_v0 = vadd.f32 %v14766_v11, %v14390_v31  ;;  %v14861_v2 = vadd.f32 %v14860_v7, %v14483_v14  ;;  %vm21262_vm3 = vcmp.lt.s32.totalorder %v13829_v36, 94  ;;  %v21279_v39 = vld [vmem:[%s17723_s25 + $0x470] ss:$400 sps:$4 sm:$0xff]  }
 0x442   : > { %12756 = vmatmul.mubr.bf16.gmra.mrb[148].mxu0 %v21143_v23  ;;  %12809 = vmatmul.mubr.bf16.gmra.mrb[148].mxu1 %v21143_v23  ;;  %vm21272_vm4 = vcmp.lt.s32.totalorder %v13830_v50, 94  ;;  %v21429_v51 = vld [vmem:[%s17723_s25 + $0x480] ss:$400 sps:$4 sm:$0xff]  }
 0x443   : > { %v21147_v26 = vadd.f32 %v14861_v2, %v14484_v9  ;;  %12824 = vmatpush1.bf16.msra.mxu0 %v20970_v62  ;;  %12877 = vmatpush1.bf16.msra.mxu1 %v21011_v41  ;;  %v21171_v62 = vld [vmem:[%s17723_s25 + $0x148] ss:$400 sps:$4 sm:$0xff]  }
 0x444   : > { %12825 = vmatprep.subr.bf16.mxu0 %v20975_v19  ;;  %12878 = vmatprep.subr.bf16.mxu1 %v21017_v16  ;;  %v21176_v19 = vld [vmem:[%s17723_s25 + $0x144] ss:$400 sps:$4 sm:$0xff]  }
 0x445   : > { %16852 = vmatprep.mubr.msk.bf16.mxu0 %vm10798_vm0, %v21156_v48  ;;  %16854 = vmatprep.mubr.msk.bf16.mxu1 %vm10798_vm0, %v21156_v48 }
 0x447   : > { %12826 = vmatpush1.bf16.msra.mxu0 %v20980_v18  ;;  %12879 = vmatpush1.bf16.msra.mxu1 %v21023_v52  ;;  %v21181_v18 = vld [vmem:[%s17723_s25 + $0x468] ss:$400 sps:$4 sm:$0xff]  }
 0x448   : > { %12827 = vmatprep.subr.bf16.mxu0 %v20985_v13  ;;  %12880 = vmatprep.subr.bf16.mxu1 %v21029_v17  ;;  %v21186_v13 = vld [vmem:[%s17723_s25 + $0x464] ss:$400 sps:$4 sm:$0xff]  }
 0x44b   : > { %12828 = vmatpush1.bf16.msra.mxu0 %v20990_v32  ;;  %12881 = vmatpush1.bf16.msra.mxu1 %v21046_v45  ;;  %v21191_v32 = vld [vmem:[%s17723_s25 + $0x14c] ss:$400 sps:$4 sm:$0xff]  }
 0x44c   : > { %12829 = vmatprep.subr.bf16.mxu0 %v20995_v29  ;;  %12882 = vmatprep.subr.bf16.mxu1 %v21053_v30  ;;  %v21196_v29 = vld [vmem:[%s17723_s25 + $0x148] ss:$400 sps:$4 sm:$0xff]  }
 0x44f   : > { %12830 = vmatpush1.bf16.msra.mxu0 %v21000_v33  ;;  %12883 = vmatpush1.bf16.msra.mxu1 %v21073_v5  ;;  %v21201_v33 = vld [vmem:[%s17723_s25 + $0x46c] ss:$400 sps:$4 sm:$0xff]  }
 0x450   : > { %12831 = vmatprep.subr.bf16.mxu0 %v21005_v34  ;;  %12884 = vmatprep.subr.bf16.mxu1 %v21171_v62  ;;  %v21206_v34 = vld [vmem:[%s17723_s25 + $0x468] ss:$400 sps:$4 sm:$0xff]  }
 0x453   : > { %12832 = vmatpush1.bf16.msra.mxu0 %v21011_v41  ;;  %12885 = vmatpush1.bf16.msra.mxu1 %v21176_v19  ;;  %v21211_v41 = vld [vmem:[%s17723_s25 + $0x150] ss:$400 sps:$4 sm:$0xff]  }
 0x454   : > { %12833 = vmatprep.subr.bf16.mxu0 %v21017_v16  ;;  %12886 = vmatprep.subr.bf16.mxu1 %v21181_v18  ;;  %v13733_v16 = vadd.s32 7680, %v18176_v42 }
 0x456   : > { %v13827_v27 = vand.u32 127, %v13733_v16 }
 0x457   : > { %12834 = vmatpush1.bf16.msra.mxu0 %v21023_v52  ;;  %12887 = vmatpush1.bf16.msra.mxu1 %v21186_v13  ;;  %v21217_v52 = vld [vmem:[%s17723_s25 + $0x14c] ss:$400 sps:$4 sm:$0xff]  }
 0x458   : > { %12835 = vmatprep.subr.bf16.mxu0 %v21029_v17  ;;  %12888 = vmatprep.subr.bf16.mxu1 %v21191_v32  ;;  %vm21238_vm1 = vcmp.lt.s32.totalorder %v13827_v27, 94  ;;  %v13739_v27 = vadd.s32 8448, %v18176_v42 }
 0x45b   : > { %12836 = vmatpush1.bf16.msra.mxu0 %v21046_v45  ;;  %12889 = vmatpush1.bf16.msra.mxu1 %v21196_v29 }
 0x45c   : > { %12837 = vmatprep.subr.bf16.mxu0 %v21053_v30  ;;  %12890 = vmatprep.subr.bf16.mxu1 %v21201_v33 }
 0x45f   : > { %12838 = vmatpush1.bf16.msra.mxu0 %v21073_v5  ;;  %12891 = vmatpush1.bf16.msra.mxu1 %v21206_v34 }
 0x460   : > { %12839 = vmatprep.subr.bf16.mxu0 %v21171_v62  ;;  %12892 = vmatprep.subr.bf16.mxu1 %v21211_v41 }
 0x463   : > { %12840 = vmatpush1.bf16.msra.mxu0 %v21176_v19  ;;  %12893 = vmatpush1.bf16.msra.mxu1 %v21217_v52 }
 0x464   : > { %12841 = vmatprep.subr.bf16.mxu0 %v21181_v18  ;;  %12894 = vmatprep.subr.bf16.mxu1 %v21223_v8 }
 0x465   : > { %v12429_v24 = vpop.f32.mrb[120].mxu0  ;;  %v12482_v25 = vpop.f32.mrb[120].mxu1 }
 0x466   : > { %v12430_v3 = vadd.f32 %v12429_v24, %v18183_v44  ;;  %v12431_v57 = vpop.f32.mrb[121].mxu0  ;;  %v12483_v12 = vadd.f32 %v12482_v25, %v18183_v44  ;;  %v12484_v35 = vpop.f32.mrb[121].mxu1 }
 0x467   : > { %v12432_v59 = vadd.f32 %v12431_v57, %v18183_v44  ;;  %v12433_v1 = vpop.f32.mrb[122].mxu0  ;;  %12842 = vmatpush1.bf16.msra.mxu0 %v21186_v13  ;;  %12895 = vmatpush1.bf16.msra.mxu1 %v21229_v37  ;;  %v12485_v43 = vadd.f32 %v12484_v35, %v18183_v44  ;;  %v12486_v10 = vpop.f32.mrb[122].mxu1 }
 0x468   : > { %v13356_v28 = vmax.f32 %v12430_v3, 0.0  ;;  %v12434_v38 = vadd.f32 %v12433_v1, %v18205_v53  ;;  %v12435_v54 = vpop.f32.mrb[123].mxu0  ;;  %v13358_v4 = vmax.f32 %v12483_v12, 0.0  ;;  %12843 = vmatprep.subr.bf16.mxu0 %v21191_v32  ;;  %12896 = vmatprep.subr.bf16.mxu1 %v21235_v6  ;;  %v12487_v15 = vadd.f32 %v12486_v10, %v18205_v53  ;;  %v12488_v61 = vpop.f32.mrb[123].mxu1 }
 0x469   : > { %v13357_v31 = vmax.f32 %v12432_v59, 0.0  ;;  %v12436_v58 = vadd.f32 %v12435_v54, %v18205_v53  ;;  %v12489_v7 = vadd.f32 %v12488_v61, %v18205_v53  ;;  %v13359_v9 = vmax.f32 %v12485_v43, 0.0 }
 0x46a   : > { %v14203_v11 = vsel %vm21238_vm1, %v13356_v28, 0.0  ;;  %v13450_v14 = vmax.f32 %v12434_v38, 0.0  ;;  %v13452_v2 = vmax.f32 %v12487_v15, 0.0 }
 0x46b   : > { %v14578_v16 = vadd.f32 %v21099_v21, %v14203_v11  ;;  %v14204_v60 = vsel %vm21244_vm2, %v13357_v31, 0.0  ;;  %v13451_v47 = vmax.f32 %v12436_v58, 0.0  ;;  %12844 = vmatpush1.bf16.msra.mxu0 %v21196_v29  ;;  %12897 = vmatpush1.bf16.msra.mxu1 %v21252_v46  ;;  %v14205_v21 = vsel %vm21262_vm3, %v13358_v4, 0.0 }
 0x46c   : > { %v14297_v40 = vsel %vm21238_vm1, %v13450_v14, 0.0  ;;  %v13453_v24 = vmax.f32 %v12489_v7, 0.0  ;;  %12845 = vmatprep.subr.bf16.mxu0 %v21201_v33  ;;  %12898 = vmatprep.subr.bf16.mxu1 %v21259_v56  ;;  %v14206_v35 = vsel %vm21272_vm4, %v13359_v9, 0.0  ;;  %v14299_v59 = vsel %vm21262_vm3, %v13452_v2, 0.0 }
 0x46d   : > { %v14579_v25 = vadd.f32 %v14578_v16, %v14204_v60  ;;  %v14673_v36 = vadd.f32 %v21107_v20, %v14297_v40  ;;  %v14298_v3 = vsel %vm21244_vm2, %v13451_v47, 0.0  ;;  %v12439_v57 = vpop.f32.mrb[124].mxu0  ;;  %v12492_v12 = vpop.f32.mrb[124].mxu1 }
 0x46e   : > { %v12440_v1 = vadd.f32 %v12439_v57, %v18210_v55  ;;  %v12441_v43 = vpop.f32.mrb[125].mxu0  ;;  %v12493_v50 = vadd.f32 %v12492_v12, %v18210_v55  ;;  %v12494_v10 = vpop.f32.mrb[125].mxu1  ;;  %v14300_v20 = vsel %vm21272_vm4, %v13453_v24, 0.0  ;;  %v21313_v24 = vld [vmem:[%s22364_s1] ss:$8 sps:$4 sm:$0xff]  }
 0x46f   : > { %v14674_v28 = vadd.f32 %v14673_v36, %v14298_v3  ;;  %v14580_v38 = vadd.f32 %v14579_v25, %v14205_v21  ;;  %v12442_v54 = vadd.f32 %v12441_v43, %v18210_v55  ;;  %v12443_v4 = vpop.f32.mrb[126].mxu0  ;;  %12846 = vmatpush1.bf16.msra.mxu0 %v21206_v34  ;;  %12899 = vmatpush1.bf16.msra.mxu1 %v21279_v39  ;;  %v12496_v15 = vpop.f32.mrb[126].mxu1 }
 0x470   : > { %v13544_v61 = vmax.f32 %v12440_v1, 0.0  ;;  %v12444_v31 = vadd.f32 %v12443_v4, %v18258_v49  ;;  %v12445_v58 = vpop.f32.mrb[127].mxu0  ;;  %v13546_v7 = vmax.f32 %v12493_v50, 0.0  ;;  %v12495_v11 = vadd.f32 %v12494_v10, %v18210_v55  ;;  %12925 = vmatprep.subr.bf16.mxu0 %v21029_v17  ;;  %12978 = vmatprep.subr.bf16.mxu1 %v21191_v32  ;;  %v12498_v14 = vpop.f32.mrb[127].mxu1 }
 0x471   : > { %v21305_v9 = vadd.f32 %v14580_v38, %v14206_v35  ;;  %v14675_v2 = vadd.f32 %v14674_v28, %v14299_v59  ;;  %v13545_v16 = vmax.f32 %v12442_v54, 0.0  ;;  %v12446_v60 = vadd.f32 %v12445_v58, %v18258_v49 }
 0x472   : > { %v14391_v47 = vsel %vm21238_vm1, %v13544_v61, 0.0  ;;  %v13638_v40 = vmax.f32 %v12444_v31, 0.0  ;;  %v13547_v21 = vmax.f32 %v12495_v11, 0.0  ;;  %12852 = vmatmul.mubr.bf16.vlgmr.msra.gmra.mrb[152].mxu0 %v21313_v24  ;;  %12905 = vmatmul.mubr.bf16.vlgmr.msra.gmra.mrb[152].mxu1 %v21313_v24  ;;  %v14393_v12 = vsel %vm21262_vm3, %v13546_v7, 0.0  ;;  %v21441_v31 = vld [vmem:[%s17723_s25 + $0x164] ss:$400 sps:$4 sm:$0xff]  }
 0x473   : > { %v14768_v17 = vadd.f32 %v21138_v0, %v14391_v47  ;;  %v21318_v25 = vadd.f32 %v14675_v2, %v14300_v20  ;;  %v14392_v36 = vsel %vm21244_vm2, %v13545_v16, 0.0  ;;  %v13639_v3 = vmax.f32 %v12446_v60, 0.0  ;;  %12926 = vmatpush1.bf16.msra.mxu0 %v21046_v45  ;;  %12979 = vmatpush1.bf16.msra.mxu1 %v21196_v29 }
 0x474   : > { %v14485_v57 = vsel %vm21238_vm1, %v13638_v40, 0.0  ;;  %v12497_v35 = vadd.f32 %v12496_v15, %v18258_v49  ;;  %v12499_v0 = vadd.f32 %v12498_v14, %v18258_v49  ;;  %12927 = vmatprep.subr.bf16.mxu0 %v21053_v30  ;;  %12980 = vmatprep.subr.bf16.mxu1 %v21201_v33  ;;  %v14394_v30 = vsel %vm21272_vm4, %v13547_v21, 0.0  ;;  %v21435_v15 = vld [vmem:[%s17723_s25 + $0x47c] ss:$400 sps:$4 sm:$0xff]  }
 0x475   : > { %v14769_v59 = vadd.f32 %v14768_v17, %v14392_v36  ;;  %v14863_v1 = vadd.f32 %v21147_v26, %v14485_v57  ;;  %v14486_v45 = vsel %vm21244_vm2, %v13639_v3, 0.0  ;;  %16853 = vmatprep.mubr.msk.bf16.mxu0 %vm10798_vm0, %v21338_v63  ;;  %16855 = vmatprep.mubr.msk.bf16.mxu1 %vm10798_vm0, %v21338_v63  ;;  %v13740_v61 = vadd.s32 8576, %v18176_v42  ;;  %v21458_v57 = vld [vmem:[%s17723_s25 + $0x160] ss:$400 sps:$4 sm:$0xff]  }
 0x476   : > { %v13640_v43 = vmax.f32 %v12497_v35, 0.0  ;;  %v13641_v50 = vmax.f32 %v12499_v0, 0.0  ;;  %v13833_v11 = vand.u32 127, %v13739_v27 }
 0x477   : > { %v14864_v26 = vadd.f32 %v14863_v1, %v14486_v45  ;;  %v14770_v10 = vadd.f32 %v14769_v59, %v14393_v12  ;;  %12928 = vmatpush1.bf16.msra.mxu0 %v21073_v5  ;;  %12981 = vmatpush1.bf16.msra.mxu1 %v21206_v34  ;;  %v13834_v3 = vand.u32 127, %v13740_v61 }
 0x478   : > { %v14487_v22 = vsel %vm21262_vm3, %v13640_v43, 0.0  ;;  %v14488_v28 = vsel %vm21272_vm4, %v13641_v50, 0.0  ;;  %12929 = vmatprep.subr.bf16.mxu0 %v21171_v62  ;;  %12982 = vmatprep.subr.bf16.mxu1 %v21211_v41  ;;  %v21377_v62 = vld [vmem:[%s17723_s25 + $0x158] ss:$400 sps:$4 sm:$0xff]   ;;  %v21465_v43 = vld [vmem:[%s17723_s25 + $0x484] ss:$400 sps:$4 sm:$0xff]  }
 0x479   : > { %v21354_v38 = vadd.f32 %v14770_v10, %v14394_v30  ;;  %v14865_v20 = vadd.f32 %v14864_v26, %v14487_v22  ;;  %vm21468_vm7 = vcmp.lt.s32.totalorder %v13833_v11, 94  ;;  %vm21478_vm8 = vcmp.lt.s32.totalorder %v13834_v3, 94 }
 0x47a   : > { %12862 = vmatmul.mubr.bf16.gmra.mrb[156].mxu0 %v21143_v23  ;;  %12915 = vmatmul.mubr.bf16.gmra.mrb[156].mxu1 %v21143_v23 }
 0x47b   : > { %v21358_v5 = vadd.f32 %v14865_v20, %v14488_v28  ;;  %12930 = vmatpush1.bf16.msra.mxu0 %v21176_v19  ;;  %12983 = vmatpush1.bf16.msra.mxu1 %v21217_v52  ;;  %v21382_v19 = vld [vmem:[%s17723_s25 + $0x154] ss:$400 sps:$4 sm:$0xff]  }
 0x47c   : > { %12931 = vmatprep.subr.bf16.mxu0 %v21181_v18  ;;  %12984 = vmatprep.subr.bf16.mxu1 %v21223_v8  ;;  %v21387_v18 = vld [vmem:[%s17723_s25 + $0x478] ss:$400 sps:$4 sm:$0xff]  }
 0x47d   : > { %16856 = vmatprep.mubr.msk.bf16.mxu0 %vm10798_vm0, %v21156_v48  ;;  %16858 = vmatprep.mubr.msk.bf16.mxu1 %vm10798_vm0, %v21156_v48 }
 0x47f   : > { %12932 = vmatpush1.bf16.msra.mxu0 %v21186_v13  ;;  %12985 = vmatpush1.bf16.msra.mxu1 %v21229_v37  ;;  %v21392_v13 = vld [vmem:[%s17723_s25 + $0x474] ss:$400 sps:$4 sm:$0xff]  }
 0x480   : > { %12933 = vmatprep.subr.bf16.mxu0 %v21191_v32  ;;  %12986 = vmatprep.subr.bf16.mxu1 %v21235_v6  ;;  %v21397_v32 = vld [vmem:[%s17723_s25 + $0x15c] ss:$400 sps:$4 sm:$0xff]  }
 0x483   : > { %12934 = vmatpush1.bf16.msra.mxu0 %v21196_v29  ;;  %12987 = vmatpush1.bf16.msra.mxu1 %v21252_v46  ;;  %v21402_v29 = vld [vmem:[%s17723_s25 + $0x158] ss:$400 sps:$4 sm:$0xff]  }
 0x484   : > { %12935 = vmatprep.subr.bf16.mxu0 %v21201_v33  ;;  %12988 = vmatprep.subr.bf16.mxu1 %v21259_v56  ;;  %v21407_v33 = vld [vmem:[%s17723_s25 + $0x47c] ss:$400 sps:$4 sm:$0xff]  }
 0x487   : > { %12936 = vmatpush1.bf16.msra.mxu0 %v21206_v34  ;;  %12989 = vmatpush1.bf16.msra.mxu1 %v21279_v39  ;;  %v21412_v34 = vld [vmem:[%s17723_s25 + $0x478] ss:$400 sps:$4 sm:$0xff]  }
 0x488   : > { %12937 = vmatprep.subr.bf16.mxu0 %v21211_v41  ;;  %12990 = vmatprep.subr.bf16.mxu1 %v21377_v62  ;;  %v21417_v41 = vld [vmem:[%s17723_s25 + $0x160] ss:$400 sps:$4 sm:$0xff]  }
 0x48b   : > { %12938 = vmatpush1.bf16.msra.mxu0 %v21217_v52  ;;  %12991 = vmatpush1.bf16.msra.mxu1 %v21382_v19  ;;  %v13737_v52 = vadd.s32 8192, %v18176_v42 }
 0x48c   : > { %12939 = vmatprep.subr.bf16.mxu0 %v21223_v8  ;;  %12992 = vmatprep.subr.bf16.mxu1 %v21387_v18  ;;  %v21423_v8 = vld [vmem:[%s17723_s25 + $0x15c] ss:$400 sps:$4 sm:$0xff]  }
 0x48d   : > { %v13831_v54 = vand.u32 127, %v13737_v52 }
 0x48f   : > { %12940 = vmatpush1.bf16.msra.mxu0 %v21229_v37  ;;  %12993 = vmatpush1.bf16.msra.mxu1 %v21392_v13  ;;  %v13738_v37 = vadd.s32 8320, %v18176_v42  ;;  %vm21444_vm5 = vcmp.lt.s32.totalorder %v13831_v54, 94 }
 0x490   : > { %12941 = vmatprep.subr.bf16.mxu0 %v21235_v6  ;;  %12994 = vmatprep.subr.bf16.mxu1 %v21397_v32 }
 0x491   : > { %v13832_v4 = vand.u32 127, %v13738_v37 }
 0x493   : > { %12942 = vmatpush1.bf16.msra.mxu0 %v21252_v46  ;;  %12995 = vmatpush1.bf16.msra.mxu1 %v21402_v29  ;;  %vm21450_vm6 = vcmp.lt.s32.totalorder %v13832_v4, 94 }
 0x494   : > { %12943 = vmatprep.subr.bf16.mxu0 %v21259_v56  ;;  %12996 = vmatprep.subr.bf16.mxu1 %v21407_v33 }
 0x497   : > { %12944 = vmatpush1.bf16.msra.mxu0 %v21279_v39  ;;  %12997 = vmatpush1.bf16.msra.mxu1 %v21412_v34 }
 0x498   : > { %12945 = vmatprep.subr.bf16.mxu0 %v21377_v62  ;;  %12998 = vmatprep.subr.bf16.mxu1 %v21417_v41 }
 0x49b   : > { %12946 = vmatpush1.bf16.msra.mxu0 %v21382_v19  ;;  %12999 = vmatpush1.bf16.msra.mxu1 %v21423_v8 }
 0x49c   : > { %12947 = vmatprep.subr.bf16.mxu0 %v21387_v18  ;;  %13000 = vmatprep.subr.bf16.mxu1 %v21429_v51 }
 0x49d   : > { %v12535_v58 = vpop.f32.mrb[128].mxu0  ;;  %v12588_v7 = vpop.f32.mrb[128].mxu1 }
 0x49e   : > { %v12536_v14 = vadd.f32 %v12535_v58, %v18183_v44  ;;  %v12537_v16 = vpop.f32.mrb[129].mxu0  ;;  %v12589_v60 = vadd.f32 %v12588_v7, %v18183_v44  ;;  %v12590_v47 = vpop.f32.mrb[129].mxu1  ;;  %v21485_v58 = vld [vmem:[%s17723_s25 + $0x480] ss:$400 sps:$4 sm:$0xff]  }
 0x49f   : > { %v12538_v40 = vadd.f32 %v12537_v16, %v18183_v44  ;;  %v12539_v17 = vpop.f32.mrb[130].mxu0  ;;  %12948 = vmatpush1.bf16.msra.mxu0 %v21392_v13  ;;  %13001 = vmatpush1.bf16.msra.mxu1 %v21435_v15  ;;  %v12591_v36 = vadd.f32 %v12590_v47, %v18183_v44  ;;  %v12592_v12 = vpop.f32.mrb[130].mxu1 }
 0x4a0   : > { %v13360_v35 = vmax.f32 %v12536_v14, 0.0  ;;  %v12540_v0 = vadd.f32 %v12539_v17, %v18205_v53  ;;  %v12541_v59 = vpop.f32.mrb[131].mxu0  ;;  %v13362_v1 = vmax.f32 %v12589_v60, 0.0  ;;  %12949 = vmatprep.subr.bf16.mxu0 %v21397_v32  ;;  %13002 = vmatprep.subr.bf16.mxu1 %v21441_v31  ;;  %v12593_v45 = vadd.f32 %v12592_v12, %v18205_v53  ;;  %v12594_v30 = vpop.f32.mrb[131].mxu1 }
 0x4a1   : > { %v13361_v50 = vmax.f32 %v12538_v40, 0.0  ;;  %v12542_v26 = vadd.f32 %v12541_v59, %v18205_v53  ;;  %v12595_v22 = vadd.f32 %v12594_v30, %v18205_v53  ;;  %v13363_v52 = vmax.f32 %v12591_v36, 0.0 }
 0x4a2   : > { %v14207_v28 = vsel %vm21444_vm5, %v13360_v35, 0.0  ;;  %v13454_v20 = vmax.f32 %v12540_v0, 0.0  ;;  %v13456_v37 = vmax.f32 %v12593_v45, 0.0 }
 0x4a3   : > { %v14582_v27 = vadd.f32 %v21305_v9, %v14207_v28  ;;  %v14208_v54 = vsel %vm21450_vm6, %v13361_v50, 0.0  ;;  %v13455_v4 = vmax.f32 %v12542_v26, 0.0  ;;  %12950 = vmatpush1.bf16.msra.mxu0 %v21402_v29  ;;  %13003 = vmatpush1.bf16.msra.mxu1 %v21458_v57  ;;  %v14209_v9 = vsel %vm21468_vm7, %v13362_v1, 0.0 }
 0x4a4   : > { %v14301_v7 = vsel %vm21444_vm5, %v13454_v20, 0.0  ;;  %v13457_v11 = vmax.f32 %v12595_v22, 0.0  ;;  %12951 = vmatprep.subr.bf16.mxu0 %v21407_v33  ;;  %13004 = vmatprep.subr.bf16.mxu1 %v21465_v43  ;;  %v14210_v17 = vsel %vm21478_vm8, %v13363_v52, 0.0  ;;  %v14303_v36 = vsel %vm21468_vm7, %v13456_v37, 0.0 }
 0x4a5   : > { %v14583_v14 = vadd.f32 %v14582_v27, %v14208_v54  ;;  %v14677_v16 = vadd.f32 %v21318_v25, %v14301_v7  ;;  %v14302_v60 = vsel %vm21450_vm6, %v13455_v4, 0.0  ;;  %v12545_v47 = vpop.f32.mrb[132].mxu0  ;;  %v12598_v40 = vpop.f32.mrb[132].mxu1 }
 0x4a6   : > { %v12546_v3 = vadd.f32 %v12545_v47, %v18210_v55  ;;  %v12547_v12 = vpop.f32.mrb[133].mxu0  ;;  %v12599_v35 = vadd.f32 %v12598_v40, %v18210_v55  ;;  %v12600_v0 = vpop.f32.mrb[133].mxu1  ;;  %v14304_v25 = vsel %vm21478_vm8, %v13457_v11, 0.0 }
 0x4a7   : > { %v14678_v59 = vadd.f32 %v14677_v16, %v14302_v60  ;;  %v14584_v1 = vadd.f32 %v14583_v14, %v14209_v9  ;;  %v12548_v45 = vadd.f32 %v12547_v12, %v18210_v55  ;;  %v12549_v30 = vpop.f32.mrb[134].mxu0  ;;  %12952 = vmatpush1.bf16.msra.mxu0 %v21412_v34  ;;  %13005 = vmatpush1.bf16.msra.mxu1 %v21485_v58  ;;  %v12602_v50 = vpop.f32.mrb[134].mxu1 }
 0x4a8   : > { %v13548_v26 = vmax.f32 %v12546_v3, 0.0  ;;  %v12550_v22 = vadd.f32 %v12549_v30, %v18258_v49  ;;  %v12551_v28 = vpop.f32.mrb[135].mxu0  ;;  %v13550_v20 = vmax.f32 %v12599_v35, 0.0  ;;  %v12601_v52 = vadd.f32 %v12600_v0, %v18210_v55  ;;  %13031 = vmatprep.subr.bf16.mxu0 %v21235_v6  ;;  %13084 = vmatprep.subr.bf16.mxu1 %v21397_v32  ;;  %v12604_v37 = vpop.f32.mrb[135].mxu1 }
 0x4a9   : > { %v21511_v27 = vadd.f32 %v14584_v1, %v14210_v17  ;;  %v14679_v54 = vadd.f32 %v14678_v59, %v14303_v36  ;;  %v13549_v4 = vmax.f32 %v12548_v45, 0.0  ;;  %v12552_v7 = vadd.f32 %v12551_v28, %v18258_v49  ;;  %v21631_v45 = vld [vmem:[%s17723_s25 + $0x48c] ss:$400 sps:$4 sm:$0xff]  }
 0x4aa   : > { %v14395_v9 = vsel %vm21444_vm5, %v13548_v26, 0.0  ;;  %v13642_v11 = vmax.f32 %v12550_v22, 0.0  ;;  %v13551_v14 = vmax.f32 %v12601_v52, 0.0  ;;  %12958 = vmatmul.mubr.bf16.vlgmr.msra.gmra.mrb[160].mxu0 %v21313_v24  ;;  %13011 = vmatmul.mubr.bf16.vlgmr.msra.gmra.mrb[160].mxu1 %v21313_v24  ;;  %v14397_v17 = vsel %vm21468_vm7, %v13550_v20, 0.0 }
 0x4ab   : > { %v14772_v6 = vadd.f32 %v21354_v38, %v14395_v9  ;;  %v21519_v16 = vadd.f32 %v14679_v54, %v14304_v25  ;;  %v14396_v60 = vsel %vm21450_vm6, %v13549_v4, 0.0  ;;  %v13643_v47 = vmax.f32 %v12552_v7, 0.0  ;;  %13032 = vmatpush1.bf16.msra.mxu0 %v21252_v46  ;;  %13085 = vmatpush1.bf16.msra.mxu1 %v21402_v29 }
 0x4ac   : > { %v14489_v40 = vsel %vm21444_vm5, %v13642_v11, 0.0  ;;  %v12603_v36 = vadd.f32 %v12602_v50, %v18258_v49  ;;  %v12605_v38 = vadd.f32 %v12604_v37, %v18258_v49  ;;  %13033 = vmatprep.subr.bf16.mxu0 %v21259_v56  ;;  %13086 = vmatprep.subr.bf16.mxu1 %v21407_v33  ;;  %v14398_v2 = vsel %vm21478_vm8, %v13551_v14, 0.0  ;;  %v21637_v50 = vld [vmem:[%s17723_s25 + $0x174] ss:$400 sps:$4 sm:$0xff]  }
 0x4ad   : > { %v14773_v3 = vadd.f32 %v14772_v6, %v14396_v60  ;;  %v14867_v12 = vadd.f32 %v21358_v5, %v14489_v40  ;;  %v14490_v46 = vsel %vm21450_vm6, %v13643_v47, 0.0  ;;  %16857 = vmatprep.mubr.msk.bf16.mxu0 %vm10798_vm0, %v21338_v63  ;;  %16859 = vmatprep.mubr.msk.bf16.mxu1 %vm10798_vm0, %v21338_v63  ;;  %v13744_v30 = vadd.s32 9088, %v18176_v42  ;;  %v21654_v60 = vld [vmem:[%s17723_s25 + $0x170] ss:$400 sps:$4 sm:$0xff]  }
 0x4ae   : > { %v13644_v35 = vmax.f32 %v12603_v36, 0.0  ;;  %v13645_v0 = vmax.f32 %v12605_v38, 0.0 }
 0x4af   : > { %v14868_v56 = vadd.f32 %v14867_v12, %v14490_v46  ;;  %v14774_v59 = vadd.f32 %v14773_v3, %v14397_v17  ;;  %13034 = vmatpush1.bf16.msra.mxu0 %v21279_v39  ;;  %13087 = vmatpush1.bf16.msra.mxu1 %v21412_v34  ;;  %v13838_v6 = vand.u32 127, %v13744_v30  ;;  %v21661_v46 = vld [vmem:[%s17723_s25 + $0x494] ss:$400 sps:$4 sm:$0xff]  }
 0x4b0   : > { %v14491_v5 = vsel %vm21468_vm7, %v13644_v35, 0.0  ;;  %v14492_v21 = vsel %vm21478_vm8, %v13645_v0, 0.0  ;;  %13035 = vmatprep.subr.bf16.mxu0 %v21377_v62  ;;  %13088 = vmatprep.subr.bf16.mxu1 %v21417_v41  ;;  %v21583_v62 = vld [vmem:[%s17723_s25 + $0x488] ss:$400 sps:$4 sm:$0xff]   ;;  %v13746_v0 = vadd.s32 9344, %v18176_v42 }
 0x4b1   : > { %v21550_v1 = vadd.f32 %v14774_v59, %v14398_v2  ;;  %v14869_v25 = vadd.f32 %v14868_v56, %v14491_v5  ;;  %vm21674_vm12 = vcmp.lt.s32.totalorder %v13838_v6, 94 }
 0x4b2   : > { %12968 = vmatmul.mubr.bf16.gmra.mrb[164].mxu0 %v21143_v23  ;;  %13021 = vmatmul.mubr.bf16.gmra.mrb[164].mxu1 %v21143_v23  ;;  %v21573_v23 = vld [vmem:[%s17723_s25 + $0x168] ss:$400 sps:$4 sm:$0xff]  }
 0x4b3   : > { %v21554_v39 = vadd.f32 %v14869_v25, %v14492_v21  ;;  %13036 = vmatpush1.bf16.msra.mxu0 %v21382_v19  ;;  %13089 = vmatpush1.bf16.msra.mxu1 %v21423_v8  ;;  %v21588_v19 = vld [vmem:[%s17723_s25 + $0x484] ss:$400 sps:$4 sm:$0xff]  }
 0x4b4   : > { %13037 = vmatprep.subr.bf16.mxu0 %v21387_v18  ;;  %13090 = vmatprep.subr.bf16.mxu1 %v21429_v51  ;;  %v21593_v18 = vld [vmem:[%s17723_s25 + $0x16c] ss:$400 sps:$4 sm:$0xff]  }
 0x4b5   : > { %16860 = vmatprep.mubr.msk.bf16.mxu0 %vm10798_vm0, %v21156_v48  ;;  %16862 = vmatprep.mubr.msk.bf16.mxu1 %vm10798_vm0, %v21156_v48  ;;  %v21578_v48 = vld [vmem:[%s17723_s25 + $0x164] ss:$400 sps:$4 sm:$0xff]  }
 0x4b7   : > { %13038 = vmatpush1.bf16.msra.mxu0 %v21392_v13  ;;  %13091 = vmatpush1.bf16.msra.mxu1 %v21435_v15  ;;  %v21598_v13 = vld [vmem:[%s17723_s25 + $0x168] ss:$400 sps:$4 sm:$0xff]  }
 0x4b8   : > { %13039 = vmatprep.subr.bf16.mxu0 %v21397_v32  ;;  %13092 = vmatprep.subr.bf16.mxu1 %v21441_v31  ;;  %v21603_v32 = vld [vmem:[%s17723_s25 + $0x48c] ss:$400 sps:$4 sm:$0xff]  }
 0x4bb   : > { %13040 = vmatpush1.bf16.msra.mxu0 %v21402_v29  ;;  %13093 = vmatpush1.bf16.msra.mxu1 %v21458_v57  ;;  %v21608_v29 = vld [vmem:[%s17723_s25 + $0x488] ss:$400 sps:$4 sm:$0xff]  }
 0x4bc   : > { %13041 = vmatprep.subr.bf16.mxu0 %v21407_v33  ;;  %13094 = vmatprep.subr.bf16.mxu1 %v21465_v43  ;;  %v21613_v33 = vld [vmem:[%s17723_s25 + $0x170] ss:$400 sps:$4 sm:$0xff]  }
 0x4bf   : > { %13042 = vmatpush1.bf16.msra.mxu0 %v21412_v34  ;;  %13095 = vmatpush1.bf16.msra.mxu1 %v21485_v58  ;;  %v13741_v34 = vadd.s32 8704, %v18176_v42 }
 0x4c0   : > { %13043 = vmatprep.subr.bf16.mxu0 %v21417_v41  ;;  %13096 = vmatprep.subr.bf16.mxu1 %v21573_v23  ;;  %v21619_v41 = vld [vmem:[%s17723_s25 + $0x16c] ss:$400 sps:$4 sm:$0xff]  }
 0x4c1   : > { %v13835_v10 = vand.u32 127, %v13741_v34 }
 0x4c3   : > { %13044 = vmatpush1.bf16.msra.mxu0 %v21423_v8  ;;  %13097 = vmatpush1.bf16.msra.mxu1 %v21578_v48  ;;  %v13742_v8 = vadd.s32 8832, %v18176_v42  ;;  %vm21640_vm9 = vcmp.lt.s32.totalorder %v13835_v10, 94  ;;  %v21831_v10 = vld [vmem:[%s17723_s25 + $0x4a0] ss:$400 sps:$4 sm:$0xff]  }
 0x4c4   : > { %13045 = vmatprep.subr.bf16.mxu0 %v21429_v51  ;;  %13098 = vmatprep.subr.bf16.mxu1 %v21583_v62  ;;  %v21625_v51 = vld [vmem:[%s17723_s25 + $0x490] ss:$400 sps:$4 sm:$0xff]  }
 0x4c5   : > { %v13836_v61 = vand.u32 127, %v13742_v8 }
 0x4c7   : > { %13046 = vmatpush1.bf16.msra.mxu0 %v21435_v15  ;;  %13099 = vmatpush1.bf16.msra.mxu1 %v21588_v19  ;;  %v13743_v15 = vadd.s32 8960, %v18176_v42  ;;  %vm21646_vm10 = vcmp.lt.s32.totalorder %v13836_v61, 94  ;;  %v21681_v61 = vld [vmem:[%s17723_s25 + $0x490] ss:$400 sps:$4 sm:$0xff]  }
 0x4c8   : > { %13047 = vmatprep.subr.bf16.mxu0 %v21441_v31  ;;  %13100 = vmatprep.subr.bf16.mxu1 %v21593_v18 }
 0x4c9   : > { %v13837_v28 = vand.u32 127, %v13743_v15 }
 0x4cb   : > { %13048 = vmatpush1.bf16.msra.mxu0 %v21458_v57  ;;  %13101 = vmatpush1.bf16.msra.mxu1 %v21598_v13  ;;  %vm21664_vm11 = vcmp.lt.s32.totalorder %v13837_v28, 94 }
 0x4cc   : > { %13049 = vmatprep.subr.bf16.mxu0 %v21465_v43  ;;  %13102 = vmatprep.subr.bf16.mxu1 %v21603_v32 }
 0x4cf   : > { %13050 = vmatpush1.bf16.msra.mxu0 %v21485_v58  ;;  %13103 = vmatpush1.bf16.msra.mxu1 %v21608_v29 }
 0x4d0   : > { %13051 = vmatprep.subr.bf16.mxu0 %v21573_v23  ;;  %13104 = vmatprep.subr.bf16.mxu1 %v21613_v33 }
 0x4d3   : > { %13052 = vmatpush1.bf16.msra.mxu0 %v21578_v48  ;;  %13105 = vmatpush1.bf16.msra.mxu1 %v21619_v41 }
 0x4d4   : > { %13053 = vmatprep.subr.bf16.mxu0 %v21583_v62  ;;  %13106 = vmatprep.subr.bf16.mxu1 %v21625_v51 }
 0x4d5   : > { %v12641_v26 = vpop.f32.mrb[136].mxu0  ;;  %v12694_v22 = vpop.f32.mrb[136].mxu1 }
 0x4d6   : > { %v12642_v20 = vadd.f32 %v12641_v26, %v18183_v44  ;;  %v12643_v37 = vpop.f32.mrb[137].mxu0  ;;  %v12695_v54 = vadd.f32 %v12694_v22, %v18183_v44  ;;  %v12696_v4 = vpop.f32.mrb[137].mxu1 }
 0x4d7   : > { %v12644_v7 = vadd.f32 %v12643_v37, %v18183_v44  ;;  %v12645_v11 = vpop.f32.mrb[138].mxu0  ;;  %13054 = vmatpush1.bf16.msra.mxu0 %v21588_v19  ;;  %13107 = vmatpush1.bf16.msra.mxu1 %v21631_v45  ;;  %v12697_v14 = vadd.f32 %v12696_v4, %v18183_v44  ;;  %v12698_v47 = vpop.f32.mrb[138].mxu1 }
 0x4d8   : > { %v13364_v40 = vmax.f32 %v12642_v20, 0.0  ;;  %v12646_v17 = vadd.f32 %v12645_v11, %v18205_v53  ;;  %v12647_v36 = vpop.f32.mrb[139].mxu0  ;;  %v13366_v38 = vmax.f32 %v12695_v54, 0.0  ;;  %13055 = vmatprep.subr.bf16.mxu0 %v21593_v18  ;;  %13108 = vmatprep.subr.bf16.mxu1 %v21637_v50  ;;  %v12699_v3 = vadd.f32 %v12698_v47, %v18205_v53  ;;  %v12700_v12 = vpop.f32.mrb[139].mxu1 }
 0x4d9   : > { %v13365_v2 = vmax.f32 %v12644_v7, 0.0  ;;  %v12648_v35 = vadd.f32 %v12647_v36, %v18205_v53  ;;  %v12701_v56 = vadd.f32 %v12700_v12, %v18205_v53  ;;  %v13367_v21 = vmax.f32 %v12697_v14, 0.0 }
 0x4da   : > { %v14211_v59 = vsel %vm21640_vm9, %v13364_v40, 0.0  ;;  %v13458_v5 = vmax.f32 %v12646_v17, 0.0  ;;  %v13460_v25 = vmax.f32 %v12699_v3, 0.0 }
 0x4db   : > { %v14586_v34 = vadd.f32 %v21511_v27, %v14211_v59  ;;  %v14212_v8 = vsel %vm21646_vm10, %v13365_v2, 0.0  ;;  %v13459_v15 = vmax.f32 %v12648_v35, 0.0  ;;  %13056 = vmatpush1.bf16.msra.mxu0 %v21598_v13  ;;  %13109 = vmatpush1.bf16.msra.mxu1 %v21654_v60  ;;  %v14213_v27 = vsel %vm21664_vm11, %v13366_v38, 0.0 }
 0x4dc   : > { %v14305_v30 = vsel %vm21640_vm9, %v13458_v5, 0.0  ;;  %v13461_v26 = vmax.f32 %v12701_v56, 0.0  ;;  %13057 = vmatprep.subr.bf16.mxu0 %v21603_v32  ;;  %13110 = vmatprep.subr.bf16.mxu1 %v21661_v46  ;;  %v14214_v4 = vsel %vm21674_vm12, %v13367_v21, 0.0  ;;  %v14307_v7 = vsel %vm21664_vm11, %v13460_v25, 0.0 }
 0x4dd   : > { %v14587_v22 = vadd.f32 %v14586_v34, %v14212_v8  ;;  %v14681_v28 = vadd.f32 %v21519_v16, %v14305_v30  ;;  %v14306_v20 = vsel %vm21646_vm10, %v13459_v15, 0.0  ;;  %v12651_v37 = vpop.f32.mrb[140].mxu0  ;;  %v12704_v54 = vpop.f32.mrb[140].mxu1 }
 0x4de   : > { %v12652_v11 = vadd.f32 %v12651_v37, %v18210_v55  ;;  %v12653_v14 = vpop.f32.mrb[141].mxu0  ;;  %v12705_v6 = vadd.f32 %v12704_v54, %v18210_v55  ;;  %v12706_v47 = vpop.f32.mrb[141].mxu1  ;;  %v14308_v16 = vsel %vm21674_vm12, %v13461_v26, 0.0 }
 0x4df   : > { %v14682_v40 = vadd.f32 %v14681_v28, %v14306_v20  ;;  %v14588_v17 = vadd.f32 %v14587_v22, %v14213_v27  ;;  %v12654_v36 = vadd.f32 %v12653_v14, %v18210_v55  ;;  %v12655_v38 = vpop.f32.mrb[142].mxu0  ;;  %13058 = vmatpush1.bf16.msra.mxu0 %v21608_v29  ;;  %13111 = vmatpush1.bf16.msra.mxu1 %v21681_v61  ;;  %v12708_v3 = vpop.f32.mrb[142].mxu1 }
 0x4e0   : > { %v13552_v12 = vmax.f32 %v12652_v11, 0.0  ;;  %v12656_v2 = vadd.f32 %v12655_v38, %v18258_v49  ;;  %v12657_v35 = vpop.f32.mrb[143].mxu0  ;;  %v13554_v56 = vmax.f32 %v12705_v6, 0.0  ;;  %v12707_v59 = vadd.f32 %v12706_v47, %v18210_v55  ;;  %13137 = vmatprep.subr.bf16.mxu0 %v21441_v31  ;;  %13190 = vmatprep.subr.bf16.mxu1 %v21593_v18  ;;  %v12710_v5 = vpop.f32.mrb[143].mxu1  ;;  %v21837_v38 = vld [vmem:[%s17723_s25 + $0x49c] ss:$400 sps:$4 sm:$0xff]  }
 0x4e1   : > { %v21707_v21 = vadd.f32 %v14588_v17, %v14214_v4  ;;  %v14683_v25 = vadd.f32 %v14682_v40, %v14307_v7  ;;  %v13553_v34 = vmax.f32 %v12654_v36, 0.0  ;;  %v12658_v8 = vadd.f32 %v12657_v35, %v18258_v49  ;;  %v21751_v40 = vld [vmem:[%s22364_s1 + $0x10] ss:$8 sps:$4 sm:$0xff]  }
 0x4e2   : > { %v14399_v15 = vsel %vm21640_vm9, %v13552_v12, 0.0  ;;  %v13646_v30 = vmax.f32 %v12656_v2, 0.0  ;;  %v13555_v27 = vmax.f32 %v12707_v59, 0.0  ;;  %13064 = vmatmul.mubr.bf16.vlgmr.msra.gmra.mrb[168].mxu0 %v21313_v24  ;;  %13117 = vmatmul.mubr.bf16.vlgmr.msra.gmra.mrb[168].mxu1 %v21313_v24  ;;  %v14401_v37 = vsel %vm21664_vm11, %v13554_v56, 0.0  ;;  %v21843_v12 = vld [vmem:[%s17723_s25 + $0x184] ss:$400 sps:$4 sm:$0xff]  }
 0x4e3   : > { %v14776_v31 = vadd.f32 %v21550_v1, %v14399_v15  ;;  %v21715_v26 = vadd.f32 %v14683_v25, %v14308_v16  ;;  %v14400_v22 = vsel %vm21646_vm10, %v13553_v34, 0.0  ;;  %v13647_v28 = vmax.f32 %v12658_v8, 0.0  ;;  %13138 = vmatpush1.bf16.msra.mxu0 %v21458_v57  ;;  %13191 = vmatpush1.bf16.msra.mxu1 %v21598_v13 }
 0x4e4   : > { %v14493_v20 = vsel %vm21640_vm9, %v13646_v30, 0.0  ;;  %v12709_v24 = vadd.f32 %v12708_v3, %v18258_v49  ;;  %v12711_v1 = vadd.f32 %v12710_v5, %v18258_v49  ;;  %13139 = vmatprep.subr.bf16.mxu0 %v21465_v43  ;;  %13192 = vmatprep.subr.bf16.mxu1 %v21603_v32  ;;  %v14402_v52 = vsel %vm21674_vm12, %v13555_v27, 0.0 }
 0x4e5   : > { %v14777_v54 = vadd.f32 %v14776_v31, %v14400_v22  ;;  %v14871_v4 = vadd.f32 %v21554_v39, %v14493_v20  ;;  %v14494_v57 = vsel %vm21646_vm10, %v13647_v28, 0.0  ;;  %16861 = vmatprep.mubr.msk.bf16.mxu0 %vm10798_vm0, %v21338_v63  ;;  %16863 = vmatprep.mubr.msk.bf16.mxu1 %vm10798_vm0, %v21338_v63  ;;  %v13747_v17 = vadd.s32 9472, %v18176_v42  ;;  %v21860_v28 = vld [vmem:[%s17723_s25 + $0x180] ss:$400 sps:$4 sm:$0xff]  }
 0x4e6   : > { %v13648_v7 = vmax.f32 %v12709_v24, 0.0  ;;  %v13649_v11 = vmax.f32 %v12711_v1, 0.0  ;;  %v13840_v36 = vand.u32 127, %v13746_v0  ;;  %v13748_v3 = vadd.s32 9600, %v18176_v42 }
 0x4e7   : > { %v14872_v43 = vadd.f32 %v14871_v4, %v14494_v57  ;;  %v14778_v14 = vadd.f32 %v14777_v54, %v14401_v37  ;;  %13140 = vmatpush1.bf16.msra.mxu0 %v21485_v58  ;;  %13193 = vmatpush1.bf16.msra.mxu1 %v21608_v29  ;;  %v13841_v56 = vand.u32 127, %v13747_v17 }
 0x4e8   : > { %v14495_v39 = vsel %vm21664_vm11, %v13648_v7, 0.0  ;;  %v14496_v9 = vsel %vm21674_vm12, %v13649_v11, 0.0  ;;  %13141 = vmatprep.subr.bf16.mxu0 %v21573_v23  ;;  %13194 = vmatprep.subr.bf16.mxu1 %v21613_v33  ;;  %v21764_v23 = vld [vmem:[%s22364_s1 + $0x4] ss:$8 sps:$4 sm:$0xff]   ;;  %vm21852_vm14 = vcmp.lt.s32.totalorder %v13840_v36, 94  ;;  %v13842_v22 = vand.u32 127, %v13748_v3 }
 0x4e9   : > { %v21746_v6 = vadd.f32 %v14778_v14, %v14402_v52  ;;  %v14873_v47 = vadd.f32 %v14872_v43, %v14495_v39  ;;  %v21867_v52 = vld [vmem:[%s17723_s25 + $0x4a4] ss:$400 sps:$4 sm:$0xff]   ;;  %vm21870_vm15 = vcmp.lt.s32.totalorder %v13841_v56, 94  ;;  %v21887_v3 = vld [vmem:[%s17723_s25 + $0x4a0] ss:$400 sps:$4 sm:$0xff]  }
 0x4ea   : > { %13074 = vmatmul.mubr.bf16.gmra.mrb[172].mxu0 %v21751_v40  ;;  %13127 = vmatmul.mubr.bf16.gmra.mrb[172].mxu1 %v21751_v40  ;;  %vm21880_vm1 = vcmp.lt.s32.totalorder %v13842_v22, 94 }
 0x4eb   : > { %v21755_v58 = vadd.f32 %v14873_v47, %v14496_v9  ;;  %13142 = vmatpush1.bf16.msra.mxu0 %v21578_v48  ;;  %13195 = vmatpush1.bf16.msra.mxu1 %v21619_v41  ;;  %v21779_v48 = vld [vmem:[%s17723_s25 + $0x178] ss:$400 sps:$4 sm:$0xff]  }
 0x4ec   : > { %13143 = vmatprep.subr.bf16.mxu0 %v21583_v62  ;;  %13196 = vmatprep.subr.bf16.mxu1 %v21625_v51  ;;  %v21784_v62 = vld [vmem:[%s17723_s25 + $0x174] ss:$400 sps:$4 sm:$0xff]  }
 0x4ed   : > { %16864 = vmatprep.mubr.msk.bf16.mxu0 %vm10798_vm0, %v21764_v23  ;;  %16866 = vmatprep.mubr.msk.bf16.mxu1 %vm10798_vm0, %v21764_v23 }
 0x4ef   : > { %13144 = vmatpush1.bf16.msra.mxu0 %v21588_v19  ;;  %13197 = vmatpush1.bf16.msra.mxu1 %v21631_v45  ;;  %v21789_v19 = vld [vmem:[%s17723_s25 + $0x498] ss:$400 sps:$4 sm:$0xff]  }
 0x4f0   : > { %13145 = vmatprep.subr.bf16.mxu0 %v21593_v18  ;;  %13198 = vmatprep.subr.bf16.mxu1 %v21637_v50  ;;  %v21794_v18 = vld [vmem:[%s17723_s25 + $0x494] ss:$400 sps:$4 sm:$0xff]  }
 0x4f3   : > { %13146 = vmatpush1.bf16.msra.mxu0 %v21598_v13  ;;  %13199 = vmatpush1.bf16.msra.mxu1 %v21654_v60  ;;  %v21799_v13 = vld [vmem:[%s17723_s25 + $0x17c] ss:$400 sps:$4 sm:$0xff]  }
 0x4f4   : > { %13147 = vmatprep.subr.bf16.mxu0 %v21603_v32  ;;  %13200 = vmatprep.subr.bf16.mxu1 %v21661_v46  ;;  %v21804_v32 = vld [vmem:[%s17723_s25 + $0x178] ss:$400 sps:$4 sm:$0xff]  }
 0x4f7   : > { %13148 = vmatpush1.bf16.msra.mxu0 %v21608_v29  ;;  %13201 = vmatpush1.bf16.msra.mxu1 %v21681_v61  ;;  %v21809_v29 = vld [vmem:[%s17723_s25 + $0x49c] ss:$400 sps:$4 sm:$0xff]  }
 0x4f8   : > { %13149 = vmatprep.subr.bf16.mxu0 %v21613_v33  ;;  %13202 = vmatprep.subr.bf16.mxu1 %v21779_v48  ;;  %v21814_v33 = vld [vmem:[%s17723_s25 + $0x498] ss:$400 sps:$4 sm:$0xff]  }
 0x4fb   : > { %13150 = vmatpush1.bf16.msra.mxu0 %v21619_v41  ;;  %13203 = vmatpush1.bf16.msra.mxu1 %v21784_v62  ;;  %v21819_v41 = vld [vmem:[%s17723_s25 + $0x180] ss:$400 sps:$4 sm:$0xff]  }
 0x4fc   : > { %13151 = vmatprep.subr.bf16.mxu0 %v21625_v51  ;;  %13204 = vmatprep.subr.bf16.mxu1 %v21789_v19  ;;  %v13745_v51 = vadd.s32 9216, %v18176_v42 }
 0x4fe   : > { %v13839_v16 = vand.u32 127, %v13745_v51 }
 0x4ff   : > { %13152 = vmatpush1.bf16.msra.mxu0 %v21631_v45  ;;  %13205 = vmatpush1.bf16.msra.mxu1 %v21794_v18  ;;  %v21825_v45 = vld [vmem:[%s17723_s25 + $0x17c] ss:$400 sps:$4 sm:$0xff]  }
 0x500   : > { %13153 = vmatprep.subr.bf16.mxu0 %v21637_v50  ;;  %13206 = vmatprep.subr.bf16.mxu1 %v21799_v13  ;;  %vm21846_vm13 = vcmp.lt.s32.totalorder %v13839_v16, 94 }
 0x503   : > { %13154 = vmatpush1.bf16.msra.mxu0 %v21654_v60  ;;  %13207 = vmatpush1.bf16.msra.mxu1 %v21804_v32 }
 0x504   : > { %13155 = vmatprep.subr.bf16.mxu0 %v21661_v46  ;;  %13208 = vmatprep.subr.bf16.mxu1 %v21809_v29 }
 0x507   : > { %13156 = vmatpush1.bf16.msra.mxu0 %v21681_v61  ;;  %13209 = vmatpush1.bf16.msra.mxu1 %v21814_v33 }
 0x508   : > { %13157 = vmatprep.subr.bf16.mxu0 %v21779_v48  ;;  %13210 = vmatprep.subr.bf16.mxu1 %v21819_v41 }
 0x50b   : > { %13158 = vmatpush1.bf16.msra.mxu0 %v21784_v62  ;;  %13211 = vmatpush1.bf16.msra.mxu1 %v21825_v45 }
 0x50c   : > { %13159 = vmatprep.subr.bf16.mxu0 %v21789_v19  ;;  %13212 = vmatprep.subr.bf16.mxu1 %v21831_v10 }
 0x50d   : > { %v12747_v2 = vpop.f32.mrb[144].mxu0  ;;  %v12800_v35 = vpop.f32.mrb[144].mxu1 }
 0x50e   : > { %v12748_v59 = vadd.f32 %v12747_v2, %v18183_v44  ;;  %v12749_v25 = vpop.f32.mrb[145].mxu0  ;;  %v12801_v34 = vadd.f32 %v12800_v35, %v18183_v44  ;;  %v12802_v8 = vpop.f32.mrb[145].mxu1 }
 0x50f   : > { %v12750_v15 = vadd.f32 %v12749_v25, %v18183_v44  ;;  %v12751_v27 = vpop.f32.mrb[146].mxu0  ;;  %13160 = vmatpush1.bf16.msra.mxu0 %v21794_v18  ;;  %13213 = vmatpush1.bf16.msra.mxu1 %v21837_v38  ;;  %v12803_v31 = vadd.f32 %v12802_v8, %v18183_v44  ;;  %v12804_v20 = vpop.f32.mrb[146].mxu1 }
 0x510   : > { %v13368_v37 = vmax.f32 %v12748_v59, 0.0  ;;  %v12752_v24 = vadd.f32 %v12751_v27, %v18205_v53  ;;  %v12753_v1 = vpop.f32.mrb[147].mxu0  ;;  %v13370_v54 = vmax.f32 %v12801_v34, 0.0  ;;  %13161 = vmatprep.subr.bf16.mxu0 %v21799_v13  ;;  %13214 = vmatprep.subr.bf16.mxu1 %v21843_v12  ;;  %v12805_v4 = vadd.f32 %v12804_v20, %v18205_v53  ;;  %v12806_v57 = vpop.f32.mrb[147].mxu1 }
 0x511   : > { %v13369_v7 = vmax.f32 %v12750_v15, 0.0  ;;  %v12754_v11 = vadd.f32 %v12753_v1, %v18205_v53  ;;  %v12807_v14 = vadd.f32 %v12806_v57, %v18205_v53  ;;  %v13371_v47 = vmax.f32 %v12803_v31, 0.0 }
 0x512   : > { %v14215_v39 = vsel %vm21846_vm13, %v13368_v37, 0.0  ;;  %v13462_v9 = vmax.f32 %v12752_v24, 0.0  ;;  %v13464_v51 = vmax.f32 %v12805_v4, 0.0 }
 0x513   : > { %v14590_v0 = vadd.f32 %v21707_v21, %v14215_v39  ;;  %v14216_v17 = vsel %vm21852_vm14, %v13369_v7, 0.0  ;;  %v13463_v16 = vmax.f32 %v12754_v11, 0.0  ;;  %13162 = vmatpush1.bf16.msra.mxu0 %v21804_v32  ;;  %13215 = vmatpush1.bf16.msra.mxu1 %v21860_v28  ;;  %v14217_v21 = vsel %vm21870_vm15, %v13370_v54, 0.0 }
 0x514   : > { %v14309_v2 = vsel %vm21846_vm13, %v13462_v9, 0.0  ;;  %v13465_v35 = vmax.f32 %v12807_v14, 0.0  ;;  %13163 = vmatprep.subr.bf16.mxu0 %v21809_v29  ;;  %13216 = vmatprep.subr.bf16.mxu1 %v21867_v52  ;;  %v14218_v15 = vsel %vm21880_vm1, %v13371_v47, 0.0  ;;  %v14311_v27 = vsel %vm21870_vm15, %v13464_v51, 0.0 }
 0x515   : > { %v14591_v56 = vadd.f32 %v14590_v0, %v14216_v17  ;;  %v14685_v59 = vadd.f32 %v21715_v26, %v14309_v2  ;;  %v14310_v25 = vsel %vm21852_vm14, %v13463_v16, 0.0  ;;  %v12757_v34 = vpop.f32.mrb[148].mxu0  ;;  %v12810_v8 = vpop.f32.mrb[148].mxu1 }
 0x516   : > { %v12758_v31 = vadd.f32 %v12757_v34, %v18210_v55  ;;  %v12759_v22 = vpop.f32.mrb[149].mxu0  ;;  %v12811_v20 = vadd.f32 %v12810_v8, %v18210_v55  ;;  %v12812_v37 = vpop.f32.mrb[149].mxu1  ;;  %v14312_v26 = vsel %vm21880_vm1, %v13465_v35, 0.0 }
 0x517   : > { %v14686_v24 = vadd.f32 %v14685_v59, %v14310_v25  ;;  %v14592_v1 = vadd.f32 %v14591_v56, %v14217_v21  ;;  %v12760_v54 = vadd.f32 %v12759_v22, %v18210_v55  ;;  %v12761_v4 = vpop.f32.mrb[150].mxu0  ;;  %13164 = vmatpush1.bf16.msra.mxu0 %v21814_v33  ;;  %13217 = vmatpush1.bf16.msra.mxu1 %v21887_v3  ;;  %v12814_v57 = vpop.f32.mrb[150].mxu1  ;;  %v21920_v56 = vld [vmem:[%s22364_s1] ss:$8 sps:$4 sm:$0xff]  }
 0x518   : > { %v13556_v7 = vmax.f32 %v12758_v31, 0.0  ;;  %v12762_v11 = vadd.f32 %v12761_v4, %v18258_v49  ;;  %v12763_v14 = vpop.f32.mrb[151].mxu0  ;;  %v13558_v39 = vmax.f32 %v12811_v20, 0.0  ;;  %v12813_v9 = vadd.f32 %v12812_v37, %v18210_v55  ;;  %13243 = vmatprep.subr.bf16.mxu0 %v21637_v50  ;;  %v12816_v47 = vpop.f32.mrb[151].mxu1 }
 0x519   : > { %v21912_v51 = vadd.f32 %v14592_v1, %v14218_v15  ;;  %v14687_v0 = vadd.f32 %v14686_v24, %v14311_v27  ;;  %v13557_v17 = vmax.f32 %v12760_v54, 0.0  ;;  %v12764_v16 = vadd.f32 %v12763_v14, %v18258_v49  ;;  %v17624_v14 = vld [vmem:[%s17723_s25 + $0x188] ss:$400 sps:$4 sm:$0xff]  }
 0x51a   : > { %v14403_v2 = vsel %vm21846_vm13, %v13556_v7, 0.0  ;;  %v13650_v21 = vmax.f32 %v12762_v11, 0.0  ;;  %v13559_v35 = vmax.f32 %v12813_v9, 0.0  ;;  %13170 = vmatmul.mubr.bf16.vlgmr.msra.gmra.mrb[176].mxu0 %v21920_v56  ;;  %13223 = vmatmul.mubr.bf16.vlgmr.msra.gmra.mrb[176].mxu1 %v21920_v56  ;;  %v14405_v15 = vsel %vm21870_vm15, %v13558_v39, 0.0 }
 0x51b   : > { %v14780_v50 = vadd.f32 %v21746_v6, %v14403_v2  ;;  %v21925_v59 = vadd.f32 %v14687_v0, %v14312_v26  ;;  %v14404_v25 = vsel %vm21852_vm14, %v13557_v17, 0.0  ;;  %v13651_v34 = vmax.f32 %v12764_v16, 0.0  ;;  %13244 = vmatpush1.bf16.msra.mxu0 %v21654_v60  ;;  %16865 = vmatprep.mubr.msk.bf16.mxu0 %vm10798_vm0, %v21338_v63 }
 0x51c   : > { %v14497_v8 = vsel %vm21846_vm13, %v13650_v21, 0.0  ;;  %v12815_v27 = vadd.f32 %v12814_v57, %v18258_v49  ;;  %v12817_v6 = vadd.f32 %v12816_v47, %v18258_v49  ;;  %13245 = vmatprep.subr.bf16.mxu0 %v21661_v46  ;;  %16867 = vmatprep.mubr.msk.bf16.mxu1 %vm10798_vm0, %v21338_v63  ;;  %v14406_v5 = vsel %vm21880_vm1, %v13559_v35, 0.0  ;;  %v17629_v21 = vld [vmem:[%s17723_s25 + $0x4ac] ss:$400 sps:$4 sm:$0xff]  }
 0x51d   : > { %v14781_v31 = vadd.f32 %v14780_v50, %v14404_v25  ;;  %v14875_v60 = vadd.f32 %v21755_v58, %v14497_v8  ;;  %v14498_v22 = vsel %vm21852_vm14, %v13651_v34, 0.0  ;;  %v13753_v4 = vadd.s32 10240, %v18176_v42 }
 0x51e   : > { %v13652_v20 = vmax.f32 %v12815_v27, 0.0  ;;  %v13653_v37 = vmax.f32 %v12817_v6, 0.0  ;;  %v13755_v7 = vadd.s32 10496, %v18176_v42 }
 0x51f   : > { %v14876_v24 = vadd.f32 %v14875_v60, %v14498_v22  ;;  %v14782_v1 = vadd.f32 %v14781_v31, %v14405_v15  ;;  %13246 = vmatpush1.bf16.msra.mxu0 %v21681_v61  ;;  %v17620_v61 = vld [vmem:[%s17723_s25 + $0x188] ss:$400 sps:$4 sm:$0xff]  }
 0x520   : > { %v14499_v46 = vsel %vm21870_vm15, %v13652_v20, 0.0  ;;  %v14500_v63 = vsel %vm21880_vm1, %v13653_v37, 0.0  ;;  %13247 = vmatprep.subr.bf16.mxu0 %v21779_v48  ;;  %v17618_v48 = vld [vmem:[%s17723_s25 + $0x184] ss:$400 sps:$4 sm:$0xff]  }
 0x521   : > { %v21952_v58 = vadd.f32 %v14782_v1, %v14406_v5  ;;  %v14877_v30 = vadd.f32 %v14876_v24, %v14499_v46  ;;  %v17627_v5 = vld [vmem:[%s17723_s25 + $0x4a8] ss:$400 sps:$4 sm:$0xff]  }
 0x522   : > { %13180 = vmatmul.mubr.bf16.gmra.mrb[180].mxu0 %v21751_v40  ;;  %13233 = vmatmul.mubr.bf16.gmra.mrb[180].mxu1 %v21751_v40 }
 0x523   : > { %v21956_v26 = vadd.f32 %v14877_v30, %v14500_v63  ;;  %13248 = vmatpush1.bf16.msra.mxu0 %v21784_v62  ;;  %16868 = vmatprep.mubr.msk.bf16.mxu0 %vm10798_vm0, %v21764_v23  ;;  %v13749_v23 = vadd.s32 9728, %v18176_v42  ;;  %v13750_v62 = vadd.s32 9856, %v18176_v42 }
 0x524   : > { %13249 = vmatprep.subr.bf16.mxu0 %v21789_v19  ;;  %v13751_v19 = vadd.s32 9984, %v18176_v42 }
 0x527   : > { %13250 = vmatpush1.bf16.msra.mxu0 %v21794_v18  ;;  %v17623_v18 = vld [vmem:[%s17723_s25 + $0x4a8] ss:$400 sps:$4 sm:$0xff]  }
 0x528   : > { %13251 = vmatprep.subr.bf16.mxu0 %v21799_v13  ;;  %v13843_v13 = vand.u32 127, %v13749_v23 }
 0x52a   : > { %vm21985_vm2 = vcmp.lt.s32.totalorder %v13843_v13, 94 }
 0x52b   : > { %13252 = vmatpush1.bf16.msra.mxu0 %v21804_v32  ;;  %v13752_v32 = vadd.s32 10112, %v18176_v42 }
 0x52c   : > { %13253 = vmatprep.subr.bf16.mxu0 %v21809_v29  ;;  %v13844_v29 = vand.u32 127, %v13750_v62 }
 0x52e   : > { %vm21991_vm3 = vcmp.lt.s32.totalorder %v13844_v29, 94 }
 0x52f   : > { %13254 = vmatpush1.bf16.msra.mxu0 %v21814_v33  ;;  %v17621_v33 = vld [vmem:[%s17723_s25 + $0x4a4] ss:$400 sps:$4 sm:$0xff]  }
 0x530   : > { %13255 = vmatprep.subr.bf16.mxu0 %v21819_v41  ;;  %v13845_v41 = vand.u32 127, %v13751_v19 }
 0x532   : > { %vm21995_vm4 = vcmp.lt.s32.totalorder %v13845_v41, 94 }
 0x533   : > { %13256 = vmatpush1.bf16.msra.mxu0 %v21825_v45  ;;  %v17626_v45 = vld [vmem:[%s17723_s25 + $0x18c] ss:$400 sps:$4 sm:$0xff]  }
 0x534   : > { %13257 = vmatprep.subr.bf16.mxu0 %v21831_v10 }
 0x537   : > { %13258 = vmatpush1.bf16.msra.mxu0 %v21837_v38 }
 0x538   : > { %13259 = vmatprep.subr.bf16.mxu0 %v21843_v12 }
 0x53b   : > { %13260 = vmatpush1.bf16.msra.mxu0 %v21860_v28 }
 0x53c   : > { %13261 = vmatprep.subr.bf16.mxu0 %v21867_v52 }
 0x53f   : > { %13262 = vmatpush1.bf16.msra.mxu0 %v21887_v3  ;;  %v13846_v3 = vand.u32 127, %v13752_v32 }
 0x540   : > { %13263 = vmatprep.subr.bf16.mxu0 %v17620_v61 }
 0x541   : > { %vm22008_vm5 = vcmp.lt.s32.totalorder %v13846_v3, 94 }
 0x543   : > { %13264 = vmatpush1.bf16.msra.mxu0 %v17618_v48 }
 0x544   : > { %13265 = vmatprep.subr.bf16.mxu0 %v17623_v18 }
 0x545   : > { %v12853_v10 = vpop.f32.mrb[152].mxu0  ;;  %v12906_v38 = vpop.f32.mrb[152].mxu1 }
 0x546   : > { %v12854_v12 = vadd.f32 %v12853_v10, %v18183_v44  ;;  %v12855_v52 = vpop.f32.mrb[153].mxu0  ;;  %v12907_v43 = vadd.f32 %v12906_v38, %v18183_v44  ;;  %v12908_v36 = vpop.f32.mrb[153].mxu1 }
 0x547   : > { %v12856_v54 = vadd.f32 %v12855_v52, %v18183_v44  ;;  %v12857_v57 = vpop.f32.mrb[154].mxu0  ;;  %13266 = vmatpush1.bf16.msra.mxu0 %v17621_v33  ;;  %v12909_v11 = vadd.f32 %v12908_v36, %v18183_v44  ;;  %v12910_v39 = vpop.f32.mrb[154].mxu1 }
 0x548   : > { %v13372_v9 = vmax.f32 %v12854_v12, 0.0  ;;  %v12858_v47 = vadd.f32 %v12857_v57, %v18205_v53  ;;  %v12859_v0 = vpop.f32.mrb[155].mxu0  ;;  %v13374_v17 = vmax.f32 %v12907_v43, 0.0  ;;  %13267 = vmatprep.subr.bf16.mxu0 %v17626_v45  ;;  %v12911_v16 = vadd.f32 %v12910_v39, %v18205_v53  ;;  %v12912_v2 = vpop.f32.mrb[155].mxu1 }
 0x549   : > { %v13373_v35 = vmax.f32 %v12856_v54, 0.0  ;;  %v12860_v50 = vadd.f32 %v12859_v0, %v18205_v53  ;;  %v13375_v25 = vmax.f32 %v12909_v11, 0.0  ;;  %v12913_v34 = vadd.f32 %v12912_v2, %v18205_v53  ;;  %v17657_v2 = vld [vmem:[%s22364_s1 + $0x14] ss:$8 sps:$4 sm:$0xff]  }
 0x54a   : > { %v14219_v8 = vsel %vm21985_vm2, %v13372_v9, 0.0  ;;  %v13466_v15 = vmax.f32 %v12858_v47, 0.0  ;;  %v13468_v6 = vmax.f32 %v12911_v16, 0.0  ;;  %v14221_v37 = vsel %vm21995_vm4, %v13374_v17, 0.0 }
 0x54b   : > { %v14594_v31 = vadd.f32 %v21912_v51, %v14219_v8  ;;  %v14220_v60 = vsel %vm21991_vm3, %v13373_v35, 0.0  ;;  %v13467_v22 = vmax.f32 %v12860_v50, 0.0  ;;  %13268 = vmatpush1.bf16.msra.mxu0 %v17624_v14  ;;  %v13469_v24 = vmax.f32 %v12913_v34, 0.0 }
 0x54c   : > { %v14313_v20 = vsel %vm21985_vm2, %v13466_v15, 0.0  ;;  %13269 = vmatprep.subr.bf16.mxu0 %v17629_v21  ;;  %v14222_v63 = vsel %vm22008_vm5, %v13375_v25, 0.0  ;;  %v14315_v23 = vsel %vm21995_vm4, %v13468_v6, 0.0 }
 0x54d   : > { %v14595_v1 = vadd.f32 %v14594_v31, %v14220_v60  ;;  %v14689_v46 = vadd.f32 %v21925_v59, %v14313_v20  ;;  %v14314_v51 = vsel %vm21991_vm3, %v13467_v22, 0.0  ;;  %v12863_v30 = vpop.f32.mrb[156].mxu0  ;;  %v12916_v61 = vpop.f32.mrb[156].mxu1  ;;  %v14316_v62 = vsel %vm22008_vm5, %v13469_v24, 0.0 }
 0x54e   : > { %v12864_v48 = vadd.f32 %v12863_v30, %v18210_v55  ;;  %v12865_v19 = vpop.f32.mrb[157].mxu0  ;;  %v12917_v18 = vadd.f32 %v12916_v61, %v18210_v55  ;;  %v12918_v59 = vpop.f32.mrb[157].mxu1  ;;  %v13754_v20 = vadd.s32 10368, %v18176_v42  ;;  %v13756_v24 = vadd.s32 10624, %v18176_v42 }
 0x54f   : > { %v14690_v13 = vadd.f32 %v14689_v46, %v14314_v51  ;;  %v14596_v32 = vadd.f32 %v14595_v1, %v14221_v37  ;;  %v12866_v29 = vadd.f32 %v12865_v19, %v18210_v55  ;;  %v12867_v33 = vpop.f32.mrb[158].mxu0  ;;  %13270 = vmatpush1.bf16.msra.mxu0 %v17627_v5  ;;  %v12919_v41 = vadd.f32 %v12918_v59, %v18210_v55  ;;  %v12920_v45 = vpop.f32.mrb[158].mxu1 }
 0x550   : > { %v13560_v10 = vmax.f32 %v12864_v48, 0.0  ;;  %v12868_v38 = vadd.f32 %v12867_v33, %v18258_v49  ;;  %v12869_v12 = vpop.f32.mrb[159].mxu0  ;;  %v13562_v52 = vmax.f32 %v12917_v18, 0.0  ;;  %v12921_v43 = vadd.f32 %v12920_v45, %v18258_v49  ;;  %v12922_v36 = vpop.f32.mrb[159].mxu1 }
 0x551   : > { %v22035_v3 = vadd.f32 %v14596_v32, %v14222_v63  ;;  %v14691_v54 = vadd.f32 %v14690_v13, %v14315_v23  ;;  %v13561_v57 = vmax.f32 %v12866_v29, 0.0  ;;  %v12870_v11 = vadd.f32 %v12869_v12, %v18258_v49 }
 0x552   : > { %v14407_v14 = vsel %vm21985_vm2, %v13560_v10, 0.0  ;;  %v13654_v39 = vmax.f32 %v12868_v38, 0.0  ;;  %v13563_v9 = vmax.f32 %v12919_v41, 0.0  ;;  %13276 = vmatmul.mubr.bf16.vlgmr.msra.gmra.mrb[184].mxu0 %v21920_v56  ;;  %v14409_v35 = vsel %vm21995_vm4, %v13562_v52, 0.0 }
 0x553   : > { %v14784_v47 = vadd.f32 %v21952_v58, %v14407_v14  ;;  %v14692_v0 = vadd.f32 %v14691_v54, %v14316_v62  ;;  %v14408_v17 = vsel %vm21991_vm3, %v13561_v57, 0.0  ;;  %v13655_v16 = vmax.f32 %v12870_v11, 0.0  ;;  %16869 = vmatprep.mubr.msk.bf16.mxu0 %vm10798_vm0, %v17657_v2 }
 0x554   : > { %v14501_v21 = vsel %vm21985_vm2, %v13654_v39, 0.0  ;;  %v13656_v56 = vmax.f32 %v12921_v43, 0.0  ;;  %v12923_v58 = vadd.f32 %v12922_v36, %v18258_v49  ;;  %v14410_v8 = vsel %vm22008_vm5, %v13563_v9, 0.0 }
 0x555   : > { %v14785_v50 = vadd.f32 %v14784_v47, %v14408_v17  ;;  %v14879_v25 = vadd.f32 %v21956_v26, %v14501_v21  ;;  %v14502_v34 = vsel %vm21991_vm3, %v13655_v16, 0.0  ;;  %v13847_v37 = vand.u32 127, %v13753_v4 }
 0x556   : > { %v14503_v15 = vsel %vm21995_vm4, %v13656_v56, 0.0  ;;  %v13657_v28 = vmax.f32 %v12923_v58, 0.0  ;;  %v13848_v1 = vand.u32 127, %v13754_v20  ;;  %v13849_v30 = vand.u32 127, %v13755_v7 }
 0x557   : > { %v14880_v6 = vadd.f32 %v14879_v25, %v14502_v34  ;;  %v14786_v31 = vadd.f32 %v14785_v50, %v14409_v35  ;;  %vm22073_vm0 = vcmp.lt.s32.totalorder %v13847_v37, 94  ;;  %v13850_v19 = vand.u32 127, %v13756_v24 }
 0x558   : > { %v14504_v60 = vsel %vm22008_vm5, %v13657_v28, 0.0  ;;  %vm22079_vm6 = vcmp.lt.s32.totalorder %v13848_v1, 94  ;;  %vm22089_vm7 = vcmp.lt.s32.totalorder %v13849_v30, 94  ;;  %v13759_v32 = vadd.s32 11008, %v18176_v42 }
 0x559   : > { %v22062_v22 = vadd.f32 %v14786_v31, %v14410_v8  ;;  %v14881_v5 = vadd.f32 %v14880_v6, %v14503_v15  ;;  %vm22096_vm8 = vcmp.lt.s32.totalorder %v13850_v19, 94  ;;  %vm17668_vm4 = vmmov 0  }
 0x55a   : > { %13286 = vmatmul.mubr.bf16.gmra.mrb[188].mxu0 %v21751_v40  ;;  %v13853_v9 = vand.u32 127, %v13759_v32  ;;  %vm14905_vm5 = vcmask 261120  }
 0x55b   : > { %v22065_v26 = vadd.f32 %v14881_v5, %v14504_v60 }
 0x55c   : > { %vm22164_vm11 = vcmp.lt.s32.totalorder %v13853_v9, 94 }
 0x57d   : > { %v12959_v46 = vpop.f32.mrb[160].mxu0  ;;  %v13012_v27 = vpop.f32.mrb[160].mxu1 }
 0x57e   : > { %v12960_v51 = vadd.f32 %v12959_v46, %v18183_v44  ;;  %v13013_v63 = vadd.f32 %v13012_v27, %v18183_v44  ;;  %v12961_v40 = vpop.f32.mrb[161].mxu0  ;;  %v13014_v61 = vpop.f32.mrb[161].mxu1 }
 0x57f   : > { %v12962_v48 = vadd.f32 %v12961_v40, %v18183_v44  ;;  %v13015_v62 = vadd.f32 %v13014_v61, %v18183_v44  ;;  %v12963_v18 = vpop.f32.mrb[162].mxu0  ;;  %v13016_v59 = vpop.f32.mrb[162].mxu1 }
 0x580   : > { %v13376_v13 = vmax.f32 %v12960_v51, 0.0  ;;  %v12964_v29 = vadd.f32 %v12963_v18, %v18205_v53  ;;  %v13017_v33 = vadd.f32 %v13016_v59, %v18205_v53  ;;  %v12965_v41 = vpop.f32.mrb[163].mxu0  ;;  %v13018_v45 = vpop.f32.mrb[163].mxu1  ;;  %v13378_v43 = vmax.f32 %v13013_v63, 0.0 }
 0x581   : > { %v13377_v10 = vmax.f32 %v12962_v48, 0.0  ;;  %v12966_v38 = vadd.f32 %v12965_v41, %v18205_v53  ;;  %v13019_v12 = vadd.f32 %v13018_v45, %v18205_v53  ;;  %v13379_v14 = vmax.f32 %v13015_v62, 0.0 }
 0x582   : > { %v14223_v52 = vsel %vm22073_vm0, %v13376_v13, 0.0  ;;  %v13470_v54 = vmax.f32 %v12964_v29, 0.0  ;;  %v13472_v17 = vmax.f32 %v13017_v33, 0.0  ;;  %v14225_v58 = vsel %vm22089_vm7, %v13378_v43, 0.0 }
 0x583   : > { %v14598_v57 = vadd.f32 %v22035_v3, %v14223_v52  ;;  %v14224_v11 = vsel %vm22079_vm6, %v13377_v10, 0.0  ;;  %v13471_v39 = vmax.f32 %v12966_v38, 0.0  ;;  %v13473_v35 = vmax.f32 %v13019_v12, 0.0 }
 0x584   : > { %v14317_v47 = vsel %vm22073_vm0, %v13470_v54, 0.0  ;;  %v14226_v15 = vsel %vm22096_vm8, %v13379_v14, 0.0  ;;  %v14319_v5 = vsel %vm22089_vm7, %v13472_v17, 0.0 }
 0x585   : > { %v14599_v16 = vadd.f32 %v14598_v57, %v14224_v11  ;;  %v14693_v2 = vadd.f32 %v14692_v0, %v14317_v47  ;;  %v14318_v21 = vsel %vm22079_vm6, %v13471_v39, 0.0  ;;  %v12969_v3 = vpop.f32.mrb[164].mxu0  ;;  %v13022_v56 = vpop.f32.mrb[164].mxu1  ;;  %v14320_v46 = vsel %vm22096_vm8, %v13473_v35, 0.0 }
 0x586   : > { %v12970_v50 = vadd.f32 %v12969_v3, %v18210_v55  ;;  %v13023_v25 = vadd.f32 %v13022_v56, %v18210_v55  ;;  %v12971_v34 = vpop.f32.mrb[165].mxu0  ;;  %v13024_v8 = vpop.f32.mrb[165].mxu1  ;;  %v13757_v39 = vadd.s32 10752, %v18176_v42  ;;  %v13758_v47 = vadd.s32 10880, %v18176_v42 }
 0x587   : > { %v14600_v28 = vadd.f32 %v14599_v16, %v14225_v58  ;;  %v14694_v0 = vadd.f32 %v14693_v2, %v14318_v21  ;;  %v12972_v6 = vadd.f32 %v12971_v34, %v18210_v55  ;;  %v12973_v31 = vpop.f32.mrb[166].mxu0  ;;  %v13026_v60 = vpop.f32.mrb[166].mxu1  ;;  %v13025_v20 = vadd.f32 %v13024_v8, %v18210_v55 }
 0x588   : > { %v13564_v4 = vmax.f32 %v12970_v50, 0.0  ;;  %v12974_v7 = vadd.f32 %v12973_v31, %v18258_v49  ;;  %v12975_v37 = vpop.f32.mrb[167].mxu0  ;;  %v13028_v24 = vpop.f32.mrb[167].mxu1  ;;  %v13566_v30 = vmax.f32 %v13023_v25, 0.0  ;;  %v13027_v61 = vadd.f32 %v13026_v60, %v18258_v49 }
 0x589   : > { %v14601_v1 = vadd.f32 %v14600_v28, %v14226_v15  ;;  %v14695_v27 = vadd.f32 %v14694_v0, %v14319_v5  ;;  %v13565_v51 = vmax.f32 %v12972_v6, 0.0  ;;  %v13567_v18 = vmax.f32 %v13025_v20, 0.0 }
 0x58a   : > { %v14411_v63 = vsel %vm22073_vm0, %v13564_v4, 0.0  ;;  %v13658_v40 = vmax.f32 %v12974_v7, 0.0  ;;  %v12976_v13 = vadd.f32 %v12975_v37, %v18258_v49  ;;  %v13029_v29 = vadd.f32 %v13028_v24, %v18258_v49 }
 0x58b   : > { %v14696_v48 = vadd.f32 %v14695_v27, %v14320_v46  ;;  %v14788_v62 = vadd.f32 %v22062_v22, %v14411_v63  ;;  %v14412_v19 = vsel %vm22079_vm6, %v13565_v51, 0.0  ;;  %v14413_v45 = vsel %vm22089_vm7, %v13566_v30, 0.0 }
 0x58c   : > { %v14505_v59 = vsel %vm22073_vm0, %v13658_v40, 0.0  ;;  %v13660_v10 = vmax.f32 %v13027_v61, 0.0  ;;  %v13659_v38 = vmax.f32 %v12976_v13, 0.0  ;;  %v14414_v12 = vsel %vm22096_vm8, %v13567_v18, 0.0 }
 0x58d   : > { %v14789_v33 = vadd.f32 %v14788_v62, %v14412_v19  ;;  %v14883_v41 = vadd.f32 %v22065_v26, %v14505_v59  ;;  %v13661_v52 = vmax.f32 %v13029_v29, 0.0  ;;  %v13851_v17 = vand.u32 127, %v13757_v39 }
 0x58e   : > { %v14506_v23 = vsel %vm22079_vm6, %v13659_v38, 0.0  ;;  %v14507_v57 = vsel %vm22089_vm7, %v13660_v10, 0.0  ;;  %v13760_v16 = vadd.s32 11136, %v18176_v42  ;;  %v13852_v2 = vand.u32 127, %v13758_v47 }
 0x58f   : > { %v14790_v22 = vadd.f32 %v14789_v33, %v14413_v45  ;;  %v14884_v54 = vadd.f32 %v14883_v41, %v14506_v23  ;;  %v14508_v11 = vsel %vm22096_vm8, %v13661_v52, 0.0  ;;  %vm22148_vm9 = vcmp.lt.s32.totalorder %v13851_v17, 94 }
 0x590   : > { %v13854_v8 = vand.u32 127, %v13760_v16  ;;  %vm22154_vm10 = vcmp.lt.s32.totalorder %v13852_v2, 94  ;;  %v13763_v6 = vadd.s32 11520, %v18176_v42  ;;  %vm15394_vm0 = vcmask 2048  }
 0x591   : > { %v22134_v43 = vadd.f32 %v14790_v22, %v14414_v12  ;;  %v14885_v26 = vadd.f32 %v14884_v54, %v14507_v57 }
 0x592   : > { %vm22170_vm12 = vcmp.lt.s32.totalorder %v13854_v8, 94  ;;  %v13857_v62 = vand.u32 127, %v13763_v6 }
 0x593   : > { %v22140_v14 = vadd.f32 %v14885_v26, %v14508_v11 }
 0x594   : > { %vm22238_vm15 = vcmp.lt.s32.totalorder %v13857_v62, 94 }
 0x5b5   : > { %v13065_v21 = vpop.f32.mrb[168].mxu0  ;;  %v13118_v35 = vpop.f32.mrb[168].mxu1 }
 0x5b6   : > { %v13066_v36 = vadd.f32 %v13065_v21, %v18183_v44  ;;  %v13119_v3 = vadd.f32 %v13118_v35, %v18183_v44  ;;  %v13067_v56 = vpop.f32.mrb[169].mxu0  ;;  %v13120_v58 = vpop.f32.mrb[169].mxu1 }
 0x5b7   : > { %v13068_v25 = vadd.f32 %v13067_v56, %v18183_v44  ;;  %v13121_v34 = vadd.f32 %v13120_v58, %v18183_v44  ;;  %v13069_v15 = vpop.f32.mrb[170].mxu0  ;;  %v13122_v28 = vpop.f32.mrb[170].mxu1 }
 0x5b8   : > { %v13380_v0 = vmax.f32 %v13066_v36, 0.0  ;;  %v13070_v31 = vadd.f32 %v13069_v15, %v18205_v53  ;;  %v13123_v60 = vadd.f32 %v13122_v28, %v18205_v53  ;;  %v13071_v5 = vpop.f32.mrb[171].mxu0  ;;  %v13124_v4 = vpop.f32.mrb[171].mxu1  ;;  %v13382_v46 = vmax.f32 %v13119_v3, 0.0 }
 0x5b9   : > { %v13381_v20 = vmax.f32 %v13068_v25, 0.0  ;;  %v13072_v7 = vadd.f32 %v13071_v5, %v18205_v53  ;;  %v13125_v37 = vadd.f32 %v13124_v4, %v18205_v53  ;;  %v13383_v40 = vmax.f32 %v13121_v34, 0.0 }
 0x5ba   : > { %v14227_v24 = vsel %vm22148_vm9, %v13380_v0, 0.0  ;;  %v13474_v51 = vmax.f32 %v13070_v31, 0.0  ;;  %v13476_v18 = vmax.f32 %v13123_v60, 0.0  ;;  %v14229_v45 = vsel %vm22164_vm11, %v13382_v46, 0.0 }
 0x5bb   : > { %v14602_v63 = vadd.f32 %v14601_v1, %v14227_v24  ;;  %v14228_v30 = vsel %vm22154_vm10, %v13381_v20, 0.0  ;;  %v13475_v61 = vmax.f32 %v13072_v7, 0.0  ;;  %v13477_v33 = vmax.f32 %v13125_v37, 0.0 }
 0x5bc   : > { %v14321_v19 = vsel %vm22148_vm9, %v13474_v51, 0.0  ;;  %v14230_v23 = vsel %vm22170_vm12, %v13383_v40, 0.0  ;;  %v14323_v11 = vsel %vm22164_vm11, %v13476_v18, 0.0 }
 0x5bd   : > { %v14603_v59 = vadd.f32 %v14602_v63, %v14228_v30  ;;  %v14697_v13 = vadd.f32 %v14696_v48, %v14321_v19  ;;  %v14322_v29 = vsel %vm22154_vm10, %v13475_v61, 0.0  ;;  %v13075_v1 = vpop.f32.mrb[172].mxu0  ;;  %v13128_v41 = vpop.f32.mrb[172].mxu1  ;;  %v14324_v21 = vsel %vm22170_vm12, %v13477_v33, 0.0 }
 0x5be   : > { %v13076_v10 = vadd.f32 %v13075_v1, %v18210_v55  ;;  %v13129_v38 = vadd.f32 %v13128_v41, %v18210_v55  ;;  %v13077_v22 = vpop.f32.mrb[173].mxu0  ;;  %v13130_v12 = vpop.f32.mrb[173].mxu1  ;;  %v13761_v61 = vadd.s32 11264, %v18176_v42  ;;  %v13762_v19 = vadd.s32 11392, %v18176_v42 }
 0x5bf   : > { %v14604_v52 = vadd.f32 %v14603_v59, %v14229_v45  ;;  %v14698_v48 = vadd.f32 %v14697_v13, %v14322_v29  ;;  %v13078_v54 = vadd.f32 %v13077_v22, %v18210_v55  ;;  %v13079_v57 = vpop.f32.mrb[174].mxu0  ;;  %v13132_v26 = vpop.f32.mrb[174].mxu1  ;;  %v13131_v47 = vadd.f32 %v13130_v12, %v18210_v55 }
 0x5c0   : > { %v13568_v39 = vmax.f32 %v13076_v10, 0.0  ;;  %v13080_v32 = vadd.f32 %v13079_v57, %v18258_v49  ;;  %v13081_v17 = vpop.f32.mrb[175].mxu0  ;;  %v13134_v16 = vpop.f32.mrb[175].mxu1  ;;  %v13570_v9 = vmax.f32 %v13129_v38, 0.0  ;;  %v13133_v58 = vadd.f32 %v13132_v26, %v18258_v49 }
 0x5c1   : > { %v14605_v2 = vadd.f32 %v14604_v52, %v14230_v23  ;;  %v14699_v35 = vadd.f32 %v14698_v48, %v14323_v11  ;;  %v13569_v36 = vmax.f32 %v13078_v54, 0.0  ;;  %v13571_v15 = vmax.f32 %v13131_v47, 0.0 }
 0x5c2   : > { %v14415_v3 = vsel %vm22148_vm9, %v13568_v39, 0.0  ;;  %v13662_v56 = vmax.f32 %v13080_v32, 0.0  ;;  %v13082_v0 = vadd.f32 %v13081_v17, %v18258_v49  ;;  %v13135_v31 = vadd.f32 %v13134_v16, %v18258_v49 }
 0x5c3   : > { %v14700_v25 = vadd.f32 %v14699_v35, %v14324_v21  ;;  %v14792_v34 = vadd.f32 %v22134_v43, %v14415_v3  ;;  %v14416_v8 = vsel %vm22154_vm10, %v13569_v36, 0.0  ;;  %v14417_v4 = vsel %vm22164_vm11, %v13570_v9, 0.0 }
 0x5c4   : > { %v14509_v28 = vsel %vm22148_vm9, %v13662_v56, 0.0  ;;  %v13664_v20 = vmax.f32 %v13133_v58, 0.0  ;;  %v13663_v7 = vmax.f32 %v13082_v0, 0.0  ;;  %v14418_v37 = vsel %vm22170_vm12, %v13571_v15, 0.0 }
 0x5c5   : > { %v14793_v60 = vadd.f32 %v14792_v34, %v14416_v8  ;;  %v14887_v5 = vadd.f32 %v22140_v14, %v14509_v28  ;;  %v13665_v24 = vmax.f32 %v13135_v31, 0.0  ;;  %v13855_v18 = vand.u32 127, %v13761_v61 }
 0x5c6   : > { %v14510_v50 = vsel %vm22154_vm10, %v13663_v7, 0.0  ;;  %v14511_v63 = vsel %vm22164_vm11, %v13664_v20, 0.0  ;;  %v13764_v59 = vadd.s32 11648, %v18176_v42  ;;  %v13856_v13 = vand.u32 127, %v13762_v19 }
 0x5c7   : > { %v14794_v43 = vadd.f32 %v14793_v60, %v14417_v4  ;;  %v14888_v51 = vadd.f32 %v14887_v5, %v14510_v50  ;;  %v14512_v30 = vsel %vm22170_vm12, %v13665_v24, 0.0  ;;  %vm22222_vm13 = vcmp.lt.s32.totalorder %v13855_v18, 94 }
 0x5c8   : > { %v13858_v12 = vand.u32 127, %v13764_v59  ;;  %vm22228_vm14 = vcmp.lt.s32.totalorder %v13856_v13, 94 }
 0x5c9   : > { %v22208_v46 = vadd.f32 %v14794_v43, %v14418_v37  ;;  %v14889_v14 = vadd.f32 %v14888_v51, %v14511_v63 }
 0x5ca   : > { %vm22244_vm1 = vcmp.lt.s32.totalorder %v13858_v12, 94 }
 0x5cb   : > { %v22214_v40 = vadd.f32 %v14889_v14, %v14512_v30 }
 0x5ed   : > { %v13171_v29 = vpop.f32.mrb[176].mxu0  ;;  %v13224_v33 = vpop.f32.mrb[176].mxu1 }
 0x5ee   : > { %v13172_v27 = vadd.f32 %v13171_v29, %v18183_v44  ;;  %v13225_v1 = vadd.f32 %v13224_v33, %v18183_v44  ;;  %v13173_v41 = vpop.f32.mrb[177].mxu0  ;;  %v13226_v45 = vpop.f32.mrb[177].mxu1 }
 0x5ef   : > { %v13174_v38 = vadd.f32 %v13173_v41, %v18183_v44  ;;  %v13227_v22 = vadd.f32 %v13226_v45, %v18183_v44  ;;  %v13175_v23 = vpop.f32.mrb[178].mxu0  ;;  %v13228_v52 = vpop.f32.mrb[178].mxu1 }
 0x5f0   : > { %v13384_v48 = vmax.f32 %v13172_v27, 0.0  ;;  %v13176_v57 = vadd.f32 %v13175_v23, %v18205_v53  ;;  %v13229_v26 = vadd.f32 %v13228_v52, %v18205_v53  ;;  %v13177_v11 = vpop.f32.mrb[179].mxu0  ;;  %v13230_v39 = vpop.f32.mrb[179].mxu1  ;;  %v13386_v21 = vmax.f32 %v13225_v1, 0.0 }
 0x5f1   : > { %v13385_v47 = vmax.f32 %v13174_v38, 0.0  ;;  %v13178_v32 = vadd.f32 %v13177_v11, %v18205_v53  ;;  %v13231_v17 = vadd.f32 %v13230_v39, %v18205_v53  ;;  %v13387_v56 = vmax.f32 %v13227_v22, 0.0 }
 0x5f2   : > { %v14231_v16 = vsel %vm22222_vm13, %v13384_v48, 0.0  ;;  %v13478_v36 = vmax.f32 %v13176_v57, 0.0  ;;  %v13480_v15 = vmax.f32 %v13229_v26, 0.0  ;;  %v14233_v4 = vsel %vm22238_vm15, %v13386_v21, 0.0 }
 0x5f3   : > { %v14606_v3 = vadd.f32 %v14605_v2, %v14231_v16  ;;  %v14232_v9 = vsel %vm22228_vm14, %v13385_v47, 0.0  ;;  %v13479_v58 = vmax.f32 %v13178_v32, 0.0  ;;  %v13481_v60 = vmax.f32 %v13231_v17, 0.0 }
 0x5f4   : > { %v14325_v8 = vsel %vm22222_vm13, %v13478_v36, 0.0  ;;  %v14234_v50 = vsel %vm22244_vm1, %v13387_v56, 0.0  ;;  %v14327_v30 = vsel %vm22238_vm15, %v13480_v15, 0.0 }
 0x5f5   : > { %v14607_v28 = vadd.f32 %v14606_v3, %v14232_v9  ;;  %v14701_v0 = vadd.f32 %v14700_v25, %v14325_v8  ;;  %v14326_v31 = vsel %vm22228_vm14, %v13479_v58, 0.0  ;;  %v13181_v2 = vpop.f32.mrb[180].mxu0  ;;  %v13234_v5 = vpop.f32.mrb[180].mxu1  ;;  %v14328_v29 = vsel %vm22244_vm1, %v13481_v60, 0.0 }
 0x5f6   : > { %v13182_v20 = vadd.f32 %v13181_v2, %v18210_v55  ;;  %v13235_v7 = vadd.f32 %v13234_v5, %v18210_v55  ;;  %v13183_v43 = vpop.f32.mrb[181].mxu0  ;;  %v13236_v37 = vpop.f32.mrb[181].mxu1  ;;  %v13765_v58 = vadd.s32 11776, %v18176_v42  ;;  %v13766_v8 = vadd.s32 11904, %v18176_v42 }
 0x5f7   : > { %v14608_v24 = vadd.f32 %v14607_v28, %v14233_v4  ;;  %v14702_v25 = vadd.f32 %v14701_v0, %v14326_v31  ;;  %v13184_v51 = vadd.f32 %v13183_v43, %v18210_v55  ;;  %v13185_v63 = vpop.f32.mrb[182].mxu0  ;;  %v13238_v14 = vpop.f32.mrb[182].mxu1  ;;  %v13237_v19 = vadd.f32 %v13236_v37, %v18210_v55 }
 0x5f8   : > { %v13572_v61 = vmax.f32 %v13182_v20, 0.0  ;;  %v13186_v6 = vadd.f32 %v13185_v63, %v18258_v49  ;;  %v13187_v18 = vpop.f32.mrb[183].mxu0  ;;  %v13240_v59 = vpop.f32.mrb[183].mxu1  ;;  %v13574_v62 = vmax.f32 %v13235_v7, 0.0  ;;  %v13239_v45 = vadd.f32 %v13238_v14, %v18258_v49 }
 0x5f9   : > { %v14609_v13 = vadd.f32 %v14608_v24, %v14234_v50  ;;  %v14703_v33 = vadd.f32 %v14702_v25, %v14327_v30  ;;  %v13573_v27 = vmax.f32 %v13184_v51, 0.0  ;;  %v13575_v23 = vmax.f32 %v13237_v19, 0.0 }
 0x5fa   : > { %v14419_v1 = vsel %vm22222_vm13, %v13572_v61, 0.0  ;;  %v13666_v41 = vmax.f32 %v13186_v6, 0.0  ;;  %v13188_v48 = vadd.f32 %v13187_v18, %v18258_v49  ;;  %v13241_v57 = vadd.f32 %v13240_v59, %v18258_v49 }
 0x5fb   : > { %v14704_v38 = vadd.f32 %v14703_v33, %v14328_v29  ;;  %v14796_v22 = vadd.f32 %v22208_v46, %v14419_v1  ;;  %v14420_v12 = vsel %vm22228_vm14, %v13573_v27, 0.0  ;;  %v14421_v39 = vsel %vm22238_vm15, %v13574_v62, 0.0 }
 0x5fc   : > { %v14513_v52 = vsel %vm22222_vm13, %v13666_v41, 0.0  ;;  %v13668_v47 = vmax.f32 %v13239_v45, 0.0  ;;  %v13667_v32 = vmax.f32 %v13188_v48, 0.0  ;;  %v14422_v17 = vsel %vm22244_vm1, %v13575_v23, 0.0 }
 0x5fd   : > { %v14797_v26 = vadd.f32 %v14796_v22, %v14420_v12  ;;  %v14891_v11 = vadd.f32 %v22214_v40, %v14513_v52  ;;  %v13669_v16 = vmax.f32 %v13241_v57, 0.0  ;;  %v13859_v15 = vand.u32 127, %v13765_v58  ;;  %v14903_v57 = vld [vmem:[%s22366_s3] sm:$0x7] }
 0x5fe   : > { %v14514_v10 = vsel %vm22228_vm14, %v13667_v32, 0.0  ;;  %v14515_v3 = vsel %vm22238_vm15, %v13668_v47, 0.0  ;;  %v13860_v28 = vand.u32 127, %v13766_v8  ;;  %v17667_v52 = vmov 0.0|0.0  }
 0x5ff   : > { %v14798_v46 = vadd.f32 %v14797_v26, %v14421_v39  ;;  %v14892_v36 = vadd.f32 %v14891_v11, %v14514_v10  ;;  %v14516_v40 = vsel %vm22244_vm1, %v13669_v16, 0.0  ;;  %vm22289_vm2 = vcmp.lt.s32.totalorder %v13859_v15, 94  ;;  %16968 = vmatprep.subr.bf16.mxu1 %v17667_v52 }
 0x600   : > { %vm22295_vm3 = vcmp.lt.s32.totalorder %v13860_v28, 94  ;;  %v17669_v48 = vmov 0.0   ;;  %v14907_v26 = vsel %vm14905_vm5, %v14903_v57, 0 }
 0x601   : > { %v14799_v21 = vadd.f32 %v14798_v46, %v14422_v17  ;;  %v14893_v9 = vadd.f32 %v14892_v36, %v14515_v3  ;;  %16910 = vmatprep.mubr.msk.f32.mxu1 %vm17668_vm4, %v17669_v48  ;;  %v22326_v32 = vand.u32 4294901760, %v14907_v26 }
 0x603   : > { %v14894_v56 = vadd.f32 %v14893_v9, %v14516_v40  ;;  %v14979_v16 = vsub.f32 %v14907_v26, %v22326_v32 }
 0x605   : > { %v14980_v58 = vand.u32 4294901760, %v14979_v16 }
 0x607   : > { %v14981_v60 = vsub.f32 %v14979_v16, %v14980_v58 }
 0x625   : > { %v13277_v0 = vpop.f32.mrb[184].mxu0 }
 0x626   : > { %v13278_v54 = vadd.f32 %v13277_v0, %v18183_v44  ;;  %v13279_v31 = vpop.f32.mrb[185].mxu0 }
 0x627   : > { %v13280_v35 = vadd.f32 %v13279_v31, %v18183_v44  ;;  %v13281_v2 = vpop.f32.mrb[186].mxu0 }
 0x628   : > { %v13388_v34 = vmax.f32 %v13278_v54, 0.0  ;;  %v13282_v5 = vadd.f32 %v13281_v2, %v18205_v53  ;;  %v13283_v4 = vpop.f32.mrb[187].mxu0 }
 0x629   : > { %v13389_v42 = vmax.f32 %v13280_v35, 0.0  ;;  %v13284_v7 = vadd.f32 %v13283_v4, %v18205_v53 }
 0x62a   : > { %v14235_v43 = vsel %vm22289_vm2, %v13388_v34, 0.0  ;;  %v13482_v37 = vmax.f32 %v13282_v5, 0.0 }
 0x62b   : > { %v13483_v50 = vmax.f32 %v13284_v7, 0.0  ;;  %v14236_v44 = vsel %vm22295_vm3, %v13389_v42, 0.0  ;;  %v14610_v24 = vadd.f32 %v14609_v13, %v14235_v43  ;;  %v14982_v42 = vand.u32 4294901760, %v14981_v60 }
 0x62c   : > { %v14329_v25 = vsel %vm22289_vm2, %v13482_v37, 0.0 }
 0x62d   : > { %v13287_v51 = vpop.f32.mrb[188].mxu0  ;;  %v14611_v63 = vadd.f32 %v14610_v24, %v14236_v44  ;;  %v14330_v14 = vsel %vm22295_vm3, %v13483_v50, 0.0  ;;  %v14705_v30 = vadd.f32 %v14704_v38, %v14329_v25 }
 0x62e   : > { %v13288_v53 = vadd.f32 %v13287_v51, %v18210_v55  ;;  %v13289_v61 = vpop.f32.mrb[189].mxu0 }
 0x62f   : > { %v13290_v19 = vadd.f32 %v13289_v61, %v18210_v55  ;;  %v13291_v6 = vpop.f32.mrb[190].mxu0  ;;  %14612 = vadd.xlane.f32.xlu0 %v14611_v63  ;;  %v14706_v18 = vadd.f32 %v14705_v30, %v14330_v14  ;;  %v14904_v61 = vld [vmem:[%s22367_s4] sm:$0x7] }
 0x630   : > { %v13576_v59 = vmax.f32 %v13288_v53, 0.0  ;;  %v13292_v13 = vadd.f32 %v13291_v6, %v18258_v49  ;;  %v13293_v29 = vpop.f32.mrb[191].mxu0 }
 0x631   : > { %v13577_v33 = vmax.f32 %v13290_v19, 0.0  ;;  %v13294_v27 = vadd.f32 %v13293_v29, %v18258_v49  ;;  %14707 = vadd.xlane.f32.xlu1 %v14706_v18 }
 0x632   : > { %v14423_v1 = vsel %vm22289_vm2, %v13576_v59, 0.0  ;;  %v13670_v62 = vmax.f32 %v13292_v13, 0.0 }
 0x633   : > { %v13671_v41 = vmax.f32 %v13294_v27, 0.0  ;;  %v14424_v45 = vsel %vm22295_vm3, %v13577_v33, 0.0  ;;  %v14800_v55 = vadd.f32 %v14799_v21, %v14423_v1 }
 0x634   : > { %v14517_v38 = vsel %vm22289_vm2, %v13670_v62, 0.0 }
 0x635   : > { %v14801_v22 = vadd.f32 %v14800_v55, %v14424_v45  ;;  %v14518_v12 = vsel %vm22295_vm3, %v13671_v41, 0.0  ;;  %v14895_v23 = vadd.f32 %v14894_v56, %v14517_v38 }
 0x637   : > { %14802 = vadd.xlane.f32.xlu0 %v14801_v22  ;;  %v14896_v49 = vadd.f32 %v14895_v23, %v14518_v12 }
 0x63b   : > { %14897 = vadd.xlane.f32.xlu0 %v14896_v49 }
 0x6bc   : > { %v14613_v11 = vpop.xlane.xlu0 %14612 }
 0x6bd   : > { %v14899_v39 = vmul.f32 0.00011317338, %v14613_v11 }
 0x6be   : > { %v14708_v47 = vpop.xlane.xlu1 %14707 }
 0x6bf   : > { %v14910_v46 = vand.u32 4294901760, %v14899_v39  ;;  %v14900_v17 = vmul.f32 0.00011317338, %v14708_v47 }
 0x6c1   : > { %v14913_v10 = vand.u32 4294901760, %v14900_v17  ;;  %v14990_v21 = vsub.f32 %v14899_v39, %v14910_v46 }
 0x6c3   : > { %v16969_v36 = vpack.c.bf16 %v14913_v10, %v14910_v46  ;;  %v14997_v3 = vsub.f32 %v14900_v17, %v14913_v10  ;;  %v14991_v8 = vand.u32 4294901760, %v14990_v21 }
 0x6c4   : > { %v14803_v9 = vpop.xlane.xlu0 %14802 }
 0x6c5   : > { %v14998_v40 = vand.u32 4294901760, %v14997_v3  ;;  %v14901_v56 = vmul.f32 0.00011317338, %v14803_v9  ;;  %16970 = vmatpush3.bf16.msra.mxu1 %v16969_v36  ;;  %v14992_v35 = vsub.f32 %v14990_v21, %v14991_v8  ;;  %v16981_v63 = vpack.c.bf16 %v14997_v3, %v14990_v21 }
 0x6c6   : > { %16971 = vmatprep.subr.bf16.mxu1 %v17667_v52 }
 0x6c7   : > { %v14916_v15 = vand.u32 4294901760, %v14901_v56  ;;  %v14999_v0 = vsub.f32 %v14997_v3, %v14998_v40  ;;  %v14993_v7 = vand.u32 4294901760, %v14992_v35  ;;  %v16993_v30 = vpack.c.bf16 %v14998_v40, %v14991_v8 }
 0x6c8   : > { %v14898_v28 = vpop.xlane.xlu0 %14897 }
 0x6c9   : > { %v15004_v54 = vsub.f32 %v14901_v56, %v14916_v15  ;;  %v14902_v31 = vmul.f32 0.00011317338, %v14898_v28  ;;  %v15000_v5 = vand.u32 4294901760, %v14999_v0 }
 0x6cb   : > { %v15005_v2 = vand.u32 4294901760, %v15004_v54  ;;  %v14919_v34 = vand.u32 4294901760, %v14902_v31  ;;  %v16975_v44 = vpack.c.bf16 %v15000_v5, %v14993_v7 }
 0x6cd   : > { %v16972_v4 = vpack.c.bf16 %v14919_v34, %v14916_v15  ;;  %v15011_v20 = vsub.f32 %v14902_v31, %v14919_v34  ;;  %v15006_v43 = vsub.f32 %v15004_v54, %v15005_v2 }
 0x6cf   : > { %v15012_v37 = vand.u32 4294901760, %v15011_v20  ;;  %16973 = vmatpush3.bf16.msra.mxu1 %v16972_v4  ;;  %v15007_v24 = vand.u32 4294901760, %v15006_v43  ;;  %v16984_v14 = vpack.c.bf16 %v15011_v20, %v15004_v54 }
 0x6d0   : > { %16974 = vmatprep.subr.bf16.mxu1 %v17667_v52 }
 0x6d1   : > { %v15013_v50 = vsub.f32 %v15011_v20, %v15012_v37  ;;  %v16996_v53 = vpack.c.bf16 %v15012_v37, %v15005_v2 }
 0x6d2   : > { %16911 = vmatmul.mubr.f32.vlgmr.msra.gmra.mrb[184].mxu1 %v14982_v42 }
 0x6d3   : > { %v15014_v25 = vand.u32 4294901760, %v15013_v50  ;;  %16976 = vmatpush3.bf16.msra.mxu1 %v16975_v44  ;;  %16921 = vmatprep.mubr.msk.f32.mxu1 %vm17668_vm4, %v17669_v48 }
 0x6d4   : > { %16977 = vmatprep.subr.bf16.mxu1 %v17667_v52 }
 0x6d5   : > { %v16978_v51 = vpack.c.bf16 %v15014_v25, %v15007_v24 }
 0x6d7   : > { %16979 = vmatpush3.bf16.msra.mxu1 %v16978_v51 }
 0x6d8   : > { %16980 = vmatprep.subr.bf16.mxu1 %v17667_v52 }
 0x6da   : > { %16922 = vmatmul.mubr.f32.vlgmr.msra.gmra.mrb[184].mxu1 %v22326_v32 }
 0x6db   : > { %16982 = vmatpush3.bf16.msra.mxu1 %v16981_v63  ;;  %16932 = vmatprep.mubr.msk.f32.mxu1 %vm17668_vm4, %v17669_v48 }
 0x6dc   : > { %16983 = vmatprep.subr.bf16.mxu1 %v17667_v52 }
 0x6df   : > { %16985 = vmatpush3.bf16.msra.mxu1 %v16984_v14 }
 0x6e0   : > { %16986 = vmatprep.subr.bf16.mxu1 %v17667_v52 }
 0x6e2   : > { %16933 = vmatmul.mubr.f32.vlgmr.msra.gmra.mrb[184].mxu1 %v14979_v16 }
 0x6e3   : > { %16988 = vmatpush3.bf16.msra.mxu1 %v16969_v36  ;;  %16943 = vmatprep.mubr.msk.f32.mxu1 %vm17668_vm4, %v17669_v48 }
 0x6e4   : > { %16989 = vmatprep.subr.bf16.mxu1 %v17667_v52 }
 0x6e7   : > { %16991 = vmatpush3.bf16.msra.mxu1 %v16972_v4 }
 0x6e8   : > { %16992 = vmatprep.subr.bf16.mxu1 %v17667_v52 }
 0x6ea   : > { %16944 = vmatmul.mubr.f32.vlgmr.msra.gmra.mrb[184].mxu1 %v14980_v58 }
 0x6eb   : > { %16994 = vmatpush3.bf16.msra.mxu1 %v16993_v30  ;;  %16954 = vmatprep.mubr.msk.f32.mxu1 %vm17668_vm4, %v17669_v48 }
 0x6ec   : > { %16995 = vmatprep.subr.bf16.mxu1 %v17667_v52 }
 0x6ef   : > { %16997 = vmatpush3.bf16.msra.mxu1 %v16996_v53 }
 0x6f0   : > { %16998 = vmatprep.subr.bf16.mxu1 %v17667_v52 }
 0x6f2   : > { %16955 = vmatmul.mubr.f32.vlgmr.msra.gmra.mrb[184].mxu1 %v22326_v32 }
 0x6f3   : > { %17000 = vmatpush3.bf16.msra.mxu1 %v16969_v36  ;;  %16965 = vmatprep.mubr.msk.f32.mxu1 %vm17668_vm4, %v17669_v48 }
 0x6f4   : > { %17001 = vmatprep.subr.bf16.mxu1 %v17667_v52 }
 0x6f7   : > { %17003 = vmatpush3.bf16.msra.mxu1 %v16972_v4 }
 0x6fa   : > { %16966 = vmatmul.mubr.f32.vlgmr.msra.gmra.mrb[184].mxu1 %v22326_v32 }
 0x7cd   : > { %v15390_v19 = vpop.f32.mrb[184].mxu1 }
 0x7ce   : > { %v17004_v6 = vadd.f32 %v15390_v19, %v14904_v61  ;;  %v16967_v18 = vpop.f32.mrb[185].mxu1 }
 0x7d0   : > { %15395 = vst.msk [vmem:[%s222_s11] sm:$0x7] %vm15394_vm0, %v17004_v6 }
 0x7d1 PF: > { %s15_s18 = sadd.s32 1, %s17664_s18  }
 0x7d2   : > { %p12_p4 = scmp.ge.s32.totalorder %s15_s18, 4  }
 0x7d4   :  { %14 = sbr.rel (!%p12_p4) target bundleno = 1 (0x1), region = 70 }

</bundles_post_ra>
